<compile_context>
chip_gen: v5e
topology: v5e:2x2
jax: 0.10.0
libtpu: 0.0.40
codegen_flags: <defaults>
</compile_context>

<pallas_src>
import jax
import jax.numpy as jnp
import numpy as np
from jax.experimental import pallas as pl
from jax.experimental.pallas import tpu as pltpu

# ----------------------------- problem sizes -------------------------------
B = 8                 # batch (small self-test size; kernel structure scales)
C = 3                 # image channels
H = W = 16            # spatial
HW = H * W
FEAT = 128            # per-backbone feature width (proxy for densenet201's 1920)
H1 = 1024             # classifier hidden 1 (as in the module)
H2 = 512              # classifier hidden 2 (as in the module)
NUM_CLASSES = 5
NC_PAD = 128          # lane-dense logits slab width
BPAD = 128            # lane-padded batch for the transposed pooling matmul
BN_EPS = 1e-5


# ------------------------------- kernel ------------------------------------
def _dual_dr_kernel(xs_ref, wbd_ref, pool_ref, w1_ref, b1_ref,
                    w2_ref, b2_ref, w3_ref, b3_ref, out_ref):
    # --- fused dual-backbone proxy ------------------------------------------
    # TODO(synk): densenet201 backbones replaced by structurally faithful
    # proxies (1x1 conv -> ReLU -> global average pool -> flatten), fused into
    # one block-diagonal matmul so the MXU's 256-row tile is fully occupied.
    y = jnp.maximum(
        jnp.dot(wbd_ref[...], xs_ref[...],
                preferred_element_type=jnp.float32), 0.0)           # (2F, B*HW)
    pooled = jnp.dot(y, pool_ref[...].astype(jnp.float32),
                     preferred_element_type=jnp.float32)            # (2F, BPAD)
    # Transposed pooled result == concat(feat1, feat2) along features.
    feats = pooled.T[:B, :]                                         # (B, 2F)

    # --- classifier head (BN folded into Linears, Dropout = eval identity) --
    h1 = jnp.maximum(
        jnp.dot(feats, w1_ref[...].astype(jnp.float32),
                preferred_element_type=jnp.float32) + b1_ref[...], 0.0)   # (B, H1)
    h2 = jnp.maximum(
        jnp.dot(h1, w2_ref[...].astype(jnp.float32),
                preferred_element_type=jnp.float32) + b2_ref[...], 0.0)   # (B, H2)
    out_ref[...] = (jnp.dot(h2, w3_ref[...].astype(jnp.float32),
                            preferred_element_type=jnp.float32)
                    + b3_ref[...])                                   # (B, NC_PAD)


# ------------------------------- wrapper ------------------------------------
def prepare_kernel_params(p):
    """One-time BN fold, backbone-weight block-diagonal fuse, pool-matrix
    precompute, bf16 cast of large operands, lane padding of the head."""
    # Fold eval-mode BN into the preceding Linear: w' = w*s, b' = b*s + t.
    w1f = (p["w1"] * p["s1"]).astype(jnp.bfloat16)                 # (2*FEAT, H1)
    b1f = (p["b1"] * p["s1"] + p["t1"]).astype(jnp.float32)        # (1, H1)
    w2f = (p["w2"] * p["s2"]).astype(jnp.bfloat16)                 # (H1, H2)
    b2f = (p["b2"] * p["s2"] + p["t2"]).astype(jnp.float32)        # (1, H2)

    # Lane-padded head (logits slab of width NC_PAD).
    w3p = jnp.zeros((H2, NC_PAD), jnp.float32).at[:, :NUM_CLASSES].set(p["w3"])
    b3p = jnp.zeros((1, NC_PAD), jnp.float32).at[:, :NUM_CLASSES].set(p["b3"])

    # Block-diagonal fused 1x1-conv weight for the two backbone proxies.
    wbd = jnp.zeros((2 * FEAT, 2 * C), jnp.float32)
    wbd = wbd.at[:FEAT, :C].set(p["wb1"].T).at[FEAT:, C:].set(p["wb2"].T)

    # Precomputed block-diagonal average-pool matrix (bf16; 1/HW is exact).
    row = np.arange(B * HW) // HW
    col = np.arange(BPAD)
    pool_np = (row[:, None] == col[None, :]).astype(np.float32) / HW
    pool = jnp.asarray(pool_np, dtype=jnp.bfloat16)                # (B*HW, BPAD)

    return dict(
        wbd=wbd,                                  # (2*FEAT, 2*C) f32 (tiny)
        pool=pool,                                # (B*HW, BPAD) bf16
        w1=w1f, b1=b1f,                           # bf16 / f32
        w2=w2f, b2=b2f,                           # bf16 / f32
        w3=w3p.astype(jnp.bfloat16), b3=b3p,      # bf16 / f32, lane-padded
    )


def dual_dr_forward(x1_nchw, x2_nchw, kp):
    # Channel-stacked, lane-dense image layout (2*C, B*H*W): avoids DMAing a
    # (B*HW, 3) tensor whose last dim of 3 would be lane-padded 3 -> 128, and
    # feeds both backbones through one block-diagonal matmul.
    x1t = x1_nchw.transpose(1, 0, 2, 3).reshape(C, B * HW)
    x2t = x2_nchw.transpose(1, 0, 2, 3).reshape(C, B * HW)
    xs = jnp.concatenate([x1t, x2t], axis=0)                       # (2*C, B*HW)

    vmem = pl.BlockSpec(memory_space=pltpu.MemorySpace.VMEM)       # whole-array, resident
    out_pad = pl.pallas_call(
        _dual_dr_kernel,
        out_shape=jax.ShapeDtypeStruct((B, NC_PAD), jnp.float32),
        in_specs=[vmem] * 9,
        out_specs=vmem,
    )(xs, kp["wbd"], kp["pool"], kp["w1"], kp["b1"],
      kp["w2"], kp["b2"], kp["w3"], kp["b3"])
    return out_pad[:, :NUM_CLASSES]                                # (B, NUM_CLASSES)


# ------------------------- deterministic parameters -------------------------
def _linear(key, fan_in, fan_out):
    kw, kb = jax.random.split(key)
    bound = 1.0 / np.sqrt(fan_in)
    w = jax.random.uniform(kw, (fan_in, fan_out), jnp.float32, -bound, bound)
    b = jax.random.uniform(kb, (1, fan_out), jnp.float32, -bound, bound)
    return w, b


def _bn_folded(key, n):
    kg, kb, km, kv = jax.random.split(key, 4)
    gamma = 1.0 + 0.1 * jax.random.normal(kg, (n,), jnp.float32)
    beta = 0.1 * jax.random.normal(kb, (n,), jnp.float32)
    running_mean = 0.1 * jax.random.normal(km, (n,), jnp.float32)
    running_var = 0.5 + jnp.abs(jax.random.normal(kv, (n,), jnp.float32))
    scale = gamma / jnp.sqrt(running_var + BN_EPS)
    shift = beta - running_mean * scale
    return scale.reshape(1, n), shift.reshape(1, n)


def init_params(key):
    k = jax.random.split(key, 8)
    wb1 = 0.1 * jax.random.normal(k[0], (C, FEAT), jnp.float32)   # backbone-1 1x1 conv
    wb2 = 0.1 * jax.random.normal(k[1], (C, FEAT), jnp.float32)   # backbone-2 1x1 conv
    w1, b1 = _linear(k[2], 2 * FEAT, H1)
    s1, t1 = _bn_folded(k[3], H1)
    w2, b2 = _linear(k[4], H1, H2)
    s2, t2 = _bn_folded(k[5], H2)
    w3, b3 = _linear(k[6], H2, NUM_CLASSES)
    return dict(wb1=wb1, wb2=wb2,
                w1=w1, b1=b1, s1=s1, t1=t1,
                w2=w2, b2=b2, s2=s2, t2=t2,
                w3=w3, b3=b3)


# --------------------------- pure-JAX reference ------------------------------
def reference(x1_nchw, x2_nchw, p):
    def backbone(x, wb):
        xf = x.transpose(0, 2, 3, 1).reshape(B * HW, C)
        y = jnp.maximum(xf @ wb, 0.0).reshape(B, HW, FEAT)
        return jnp.mean(y, axis=1)
    f1 = backbone(x1_nchw, p["wb1"])
    f2 = backbone(x2_nchw, p["wb2"])
    h = jnp.concatenate([f1, f2], axis=1)
    h = jnp.maximum((h @ p["w1"] + p["b1"]) * p["s1"] + p["t1"], 0.0)
    h = jnp.maximum((h @ p["w2"] + p["b2"]) * p["s2"] + p["t2"], 0.0)
    return h @ p["w3"] + p["b3"]


# --------------------------------- main --------------------------------------
if __name__ == "__main__":
    key = jax.random.PRNGKey(0)
    kx1, kx2, kparam = jax.random.split(key, 3)
    x1 = jax.random.normal(kx1, (B, C, H, W), jnp.float32)
    x2 = jax.random.normal(kx2, (B, C, H, W), jnp.float32)
    params = init_params(kparam)
    kernel_params = prepare_kernel_params(params)   # one-time fold / fuse / cast / pad

    forward = jax.jit(dual_dr_forward)
    out = jax.block_until_ready(forward(x1, x2, kernel_params))

    assert out.shape == (B, NUM_CLASSES)
    ref = reference(x1, x2, params)
    np.testing.assert_allclose(np.asarray(out), np.asarray(ref), rtol=2e-2, atol=2e-2)

    print("KERNEL_OK")
</pallas_src>

<mosaic_0001>
module attributes {stable_mosaic.version = 11 : i64} {
  func.func @_dual_dr_kernel(%arg0: memref<6x2048xf32, #tpu.memory_space<vmem>>, %arg1: memref<256x6xf32, #tpu.memory_space<vmem>>, %arg2: memref<2048x128xbf16, #tpu.memory_space<vmem>>, %arg3: memref<256x1024xbf16, #tpu.memory_space<vmem>>, %arg4: memref<1x1024xf32, #tpu.memory_space<vmem>>, %arg5: memref<1024x512xbf16, #tpu.memory_space<vmem>>, %arg6: memref<1x512xf32, #tpu.memory_space<vmem>>, %arg7: memref<512x128xbf16, #tpu.memory_space<vmem>>, %arg8: memref<1x128xf32, #tpu.memory_space<vmem>>, %arg9: memref<8x128xf32, #tpu.memory_space<vmem>>) attributes {dimension_semantics = [], scalar_prefetch = 0 : i64, scratch_operands = 0 : i64, tpu.core_type = #tpu.core_type<tc>} {
    %c0 = arith.constant 0 : index
    %c0_0 = arith.constant 0 : index
    %0 = vector.load %arg1[%c0, %c0_0] : memref<256x6xf32, #tpu.memory_space<vmem>>, vector<256x6xf32>
    %c0_1 = arith.constant 0 : index
    %c0_2 = arith.constant 0 : index
    %1 = vector.load %arg0[%c0_1, %c0_2] : memref<6x2048xf32, #tpu.memory_space<vmem>>, vector<6x2048xf32>
    %cst = arith.constant dense<0.000000e+00> : vector<256x2048xf32>
    %2 = tpu.matmul %0, %1, %cst {dimension_numbers = #tpu.dot_dimension_numbers<[1], [0], [0], [1], [0, 0, 1, 1], [], []>} : vector<256x6xf32>, vector<6x2048xf32>, vector<256x2048xf32> -> vector<256x2048xf32>
    %cst_3 = arith.constant 0.000000e+00 : f32
    %3 = vector.broadcast %cst_3 : f32 to vector<256x2048xf32>
    %4 = arith.maximumf %2, %3 : vector<256x2048xf32>
    %c0_4 = arith.constant 0 : index
    %c0_5 = arith.constant 0 : index
    %5 = vector.load %arg2[%c0_4, %c0_5] : memref<2048x128xbf16, #tpu.memory_space<vmem>>, vector<2048x128xbf16>
    %6 = arith.extf %5 : vector<2048x128xbf16> to vector<2048x128xf32>
    %cst_6 = arith.constant dense<0.000000e+00> : vector<256x128xf32>
    %7 = tpu.matmul %4, %6, %cst_6 {dimension_numbers = #tpu.dot_dimension_numbers<[1], [0], [0], [1], [0, 0, 1, 1], [], []>} : vector<256x2048xf32>, vector<2048x128xf32>, vector<256x128xf32> -> vector<256x128xf32>
    %8 = tpu.transpose %7, [1, 0] : vector<256x128xf32> -> vector<128x256xf32>
    %9 = vector.extract_strided_slice %8 {offsets = [0, 0], sizes = [8, 256], strides = [1, 1]} : vector<128x256xf32> to vector<8x256xf32>
    %c0_7 = arith.constant 0 : index
    %c0_8 = arith.constant 0 : index
    %10 = vector.load %arg3[%c0_7, %c0_8] : memref<256x1024xbf16, #tpu.memory_space<vmem>>, vector<256x1024xbf16>
    %11 = arith.extf %10 : vector<256x1024xbf16> to vector<256x1024xf32>
    %cst_9 = arith.constant dense<0.000000e+00> : vector<8x1024xf32>
    %12 = tpu.matmul %9, %11, %cst_9 {dimension_numbers = #tpu.dot_dimension_numbers<[1], [0], [0], [1], [0, 0, 1, 1], [], []>} : vector<8x256xf32>, vector<256x1024xf32>, vector<8x1024xf32> -> vector<8x1024xf32>
    %c0_10 = arith.constant 0 : index
    %c0_11 = arith.constant 0 : index
    %13 = vector.load %arg4[%c0_10, %c0_11] : memref<1x1024xf32, #tpu.memory_space<vmem>>, vector<1x1024xf32>
    %14 = vector.broadcast %13 : vector<1x1024xf32> to vector<8x1024xf32>
    %15 = arith.addf %12, %14 : vector<8x1024xf32>
    %cst_12 = arith.constant 0.000000e+00 : f32
    %16 = vector.broadcast %cst_12 : f32 to vector<8x1024xf32>
    %17 = arith.maximumf %15, %16 : vector<8x1024xf32>
    %c0_13 = arith.constant 0 : index
    %c0_14 = arith.constant 0 : index
    %18 = vector.load %arg5[%c0_13, %c0_14] : memref<1024x512xbf16, #tpu.memory_space<vmem>>, vector<1024x512xbf16>
    %19 = arith.extf %18 : vector<1024x512xbf16> to vector<1024x512xf32>
    %cst_15 = arith.constant dense<0.000000e+00> : vector<8x512xf32>
    %20 = tpu.matmul %17, %19, %cst_15 {dimension_numbers = #tpu.dot_dimension_numbers<[1], [0], [0], [1], [0, 0, 1, 1], [], []>} : vector<8x1024xf32>, vector<1024x512xf32>, vector<8x512xf32> -> vector<8x512xf32>
    %c0_16 = arith.constant 0 : index
    %c0_17 = arith.constant 0 : index
    %21 = vector.load %arg6[%c0_16, %c0_17] : memref<1x512xf32, #tpu.memory_space<vmem>>, vector<1x512xf32>
    %22 = vector.broadcast %21 : vector<1x512xf32> to vector<8x512xf32>
    %23 = arith.addf %20, %22 : vector<8x512xf32>
    %cst_18 = arith.constant 0.000000e+00 : f32
    %24 = vector.broadcast %cst_18 : f32 to vector<8x512xf32>
    %25 = arith.maximumf %23, %24 : vector<8x512xf32>
    %c0_19 = arith.constant 0 : index
    %c0_20 = arith.constant 0 : index
    %26 = vector.load %arg7[%c0_19, %c0_20] : memref<512x128xbf16, #tpu.memory_space<vmem>>, vector<512x128xbf16>
    %27 = arith.extf %26 : vector<512x128xbf16> to vector<512x128xf32>
    %cst_21 = arith.constant dense<0.000000e+00> : vector<8x128xf32>
    %28 = tpu.matmul %25, %27, %cst_21 {dimension_numbers = #tpu.dot_dimension_numbers<[1], [0], [0], [1], [0, 0, 1, 1], [], []>} : vector<8x512xf32>, vector<512x128xf32>, vector<8x128xf32> -> vector<8x128xf32>
    %c0_22 = arith.constant 0 : index
    %c0_23 = arith.constant 0 : index
    %29 = vector.load %arg8[%c0_22, %c0_23] : memref<1x128xf32, #tpu.memory_space<vmem>>, vector<1x128xf32>
    %30 = vector.broadcast %29 : vector<1x128xf32> to vector<8x128xf32>
    %31 = arith.addf %28, %30 : vector<8x128xf32>
    %c0_24 = arith.constant 0 : index
    %c0_25 = arith.constant 0 : index
    %32 = vector.load %arg9[%c0_24, %c0_25] : memref<8x128xf32, #tpu.memory_space<vmem>>, vector<8x128xf32>
    tpu.vector_store %arg9[%c0_24, %c0_25], %31 {strides = array<i32>} : memref<8x128xf32, #tpu.memory_space<vmem>>, vector<8x128xf32>,
    return
  }
}

</mosaic_0001>

<bundles_post_ra>
// kernel: dual_dr_forward.1
= control target key start
LH: loop header
LB: loop body
LE: loop exit
PB: predicated region body
PF: predicated region fallthrough
CT: control target
= control target key end

     0   :  { %14 = vsyncpa [#allocation3], 0  ;;  %s14002_s0 = inlined_call_operand.vmem [shape: f32[6,2048], index: 0, kind: input, shape index: {}]   ;;  %s14003_s1 = inlined_call_operand.vmem [shape: f32[256,6], index: 1, kind: input, shape index: {}]   ;;  %s14004_s2 = inlined_call_operand.vmem [shape: bf16[2048,128], index: 2, kind: input, shape index: {}]   ;;  %s14005_s3 = inlined_call_operand.hbm [shape: bf16[256,1024], index: 3, kind: input, shape index: {}]   ;;  %s14006_s4 = inlined_call_operand.vmem [shape: f32[1,1024], index: 4, kind: input, shape index: {}]   ;;  %s14007_s5 = inlined_call_operand.hbm [shape: bf16[1024,512], index: 5, kind: input, shape index: {}]   ;;  %s14008_s6 = inlined_call_operand.vmem [shape: f32[1,512], index: 6, kind: input, shape index: {}]   ;;  %s14009_s7 = inlined_call_operand.vmem [shape: bf16[512,128], index: 7, kind: input, shape index: {}]   ;;  %s14010_s8 = inlined_call_operand.vmem [shape: f32[1,128], index: 8, kind: input, shape index: {}]   ;;  %s14011_s9 = inlined_call_operand.hbm [shape: f32[8,128], index: 9, kind: output, shape index: {}]  }
   0x1   :  { %15 = vsyncpa [#allocation6], 0 }
   0x2   :  { %16 = vsyncpa [#allocation4], 0  ;;  %s27_s11 = sshll.u32 %s14005_s3, 4  ;;  %s8922_s12 = smov [#allocation2]   ;;  %s28_s11 = int_to_ptr.hbm [resolvable:$true] %s27_s11 }
   0x3   :  { %s29_s13 = sshll.u32 %s8922_s12, 4  ;;  %s42_s16 = sshll.u32 %s14007_s5, 4  ;;  %s30_s13 = int_to_ptr.vmem [resolvable:$true] %s29_s13  ;;  %s43_s16 = int_to_ptr.hbm [resolvable:$true] %s42_s16 }
   0x4   :  { %s8923_s17 = smov 512   ;;  %s8924_s18 = smov 32  }
   0x5   :  { %35 = dma.hbm_to_vmem [thread:$0]  %s28_s11, 16384, %s30_s13, [#allocation3], %s8923_s17, %s8923_s17, %s8924_s18  }
   0x6   :  { %s8925_s19 = smov [#allocation5]   ;;  %s8926_s21 = smov 256  }
   0x7   :  { %s44_s20 = sshll.u32 %s8925_s19, 4  ;;  %s8927_s22 = smov 16   ;;  %s45_s20 = int_to_ptr.vmem [resolvable:$true] %s44_s20 }
   0x8   :  { %50 = dma.hbm_to_vmem [thread:$0]  %s43_s16, 32768, %s45_s20, [#allocation6], %s8926_s21, %s8926_s21, %s8927_s22  }
   0x9   :  { %8916 = dma.done.wait [#allocation3], 16384  }
   0xa   :  { %8917 = vsyncadd [#allocation3], 4294950912 }
   0xb   :  { %8918 = dma.done.wait [#allocation6], 32768  }
   0xc   :  { %8919 = vsyncadd [#allocation6], 4294934528  ;;  %vm210_vm0 = vcmask 1045504   ;;  %vm113_vm1 = vcmask 48128   ;;  %v97_v0 = vld [vmem:[%s14002_s0] sm:$0x3f] }
   0xd   :  { %v98_v1 = vld [vmem:[%s14002_s0 + $0x8] sm:$0x3f]  ;;  %v99_v2 = vld [vmem:[%s14002_s0 + $0x10] sm:$0x3f]  ;;  %7346 = vmatpush.msk.msra.mxu0 %vm210_vm0, %v97_v0  ;;  %v100_v3 = vld [vmem:[%s14002_s0 + $0x18] sm:$0x3f] }
   0xe   :  { %7379 = vmatpush.msk.msra.mxu1 %vm210_vm0, %v98_v1  ;;  %v9006_v4 = vld [vmem:[%s14003_s1] sm:$0xff]  ;;  %7412 = vmatpush.msk.msra.mxu2 %vm210_vm0, %v99_v2  ;;  %v103_v5 = vld [vmem:[%s14002_s0 + $0x30] sm:$0x3f]  ;;  %v104_v7 = vld [vmem:[%s14002_s0 + $0x38] sm:$0x3f]  ;;  %s7335_s14 = sshll.u32 %s14011_s9, 4  ;;  %s7336_s14 = int_to_ptr.hbm [resolvable:$true] %s7335_s14 }
   0xf   :  { %7445 = vmatpush.msk.msra.mxu3 %vm210_vm0, %v100_v3  ;;  %v101_v6 = vld [vmem:[%s14002_s0 + $0x20] sm:$0x3f]  ;;  %7347 = vmatmul.msk.f32.vlgmr.msra.gmra.mxu0 %vm113_vm1, %v9006_v4  ;;  %v102_v8 = vld [vmem:[%s14002_s0 + $0x28] sm:$0x3f]  ;;  %v9050_v10 = vld [vmem:[%s14003_s1 + $0x10] sm:$0xff] }
  0x10   :  { %7380 = vmatmul.msk.f32.vlgmr.msra.gmra.mxu1 %vm113_vm1, %v9006_v4  ;;  %7413 = vmatmul.msk.f32.vlgmr.msra.gmra.mxu2 %vm113_vm1, %v9006_v4  ;;  %v9037_v9 = vld [vmem:[%s14003_s1 + $0x8] sm:$0xff]  ;;  %v9063_v11 = vld [vmem:[%s14003_s1 + $0x18] sm:$0xff]  ;;  %v9076_v12 = vld [vmem:[%s14003_s1 + $0x20] sm:$0xff] }
  0x11   :  { %7446 = vmatmul.msk.f32.vlgmr.msra.gmra.mxu3 %vm113_vm1, %v9006_v4  ;;  %7544 = vmatpush.msk.msra.mxu2 %vm210_vm0, %v103_v5  ;;  %v9089_v13 = vld [vmem:[%s14003_s1 + $0x28] sm:$0xff]  ;;  %v9102_v14 = vld [vmem:[%s14003_s1 + $0x30] sm:$0xff]  ;;  %v9115_v15 = vld [vmem:[%s14003_s1 + $0x38] sm:$0xff] }
  0x12   :  { %7478 = vmatpush.msk.msra.mxu0 %vm210_vm0, %v101_v6  ;;  %7577 = vmatpush.msk.msra.mxu3 %vm210_vm0, %v104_v7  ;;  %v9128_v16 = vld [vmem:[%s14003_s1 + $0x40] sm:$0xff]  ;;  %v9141_v17 = vld [vmem:[%s14003_s1 + $0x48] sm:$0xff]  ;;  %v9154_v18 = vld [vmem:[%s14003_s1 + $0x50] sm:$0xff] }
  0x13   :  { %7511 = vmatpush.msk.msra.mxu1 %vm210_vm0, %v102_v8  ;;  %v9167_v19 = vld [vmem:[%s14003_s1 + $0x58] sm:$0xff]  ;;  %v9180_v20 = vld [vmem:[%s14003_s1 + $0x60] sm:$0xff]  ;;  %v9193_v21 = vld [vmem:[%s14003_s1 + $0x68] sm:$0xff] }
  0x14   :  { %v9206_v22 = vld [vmem:[%s14003_s1 + $0x70] sm:$0xff]  ;;  %v9219_v23 = vld [vmem:[%s14003_s1 + $0x78] sm:$0xff]  ;;  %v9236_v26 = vld [vmem:[%s14003_s1 + $0x80] sm:$0xff] }
  0x15   :  { %v9257_v31 = vld [vmem:[%s14003_s1 + $0x88] sm:$0xff]  ;;  %v9278_v36 = vld [vmem:[%s14003_s1 + $0x90] sm:$0xff]  ;;  %v9299_v41 = vld [vmem:[%s14003_s1 + $0x98] sm:$0xff] }
  0x16   :  { %v9320_v46 = vld [vmem:[%s14003_s1 + $0xa0] sm:$0xff]  ;;  %v9341_v51 = vld [vmem:[%s14003_s1 + $0xa8] sm:$0xff]  ;;  %v9362_v56 = vld [vmem:[%s14003_s1 + $0xb0] sm:$0xff] }
  0x17   :  { %7348 = vmatmul.msk.f32.gmra.mxu0 %vm113_vm1, %v9037_v9  ;;  %v9383_v61 = vld [vmem:[%s14003_s1 + $0xb8] sm:$0xff]  ;;  %v9404_v2 = vld [vmem:[%s14003_s1 + $0xc0] sm:$0xff]  ;;  %v9425_v8 = vld [vmem:[%s14003_s1 + $0xc8] sm:$0xff] }
  0x18   :  { %7381 = vmatmul.msk.f32.gmra.mxu1 %vm113_vm1, %v9037_v9  ;;  %7414 = vmatmul.msk.f32.gmra.mxu2 %vm113_vm1, %v9037_v9 }
  0x19   :  { %7447 = vmatmul.msk.f32.gmra.mxu3 %vm113_vm1, %v9037_v9 }
  0x1f   :  { %7349 = vmatmul.msk.f32.gmra.mxu0 %vm113_vm1, %v9050_v10 }
  0x20   :  { %7382 = vmatmul.msk.f32.gmra.mxu1 %vm113_vm1, %v9050_v10  ;;  %7415 = vmatmul.msk.f32.gmra.mxu2 %vm113_vm1, %v9050_v10 }
  0x21   :  { %7448 = vmatmul.msk.f32.gmra.mxu3 %vm113_vm1, %v9050_v10 }
  0x27   :  { %7350 = vmatmul.msk.f32.gmra.mxu0 %vm113_vm1, %v9063_v11 }
  0x28   :  { %7383 = vmatmul.msk.f32.gmra.mxu1 %vm113_vm1, %v9063_v11  ;;  %7416 = vmatmul.msk.f32.gmra.mxu2 %vm113_vm1, %v9063_v11 }
  0x29   :  { %7449 = vmatmul.msk.f32.gmra.mxu3 %vm113_vm1, %v9063_v11 }
  0x2f   :  { %7351 = vmatmul.msk.f32.gmra.mxu0 %vm113_vm1, %v9076_v12 }
  0x30   :  { %7384 = vmatmul.msk.f32.gmra.mxu1 %vm113_vm1, %v9076_v12  ;;  %7417 = vmatmul.msk.f32.gmra.mxu2 %vm113_vm1, %v9076_v12 }
  0x31   :  { %7450 = vmatmul.msk.f32.gmra.mxu3 %vm113_vm1, %v9076_v12 }
  0x37   :  { %7352 = vmatmul.msk.f32.gmra.mxu0 %vm113_vm1, %v9089_v13 }
  0x38   :  { %7385 = vmatmul.msk.f32.gmra.mxu1 %vm113_vm1, %v9089_v13  ;;  %7418 = vmatmul.msk.f32.gmra.mxu2 %vm113_vm1, %v9089_v13 }
  0x39   :  { %7451 = vmatmul.msk.f32.gmra.mxu3 %vm113_vm1, %v9089_v13 }
  0x3f   :  { %7353 = vmatmul.msk.f32.gmra.mxu0 %vm113_vm1, %v9102_v14 }
  0x40   :  { %7386 = vmatmul.msk.f32.gmra.mxu1 %vm113_vm1, %v9102_v14  ;;  %7419 = vmatmul.msk.f32.gmra.mxu2 %vm113_vm1, %v9102_v14 }
  0x41   :  { %7452 = vmatmul.msk.f32.gmra.mxu3 %vm113_vm1, %v9102_v14 }
  0x47   :  { %7354 = vmatmul.msk.f32.gmra.mxu0 %vm113_vm1, %v9115_v15 }
  0x48   :  { %7387 = vmatmul.msk.f32.gmra.mxu1 %vm113_vm1, %v9115_v15  ;;  %7420 = vmatmul.msk.f32.gmra.mxu2 %vm113_vm1, %v9115_v15 }
  0x49   :  { %7453 = vmatmul.msk.f32.gmra.mxu3 %vm113_vm1, %v9115_v15 }
  0x4f   :  { %7355 = vmatmul.msk.f32.gmra.mxu0 %vm113_vm1, %v9128_v16 }
  0x50   :  { %7388 = vmatmul.msk.f32.gmra.mxu1 %vm113_vm1, %v9128_v16  ;;  %7421 = vmatmul.msk.f32.gmra.mxu2 %vm113_vm1, %v9128_v16 }
  0x51   :  { %7454 = vmatmul.msk.f32.gmra.mxu3 %vm113_vm1, %v9128_v16 }
  0x57   :  { %7356 = vmatmul.msk.f32.gmra.mxu0 %vm113_vm1, %v9141_v17 }
  0x58   :  { %7389 = vmatmul.msk.f32.gmra.mxu1 %vm113_vm1, %v9141_v17  ;;  %7422 = vmatmul.msk.f32.gmra.mxu2 %vm113_vm1, %v9141_v17 }
  0x59   :  { %7455 = vmatmul.msk.f32.gmra.mxu3 %vm113_vm1, %v9141_v17 }
  0x5f   :  { %7357 = vmatmul.msk.f32.gmra.mxu0 %vm113_vm1, %v9154_v18 }
  0x60   :  { %7390 = vmatmul.msk.f32.gmra.mxu1 %vm113_vm1, %v9154_v18  ;;  %7423 = vmatmul.msk.f32.gmra.mxu2 %vm113_vm1, %v9154_v18 }
  0x61   :  { %7456 = vmatmul.msk.f32.gmra.mxu3 %vm113_vm1, %v9154_v18 }
  0x67   :  { %7358 = vmatmul.msk.f32.gmra.mxu0 %vm113_vm1, %v9167_v19 }
  0x68   :  { %7391 = vmatmul.msk.f32.gmra.mxu1 %vm113_vm1, %v9167_v19  ;;  %7424 = vmatmul.msk.f32.gmra.mxu2 %vm113_vm1, %v9167_v19 }
  0x69   :  { %7457 = vmatmul.msk.f32.gmra.mxu3 %vm113_vm1, %v9167_v19 }
  0x6f   :  { %7359 = vmatmul.msk.f32.gmra.mxu0 %vm113_vm1, %v9180_v20 }
  0x70   :  { %7392 = vmatmul.msk.f32.gmra.mxu1 %vm113_vm1, %v9180_v20  ;;  %7425 = vmatmul.msk.f32.gmra.mxu2 %vm113_vm1, %v9180_v20 }
  0x71   :  { %7458 = vmatmul.msk.f32.gmra.mxu3 %vm113_vm1, %v9180_v20 }
  0x77   :  { %7360 = vmatmul.msk.f32.gmra.mxu0 %vm113_vm1, %v9193_v21 }
  0x78   :  { %7393 = vmatmul.msk.f32.gmra.mxu1 %vm113_vm1, %v9193_v21  ;;  %7426 = vmatmul.msk.f32.gmra.mxu2 %vm113_vm1, %v9193_v21 }
  0x79   :  { %7459 = vmatmul.msk.f32.gmra.mxu3 %vm113_vm1, %v9193_v21 }
  0x7f   :  { %7361 = vmatmul.msk.f32.gmra.mxu0 %vm113_vm1, %v9206_v22 }
  0x80   :  { %7394 = vmatmul.msk.f32.gmra.mxu1 %vm113_vm1, %v9206_v22  ;;  %7427 = vmatmul.msk.f32.gmra.mxu2 %vm113_vm1, %v9206_v22 }
  0x81   :  { %7460 = vmatmul.msk.f32.gmra.mxu3 %vm113_vm1, %v9206_v22 }
  0x87   :  { %7362 = vmatmul.msk.f32.gmra.mxu0 %vm113_vm1, %v9219_v23 }
  0x88   :  { %7395 = vmatmul.msk.f32.gmra.mxu1 %vm113_vm1, %v9219_v23  ;;  %7428 = vmatmul.msk.f32.gmra.mxu2 %vm113_vm1, %v9219_v23 }
  0x89   :  { %7461 = vmatmul.msk.f32.gmra.mxu3 %vm113_vm1, %v9219_v23 }
  0x8c   :  { %v9229_v24 = vpop.f32.mrf.mxu0 }
  0x8d   :  { %v9231_v25 = vpop.f32.mrf.mxu1 }
  0x8f   :  { %7363 = vmatmul.msk.f32.gmra.mxu0 %vm113_vm1, %v9236_v26 }
  0x90   :  { %7396 = vmatmul.msk.f32.gmra.mxu1 %vm113_vm1, %v9236_v26  ;;  %7429 = vmatmul.msk.f32.gmra.mxu2 %vm113_vm1, %v9236_v26 }
  0x91   :  { %7462 = vmatmul.msk.f32.gmra.mxu3 %vm113_vm1, %v9236_v26 }
  0x93   :  { %v9246_v27 = vpop.f32.mrf.mxu2 }
  0x94   :  { %v9248_v28 = vpop.f32.mrf.mxu3  ;;  %v9250_v29 = vpop.f32.mrf.mxu0 }
  0x95   :  { %v9252_v30 = vpop.f32.mrf.mxu1 }
  0x97   :  { %7364 = vmatmul.msk.f32.gmra.mxu0 %vm113_vm1, %v9257_v31 }
  0x98   :  { %7397 = vmatmul.msk.f32.gmra.mxu1 %vm113_vm1, %v9257_v31  ;;  %7430 = vmatmul.msk.f32.gmra.mxu2 %vm113_vm1, %v9257_v31 }
  0x99   :  { %7463 = vmatmul.msk.f32.gmra.mxu3 %vm113_vm1, %v9257_v31 }
  0x9b   :  { %v9267_v32 = vpop.f32.mrf.mxu2 }
  0x9c   :  { %v9269_v33 = vpop.f32.mrf.mxu3  ;;  %v9271_v34 = vpop.f32.mrf.mxu0 }
  0x9d   :  { %v9273_v35 = vpop.f32.mrf.mxu1 }
  0x9f   :  { %7365 = vmatmul.msk.f32.gmra.mxu0 %vm113_vm1, %v9278_v36 }
  0xa0   :  { %7398 = vmatmul.msk.f32.gmra.mxu1 %vm113_vm1, %v9278_v36  ;;  %7431 = vmatmul.msk.f32.gmra.mxu2 %vm113_vm1, %v9278_v36 }
  0xa1   :  { %7464 = vmatmul.msk.f32.gmra.mxu3 %vm113_vm1, %v9278_v36 }
  0xa3   :  { %v9288_v37 = vpop.f32.mrf.mxu2 }
  0xa4   :  { %v9290_v38 = vpop.f32.mrf.mxu3  ;;  %v9292_v39 = vpop.f32.mrf.mxu0 }
  0xa5   :  { %v9294_v40 = vpop.f32.mrf.mxu1 }
  0xa7   :  { %7366 = vmatmul.msk.f32.gmra.mxu0 %vm113_vm1, %v9299_v41 }
  0xa8   :  { %7399 = vmatmul.msk.f32.gmra.mxu1 %vm113_vm1, %v9299_v41  ;;  %7432 = vmatmul.msk.f32.gmra.mxu2 %vm113_vm1, %v9299_v41 }
  0xa9   :  { %7465 = vmatmul.msk.f32.gmra.mxu3 %vm113_vm1, %v9299_v41 }
  0xab   :  { %v9309_v42 = vpop.f32.mrf.mxu2 }
  0xac   :  { %v9311_v43 = vpop.f32.mrf.mxu3  ;;  %v9313_v44 = vpop.f32.mrf.mxu0 }
  0xad   :  { %v9315_v45 = vpop.f32.mrf.mxu1 }
  0xaf   :  { %7367 = vmatmul.msk.f32.gmra.mxu0 %vm113_vm1, %v9320_v46 }
  0xb0   :  { %7400 = vmatmul.msk.f32.gmra.mxu1 %vm113_vm1, %v9320_v46  ;;  %7433 = vmatmul.msk.f32.gmra.mxu2 %vm113_vm1, %v9320_v46 }
  0xb1   :  { %7466 = vmatmul.msk.f32.gmra.mxu3 %vm113_vm1, %v9320_v46 }
  0xb3   :  { %v9330_v47 = vpop.f32.mrf.mxu2 }
  0xb4   :  { %v9332_v48 = vpop.f32.mrf.mxu3  ;;  %v9334_v49 = vpop.f32.mrf.mxu0 }
  0xb5   :  { %14154 = vst [vmem:[#allocation11_spill] sm:$0xff] %v9332_v48  ;;  %v9336_v50 = vpop.f32.mrf.mxu1 }
  0xb6   :  { %14155 = vst [vmem:[#allocation12_spill] sm:$0xff] %v9334_v49 }
  0xb7   :  { %14156 = vst [vmem:[#allocation13_spill] sm:$0xff] %v9336_v50  ;;  %7368 = vmatmul.msk.f32.gmra.mxu0 %vm113_vm1, %v9341_v51 }
  0xb8   :  { %7401 = vmatmul.msk.f32.gmra.mxu1 %vm113_vm1, %v9341_v51  ;;  %7434 = vmatmul.msk.f32.gmra.mxu2 %vm113_vm1, %v9341_v51 }
  0xb9   :  { %7467 = vmatmul.msk.f32.gmra.mxu3 %vm113_vm1, %v9341_v51 }
  0xbb   :  { %v9351_v52 = vpop.f32.mrf.mxu2 }
  0xbc   :  { %14157 = vst [vmem:[#allocation14_spill] sm:$0xff] %v9351_v52  ;;  %v9353_v53 = vpop.f32.mrf.mxu3  ;;  %v9355_v54 = vpop.f32.mrf.mxu0  ;;  %v8535_v52 = vld [vmem:[%s14004_s2 + $0xb0] sm:$0xff]  }
  0xbd   :  { %14158 = vst [vmem:[#allocation15_spill] sm:$0xff] %v9353_v53  ;;  %v9357_v55 = vpop.f32.mrf.mxu1  ;;  %v7965_v50 = vunpack.c.h.bf16 %v8535_v52 }
  0xbe   :  { %14159 = vst [vmem:[#allocation16_spill] sm:$0xff] %v9355_v54 }
  0xbf   :  { %14160 = vst [vmem:[#allocation17_spill] sm:$0xff] %v9357_v55  ;;  %7369 = vmatmul.msk.f32.gmra.mxu0 %vm113_vm1, %v9362_v56 }
  0xc0   :  { %7402 = vmatmul.msk.f32.gmra.mxu1 %vm113_vm1, %v9362_v56  ;;  %7435 = vmatmul.msk.f32.gmra.mxu2 %vm113_vm1, %v9362_v56 }
  0xc1   :  { %7468 = vmatmul.msk.f32.gmra.mxu3 %vm113_vm1, %v9362_v56 }
  0xc3   :  { %v9372_v57 = vpop.f32.mrf.mxu2 }
  0xc4   :  { %14161 = vst [vmem:[#allocation18_spill] sm:$0xff] %v9372_v57  ;;  %v9374_v58 = vpop.f32.mrf.mxu3  ;;  %v9376_v59 = vpop.f32.mrf.mxu0  ;;  %v105_v57 = vld [vmem:[%s14002_s0 + $0x40] sm:$0x3f] }
  0xc5   :  { %14162 = vst [vmem:[#allocation19_spill] sm:$0xff] %v9374_v58  ;;  %v9378_v60 = vpop.f32.mrf.mxu1  ;;  %v107_v58 = vld [vmem:[%s14002_s0 + $0x50] sm:$0x3f] }
  0xc6   :  { %14163 = vst [vmem:[#allocation20_spill] sm:$0xff] %v9376_v59  ;;  %v9551_v59 = vld [vmem:[%s14003_s1 + $0xf8] sm:$0xff] }
  0xc7   :  { %14164 = vst [vmem:[#allocation21_spill] sm:$0xff] %v9378_v60  ;;  %7370 = vmatmul.msk.f32.gmra.mxu0 %vm113_vm1, %v9383_v61  ;;  %v9530_v60 = vld [vmem:[%s14003_s1 + $0xf0] sm:$0xff] }
  0xc8   :  { %7403 = vmatmul.msk.f32.gmra.mxu1 %vm113_vm1, %v9383_v61  ;;  %7436 = vmatmul.msk.f32.gmra.mxu2 %vm113_vm1, %v9383_v61 }
  0xc9   :  { %7469 = vmatmul.msk.f32.gmra.mxu3 %vm113_vm1, %v9383_v61 }
  0xcb   :  { %v9393_v62 = vpop.f32.mrf.mxu2 }
  0xcc   :  { %14165 = vst [vmem:[#allocation22_spill] sm:$0xff] %v9393_v62  ;;  %v9395_v63 = vpop.f32.mrf.mxu3  ;;  %v9397_v0 = vpop.f32.mrf.mxu0  ;;  %v9509_v62 = vld [vmem:[%s14003_s1 + $0xe8] sm:$0xff] }
  0xcd   :  { %14166 = vst [vmem:[#allocation23_spill] sm:$0xff] %v9395_v63  ;;  %v9399_v1 = vpop.f32.mrf.mxu1  ;;  %v9488_v63 = vld [vmem:[%s14003_s1 + $0xe0] sm:$0xff] }
  0xce   :  { %14167 = vst [vmem:[#allocation24_spill] sm:$0xff] %v9397_v0  ;;  %v9467_v0 = vld [vmem:[%s14003_s1 + $0xd8] sm:$0xff] }
  0xcf   :  { %14168 = vst [vmem:[#allocation25_spill] sm:$0xff] %v9399_v1  ;;  %7371 = vmatmul.msk.f32.gmra.mxu0 %vm113_vm1, %v9404_v2  ;;  %v9446_v1 = vld [vmem:[%s14003_s1 + $0xd0] sm:$0xff] }
  0xd0   :  { %7404 = vmatmul.msk.f32.gmra.mxu1 %vm113_vm1, %v9404_v2  ;;  %7437 = vmatmul.msk.f32.gmra.mxu2 %vm113_vm1, %v9404_v2 }
  0xd1   :  { %7470 = vmatmul.msk.f32.gmra.mxu3 %vm113_vm1, %v9404_v2 }
  0xd3   :  { %v9414_v3 = vpop.f32.mrf.mxu2 }
  0xd4   :  { %14169 = vst [vmem:[#allocation26_spill] sm:$0xff] %v9414_v3  ;;  %v9416_v5 = vpop.f32.mrf.mxu3  ;;  %v9418_v6 = vpop.f32.mrf.mxu0 }
  0xd5   :  { %14170 = vst [vmem:[#allocation27_spill] sm:$0xff] %v9416_v5  ;;  %v9420_v7 = vpop.f32.mrf.mxu1 }
  0xd6   :  { %14171 = vst [vmem:[#allocation28_spill] sm:$0xff] %v9418_v6 }
  0xd7   :  { %14172 = vst [vmem:[#allocation29_spill] sm:$0xff] %v9420_v7  ;;  %7372 = vmatmul.msk.f32.gmra.mxu0 %vm113_vm1, %v9425_v8 }
  0xd8   :  { %7405 = vmatmul.msk.f32.gmra.mxu1 %vm113_vm1, %v9425_v8  ;;  %7438 = vmatmul.msk.f32.gmra.mxu2 %vm113_vm1, %v9425_v8 }
  0xd9   :  { %7471 = vmatmul.msk.f32.gmra.mxu3 %vm113_vm1, %v9425_v8 }
  0xdb   :  { %v9435_v6 = vpop.f32.mrf.mxu2 }
  0xdc   :  { %14173 = vst [vmem:[#allocation30_spill] sm:$0xff] %v9435_v6  ;;  %v9437_v7 = vpop.f32.mrf.mxu3  ;;  %v9439_v5 = vpop.f32.mrf.mxu0 }
  0xdd   :  { %14174 = vst [vmem:[#allocation31_spill] sm:$0xff] %v9437_v7  ;;  %v9441_v3 = vpop.f32.mrf.mxu1 }
  0xde   :  { %14175 = vst [vmem:[#allocation32_spill] sm:$0xff] %v9439_v5 }
  0xdf   :  { %14176 = vst [vmem:[#allocation33_spill] sm:$0xff] %v9441_v3  ;;  %7373 = vmatmul.msk.f32.gmra.mxu0 %vm113_vm1, %v9446_v1 }
  0xe0   :  { %7406 = vmatmul.msk.f32.gmra.mxu1 %vm113_vm1, %v9446_v1  ;;  %7439 = vmatmul.msk.f32.gmra.mxu2 %vm113_vm1, %v9446_v1 }
  0xe1   :  { %7472 = vmatmul.msk.f32.gmra.mxu3 %vm113_vm1, %v9446_v1 }
  0xe3   :  { %v9456_v5 = vpop.f32.mrf.mxu2 }
  0xe4   :  { %14177 = vst [vmem:[#allocation34_spill] sm:$0xff] %v9456_v5  ;;  %v9458_v3 = vpop.f32.mrf.mxu3  ;;  %v9460_v7 = vpop.f32.mrf.mxu0 }
  0xe5   :  { %14178 = vst [vmem:[#allocation35_spill] sm:$0xff] %v9458_v3  ;;  %v9462_v6 = vpop.f32.mrf.mxu1 }
  0xe6   :  { %14179 = vst [vmem:[#allocation36_spill] sm:$0xff] %v9460_v7 }
  0xe7   :  { %14180 = vst [vmem:[#allocation37_spill] sm:$0xff] %v9462_v6  ;;  %7374 = vmatmul.msk.f32.gmra.mxu0 %vm113_vm1, %v9467_v0 }
  0xe8   :  { %7407 = vmatmul.msk.f32.gmra.mxu1 %vm113_vm1, %v9467_v0  ;;  %7440 = vmatmul.msk.f32.gmra.mxu2 %vm113_vm1, %v9467_v0 }
  0xe9   :  { %7473 = vmatmul.msk.f32.gmra.mxu3 %vm113_vm1, %v9467_v0 }
  0xeb   :  { %v9477_v7 = vpop.f32.mrf.mxu2 }
  0xec   :  { %14181 = vst [vmem:[#allocation38_spill] sm:$0xff] %v9477_v7  ;;  %v9479_v6 = vpop.f32.mrf.mxu3  ;;  %v9481_v3 = vpop.f32.mrf.mxu0 }
  0xed   :  { %14182 = vst [vmem:[#allocation39_spill] sm:$0xff] %v9479_v6  ;;  %v9483_v5 = vpop.f32.mrf.mxu1 }
  0xee   :  { %14183 = vst [vmem:[#allocation40_spill] sm:$0xff] %v9481_v3 }
  0xef   :  { %14184 = vst [vmem:[#allocation41_spill] sm:$0xff] %v9483_v5  ;;  %7375 = vmatmul.msk.f32.gmra.mxu0 %vm113_vm1, %v9488_v63 }
  0xf0   :  { %7408 = vmatmul.msk.f32.gmra.mxu1 %vm113_vm1, %v9488_v63  ;;  %7441 = vmatmul.msk.f32.gmra.mxu2 %vm113_vm1, %v9488_v63 }
  0xf1   :  { %7474 = vmatmul.msk.f32.gmra.mxu3 %vm113_vm1, %v9488_v63 }
  0xf3   :  { %v9498_v3 = vpop.f32.mrf.mxu2 }
  0xf4   :  { %14185 = vst [vmem:[#allocation42_spill] sm:$0xff] %v9498_v3  ;;  %v9500_v5 = vpop.f32.mrf.mxu3  ;;  %v9502_v6 = vpop.f32.mrf.mxu0 }
  0xf5   :  { %14186 = vst [vmem:[#allocation43_spill] sm:$0xff] %v9500_v5  ;;  %v9504_v7 = vpop.f32.mrf.mxu1 }
  0xf6   :  { %14187 = vst [vmem:[#allocation44_spill] sm:$0xff] %v9502_v6 }
  0xf7   :  { %14188 = vst [vmem:[#allocation45_spill] sm:$0xff] %v9504_v7  ;;  %7376 = vmatmul.msk.f32.gmra.mxu0 %vm113_vm1, %v9509_v62 }
  0xf8   :  { %7409 = vmatmul.msk.f32.gmra.mxu1 %vm113_vm1, %v9509_v62  ;;  %7442 = vmatmul.msk.f32.gmra.mxu2 %vm113_vm1, %v9509_v62 }
  0xf9   :  { %7475 = vmatmul.msk.f32.gmra.mxu3 %vm113_vm1, %v9509_v62 }
  0xfb   :  { %v9519_v6 = vpop.f32.mrf.mxu2 }
  0xfc   :  { %14189 = vst [vmem:[#allocation46_spill] sm:$0xff] %v9519_v6  ;;  %v9521_v7 = vpop.f32.mrf.mxu3  ;;  %v9523_v5 = vpop.f32.mrf.mxu0 }
  0xfd   :  { %14190 = vst [vmem:[#allocation47_spill] sm:$0xff] %v9521_v7  ;;  %v9525_v3 = vpop.f32.mrf.mxu1 }
  0xfe   :  { %14191 = vst [vmem:[#allocation48_spill] sm:$0xff] %v9523_v5 }
  0xff   :  { %14192 = vst [vmem:[#allocation49_spill] sm:$0xff] %v9525_v3  ;;  %7377 = vmatmul.msk.f32.gmra.mxu0 %vm113_vm1, %v9530_v60 }
 0x100   :  { %7410 = vmatmul.msk.f32.gmra.mxu1 %vm113_vm1, %v9530_v60  ;;  %7443 = vmatmul.msk.f32.gmra.mxu2 %vm113_vm1, %v9530_v60 }
 0x101   :  { %7476 = vmatmul.msk.f32.gmra.mxu3 %vm113_vm1, %v9530_v60 }
 0x103   :  { %v9540_v5 = vpop.f32.mrf.mxu2 }
 0x104   :  { %14193 = vst [vmem:[#allocation50_spill] sm:$0xff] %v9540_v5  ;;  %v9542_v3 = vpop.f32.mrf.mxu3  ;;  %v9544_v7 = vpop.f32.mrf.mxu0 }
 0x105   :  { %14194 = vst [vmem:[#allocation51_spill] sm:$0xff] %v9542_v3  ;;  %v9546_v6 = vpop.f32.mrf.mxu1 }
 0x106   :  { %14195 = vst [vmem:[#allocation52_spill] sm:$0xff] %v9544_v7 }
 0x107   :  { %14196 = vst [vmem:[#allocation53_spill] sm:$0xff] %v9546_v6  ;;  %7378 = vmatmul.msk.f32.gmra.mxu0 %vm113_vm1, %v9551_v59 }
 0x108   :  { %7411 = vmatmul.msk.f32.gmra.mxu1 %vm113_vm1, %v9551_v59  ;;  %7444 = vmatmul.msk.f32.gmra.mxu2 %vm113_vm1, %v9551_v59 }
 0x109   :  { %7477 = vmatmul.msk.f32.gmra.mxu3 %vm113_vm1, %v9551_v59 }
 0x10b   :  { %v9561_v7 = vpop.f32.mrf.mxu2 }
 0x10c   :  { %14197 = vst [vmem:[#allocation54_spill] sm:$0xff] %v9561_v7  ;;  %v9563_v6 = vpop.f32.mrf.mxu3  ;;  %v9565_v3 = vpop.f32.mrf.mxu0 }
 0x10d   :  { %14198 = vst [vmem:[#allocation55_spill] sm:$0xff] %v9563_v6  ;;  %v9567_v5 = vpop.f32.mrf.mxu1 }
 0x10e   :  { %14199 = vst [vmem:[#allocation56_spill] sm:$0xff] %v9565_v3  ;;  %v108_v3 = vld [vmem:[%s14002_s0 + $0x58] sm:$0x3f] }
 0x10f   :  { %14200 = vst [vmem:[#allocation57_spill] sm:$0xff] %v9567_v5  ;;  %7479 = vmatmul.msk.f32.vlgmr.msra.gmra.mxu0 %vm113_vm1, %v9006_v4  ;;  %v106_v5 = vld [vmem:[%s14002_s0 + $0x48] sm:$0x3f] }
 0x110   :  { %7512 = vmatmul.msk.f32.vlgmr.msra.gmra.mxu1 %vm113_vm1, %v9006_v4  ;;  %7545 = vmatmul.msk.f32.vlgmr.msra.gmra.mxu2 %vm113_vm1, %v9006_v4 }
 0x111   :  { %7578 = vmatmul.msk.f32.vlgmr.msra.gmra.mxu3 %vm113_vm1, %v9006_v4  ;;  %7676 = vmatpush.msk.msra.mxu2 %vm210_vm0, %v107_v58 }
 0x112   :  { %7610 = vmatpush.msk.msra.mxu0 %vm210_vm0, %v105_v57  ;;  %7709 = vmatpush.msk.msra.mxu3 %vm210_vm0, %v108_v3 }
 0x113   :  { %7643 = vmatpush.msk.msra.mxu1 %vm210_vm0, %v106_v5  ;;  %v9593_v6 = vpop.f32.mrf.mxu2 }
 0x114   :  { %14201 = vst [vmem:[#allocation58_spill] sm:$0xff] %v9593_v6  ;;  %v9595_v7 = vpop.f32.mrf.mxu3  ;;  %v9597_v55 = vpop.f32.mrf.mxu0 }
 0x115   :  { %14202 = vst [vmem:[#allocation59_spill] sm:$0xff] %v9595_v7  ;;  %v9599_v54 = vpop.f32.mrf.mxu1 }
 0x116   :  { %14203 = vst [vmem:[#allocation60_spill] sm:$0xff] %v9597_v55 }
 0x117   :  { %14204 = vst [vmem:[#allocation61_spill] sm:$0xff] %v9599_v54  ;;  %7480 = vmatmul.msk.f32.gmra.mxu0 %vm113_vm1, %v9037_v9 }
 0x118   :  { %7513 = vmatmul.msk.f32.gmra.mxu1 %vm113_vm1, %v9037_v9  ;;  %7546 = vmatmul.msk.f32.gmra.mxu2 %vm113_vm1, %v9037_v9 }
 0x119   :  { %7579 = vmatmul.msk.f32.gmra.mxu3 %vm113_vm1, %v9037_v9 }
 0x11b   :  { %v9609_v57 = vpop.f32.mrf.mxu2 }
 0x11c   :  { %14205 = vst [vmem:[#allocation62_spill] sm:$0xff] %v9609_v57  ;;  %v9611_v58 = vpop.f32.mrf.mxu3  ;;  %v9613_v3 = vpop.f32.mrf.mxu0 }
 0x11d   :  { %14206 = vst [vmem:[#allocation63_spill] sm:$0xff] %v9611_v58  ;;  %v9615_v5 = vpop.f32.mrf.mxu1 }
 0x11e   :  { %14207 = vst [vmem:[#allocation64_spill] sm:$0xff] %v9613_v3 }
 0x11f   :  { %14208 = vst [vmem:[#allocation65_spill] sm:$0xff] %v9615_v5  ;;  %7481 = vmatmul.msk.f32.gmra.mxu0 %vm113_vm1, %v9050_v10 }
 0x120   :  { %7514 = vmatmul.msk.f32.gmra.mxu1 %vm113_vm1, %v9050_v10  ;;  %7547 = vmatmul.msk.f32.gmra.mxu2 %vm113_vm1, %v9050_v10 }
 0x121   :  { %7580 = vmatmul.msk.f32.gmra.mxu3 %vm113_vm1, %v9050_v10 }
 0x123   :  { %v9625_v54 = vpop.f32.mrf.mxu2 }
 0x124   :  { %14209 = vst [vmem:[#allocation66_spill] sm:$0xff] %v9625_v54  ;;  %v9627_v57 = vpop.f32.mrf.mxu3  ;;  %v9629_v58 = vpop.f32.mrf.mxu0 }
 0x125   :  { %14210 = vst [vmem:[#allocation67_spill] sm:$0xff] %v9627_v57  ;;  %v9631_v3 = vpop.f32.mrf.mxu1 }
 0x126   :  { %14211 = vst [vmem:[#allocation68_spill] sm:$0xff] %v9629_v58 }
 0x127   :  { %14212 = vst [vmem:[#allocation69_spill] sm:$0xff] %v9631_v3  ;;  %7482 = vmatmul.msk.f32.gmra.mxu0 %vm113_vm1, %v9063_v11 }
 0x128   :  { %7515 = vmatmul.msk.f32.gmra.mxu1 %vm113_vm1, %v9063_v11  ;;  %7548 = vmatmul.msk.f32.gmra.mxu2 %vm113_vm1, %v9063_v11 }
 0x129   :  { %7581 = vmatmul.msk.f32.gmra.mxu3 %vm113_vm1, %v9063_v11 }
 0x12b   :  { %v9641_v5 = vpop.f32.mrf.mxu2 }
 0x12c   :  { %14213 = vst [vmem:[#allocation70_spill] sm:$0xff] %v9641_v5  ;;  %v9643_v54 = vpop.f32.mrf.mxu3  ;;  %v9645_v57 = vpop.f32.mrf.mxu0 }
 0x12d   :  { %14214 = vst [vmem:[#allocation71_spill] sm:$0xff] %v9643_v54  ;;  %v9647_v58 = vpop.f32.mrf.mxu1 }
 0x12e   :  { %14215 = vst [vmem:[#allocation72_spill] sm:$0xff] %v9645_v57 }
 0x12f   :  { %14216 = vst [vmem:[#allocation73_spill] sm:$0xff] %v9647_v58  ;;  %7483 = vmatmul.msk.f32.gmra.mxu0 %vm113_vm1, %v9076_v12 }
 0x130   :  { %7516 = vmatmul.msk.f32.gmra.mxu1 %vm113_vm1, %v9076_v12  ;;  %7549 = vmatmul.msk.f32.gmra.mxu2 %vm113_vm1, %v9076_v12 }
 0x131   :  { %7582 = vmatmul.msk.f32.gmra.mxu3 %vm113_vm1, %v9076_v12 }
 0x133   :  { %v9657_v3 = vpop.f32.mrf.mxu2 }
 0x134   :  { %14217 = vst [vmem:[#allocation74_spill] sm:$0xff] %v9657_v3  ;;  %v9659_v5 = vpop.f32.mrf.mxu3  ;;  %v9661_v54 = vpop.f32.mrf.mxu0 }
 0x135   :  { %14218 = vst [vmem:[#allocation75_spill] sm:$0xff] %v9659_v5  ;;  %v9663_v57 = vpop.f32.mrf.mxu1 }
 0x136   :  { %14219 = vst [vmem:[#allocation76_spill] sm:$0xff] %v9661_v54 }
 0x137   :  { %14220 = vst [vmem:[#allocation77_spill] sm:$0xff] %v9663_v57  ;;  %7484 = vmatmul.msk.f32.gmra.mxu0 %vm113_vm1, %v9089_v13 }
 0x138   :  { %7517 = vmatmul.msk.f32.gmra.mxu1 %vm113_vm1, %v9089_v13  ;;  %7550 = vmatmul.msk.f32.gmra.mxu2 %vm113_vm1, %v9089_v13 }
 0x139   :  { %7583 = vmatmul.msk.f32.gmra.mxu3 %vm113_vm1, %v9089_v13 }
 0x13b   :  { %v9673_v58 = vpop.f32.mrf.mxu2 }
 0x13c   :  { %14221 = vst [vmem:[#allocation78_spill] sm:$0xff] %v9673_v58  ;;  %v9675_v3 = vpop.f32.mrf.mxu3  ;;  %v9677_v5 = vpop.f32.mrf.mxu0 }
 0x13d   :  { %14222 = vst [vmem:[#allocation79_spill] sm:$0xff] %v9675_v3  ;;  %v9679_v54 = vpop.f32.mrf.mxu1 }
 0x13e   :  { %14223 = vst [vmem:[#allocation80_spill] sm:$0xff] %v9677_v5 }
 0x13f   :  { %14224 = vst [vmem:[#allocation81_spill] sm:$0xff] %v9679_v54  ;;  %7485 = vmatmul.msk.f32.gmra.mxu0 %vm113_vm1, %v9102_v14 }
 0x140   :  { %7518 = vmatmul.msk.f32.gmra.mxu1 %vm113_vm1, %v9102_v14  ;;  %7551 = vmatmul.msk.f32.gmra.mxu2 %vm113_vm1, %v9102_v14 }
 0x141   :  { %7584 = vmatmul.msk.f32.gmra.mxu3 %vm113_vm1, %v9102_v14 }
 0x143   :  { %v9689_v13 = vpop.f32.mrf.mxu2 }
 0x144   :  { %14225 = vst [vmem:[#allocation82_spill] sm:$0xff] %v9689_v13  ;;  %v9691_v58 = vpop.f32.mrf.mxu3  ;;  %v9693_v3 = vpop.f32.mrf.mxu0 }
 0x145   :  { %14226 = vst [vmem:[#allocation83_spill] sm:$0xff] %v9691_v58  ;;  %v9695_v5 = vpop.f32.mrf.mxu1 }
 0x146   :  { %14227 = vst [vmem:[#allocation84_spill] sm:$0xff] %v9693_v3 }
 0x147   :  { %14228 = vst [vmem:[#allocation85_spill] sm:$0xff] %v9695_v5  ;;  %7486 = vmatmul.msk.f32.gmra.mxu0 %vm113_vm1, %v9115_v15 }
 0x148   :  { %7519 = vmatmul.msk.f32.gmra.mxu1 %vm113_vm1, %v9115_v15  ;;  %7552 = vmatmul.msk.f32.gmra.mxu2 %vm113_vm1, %v9115_v15 }
 0x149   :  { %7585 = vmatmul.msk.f32.gmra.mxu3 %vm113_vm1, %v9115_v15 }
 0x14b   :  { %v9705_v14 = vpop.f32.mrf.mxu2 }
 0x14c   :  { %14229 = vst [vmem:[#allocation86_spill] sm:$0xff] %v9705_v14  ;;  %v9707_v13 = vpop.f32.mrf.mxu3  ;;  %v9709_v58 = vpop.f32.mrf.mxu0 }
 0x14d   :  { %14230 = vst [vmem:[#allocation87_spill] sm:$0xff] %v9707_v13  ;;  %v9711_v3 = vpop.f32.mrf.mxu1 }
 0x14e   :  { %14231 = vst [vmem:[#allocation88_spill] sm:$0xff] %v9709_v58 }
 0x14f   :  { %14232 = vst [vmem:[#allocation89_spill] sm:$0xff] %v9711_v3  ;;  %7487 = vmatmul.msk.f32.gmra.mxu0 %vm113_vm1, %v9128_v16  ;;  %v8528_v3 = vld [vmem:[%s14004_s2 + $0x78] sm:$0xff]  }
 0x150   :  { %7520 = vmatmul.msk.f32.gmra.mxu1 %vm113_vm1, %v9128_v16  ;;  %7553 = vmatmul.msk.f32.gmra.mxu2 %vm113_vm1, %v9128_v16  ;;  %v7937_v6 = vunpack.c.h.bf16 %v8528_v3 }
 0x151   :  { %7586 = vmatmul.msk.f32.gmra.mxu3 %vm113_vm1, %v9128_v16 }
 0x153   :  { %v9721_v15 = vpop.f32.mrf.mxu2 }
 0x154   :  { %14233 = vst [vmem:[#allocation90_spill] sm:$0xff] %v9721_v15  ;;  %v9723_v14 = vpop.f32.mrf.mxu3  ;;  %v9725_v13 = vpop.f32.mrf.mxu0 }
 0x155   :  { %14234 = vst [vmem:[#allocation91_spill] sm:$0xff] %v9723_v14  ;;  %v9727_v58 = vpop.f32.mrf.mxu1 }
 0x156   :  { %14235 = vst [vmem:[#allocation92_spill] sm:$0xff] %v9725_v13 }
 0x157   :  { %14236 = vst [vmem:[#allocation93_spill] sm:$0xff] %v9727_v58  ;;  %7488 = vmatmul.msk.f32.gmra.mxu0 %vm113_vm1, %v9141_v17  ;;  %v8544_v58 = vld [vmem:[%s14004_s2 + $0xf8] sm:$0xff]  }
 0x158   :  { %7521 = vmatmul.msk.f32.gmra.mxu1 %vm113_vm1, %v9141_v17  ;;  %7554 = vmatmul.msk.f32.gmra.mxu2 %vm113_vm1, %v9141_v17  ;;  %v8001_v7 = vunpack.c.h.bf16 %v8544_v58 }
 0x159   :  { %7587 = vmatmul.msk.f32.gmra.mxu3 %vm113_vm1, %v9141_v17 }
 0x15b   :  { %v9737_v16 = vpop.f32.mrf.mxu2 }
 0x15c   :  { %14237 = vst [vmem:[#allocation94_spill] sm:$0xff] %v9737_v16  ;;  %v9739_v15 = vpop.f32.mrf.mxu3  ;;  %v9741_v14 = vpop.f32.mrf.mxu0 }
 0x15d   :  { %14238 = vst [vmem:[#allocation95_spill] sm:$0xff] %v9739_v15  ;;  %v9743_v13 = vpop.f32.mrf.mxu1 }
 0x15e   :  { %14239 = vst [vmem:[#allocation96_spill] sm:$0xff] %v9741_v14 }
 0x15f   :  { %14240 = vst [vmem:[#allocation97_spill] sm:$0xff] %v9743_v13  ;;  %7489 = vmatmul.msk.f32.gmra.mxu0 %vm113_vm1, %v9154_v18  ;;  %v10747_v13 = vld [vmem:[%s14003_s1 + $0xf8] sm:$0xff] }
 0x160   :  { %7522 = vmatmul.msk.f32.gmra.mxu1 %vm113_vm1, %v9154_v18  ;;  %7555 = vmatmul.msk.f32.gmra.mxu2 %vm113_vm1, %v9154_v18 }
 0x161   :  { %7588 = vmatmul.msk.f32.gmra.mxu3 %vm113_vm1, %v9154_v18 }
 0x163   :  { %v9753_v17 = vpop.f32.mrf.mxu2 }
 0x164   :  { %14241 = vst [vmem:[#allocation98_spill] sm:$0xff] %v9753_v17  ;;  %v9755_v16 = vpop.f32.mrf.mxu3  ;;  %v9757_v15 = vpop.f32.mrf.mxu0 }
 0x165   :  { %14242 = vst [vmem:[#allocation99_spill] sm:$0xff] %v9755_v16  ;;  %v9759_v14 = vpop.f32.mrf.mxu1 }
 0x166   :  { %14243 = vst [vmem:[#allocation100_spill] sm:$0xff] %v9757_v15 }
 0x167   :  { %14244 = vst [vmem:[#allocation101_spill] sm:$0xff] %v9759_v14  ;;  %7490 = vmatmul.msk.f32.gmra.mxu0 %vm113_vm1, %v9167_v19  ;;  %v10726_v14 = vld [vmem:[%s14003_s1 + $0xf0] sm:$0xff] }
 0x168   :  { %7523 = vmatmul.msk.f32.gmra.mxu1 %vm113_vm1, %v9167_v19  ;;  %7556 = vmatmul.msk.f32.gmra.mxu2 %vm113_vm1, %v9167_v19 }
 0x169   :  { %7589 = vmatmul.msk.f32.gmra.mxu3 %vm113_vm1, %v9167_v19 }
 0x16b   :  { %v9769_v18 = vpop.f32.mrf.mxu2 }
 0x16c   :  { %14245 = vst [vmem:[#allocation102_spill] sm:$0xff] %v9769_v18  ;;  %v9771_v17 = vpop.f32.mrf.mxu3  ;;  %v9773_v16 = vpop.f32.mrf.mxu0 }
 0x16d   :  { %14246 = vst [vmem:[#allocation103_spill] sm:$0xff] %v9771_v17  ;;  %v9775_v15 = vpop.f32.mrf.mxu1 }
 0x16e   :  { %14247 = vst [vmem:[#allocation104_spill] sm:$0xff] %v9773_v16 }
 0x16f   :  { %14248 = vst [vmem:[#allocation105_spill] sm:$0xff] %v9775_v15  ;;  %7491 = vmatmul.msk.f32.gmra.mxu0 %vm113_vm1, %v9180_v20  ;;  %v10705_v15 = vld [vmem:[%s14003_s1 + $0xe8] sm:$0xff] }
 0x170   :  { %7524 = vmatmul.msk.f32.gmra.mxu1 %vm113_vm1, %v9180_v20  ;;  %7557 = vmatmul.msk.f32.gmra.mxu2 %vm113_vm1, %v9180_v20 }
 0x171   :  { %7590 = vmatmul.msk.f32.gmra.mxu3 %vm113_vm1, %v9180_v20 }
 0x173   :  { %v9785_v19 = vpop.f32.mrf.mxu2 }
 0x174   :  { %14249 = vst [vmem:[#allocation106_spill] sm:$0xff] %v9785_v19  ;;  %v9787_v18 = vpop.f32.mrf.mxu3  ;;  %v9789_v17 = vpop.f32.mrf.mxu0 }
 0x175   :  { %14250 = vst [vmem:[#allocation107_spill] sm:$0xff] %v9787_v18  ;;  %v9791_v16 = vpop.f32.mrf.mxu1 }
 0x176   :  { %14251 = vst [vmem:[#allocation108_spill] sm:$0xff] %v9789_v17 }
 0x177   :  { %14252 = vst [vmem:[#allocation109_spill] sm:$0xff] %v9791_v16  ;;  %7492 = vmatmul.msk.f32.gmra.mxu0 %vm113_vm1, %v9193_v21  ;;  %v10684_v16 = vld [vmem:[%s14003_s1 + $0xe0] sm:$0xff] }
 0x178   :  { %7525 = vmatmul.msk.f32.gmra.mxu1 %vm113_vm1, %v9193_v21  ;;  %7558 = vmatmul.msk.f32.gmra.mxu2 %vm113_vm1, %v9193_v21 }
 0x179   :  { %7591 = vmatmul.msk.f32.gmra.mxu3 %vm113_vm1, %v9193_v21 }
 0x17b   :  { %v9801_v20 = vpop.f32.mrf.mxu2 }
 0x17c   :  { %14253 = vst [vmem:[#allocation110_spill] sm:$0xff] %v9801_v20  ;;  %v9803_v19 = vpop.f32.mrf.mxu3  ;;  %v9805_v18 = vpop.f32.mrf.mxu0 }
 0x17d   :  { %14254 = vst [vmem:[#allocation111_spill] sm:$0xff] %v9803_v19  ;;  %v9807_v17 = vpop.f32.mrf.mxu1 }
 0x17e   :  { %14255 = vst [vmem:[#allocation112_spill] sm:$0xff] %v9805_v18 }
 0x17f   :  { %14256 = vst [vmem:[#allocation113_spill] sm:$0xff] %v9807_v17  ;;  %7493 = vmatmul.msk.f32.gmra.mxu0 %vm113_vm1, %v9206_v22  ;;  %v10663_v17 = vld [vmem:[%s14003_s1 + $0xd8] sm:$0xff] }
 0x180   :  { %7526 = vmatmul.msk.f32.gmra.mxu1 %vm113_vm1, %v9206_v22  ;;  %7559 = vmatmul.msk.f32.gmra.mxu2 %vm113_vm1, %v9206_v22 }
 0x181   :  { %7592 = vmatmul.msk.f32.gmra.mxu3 %vm113_vm1, %v9206_v22 }
 0x183   :  { %v9817_v21 = vpop.f32.mrf.mxu2 }
 0x184   :  { %14257 = vst [vmem:[#allocation114_spill] sm:$0xff] %v9817_v21  ;;  %v9819_v20 = vpop.f32.mrf.mxu3  ;;  %v9821_v19 = vpop.f32.mrf.mxu0 }
 0x185   :  { %14258 = vst [vmem:[#allocation115_spill] sm:$0xff] %v9819_v20  ;;  %v9823_v18 = vpop.f32.mrf.mxu1 }
 0x186   :  { %14259 = vst [vmem:[#allocation116_spill] sm:$0xff] %v9821_v19 }
 0x187   :  { %14260 = vst [vmem:[#allocation117_spill] sm:$0xff] %v9823_v18  ;;  %7494 = vmatmul.msk.f32.gmra.mxu0 %vm113_vm1, %v9219_v23  ;;  %v10642_v18 = vld [vmem:[%s14003_s1 + $0xd0] sm:$0xff] }
 0x188   :  { %7527 = vmatmul.msk.f32.gmra.mxu1 %vm113_vm1, %v9219_v23  ;;  %7560 = vmatmul.msk.f32.gmra.mxu2 %vm113_vm1, %v9219_v23 }
 0x189   :  { %7593 = vmatmul.msk.f32.gmra.mxu3 %vm113_vm1, %v9219_v23 }
 0x18b   :  { %v9833_v22 = vpop.f32.mrf.mxu2 }
 0x18c   :  { %14261 = vst [vmem:[#allocation118_spill] sm:$0xff] %v9833_v22  ;;  %v9835_v21 = vpop.f32.mrf.mxu3  ;;  %v9837_v20 = vpop.f32.mrf.mxu0 }
 0x18d   :  { %14262 = vst [vmem:[#allocation119_spill] sm:$0xff] %v9835_v21  ;;  %v9839_v19 = vpop.f32.mrf.mxu1 }
 0x18e   :  { %14263 = vst [vmem:[#allocation120_spill] sm:$0xff] %v9837_v20 }
 0x18f   :  { %14264 = vst [vmem:[#allocation121_spill] sm:$0xff] %v9839_v19  ;;  %7495 = vmatmul.msk.f32.gmra.mxu0 %vm113_vm1, %v9236_v26  ;;  %v10621_v19 = vld [vmem:[%s14003_s1 + $0xc8] sm:$0xff] }
 0x190   :  { %7528 = vmatmul.msk.f32.gmra.mxu1 %vm113_vm1, %v9236_v26  ;;  %7561 = vmatmul.msk.f32.gmra.mxu2 %vm113_vm1, %v9236_v26 }
 0x191   :  { %7594 = vmatmul.msk.f32.gmra.mxu3 %vm113_vm1, %v9236_v26 }
 0x193   :  { %v9849_v23 = vpop.f32.mrf.mxu2 }
 0x194   :  { %14265 = vst [vmem:[#allocation122_spill] sm:$0xff] %v9849_v23  ;;  %v9851_v22 = vpop.f32.mrf.mxu3  ;;  %v9853_v21 = vpop.f32.mrf.mxu0 }
 0x195   :  { %14266 = vst [vmem:[#allocation123_spill] sm:$0xff] %v9851_v22  ;;  %v9855_v20 = vpop.f32.mrf.mxu1 }
 0x196   :  { %14267 = vst [vmem:[#allocation124_spill] sm:$0xff] %v9853_v21 }
 0x197   :  { %14268 = vst [vmem:[#allocation125_spill] sm:$0xff] %v9855_v20  ;;  %7496 = vmatmul.msk.f32.gmra.mxu0 %vm113_vm1, %v9257_v31  ;;  %v10600_v20 = vld [vmem:[%s14003_s1 + $0xc0] sm:$0xff] }
 0x198   :  { %7529 = vmatmul.msk.f32.gmra.mxu1 %vm113_vm1, %v9257_v31  ;;  %7562 = vmatmul.msk.f32.gmra.mxu2 %vm113_vm1, %v9257_v31 }
 0x199   :  { %7595 = vmatmul.msk.f32.gmra.mxu3 %vm113_vm1, %v9257_v31 }
 0x19b   :  { %v9865_v26 = vpop.f32.mrf.mxu2 }
 0x19c   :  { %14269 = vst [vmem:[#allocation126_spill] sm:$0xff] %v9865_v26  ;;  %v9867_v23 = vpop.f32.mrf.mxu3  ;;  %v9869_v22 = vpop.f32.mrf.mxu0 }
 0x19d   :  { %14270 = vst [vmem:[#allocation127_spill] sm:$0xff] %v9867_v23  ;;  %v9871_v21 = vpop.f32.mrf.mxu1 }
 0x19e   :  { %14271 = vst [vmem:[#allocation128_spill] sm:$0xff] %v9869_v22 }
 0x19f   :  { %14272 = vst [vmem:[#allocation129_spill] sm:$0xff] %v9871_v21  ;;  %7497 = vmatmul.msk.f32.gmra.mxu0 %vm113_vm1, %v9278_v36  ;;  %v10579_v21 = vld [vmem:[%s14003_s1 + $0xb8] sm:$0xff] }
 0x1a0   :  { %7530 = vmatmul.msk.f32.gmra.mxu1 %vm113_vm1, %v9278_v36  ;;  %7563 = vmatmul.msk.f32.gmra.mxu2 %vm113_vm1, %v9278_v36 }
 0x1a1   :  { %7596 = vmatmul.msk.f32.gmra.mxu3 %vm113_vm1, %v9278_v36 }
 0x1a3   :  { %v9881_v31 = vpop.f32.mrf.mxu2 }
 0x1a4   :  { %14273 = vst [vmem:[#allocation130_spill] sm:$0xff] %v9881_v31  ;;  %v9883_v26 = vpop.f32.mrf.mxu3  ;;  %v9885_v23 = vpop.f32.mrf.mxu0 }
 0x1a5   :  { %14274 = vst [vmem:[#allocation131_spill] sm:$0xff] %v9883_v26  ;;  %v9887_v22 = vpop.f32.mrf.mxu1 }
 0x1a6   :  { %14275 = vst [vmem:[#allocation132_spill] sm:$0xff] %v9885_v23 }
 0x1a7   :  { %14276 = vst [vmem:[#allocation133_spill] sm:$0xff] %v9887_v22  ;;  %7498 = vmatmul.msk.f32.gmra.mxu0 %vm113_vm1, %v9299_v41  ;;  %v10558_v22 = vld [vmem:[%s14003_s1 + $0xb0] sm:$0xff] }
 0x1a8   :  { %7531 = vmatmul.msk.f32.gmra.mxu1 %vm113_vm1, %v9299_v41  ;;  %7564 = vmatmul.msk.f32.gmra.mxu2 %vm113_vm1, %v9299_v41 }
 0x1a9   :  { %7597 = vmatmul.msk.f32.gmra.mxu3 %vm113_vm1, %v9299_v41 }
 0x1ab   :  { %v9897_v36 = vpop.f32.mrf.mxu2 }
 0x1ac   :  { %14277 = vst [vmem:[#allocation134_spill] sm:$0xff] %v9897_v36  ;;  %v9899_v31 = vpop.f32.mrf.mxu3  ;;  %v9901_v26 = vpop.f32.mrf.mxu0 }
 0x1ad   :  { %14278 = vst [vmem:[#allocation135_spill] sm:$0xff] %v9899_v31  ;;  %v9903_v23 = vpop.f32.mrf.mxu1 }
 0x1ae   :  { %14279 = vst [vmem:[#allocation136_spill] sm:$0xff] %v9901_v26 }
 0x1af   :  { %14280 = vst [vmem:[#allocation137_spill] sm:$0xff] %v9903_v23  ;;  %7499 = vmatmul.msk.f32.gmra.mxu0 %vm113_vm1, %v9320_v46  ;;  %v10537_v23 = vld [vmem:[%s14003_s1 + $0xa8] sm:$0xff] }
 0x1b0   :  { %7532 = vmatmul.msk.f32.gmra.mxu1 %vm113_vm1, %v9320_v46  ;;  %7565 = vmatmul.msk.f32.gmra.mxu2 %vm113_vm1, %v9320_v46 }
 0x1b1   :  { %7598 = vmatmul.msk.f32.gmra.mxu3 %vm113_vm1, %v9320_v46 }
 0x1b3   :  { %v9913_v41 = vpop.f32.mrf.mxu2 }
 0x1b4   :  { %14281 = vst [vmem:[#allocation138_spill] sm:$0xff] %v9913_v41  ;;  %v9915_v36 = vpop.f32.mrf.mxu3  ;;  %v9917_v31 = vpop.f32.mrf.mxu0 }
 0x1b5   :  { %14282 = vst [vmem:[#allocation139_spill] sm:$0xff] %v9915_v36  ;;  %v9919_v26 = vpop.f32.mrf.mxu1 }
 0x1b6   :  { %14283 = vst [vmem:[#allocation140_spill] sm:$0xff] %v9917_v31 }
 0x1b7   :  { %14284 = vst [vmem:[#allocation141_spill] sm:$0xff] %v9919_v26  ;;  %7500 = vmatmul.msk.f32.gmra.mxu0 %vm113_vm1, %v9341_v51  ;;  %v10516_v26 = vld [vmem:[%s14003_s1 + $0xa0] sm:$0xff] }
 0x1b8   :  { %7533 = vmatmul.msk.f32.gmra.mxu1 %vm113_vm1, %v9341_v51  ;;  %7566 = vmatmul.msk.f32.gmra.mxu2 %vm113_vm1, %v9341_v51 }
 0x1b9   :  { %7599 = vmatmul.msk.f32.gmra.mxu3 %vm113_vm1, %v9341_v51 }
 0x1bb   :  { %v9929_v46 = vpop.f32.mrf.mxu2 }
 0x1bc   :  { %14285 = vst [vmem:[#allocation142_spill] sm:$0xff] %v9929_v46  ;;  %v9931_v41 = vpop.f32.mrf.mxu3  ;;  %v9933_v36 = vpop.f32.mrf.mxu0 }
 0x1bd   :  { %14286 = vst [vmem:[#allocation143_spill] sm:$0xff] %v9931_v41  ;;  %v9935_v31 = vpop.f32.mrf.mxu1 }
 0x1be   :  { %14287 = vst [vmem:[#allocation144_spill] sm:$0xff] %v9933_v36 }
 0x1bf   :  { %14288 = vst [vmem:[#allocation145_spill] sm:$0xff] %v9935_v31  ;;  %7501 = vmatmul.msk.f32.gmra.mxu0 %vm113_vm1, %v9362_v56  ;;  %v10495_v31 = vld [vmem:[%s14003_s1 + $0x98] sm:$0xff] }
 0x1c0   :  { %7534 = vmatmul.msk.f32.gmra.mxu1 %vm113_vm1, %v9362_v56  ;;  %7567 = vmatmul.msk.f32.gmra.mxu2 %vm113_vm1, %v9362_v56 }
 0x1c1   :  { %7600 = vmatmul.msk.f32.gmra.mxu3 %vm113_vm1, %v9362_v56 }
 0x1c3   :  { %v9945_v51 = vpop.f32.mrf.mxu2 }
 0x1c4   :  { %14289 = vst [vmem:[#allocation146_spill] sm:$0xff] %v9945_v51  ;;  %v9947_v46 = vpop.f32.mrf.mxu3  ;;  %v9949_v41 = vpop.f32.mrf.mxu0 }
 0x1c5   :  { %14290 = vst [vmem:[#allocation147_spill] sm:$0xff] %v9947_v46  ;;  %v9951_v36 = vpop.f32.mrf.mxu1 }
 0x1c6   :  { %14291 = vst [vmem:[#allocation148_spill] sm:$0xff] %v9949_v41 }
 0x1c7   :  { %14292 = vst [vmem:[#allocation149_spill] sm:$0xff] %v9951_v36  ;;  %7502 = vmatmul.msk.f32.gmra.mxu0 %vm113_vm1, %v9383_v61  ;;  %v10474_v36 = vld [vmem:[%s14003_s1 + $0x90] sm:$0xff] }
 0x1c8   :  { %7535 = vmatmul.msk.f32.gmra.mxu1 %vm113_vm1, %v9383_v61  ;;  %7568 = vmatmul.msk.f32.gmra.mxu2 %vm113_vm1, %v9383_v61 }
 0x1c9   :  { %7601 = vmatmul.msk.f32.gmra.mxu3 %vm113_vm1, %v9383_v61 }
 0x1cb   :  { %v9961_v56 = vpop.f32.mrf.mxu2 }
 0x1cc   :  { %14293 = vst [vmem:[#allocation150_spill] sm:$0xff] %v9961_v56  ;;  %v9963_v51 = vpop.f32.mrf.mxu3  ;;  %v9965_v46 = vpop.f32.mrf.mxu0 }
 0x1cd   :  { %14294 = vst [vmem:[#allocation151_spill] sm:$0xff] %v9963_v51  ;;  %v9967_v41 = vpop.f32.mrf.mxu1 }
 0x1ce   :  { %14295 = vst [vmem:[#allocation152_spill] sm:$0xff] %v9965_v46 }
 0x1cf   :  { %14296 = vst [vmem:[#allocation153_spill] sm:$0xff] %v9967_v41  ;;  %7503 = vmatmul.msk.f32.gmra.mxu0 %vm113_vm1, %v9404_v2  ;;  %v10453_v41 = vld [vmem:[%s14003_s1 + $0x88] sm:$0xff] }
 0x1d0   :  { %7536 = vmatmul.msk.f32.gmra.mxu1 %vm113_vm1, %v9404_v2  ;;  %7569 = vmatmul.msk.f32.gmra.mxu2 %vm113_vm1, %v9404_v2 }
 0x1d1   :  { %7602 = vmatmul.msk.f32.gmra.mxu3 %vm113_vm1, %v9404_v2 }
 0x1d3   :  { %v9977_v61 = vpop.f32.mrf.mxu2 }
 0x1d4   :  { %14297 = vst [vmem:[#allocation154_spill] sm:$0xff] %v9977_v61  ;;  %v9979_v56 = vpop.f32.mrf.mxu3  ;;  %v9981_v51 = vpop.f32.mrf.mxu0 }
 0x1d5   :  { %14298 = vst [vmem:[#allocation155_spill] sm:$0xff] %v9979_v56  ;;  %v9983_v46 = vpop.f32.mrf.mxu1 }
 0x1d6   :  { %14299 = vst [vmem:[#allocation156_spill] sm:$0xff] %v9981_v51 }
 0x1d7   :  { %14300 = vst [vmem:[#allocation157_spill] sm:$0xff] %v9983_v46  ;;  %7504 = vmatmul.msk.f32.gmra.mxu0 %vm113_vm1, %v9425_v8  ;;  %v10432_v46 = vld [vmem:[%s14003_s1 + $0x80] sm:$0xff] }
 0x1d8   :  { %7537 = vmatmul.msk.f32.gmra.mxu1 %vm113_vm1, %v9425_v8  ;;  %7570 = vmatmul.msk.f32.gmra.mxu2 %vm113_vm1, %v9425_v8 }
 0x1d9   :  { %7603 = vmatmul.msk.f32.gmra.mxu3 %vm113_vm1, %v9425_v8 }
 0x1db   :  { %v9993_v2 = vpop.f32.mrf.mxu2 }
 0x1dc   :  { %14301 = vst [vmem:[#allocation158_spill] sm:$0xff] %v9993_v2  ;;  %v9995_v61 = vpop.f32.mrf.mxu3  ;;  %v9997_v56 = vpop.f32.mrf.mxu0 }
 0x1dd   :  { %14302 = vst [vmem:[#allocation159_spill] sm:$0xff] %v9995_v61  ;;  %v9999_v51 = vpop.f32.mrf.mxu1 }
 0x1de   :  { %14303 = vst [vmem:[#allocation160_spill] sm:$0xff] %v9997_v56 }
 0x1df   :  { %14304 = vst [vmem:[#allocation161_spill] sm:$0xff] %v9999_v51  ;;  %7505 = vmatmul.msk.f32.gmra.mxu0 %vm113_vm1, %v9446_v1  ;;  %v10411_v51 = vld [vmem:[%s14003_s1 + $0x78] sm:$0xff] }
 0x1e0   :  { %7538 = vmatmul.msk.f32.gmra.mxu1 %vm113_vm1, %v9446_v1  ;;  %7571 = vmatmul.msk.f32.gmra.mxu2 %vm113_vm1, %v9446_v1 }
 0x1e1   :  { %7604 = vmatmul.msk.f32.gmra.mxu3 %vm113_vm1, %v9446_v1 }
 0x1e3   :  { %v10009_v8 = vpop.f32.mrf.mxu2 }
 0x1e4   :  { %14305 = vst [vmem:[#allocation162_spill] sm:$0xff] %v10009_v8  ;;  %v10011_v2 = vpop.f32.mrf.mxu3  ;;  %v10013_v61 = vpop.f32.mrf.mxu0 }
 0x1e5   :  { %14306 = vst [vmem:[#allocation163_spill] sm:$0xff] %v10011_v2  ;;  %v10015_v56 = vpop.f32.mrf.mxu1 }
 0x1e6   :  { %14307 = vst [vmem:[#allocation164_spill] sm:$0xff] %v10013_v61 }
 0x1e7   :  { %14308 = vst [vmem:[#allocation165_spill] sm:$0xff] %v10015_v56  ;;  %7506 = vmatmul.msk.f32.gmra.mxu0 %vm113_vm1, %v9467_v0  ;;  %v10390_v56 = vld [vmem:[%s14003_s1 + $0x70] sm:$0xff] }
 0x1e8   :  { %7539 = vmatmul.msk.f32.gmra.mxu1 %vm113_vm1, %v9467_v0  ;;  %7572 = vmatmul.msk.f32.gmra.mxu2 %vm113_vm1, %v9467_v0 }
 0x1e9   :  { %7605 = vmatmul.msk.f32.gmra.mxu3 %vm113_vm1, %v9467_v0 }
 0x1eb   :  { %v10025_v1 = vpop.f32.mrf.mxu2 }
 0x1ec   :  { %14309 = vst [vmem:[#allocation166_spill] sm:$0xff] %v10025_v1  ;;  %v10027_v8 = vpop.f32.mrf.mxu3  ;;  %v10029_v2 = vpop.f32.mrf.mxu0 }
 0x1ed   :  { %14310 = vst [vmem:[#allocation167_spill] sm:$0xff] %v10027_v8  ;;  %v10031_v61 = vpop.f32.mrf.mxu1 }
 0x1ee   :  { %14311 = vst [vmem:[#allocation168_spill] sm:$0xff] %v10029_v2 }
 0x1ef   :  { %14312 = vst [vmem:[#allocation169_spill] sm:$0xff] %v10031_v61  ;;  %7507 = vmatmul.msk.f32.gmra.mxu0 %vm113_vm1, %v9488_v63  ;;  %v10369_v61 = vld [vmem:[%s14003_s1 + $0x68] sm:$0xff] }
 0x1f0   :  { %7540 = vmatmul.msk.f32.gmra.mxu1 %vm113_vm1, %v9488_v63  ;;  %7573 = vmatmul.msk.f32.gmra.mxu2 %vm113_vm1, %v9488_v63 }
 0x1f1   :  { %7606 = vmatmul.msk.f32.gmra.mxu3 %vm113_vm1, %v9488_v63 }
 0x1f3   :  { %v10041_v0 = vpop.f32.mrf.mxu2 }
 0x1f4   :  { %14313 = vst [vmem:[#allocation170_spill] sm:$0xff] %v10041_v0  ;;  %v10043_v1 = vpop.f32.mrf.mxu3  ;;  %v10045_v8 = vpop.f32.mrf.mxu0 }
 0x1f5   :  { %14314 = vst [vmem:[#allocation171_spill] sm:$0xff] %v10043_v1  ;;  %v10047_v2 = vpop.f32.mrf.mxu1 }
 0x1f6   :  { %14315 = vst [vmem:[#allocation172_spill] sm:$0xff] %v10045_v8 }
 0x1f7   :  { %14316 = vst [vmem:[#allocation173_spill] sm:$0xff] %v10047_v2  ;;  %7508 = vmatmul.msk.f32.gmra.mxu0 %vm113_vm1, %v9509_v62 }
 0x1f8   :  { %7541 = vmatmul.msk.f32.gmra.mxu1 %vm113_vm1, %v9509_v62  ;;  %7574 = vmatmul.msk.f32.gmra.mxu2 %vm113_vm1, %v9509_v62 }
 0x1f9   :  { %7607 = vmatmul.msk.f32.gmra.mxu3 %vm113_vm1, %v9509_v62 }
 0x1fb   :  { %v10057_v63 = vpop.f32.mrf.mxu2 }
 0x1fc   :  { %14317 = vst [vmem:[#allocation174_spill] sm:$0xff] %v10057_v63  ;;  %v10059_v0 = vpop.f32.mrf.mxu3  ;;  %v10061_v1 = vpop.f32.mrf.mxu0 }
 0x1fd   :  { %14318 = vst [vmem:[#allocation175_spill] sm:$0xff] %v10059_v0  ;;  %v10063_v8 = vpop.f32.mrf.mxu1 }
 0x1fe   :  { %14319 = vst [vmem:[#allocation176_spill] sm:$0xff] %v10061_v1 }
 0x1ff   :  { %14320 = vst [vmem:[#allocation177_spill] sm:$0xff] %v10063_v8  ;;  %7509 = vmatmul.msk.f32.gmra.mxu0 %vm113_vm1, %v9530_v60  ;;  %v109_v8 = vld [vmem:[%s14002_s0 + $0x60] sm:$0x3f] }
 0x200   :  { %7542 = vmatmul.msk.f32.gmra.mxu1 %vm113_vm1, %v9530_v60  ;;  %7575 = vmatmul.msk.f32.gmra.mxu2 %vm113_vm1, %v9530_v60 }
 0x201   :  { %7608 = vmatmul.msk.f32.gmra.mxu3 %vm113_vm1, %v9530_v60 }
 0x203   :  { %v10073_v62 = vpop.f32.mrf.mxu2 }
 0x204   :  { %14321 = vst [vmem:[#allocation178_spill] sm:$0xff] %v10073_v62  ;;  %v10075_v63 = vpop.f32.mrf.mxu3  ;;  %v10077_v0 = vpop.f32.mrf.mxu0 }
 0x205   :  { %14322 = vst [vmem:[#allocation179_spill] sm:$0xff] %v10075_v63  ;;  %v10079_v1 = vpop.f32.mrf.mxu1 }
 0x206   :  { %14323 = vst [vmem:[#allocation180_spill] sm:$0xff] %v10077_v0 }
 0x207   :  { %14324 = vst [vmem:[#allocation181_spill] sm:$0xff] %v10079_v1  ;;  %7510 = vmatmul.msk.f32.gmra.mxu0 %vm113_vm1, %v9551_v59  ;;  %v111_v1 = vld [vmem:[%s14002_s0 + $0x70] sm:$0x3f] }
 0x208   :  { %7543 = vmatmul.msk.f32.gmra.mxu1 %vm113_vm1, %v9551_v59  ;;  %7576 = vmatmul.msk.f32.gmra.mxu2 %vm113_vm1, %v9551_v59 }
 0x209   :  { %7609 = vmatmul.msk.f32.gmra.mxu3 %vm113_vm1, %v9551_v59  ;;  %v112_v59 = vld [vmem:[%s14002_s0 + $0x78] sm:$0x3f] }
 0x20b   :  { %v10089_v60 = vpop.f32.mrf.mxu2 }
 0x20c   :  { %14325 = vst [vmem:[#allocation182_spill] sm:$0xff] %v10089_v60  ;;  %v10091_v62 = vpop.f32.mrf.mxu3  ;;  %v10093_v63 = vpop.f32.mrf.mxu0 }
 0x20d   :  { %14326 = vst [vmem:[#allocation183_spill] sm:$0xff] %v10091_v62  ;;  %v10095_v0 = vpop.f32.mrf.mxu1 }
 0x20e   :  { %14327 = vst [vmem:[#allocation184_spill] sm:$0xff] %v10093_v63 }
 0x20f   :  { %14328 = vst [vmem:[#allocation185_spill] sm:$0xff] %v10095_v0  ;;  %7611 = vmatmul.msk.f32.vlgmr.msra.gmra.mxu0 %vm113_vm1, %v9006_v4  ;;  %v110_v0 = vld [vmem:[%s14002_s0 + $0x68] sm:$0x3f] }
 0x210   :  { %7644 = vmatmul.msk.f32.vlgmr.msra.gmra.mxu1 %vm113_vm1, %v9006_v4  ;;  %7677 = vmatmul.msk.f32.vlgmr.msra.gmra.mxu2 %vm113_vm1, %v9006_v4 }
 0x211   :  { %7710 = vmatmul.msk.f32.vlgmr.msra.gmra.mxu3 %vm113_vm1, %v9006_v4  ;;  %7808 = vmatpush.msk.msra.mxu2 %vm210_vm0, %v111_v1 }
 0x212   :  { %7742 = vmatpush.msk.msra.mxu0 %vm210_vm0, %v109_v8  ;;  %7841 = vmatpush.msk.msra.mxu3 %vm210_vm0, %v112_v59 }
 0x213   :  { %7775 = vmatpush.msk.msra.mxu1 %vm210_vm0, %v110_v0  ;;  %v10121_v63 = vpop.f32.mrf.mxu2 }
 0x214   :  { %14329 = vst [vmem:[#allocation186_spill] sm:$0xff] %v10121_v63  ;;  %v10123_v62 = vpop.f32.mrf.mxu3  ;;  %v10125_v60 = vpop.f32.mrf.mxu0  ;;  %v10348_v63 = vld [vmem:[%s14003_s1 + $0x60] sm:$0xff] }
 0x215   :  { %14330 = vst [vmem:[#allocation187_spill] sm:$0xff] %v10123_v62  ;;  %v10127_v2 = vpop.f32.mrf.mxu1  ;;  %v10327_v62 = vld [vmem:[%s14003_s1 + $0x58] sm:$0xff] }
 0x216   :  { %14331 = vst [vmem:[#allocation188_spill] sm:$0xff] %v10125_v60  ;;  %v10306_v60 = vld [vmem:[%s14003_s1 + $0x50] sm:$0xff] }
 0x217   :  { %14332 = vst [vmem:[#allocation189_spill] sm:$0xff] %v10127_v2  ;;  %7612 = vmatmul.msk.f32.gmra.mxu0 %vm113_vm1, %v9037_v9  ;;  %v10285_v2 = vld [vmem:[%s14003_s1 + $0x48] sm:$0xff] }
 0x218   :  { %7645 = vmatmul.msk.f32.gmra.mxu1 %vm113_vm1, %v9037_v9  ;;  %7678 = vmatmul.msk.f32.gmra.mxu2 %vm113_vm1, %v9037_v9 }
 0x219   :  { %7711 = vmatmul.msk.f32.gmra.mxu3 %vm113_vm1, %v9037_v9 }
 0x21b   :  { %v10137_v4 = vpop.f32.mrf.mxu2 }
 0x21c   :  { %14333 = vst [vmem:[#allocation190_spill] sm:$0xff] %v10137_v4  ;;  %v10139_v8 = vpop.f32.mrf.mxu3  ;;  %v10141_v1 = vpop.f32.mrf.mxu0  ;;  %v10264_v4 = vld [vmem:[%s14003_s1 + $0x40] sm:$0xff] }
 0x21d   :  { %14334 = vst [vmem:[#allocation191_spill] sm:$0xff] %v10139_v8  ;;  %v10143_v0 = vpop.f32.mrf.mxu1 }
 0x21e   :  { %14335 = vst [vmem:[#allocation192_spill] sm:$0xff] %v10141_v1 }
 0x21f   :  { %14336 = vst [vmem:[#allocation193_spill] sm:$0xff] %v10143_v0  ;;  %7613 = vmatmul.msk.f32.gmra.mxu0 %vm113_vm1, %v9050_v10  ;;  %v10243_v0 = vld [vmem:[%s14003_s1 + $0x38] sm:$0xff] }
 0x220   :  { %7646 = vmatmul.msk.f32.gmra.mxu1 %vm113_vm1, %v9050_v10  ;;  %7679 = vmatmul.msk.f32.gmra.mxu2 %vm113_vm1, %v9050_v10 }
 0x221   :  { %7712 = vmatmul.msk.f32.gmra.mxu3 %vm113_vm1, %v9050_v10 }
 0x223   :  { %v10153_v9 = vpop.f32.mrf.mxu2 }
 0x224   :  { %14337 = vst [vmem:[#allocation194_spill] sm:$0xff] %v10153_v9  ;;  %v10155_v59 = vpop.f32.mrf.mxu3  ;;  %v10157_v8 = vpop.f32.mrf.mxu0 }
 0x225   :  { %14338 = vst [vmem:[#allocation195_spill] sm:$0xff] %v10155_v59  ;;  %v10159_v1 = vpop.f32.mrf.mxu1 }
 0x226   :  { %14339 = vst [vmem:[#allocation196_spill] sm:$0xff] %v10157_v8 }
 0x227   :  { %14340 = vst [vmem:[#allocation197_spill] sm:$0xff] %v10159_v1  ;;  %7614 = vmatmul.msk.f32.gmra.mxu0 %vm113_vm1, %v9063_v11  ;;  %v10184_v1 = vld [vmem:[%s14003_s1 + $0x20] sm:$0xff] }
 0x228   :  { %7647 = vmatmul.msk.f32.gmra.mxu1 %vm113_vm1, %v9063_v11  ;;  %7680 = vmatmul.msk.f32.gmra.mxu2 %vm113_vm1, %v9063_v11 }
 0x229   :  { %7713 = vmatmul.msk.f32.gmra.mxu3 %vm113_vm1, %v9063_v11 }
 0x22b   :  { %v10169_v10 = vpop.f32.mrf.mxu2 }
 0x22c   :  { %14341 = vst [vmem:[#allocation198_spill] sm:$0xff] %v10169_v10  ;;  %v10171_v9 = vpop.f32.mrf.mxu3  ;;  %v10173_v59 = vpop.f32.mrf.mxu0  ;;  %v10222_v10 = vld [vmem:[%s14003_s1 + $0x30] sm:$0xff] }
 0x22d   :  { %14342 = vst [vmem:[#allocation199_spill] sm:$0xff] %v10171_v9  ;;  %v10175_v8 = vpop.f32.mrf.mxu1 }
 0x22e   :  { %14343 = vst [vmem:[#allocation200_spill] sm:$0xff] %v10173_v59 }
 0x22f   :  { %14344 = vst [vmem:[#allocation201_spill] sm:$0xff] %v10175_v8  ;;  %7615 = vmatmul.msk.f32.gmra.mxu0 %vm113_vm1, %v9076_v12 }
 0x230   :  { %7648 = vmatmul.msk.f32.gmra.mxu1 %vm113_vm1, %v9076_v12  ;;  %7681 = vmatmul.msk.f32.gmra.mxu2 %vm113_vm1, %v10184_v1  ;;  %v10201_v12 = vld [vmem:[%s14003_s1 + $0x28] sm:$0xff] }
 0x231   :  { %7714 = vmatmul.msk.f32.gmra.mxu3 %vm113_vm1, %v10184_v1 }
 0x233   :  { %v10190_v11 = vpop.f32.mrf.mxu2 }
 0x234   :  { %14345 = vst [vmem:[#allocation202_spill] sm:$0xff] %v10190_v11  ;;  %v10192_v8 = vpop.f32.mrf.mxu3  ;;  %v10194_v59 = vpop.f32.mrf.mxu0 }
 0x235   :  { %14346 = vst [vmem:[#allocation203_spill] sm:$0xff] %v10192_v8  ;;  %v10196_v9 = vpop.f32.mrf.mxu1 }
 0x236   :  { %14347 = vst [vmem:[#allocation204_spill] sm:$0xff] %v10194_v59 }
 0x237   :  { %14348 = vst [vmem:[#allocation205_spill] sm:$0xff] %v10196_v9  ;;  %7616 = vmatmul.msk.f32.gmra.mxu0 %vm113_vm1, %v10201_v12 }
 0x238   :  { %7649 = vmatmul.msk.f32.gmra.mxu1 %vm113_vm1, %v10201_v12  ;;  %7682 = vmatmul.msk.f32.gmra.mxu2 %vm113_vm1, %v10201_v12 }
 0x239   :  { %7715 = vmatmul.msk.f32.gmra.mxu3 %vm113_vm1, %v10201_v12 }
 0x23b   :  { %v10211_v59 = vpop.f32.mrf.mxu2 }
 0x23c   :  { %14349 = vst [vmem:[#allocation206_spill] sm:$0xff] %v10211_v59  ;;  %v10213_v9 = vpop.f32.mrf.mxu3  ;;  %v10215_v8 = vpop.f32.mrf.mxu0 }
 0x23d   :  { %14350 = vst [vmem:[#allocation207_spill] sm:$0xff] %v10213_v9  ;;  %v10217_v11 = vpop.f32.mrf.mxu1 }
 0x23e   :  { %14351 = vst [vmem:[#allocation208_spill] sm:$0xff] %v10215_v8 }
 0x23f   :  { %14352 = vst [vmem:[#allocation209_spill] sm:$0xff] %v10217_v11  ;;  %7617 = vmatmul.msk.f32.gmra.mxu0 %vm113_vm1, %v10222_v10 }
 0x240   :  { %7650 = vmatmul.msk.f32.gmra.mxu1 %vm113_vm1, %v10222_v10  ;;  %7683 = vmatmul.msk.f32.gmra.mxu2 %vm113_vm1, %v10222_v10 }
 0x241   :  { %7716 = vmatmul.msk.f32.gmra.mxu3 %vm113_vm1, %v10222_v10 }
 0x243   :  { %v10232_v8 = vpop.f32.mrf.mxu2 }
 0x244   :  { %14353 = vst [vmem:[#allocation210_spill] sm:$0xff] %v10232_v8  ;;  %v10234_v11 = vpop.f32.mrf.mxu3  ;;  %v10236_v9 = vpop.f32.mrf.mxu0 }
 0x245   :  { %14354 = vst [vmem:[#allocation211_spill] sm:$0xff] %v10234_v11  ;;  %v10238_v59 = vpop.f32.mrf.mxu1 }
 0x246   :  { %14355 = vst [vmem:[#allocation212_spill] sm:$0xff] %v10236_v9 }
 0x247   :  { %14356 = vst [vmem:[#allocation213_spill] sm:$0xff] %v10238_v59  ;;  %7618 = vmatmul.msk.f32.gmra.mxu0 %vm113_vm1, %v10243_v0 }
 0x248   :  { %7651 = vmatmul.msk.f32.gmra.mxu1 %vm113_vm1, %v10243_v0  ;;  %7684 = vmatmul.msk.f32.gmra.mxu2 %vm113_vm1, %v10243_v0 }
 0x249   :  { %7717 = vmatmul.msk.f32.gmra.mxu3 %vm113_vm1, %v10243_v0 }
 0x24b   :  { %v10253_v9 = vpop.f32.mrf.mxu2 }
 0x24c   :  { %14357 = vst [vmem:[#allocation214_spill] sm:$0xff] %v10253_v9  ;;  %v10255_v59 = vpop.f32.mrf.mxu3  ;;  %v10257_v11 = vpop.f32.mrf.mxu0 }
 0x24d   :  { %14358 = vst [vmem:[#allocation215_spill] sm:$0xff] %v10255_v59  ;;  %v10259_v8 = vpop.f32.mrf.mxu1 }
 0x24e   :  { %14359 = vst [vmem:[#allocation216_spill] sm:$0xff] %v10257_v11 }
 0x24f   :  { %14360 = vst [vmem:[#allocation217_spill] sm:$0xff] %v10259_v8  ;;  %7619 = vmatmul.msk.f32.gmra.mxu0 %vm113_vm1, %v10264_v4 }
 0x250   :  { %7652 = vmatmul.msk.f32.gmra.mxu1 %vm113_vm1, %v10264_v4  ;;  %7685 = vmatmul.msk.f32.gmra.mxu2 %vm113_vm1, %v10264_v4 }
 0x251   :  { %7718 = vmatmul.msk.f32.gmra.mxu3 %vm113_vm1, %v10264_v4 }
 0x253   :  { %v10274_v11 = vpop.f32.mrf.mxu2 }
 0x254   :  { %14361 = vst [vmem:[#allocation218_spill] sm:$0xff] %v10274_v11  ;;  %v10276_v8 = vpop.f32.mrf.mxu3  ;;  %v10278_v59 = vpop.f32.mrf.mxu0 }
 0x255   :  { %14362 = vst [vmem:[#allocation219_spill] sm:$0xff] %v10276_v8  ;;  %v10280_v9 = vpop.f32.mrf.mxu1 }
 0x256   :  { %14363 = vst [vmem:[#allocation220_spill] sm:$0xff] %v10278_v59 }
 0x257   :  { %14364 = vst [vmem:[#allocation221_spill] sm:$0xff] %v10280_v9  ;;  %7620 = vmatmul.msk.f32.gmra.mxu0 %vm113_vm1, %v10285_v2 }
 0x258   :  { %7653 = vmatmul.msk.f32.gmra.mxu1 %vm113_vm1, %v10285_v2  ;;  %7686 = vmatmul.msk.f32.gmra.mxu2 %vm113_vm1, %v10285_v2 }
 0x259   :  { %7719 = vmatmul.msk.f32.gmra.mxu3 %vm113_vm1, %v10285_v2 }
 0x25b   :  { %v10295_v59 = vpop.f32.mrf.mxu2 }
 0x25c   :  { %14365 = vst [vmem:[#allocation222_spill] sm:$0xff] %v10295_v59  ;;  %v10297_v9 = vpop.f32.mrf.mxu3  ;;  %v10299_v8 = vpop.f32.mrf.mxu0 }
 0x25d   :  { %14366 = vst [vmem:[#allocation223_spill] sm:$0xff] %v10297_v9  ;;  %v10301_v11 = vpop.f32.mrf.mxu1 }
 0x25e   :  { %14367 = vst [vmem:[#allocation224_spill] sm:$0xff] %v10299_v8 }
 0x25f   :  { %14368 = vst [vmem:[#allocation225_spill] sm:$0xff] %v10301_v11  ;;  %7621 = vmatmul.msk.f32.gmra.mxu0 %vm113_vm1, %v10306_v60 }
 0x260   :  { %7654 = vmatmul.msk.f32.gmra.mxu1 %vm113_vm1, %v10306_v60  ;;  %7687 = vmatmul.msk.f32.gmra.mxu2 %vm113_vm1, %v10306_v60 }
 0x261   :  { %7720 = vmatmul.msk.f32.gmra.mxu3 %vm113_vm1, %v10306_v60 }
 0x263   :  { %v10316_v8 = vpop.f32.mrf.mxu2 }
 0x264   :  { %14369 = vst [vmem:[#allocation226_spill] sm:$0xff] %v10316_v8  ;;  %v10318_v11 = vpop.f32.mrf.mxu3  ;;  %v10320_v9 = vpop.f32.mrf.mxu0 }
 0x265   :  { %14370 = vst [vmem:[#allocation227_spill] sm:$0xff] %v10318_v11  ;;  %v10322_v59 = vpop.f32.mrf.mxu1 }
 0x266   :  { %14371 = vst [vmem:[#allocation228_spill] sm:$0xff] %v10320_v9 }
 0x267   :  { %14372 = vst [vmem:[#allocation229_spill] sm:$0xff] %v10322_v59  ;;  %7622 = vmatmul.msk.f32.gmra.mxu0 %vm113_vm1, %v10327_v62 }
 0x268   :  { %7655 = vmatmul.msk.f32.gmra.mxu1 %vm113_vm1, %v10327_v62  ;;  %7688 = vmatmul.msk.f32.gmra.mxu2 %vm113_vm1, %v10327_v62 }
 0x269   :  { %7721 = vmatmul.msk.f32.gmra.mxu3 %vm113_vm1, %v10327_v62 }
 0x26b   :  { %v10337_v9 = vpop.f32.mrf.mxu2 }
 0x26c   :  { %14373 = vst [vmem:[#allocation230_spill] sm:$0xff] %v10337_v9  ;;  %v10339_v59 = vpop.f32.mrf.mxu3  ;;  %v10341_v11 = vpop.f32.mrf.mxu0 }
 0x26d   :  { %14374 = vst [vmem:[#allocation231_spill] sm:$0xff] %v10339_v59  ;;  %v10343_v8 = vpop.f32.mrf.mxu1 }
 0x26e   :  { %14375 = vst [vmem:[#allocation232_spill] sm:$0xff] %v10341_v11 }
 0x26f   :  { %14376 = vst [vmem:[#allocation233_spill] sm:$0xff] %v10343_v8  ;;  %7623 = vmatmul.msk.f32.gmra.mxu0 %vm113_vm1, %v10348_v63 }
 0x270   :  { %7656 = vmatmul.msk.f32.gmra.mxu1 %vm113_vm1, %v10348_v63  ;;  %7689 = vmatmul.msk.f32.gmra.mxu2 %vm113_vm1, %v10348_v63 }
 0x271   :  { %7722 = vmatmul.msk.f32.gmra.mxu3 %vm113_vm1, %v10348_v63 }
 0x273   :  { %v10358_v11 = vpop.f32.mrf.mxu2 }
 0x274   :  { %14377 = vst [vmem:[#allocation234_spill] sm:$0xff] %v10358_v11  ;;  %v10360_v8 = vpop.f32.mrf.mxu3  ;;  %v10362_v59 = vpop.f32.mrf.mxu0 }
 0x275   :  { %14378 = vst [vmem:[#allocation235_spill] sm:$0xff] %v10360_v8  ;;  %v10364_v9 = vpop.f32.mrf.mxu1 }
 0x276   :  { %14379 = vst [vmem:[#allocation236_spill] sm:$0xff] %v10362_v59 }
 0x277   :  { %14380 = vst [vmem:[#allocation237_spill] sm:$0xff] %v10364_v9  ;;  %7624 = vmatmul.msk.f32.gmra.mxu0 %vm113_vm1, %v10369_v61 }
 0x278   :  { %7657 = vmatmul.msk.f32.gmra.mxu1 %vm113_vm1, %v10369_v61  ;;  %7690 = vmatmul.msk.f32.gmra.mxu2 %vm113_vm1, %v10369_v61 }
 0x279   :  { %7723 = vmatmul.msk.f32.gmra.mxu3 %vm113_vm1, %v10369_v61 }
 0x27b   :  { %v10379_v59 = vpop.f32.mrf.mxu2 }
 0x27c   :  { %14381 = vst [vmem:[#allocation238_spill] sm:$0xff] %v10379_v59  ;;  %v10381_v9 = vpop.f32.mrf.mxu3  ;;  %v10383_v8 = vpop.f32.mrf.mxu0 }
 0x27d   :  { %14382 = vst [vmem:[#allocation239_spill] sm:$0xff] %v10381_v9  ;;  %v10385_v11 = vpop.f32.mrf.mxu1 }
 0x27e   :  { %14383 = vst [vmem:[#allocation240_spill] sm:$0xff] %v10383_v8 }
 0x27f   :  { %14384 = vst [vmem:[#allocation241_spill] sm:$0xff] %v10385_v11  ;;  %7625 = vmatmul.msk.f32.gmra.mxu0 %vm113_vm1, %v10390_v56 }
 0x280   :  { %7658 = vmatmul.msk.f32.gmra.mxu1 %vm113_vm1, %v10390_v56  ;;  %7691 = vmatmul.msk.f32.gmra.mxu2 %vm113_vm1, %v10390_v56 }
 0x281   :  { %7724 = vmatmul.msk.f32.gmra.mxu3 %vm113_vm1, %v10390_v56 }
 0x283   :  { %v10400_v8 = vpop.f32.mrf.mxu2 }
 0x284   :  { %14385 = vst [vmem:[#allocation242_spill] sm:$0xff] %v10400_v8  ;;  %v10402_v11 = vpop.f32.mrf.mxu3  ;;  %v10404_v9 = vpop.f32.mrf.mxu0 }
 0x285   :  { %14386 = vst [vmem:[#allocation243_spill] sm:$0xff] %v10402_v11  ;;  %v10406_v59 = vpop.f32.mrf.mxu1 }
 0x286   :  { %14387 = vst [vmem:[#allocation244_spill] sm:$0xff] %v10404_v9 }
 0x287   :  { %14388 = vst [vmem:[#allocation245_spill] sm:$0xff] %v10406_v59  ;;  %7626 = vmatmul.msk.f32.gmra.mxu0 %vm113_vm1, %v10411_v51 }
 0x288   :  { %7659 = vmatmul.msk.f32.gmra.mxu1 %vm113_vm1, %v10411_v51  ;;  %7692 = vmatmul.msk.f32.gmra.mxu2 %vm113_vm1, %v10411_v51 }
 0x289   :  { %7725 = vmatmul.msk.f32.gmra.mxu3 %vm113_vm1, %v10411_v51 }
 0x28b   :  { %v10421_v9 = vpop.f32.mrf.mxu2 }
 0x28c   :  { %14389 = vst [vmem:[#allocation246_spill] sm:$0xff] %v10421_v9  ;;  %v10423_v59 = vpop.f32.mrf.mxu3  ;;  %v10425_v11 = vpop.f32.mrf.mxu0 }
 0x28d   :  { %14390 = vst [vmem:[#allocation247_spill] sm:$0xff] %v10423_v59  ;;  %v10427_v8 = vpop.f32.mrf.mxu1 }
 0x28e   :  { %14391 = vst [vmem:[#allocation248_spill] sm:$0xff] %v10425_v11 }
 0x28f   :  { %14392 = vst [vmem:[#allocation249_spill] sm:$0xff] %v10427_v8  ;;  %7627 = vmatmul.msk.f32.gmra.mxu0 %vm113_vm1, %v10432_v46 }
 0x290   :  { %7660 = vmatmul.msk.f32.gmra.mxu1 %vm113_vm1, %v10432_v46  ;;  %7693 = vmatmul.msk.f32.gmra.mxu2 %vm113_vm1, %v10432_v46 }
 0x291   :  { %7726 = vmatmul.msk.f32.gmra.mxu3 %vm113_vm1, %v10432_v46 }
 0x293   :  { %v10442_v11 = vpop.f32.mrf.mxu2 }
 0x294   :  { %14393 = vst [vmem:[#allocation250_spill] sm:$0xff] %v10442_v11  ;;  %v10444_v8 = vpop.f32.mrf.mxu3  ;;  %v10446_v59 = vpop.f32.mrf.mxu0 }
 0x295   :  { %14394 = vst [vmem:[#allocation251_spill] sm:$0xff] %v10444_v8  ;;  %v10448_v9 = vpop.f32.mrf.mxu1 }
 0x296   :  { %14395 = vst [vmem:[#allocation252_spill] sm:$0xff] %v10446_v59 }
 0x297   :  { %14396 = vst [vmem:[#allocation253_spill] sm:$0xff] %v10448_v9  ;;  %7628 = vmatmul.msk.f32.gmra.mxu0 %vm113_vm1, %v10453_v41 }
 0x298   :  { %7661 = vmatmul.msk.f32.gmra.mxu1 %vm113_vm1, %v10453_v41  ;;  %7694 = vmatmul.msk.f32.gmra.mxu2 %vm113_vm1, %v10453_v41 }
 0x299   :  { %7727 = vmatmul.msk.f32.gmra.mxu3 %vm113_vm1, %v10453_v41 }
 0x29b   :  { %v10463_v59 = vpop.f32.mrf.mxu2 }
 0x29c   :  { %14397 = vst [vmem:[#allocation254_spill] sm:$0xff] %v10463_v59  ;;  %v10465_v9 = vpop.f32.mrf.mxu3  ;;  %v10467_v8 = vpop.f32.mrf.mxu0 }
 0x29d   :  { %14398 = vst [vmem:[#allocation255_spill] sm:$0xff] %v10465_v9  ;;  %v10469_v11 = vpop.f32.mrf.mxu1 }
 0x29e   :  { %14399 = vst [vmem:[#allocation256_spill] sm:$0xff] %v10467_v8 }
 0x29f   :  { %14400 = vst [vmem:[#allocation257_spill] sm:$0xff] %v10469_v11  ;;  %7629 = vmatmul.msk.f32.gmra.mxu0 %vm113_vm1, %v10474_v36 }
 0x2a0   :  { %7662 = vmatmul.msk.f32.gmra.mxu1 %vm113_vm1, %v10474_v36  ;;  %7695 = vmatmul.msk.f32.gmra.mxu2 %vm113_vm1, %v10474_v36 }
 0x2a1   :  { %7728 = vmatmul.msk.f32.gmra.mxu3 %vm113_vm1, %v10474_v36 }
 0x2a3   :  { %v10484_v8 = vpop.f32.mrf.mxu2 }
 0x2a4   :  { %14401 = vst [vmem:[#allocation258_spill] sm:$0xff] %v10484_v8  ;;  %v10486_v11 = vpop.f32.mrf.mxu3  ;;  %v10488_v9 = vpop.f32.mrf.mxu0 }
 0x2a5   :  { %14402 = vst [vmem:[#allocation259_spill] sm:$0xff] %v10486_v11  ;;  %v10490_v59 = vpop.f32.mrf.mxu1 }
 0x2a6   :  { %14403 = vst [vmem:[#allocation260_spill] sm:$0xff] %v10488_v9 }
 0x2a7   :  { %14404 = vst [vmem:[#allocation261_spill] sm:$0xff] %v10490_v59  ;;  %7630 = vmatmul.msk.f32.gmra.mxu0 %vm113_vm1, %v10495_v31 }
 0x2a8   :  { %7663 = vmatmul.msk.f32.gmra.mxu1 %vm113_vm1, %v10495_v31  ;;  %7696 = vmatmul.msk.f32.gmra.mxu2 %vm113_vm1, %v10495_v31 }
 0x2a9   :  { %7729 = vmatmul.msk.f32.gmra.mxu3 %vm113_vm1, %v10495_v31 }
 0x2ab   :  { %v10505_v9 = vpop.f32.mrf.mxu2 }
 0x2ac   :  { %14405 = vst [vmem:[#allocation262_spill] sm:$0xff] %v10505_v9  ;;  %v10507_v59 = vpop.f32.mrf.mxu3  ;;  %v10509_v11 = vpop.f32.mrf.mxu0 }
 0x2ad   :  { %14406 = vst [vmem:[#allocation263_spill] sm:$0xff] %v10507_v59  ;;  %v10511_v8 = vpop.f32.mrf.mxu1 }
 0x2ae   :  { %14407 = vst [vmem:[#allocation264_spill] sm:$0xff] %v10509_v11 }
 0x2af   :  { %14408 = vst [vmem:[#allocation265_spill] sm:$0xff] %v10511_v8  ;;  %7631 = vmatmul.msk.f32.gmra.mxu0 %vm113_vm1, %v10516_v26 }
 0x2b0   :  { %7664 = vmatmul.msk.f32.gmra.mxu1 %vm113_vm1, %v10516_v26  ;;  %7697 = vmatmul.msk.f32.gmra.mxu2 %vm113_vm1, %v10516_v26 }
 0x2b1   :  { %7730 = vmatmul.msk.f32.gmra.mxu3 %vm113_vm1, %v10516_v26 }
 0x2b3   :  { %v10526_v11 = vpop.f32.mrf.mxu2 }
 0x2b4   :  { %14409 = vst [vmem:[#allocation266_spill] sm:$0xff] %v10526_v11  ;;  %v10528_v8 = vpop.f32.mrf.mxu3  ;;  %v10530_v59 = vpop.f32.mrf.mxu0 }
 0x2b5   :  { %14410 = vst [vmem:[#allocation267_spill] sm:$0xff] %v10528_v8  ;;  %v10532_v9 = vpop.f32.mrf.mxu1 }
 0x2b6   :  { %14411 = vst [vmem:[#allocation268_spill] sm:$0xff] %v10530_v59 }
 0x2b7   :  { %14412 = vst [vmem:[#allocation269_spill] sm:$0xff] %v10532_v9  ;;  %7632 = vmatmul.msk.f32.gmra.mxu0 %vm113_vm1, %v10537_v23 }
 0x2b8   :  { %7665 = vmatmul.msk.f32.gmra.mxu1 %vm113_vm1, %v10537_v23  ;;  %7698 = vmatmul.msk.f32.gmra.mxu2 %vm113_vm1, %v10537_v23 }
 0x2b9   :  { %7731 = vmatmul.msk.f32.gmra.mxu3 %vm113_vm1, %v10537_v23 }
 0x2bb   :  { %v10547_v59 = vpop.f32.mrf.mxu2 }
 0x2bc   :  { %14413 = vst [vmem:[#allocation270_spill] sm:$0xff] %v10547_v59  ;;  %v10549_v9 = vpop.f32.mrf.mxu3  ;;  %v10551_v8 = vpop.f32.mrf.mxu0 }
 0x2bd   :  { %14414 = vst [vmem:[#allocation271_spill] sm:$0xff] %v10549_v9  ;;  %v10553_v11 = vpop.f32.mrf.mxu1 }
 0x2be   :  { %14415 = vst [vmem:[#allocation272_spill] sm:$0xff] %v10551_v8 }
 0x2bf   :  { %14416 = vst [vmem:[#allocation273_spill] sm:$0xff] %v10553_v11  ;;  %7633 = vmatmul.msk.f32.gmra.mxu0 %vm113_vm1, %v10558_v22 }
 0x2c0   :  { %7666 = vmatmul.msk.f32.gmra.mxu1 %vm113_vm1, %v10558_v22  ;;  %7699 = vmatmul.msk.f32.gmra.mxu2 %vm113_vm1, %v10558_v22 }
 0x2c1   :  { %7732 = vmatmul.msk.f32.gmra.mxu3 %vm113_vm1, %v10558_v22 }
 0x2c3   :  { %v10568_v8 = vpop.f32.mrf.mxu2 }
 0x2c4   :  { %14417 = vst [vmem:[#allocation274_spill] sm:$0xff] %v10568_v8  ;;  %v10570_v11 = vpop.f32.mrf.mxu3  ;;  %v10572_v9 = vpop.f32.mrf.mxu0 }
 0x2c5   :  { %14418 = vst [vmem:[#allocation275_spill] sm:$0xff] %v10570_v11  ;;  %v10574_v59 = vpop.f32.mrf.mxu1 }
 0x2c6   :  { %14419 = vst [vmem:[#allocation276_spill] sm:$0xff] %v10572_v9 }
 0x2c7   :  { %14420 = vst [vmem:[#allocation277_spill] sm:$0xff] %v10574_v59  ;;  %7634 = vmatmul.msk.f32.gmra.mxu0 %vm113_vm1, %v10579_v21 }
 0x2c8   :  { %7667 = vmatmul.msk.f32.gmra.mxu1 %vm113_vm1, %v10579_v21  ;;  %7700 = vmatmul.msk.f32.gmra.mxu2 %vm113_vm1, %v10579_v21 }
 0x2c9   :  { %7733 = vmatmul.msk.f32.gmra.mxu3 %vm113_vm1, %v10579_v21 }
 0x2cb   :  { %v10589_v9 = vpop.f32.mrf.mxu2 }
 0x2cc   :  { %14421 = vst [vmem:[#allocation278_spill] sm:$0xff] %v10589_v9  ;;  %v10591_v59 = vpop.f32.mrf.mxu3  ;;  %v10593_v11 = vpop.f32.mrf.mxu0 }
 0x2cd   :  { %14422 = vst [vmem:[#allocation279_spill] sm:$0xff] %v10591_v59  ;;  %v10595_v8 = vpop.f32.mrf.mxu1 }
 0x2ce   :  { %14423 = vst [vmem:[#allocation280_spill] sm:$0xff] %v10593_v11 }
 0x2cf   :  { %14424 = vst [vmem:[#allocation281_spill] sm:$0xff] %v10595_v8  ;;  %7635 = vmatmul.msk.f32.gmra.mxu0 %vm113_vm1, %v10600_v20 }
 0x2d0   :  { %7668 = vmatmul.msk.f32.gmra.mxu1 %vm113_vm1, %v10600_v20  ;;  %7701 = vmatmul.msk.f32.gmra.mxu2 %vm113_vm1, %v10600_v20 }
 0x2d1   :  { %7734 = vmatmul.msk.f32.gmra.mxu3 %vm113_vm1, %v10600_v20 }
 0x2d3   :  { %v10610_v11 = vpop.f32.mrf.mxu2 }
 0x2d4   :  { %14425 = vst [vmem:[#allocation282_spill] sm:$0xff] %v10610_v11  ;;  %v10612_v8 = vpop.f32.mrf.mxu3  ;;  %v10614_v59 = vpop.f32.mrf.mxu0 }
 0x2d5   :  { %14426 = vst [vmem:[#allocation283_spill] sm:$0xff] %v10612_v8  ;;  %v10616_v9 = vpop.f32.mrf.mxu1 }
 0x2d6   :  { %14427 = vst [vmem:[#allocation284_spill] sm:$0xff] %v10614_v59 }
 0x2d7   :  { %14428 = vst [vmem:[#allocation285_spill] sm:$0xff] %v10616_v9  ;;  %7636 = vmatmul.msk.f32.gmra.mxu0 %vm113_vm1, %v10621_v19 }
 0x2d8   :  { %7669 = vmatmul.msk.f32.gmra.mxu1 %vm113_vm1, %v10621_v19  ;;  %7702 = vmatmul.msk.f32.gmra.mxu2 %vm113_vm1, %v10621_v19 }
 0x2d9   :  { %7735 = vmatmul.msk.f32.gmra.mxu3 %vm113_vm1, %v10621_v19 }
 0x2db   :  { %v10631_v59 = vpop.f32.mrf.mxu2 }
 0x2dc   :  { %14429 = vst [vmem:[#allocation286_spill] sm:$0xff] %v10631_v59  ;;  %v10633_v9 = vpop.f32.mrf.mxu3  ;;  %v10635_v8 = vpop.f32.mrf.mxu0 }
 0x2dd   :  { %14430 = vst [vmem:[#allocation287_spill] sm:$0xff] %v10633_v9  ;;  %v10637_v11 = vpop.f32.mrf.mxu1 }
 0x2de   :  { %14431 = vst [vmem:[#allocation288_spill] sm:$0xff] %v10635_v8 }
 0x2df   :  { %14432 = vst [vmem:[#allocation289_spill] sm:$0xff] %v10637_v11  ;;  %7637 = vmatmul.msk.f32.gmra.mxu0 %vm113_vm1, %v10642_v18 }
 0x2e0   :  { %7670 = vmatmul.msk.f32.gmra.mxu1 %vm113_vm1, %v10642_v18  ;;  %7703 = vmatmul.msk.f32.gmra.mxu2 %vm113_vm1, %v10642_v18 }
 0x2e1   :  { %7736 = vmatmul.msk.f32.gmra.mxu3 %vm113_vm1, %v10642_v18 }
 0x2e3   :  { %v10652_v8 = vpop.f32.mrf.mxu2 }
 0x2e4   :  { %14433 = vst [vmem:[#allocation290_spill] sm:$0xff] %v10652_v8  ;;  %v10654_v11 = vpop.f32.mrf.mxu3  ;;  %v10656_v9 = vpop.f32.mrf.mxu0 }
 0x2e5   :  { %14434 = vst [vmem:[#allocation291_spill] sm:$0xff] %v10654_v11  ;;  %v10658_v59 = vpop.f32.mrf.mxu1 }
 0x2e6   :  { %14435 = vst [vmem:[#allocation292_spill] sm:$0xff] %v10656_v9 }
 0x2e7   :  { %14436 = vst [vmem:[#allocation293_spill] sm:$0xff] %v10658_v59  ;;  %7638 = vmatmul.msk.f32.gmra.mxu0 %vm113_vm1, %v10663_v17 }
 0x2e8   :  { %7671 = vmatmul.msk.f32.gmra.mxu1 %vm113_vm1, %v10663_v17  ;;  %7704 = vmatmul.msk.f32.gmra.mxu2 %vm113_vm1, %v10663_v17 }
 0x2e9   :  { %7737 = vmatmul.msk.f32.gmra.mxu3 %vm113_vm1, %v10663_v17 }
 0x2eb   :  { %v10673_v9 = vpop.f32.mrf.mxu2 }
 0x2ec   :  { %14437 = vst [vmem:[#allocation294_spill] sm:$0xff] %v10673_v9  ;;  %v10675_v59 = vpop.f32.mrf.mxu3  ;;  %v10677_v11 = vpop.f32.mrf.mxu0 }
 0x2ed   :  { %14438 = vst [vmem:[#allocation295_spill] sm:$0xff] %v10675_v59  ;;  %v10679_v8 = vpop.f32.mrf.mxu1 }
 0x2ee   :  { %14439 = vst [vmem:[#allocation296_spill] sm:$0xff] %v10677_v11 }
 0x2ef   :  { %14440 = vst [vmem:[#allocation297_spill] sm:$0xff] %v10679_v8  ;;  %7639 = vmatmul.msk.f32.gmra.mxu0 %vm113_vm1, %v10684_v16 }
 0x2f0   :  { %7672 = vmatmul.msk.f32.gmra.mxu1 %vm113_vm1, %v10684_v16  ;;  %7705 = vmatmul.msk.f32.gmra.mxu2 %vm113_vm1, %v10684_v16 }
 0x2f1   :  { %7738 = vmatmul.msk.f32.gmra.mxu3 %vm113_vm1, %v10684_v16 }
 0x2f3   :  { %v10694_v11 = vpop.f32.mrf.mxu2 }
 0x2f4   :  { %14441 = vst [vmem:[#allocation298_spill] sm:$0xff] %v10694_v11  ;;  %v10696_v8 = vpop.f32.mrf.mxu3  ;;  %v10698_v59 = vpop.f32.mrf.mxu0 }
 0x2f5   :  { %14442 = vst [vmem:[#allocation299_spill] sm:$0xff] %v10696_v8  ;;  %v10700_v9 = vpop.f32.mrf.mxu1 }
 0x2f6   :  { %14443 = vst [vmem:[#allocation300_spill] sm:$0xff] %v10698_v59 }
 0x2f7   :  { %14444 = vst [vmem:[#allocation301_spill] sm:$0xff] %v10700_v9  ;;  %7640 = vmatmul.msk.f32.gmra.mxu0 %vm113_vm1, %v10705_v15 }
 0x2f8   :  { %7673 = vmatmul.msk.f32.gmra.mxu1 %vm113_vm1, %v10705_v15  ;;  %7706 = vmatmul.msk.f32.gmra.mxu2 %vm113_vm1, %v10705_v15 }
 0x2f9   :  { %7739 = vmatmul.msk.f32.gmra.mxu3 %vm113_vm1, %v10705_v15 }
 0x2fb   :  { %v10715_v59 = vpop.f32.mrf.mxu2 }
 0x2fc   :  { %14445 = vst [vmem:[#allocation302_spill] sm:$0xff] %v10715_v59  ;;  %v10717_v9 = vpop.f32.mrf.mxu3  ;;  %v10719_v8 = vpop.f32.mrf.mxu0 }
 0x2fd   :  { %14446 = vst [vmem:[#allocation303_spill] sm:$0xff] %v10717_v9  ;;  %v10721_v11 = vpop.f32.mrf.mxu1 }
 0x2fe   :  { %14447 = vst [vmem:[#allocation304_spill] sm:$0xff] %v10719_v8 }
 0x2ff   :  { %14448 = vst [vmem:[#allocation305_spill] sm:$0xff] %v10721_v11  ;;  %7641 = vmatmul.msk.f32.gmra.mxu0 %vm113_vm1, %v10726_v14 }
 0x300   :  { %7674 = vmatmul.msk.f32.gmra.mxu1 %vm113_vm1, %v10726_v14  ;;  %7707 = vmatmul.msk.f32.gmra.mxu2 %vm113_vm1, %v10726_v14 }
 0x301   :  { %7740 = vmatmul.msk.f32.gmra.mxu3 %vm113_vm1, %v10726_v14 }
 0x303   :  { %v10736_v8 = vpop.f32.mrf.mxu2 }
 0x304   :  { %14449 = vst [vmem:[#allocation306_spill] sm:$0xff] %v10736_v8  ;;  %v10738_v11 = vpop.f32.mrf.mxu3  ;;  %v10740_v9 = vpop.f32.mrf.mxu0 }
 0x305   :  { %14450 = vst [vmem:[#allocation307_spill] sm:$0xff] %v10738_v11  ;;  %v10742_v59 = vpop.f32.mrf.mxu1 }
 0x306   :  { %14451 = vst [vmem:[#allocation308_spill] sm:$0xff] %v10740_v9  ;;  %v8520_v9 = vld [vmem:[%s14004_s2 + $0x38] sm:$0xff]  }
 0x307   :  { %14452 = vst [vmem:[#allocation309_spill] sm:$0xff] %v10742_v59  ;;  %7642 = vmatmul.msk.f32.gmra.mxu0 %vm113_vm1, %v10747_v13  ;;  %v8536_v59 = vld [vmem:[%s14004_s2 + $0xb8] sm:$0xff]   ;;  %v7905_v55 = vunpack.c.h.bf16 %v8520_v9  ;;  %v7904_v53 = vunpack.c.l.bf16 %v8520_v9 }
 0x308   :  { %7675 = vmatmul.msk.f32.gmra.mxu1 %vm113_vm1, %v10747_v13  ;;  %7708 = vmatmul.msk.f32.gmra.mxu2 %vm113_vm1, %v10747_v13  ;;  %v7969_v57 = vunpack.c.h.bf16 %v8536_v59 }
 0x309   :  { %7741 = vmatmul.msk.f32.gmra.mxu3 %vm113_vm1, %v10747_v13 }
 0x30b   :  { %v10763_v11 = vpop.f32.mrf.mxu2 }
 0x30c   :  { %14453 = vst [vmem:[#allocation310_spill] sm:$0xff] %v10763_v11  ;;  %v10765_v8 = vpop.f32.mrf.mxu3  ;;  %v10773_v5 = vpop.f32.mrf.mxu0  ;;  %v7968_v11 = vunpack.c.l.bf16 %v8536_v59 }
 0x30d   :  { %14454 = vst [vmem:[#allocation311_spill] sm:$0xff] %v10765_v8  ;;  %v10775_v54 = vpop.f32.mrf.mxu1  ;;  %v8840_v8 = vld [vmem:[%s14003_s1] sm:$0xff] }
 0x30e   :  { %14455 = vst [vmem:[#allocation312_spill] sm:$0xff] %v10773_v5  ;;  %v8000_v5 = vunpack.c.l.bf16 %v8544_v58 }
 0x30f   :  { %14456 = vst [vmem:[#allocation313_spill] sm:$0xff] %v10775_v54  ;;  %7743 = vmatmul.msk.f32.vlgmr.msra.gmra.mxu0 %vm113_vm1, %v8840_v8  ;;  %v7936_v54 = vunpack.c.l.bf16 %v8528_v3 }
 0x310   :  { %7776 = vmatmul.msk.f32.vlgmr.msra.gmra.mxu1 %vm113_vm1, %v8840_v8  ;;  %7809 = vmatmul.msk.f32.vlgmr.msra.gmra.mxu2 %vm113_vm1, %v8840_v8 }
 0x311   :  { %7842 = vmatmul.msk.f32.vlgmr.msra.gmra.mxu3 %vm113_vm1, %v8840_v8  ;;  %3317 = vmatpush.msra.mxu2 %v7969_v57  ;;  %v8519_v57 = vld [vmem:[%s14004_s2 + $0x30] sm:$0xff]  }
 0x312   :  { %3091 = vmatpush.msra.mxu0 %v7905_v55  ;;  %3430 = vmatpush.msra.mxu3 %v8001_v7  ;;  %v8543_v55 = vld [vmem:[%s14004_s2 + $0xf0] sm:$0xff]  }
 0x313   :  { %3204 = vmatpush.msra.mxu1 %v7937_v6  ;;  %v10787_v49 = vpop.f32.mrf.mxu2  ;;  %3318 = vmatpush.msra.mxu2 %v7968_v11  ;;  %v7901_v6 = vunpack.c.h.bf16 %v8519_v57  ;;  %v7997_v7 = vunpack.c.h.bf16 %v8543_v55  ;;  %v8842_v11 = vld [vmem:[%s14003_s1 + $0x10] sm:$0xff] }
 0x314   :  { %v10789_v48 = vpop.f32.mrf.mxu3  ;;  %3092 = vmatpush.msra.mxu0 %v7904_v53  ;;  %v10791_v9 = vpop.f32.mrf.mxu0  ;;  %3431 = vmatpush.msra.mxu3 %v8000_v5  ;;  %v8527_v53 = vld [vmem:[%s14004_s2 + $0x70] sm:$0xff]  }
 0x315   :  { %v10793_v8 = vpop.f32.mrf.mxu1  ;;  %3205 = vmatpush.msra.mxu1 %v7936_v54  ;;  %3319 = vmatpush.msra.mxu2 %v7965_v50  ;;  %v7933_v58 = vunpack.c.h.bf16 %v8527_v53  ;;  %v8841_v54 = vld [vmem:[%s14003_s1 + $0x8] sm:$0xff] }
 0x316   :  { %14457 = vst [vmem:[#allocation314_spill] sm:$0xff] %v10793_v8  ;;  %3093 = vmatpush.msra.mxu0 %v7901_v6  ;;  %3432 = vmatpush.msra.mxu3 %v7997_v7  ;;  %v7964_v6 = vunpack.c.l.bf16 %v8535_v52  ;;  %v8843_v8 = vld [vmem:[%s14003_s1 + $0x18] sm:$0xff]  ;;  %s8928_s1 = smov [#allocation7]  }
 0x317   :  { %7744 = vmatmul.msk.f32.gmra.mxu0 %vm113_vm1, %v8841_v54  ;;  %3206 = vmatpush.msra.mxu1 %v7933_v58  ;;  %s7333_s11 = sshll.u32 %s8928_s1, 4  ;;  %s7334_s11 = int_to_ptr.vmem [resolvable:$true] %s7333_s11 }
 0x318   :  { %7777 = vmatmul.msk.f32.gmra.mxu1 %vm113_vm1, %v8841_v54  ;;  %7810 = vmatmul.msk.f32.gmra.mxu2 %vm113_vm1, %v8841_v54 }
 0x319   :  { %7843 = vmatmul.msk.f32.gmra.mxu3 %vm113_vm1, %v8841_v54  ;;  %3320 = vmatpush.msra.mxu2 %v7964_v6 }
 0x31b   :  { %v10811_v50 = vpop.f32.mrf.mxu2 }
 0x31c   :  { %14458 = vst [vmem:[#allocation315_spill] sm:$0xff] %v10811_v50  ;;  %v10813_v3 = vpop.f32.mrf.mxu3  ;;  %v10815_v5 = vpop.f32.mrf.mxu0  ;;  %v7932_v50 = vunpack.c.l.bf16 %v8527_v53 }
 0x31d   :  { %14459 = vst [vmem:[#allocation316_spill] sm:$0xff] %v10813_v3  ;;  %v10817_v59 = vpop.f32.mrf.mxu1  ;;  %v7996_v3 = vunpack.c.l.bf16 %v8543_v55 }
 0x31e   :  { %14460 = vst [vmem:[#allocation317_spill] sm:$0xff] %v10815_v5  ;;  %v7900_v5 = vunpack.c.l.bf16 %v8519_v57  ;;  %3207 = vmatpush.msra.mxu1 %v7932_v50 }
 0x31f   :  { %14461 = vst [vmem:[#allocation318_spill] sm:$0xff] %v10817_v59  ;;  %7745 = vmatmul.msk.f32.gmra.mxu0 %vm113_vm1, %v8842_v11  ;;  %3433 = vmatpush.msra.mxu3 %v7996_v3 }
 0x320   :  { %7778 = vmatmul.msk.f32.gmra.mxu1 %vm113_vm1, %v8842_v11  ;;  %7811 = vmatmul.msk.f32.gmra.mxu2 %vm113_vm1, %v8842_v11 }
 0x321   :  { %7844 = vmatmul.msk.f32.gmra.mxu3 %vm113_vm1, %v8842_v11  ;;  %3094 = vmatpush.msra.mxu0 %v7900_v5 }
 0x323   :  { %v10826_v7 = vpop.f32.mrf.mxu2 }
 0x324   :  { %v10828_v58 = vpop.f32.mrf.mxu3  ;;  %v10830_v54 = vpop.f32.mrf.mxu0 }
 0x325   :  { %v10832_v59 = vpop.f32.mrf.mxu1 }
 0x327   :  { %7746 = vmatmul.msk.f32.gmra.mxu0 %vm113_vm1, %v8843_v8 }
 0x328   :  { %7779 = vmatmul.msk.f32.gmra.mxu1 %vm113_vm1, %v8843_v8  ;;  %7812 = vmatmul.msk.f32.gmra.mxu2 %vm113_vm1, %v8843_v8 }
 0x329   :  { %7845 = vmatmul.msk.f32.gmra.mxu3 %vm113_vm1, %v8843_v8  ;;  %v8534_v8 = vld [vmem:[%s14004_s2 + $0xa8] sm:$0xff]  }
 0x32a   :  { %v7961_v50 = vunpack.c.h.bf16 %v8534_v8 }
 0x32b   :  { %v10841_v52 = vpop.f32.mrf.mxu2 }
 0x32c   :  { %14462 = vst [vmem:[#allocation319_spill] sm:$0xff] %v10841_v52  ;;  %v10843_v57 = vpop.f32.mrf.mxu3  ;;  %v10845_v55 = vpop.f32.mrf.mxu0  ;;  %3321 = vmatpush.msra.mxu2 %v7961_v50 }
 0x32d   :  { %14463 = vst [vmem:[#allocation320_spill] sm:$0xff] %v10843_v57  ;;  %v10847_v53 = vpop.f32.mrf.mxu1 }
 0x32e   :  { %14464 = vst [vmem:[#allocation321_spill] sm:$0xff] %v10845_v55 }
 0x32f   :  { %14465 = vst [vmem:[#allocation322_spill] sm:$0xff] %v10847_v53  ;;  %7747 = vmatmul.msk.f32.gmra.mxu0 %vm113_vm1, %v10184_v1  ;;  %v8518_v53 = vld [vmem:[%s14004_s2 + $0x28] sm:$0xff]  }
 0x330   :  { %7780 = vmatmul.msk.f32.gmra.mxu1 %vm113_vm1, %v10184_v1  ;;  %7813 = vmatmul.msk.f32.gmra.mxu2 %vm113_vm1, %v10184_v1  ;;  %v7897_v55 = vunpack.c.h.bf16 %v8518_v53 }
 0x331   :  { %7846 = vmatmul.msk.f32.gmra.mxu3 %vm113_vm1, %v10184_v1  ;;  %v8542_v1 = vld [vmem:[%s14004_s2 + $0xe8] sm:$0xff]  }
 0x332   :  { %v7993_v57 = vunpack.c.h.bf16 %v8542_v1  ;;  %3095 = vmatpush.msra.mxu0 %v7897_v55 }
 0x333   :  { %v10860_v3 = vpop.f32.mrf.mxu2 }
 0x334   :  { %14466 = vst [vmem:[#allocation323_spill] sm:$0xff] %v10860_v3  ;;  %v10862_v5 = vpop.f32.mrf.mxu3  ;;  %v10864_v11 = vpop.f32.mrf.mxu0  ;;  %v8526_v3 = vld [vmem:[%s14004_s2 + $0x68] sm:$0xff]   ;;  %3434 = vmatpush.msra.mxu3 %v7993_v57 }
 0x335   :  { %14467 = vst [vmem:[#allocation324_spill] sm:$0xff] %v10862_v5  ;;  %v10866_v6 = vpop.f32.mrf.mxu1  ;;  %v7929_v5 = vunpack.c.h.bf16 %v8526_v3 }
 0x336   :  { %14468 = vst [vmem:[#allocation325_spill] sm:$0xff] %v10864_v11 }
 0x337   :  { %14469 = vst [vmem:[#allocation326_spill] sm:$0xff] %v10866_v6  ;;  %7748 = vmatmul.msk.f32.gmra.mxu0 %vm113_vm1, %v10201_v12  ;;  %3208 = vmatpush.msra.mxu1 %v7929_v5 }
 0x338   :  { %7781 = vmatmul.msk.f32.gmra.mxu1 %vm113_vm1, %v10201_v12  ;;  %7814 = vmatmul.msk.f32.gmra.mxu2 %vm113_vm1, %v10201_v12 }
 0x339   :  { %7847 = vmatmul.msk.f32.gmra.mxu3 %vm113_vm1, %v10201_v12  ;;  %v7960_v12 = vunpack.c.l.bf16 %v8534_v8 }
 0x33b   :  { %v10885_v50 = vpop.f32.mrf.mxu2  ;;  %3322 = vmatpush.msra.mxu2 %v7960_v12 }
 0x33c   :  { %14470 = vst [vmem:[#allocation327_spill] sm:$0xff] %v10885_v50  ;;  %v10887_v6 = vpop.f32.mrf.mxu3  ;;  %v10889_v11 = vpop.f32.mrf.mxu0  ;;  %v7928_v50 = vunpack.c.l.bf16 %v8526_v3 }
 0x33d   :  { %14471 = vst [vmem:[#allocation328_spill] sm:$0xff] %v10887_v6  ;;  %v10891_v52 = vpop.f32.mrf.mxu1  ;;  %v7992_v6 = vunpack.c.l.bf16 %v8542_v1 }
 0x33e   :  { %14472 = vst [vmem:[#allocation329_spill] sm:$0xff] %v10889_v11  ;;  %v7896_v11 = vunpack.c.l.bf16 %v8518_v53  ;;  %3209 = vmatpush.msra.mxu1 %v7928_v50 }
 0x33f   :  { %14473 = vst [vmem:[#allocation330_spill] sm:$0xff] %v10891_v52  ;;  %7749 = vmatmul.msk.f32.gmra.mxu0 %vm113_vm1, %v10222_v10  ;;  %3435 = vmatpush.msra.mxu3 %v7992_v6 }
 0x340   :  { %7782 = vmatmul.msk.f32.gmra.mxu1 %vm113_vm1, %v10222_v10  ;;  %7815 = vmatmul.msk.f32.gmra.mxu2 %vm113_vm1, %v10222_v10 }
 0x341   :  { %7848 = vmatmul.msk.f32.gmra.mxu3 %vm113_vm1, %v10222_v10  ;;  %3096 = vmatpush.msra.mxu0 %v7896_v11 }
 0x343   :  { %v10901_v57 = vpop.f32.mrf.mxu2 }
 0x344   :  { %v10903_v55 = vpop.f32.mrf.mxu3  ;;  %v10905_v5 = vpop.f32.mrf.mxu0 }
 0x345   :  { %14474 = vst [vmem:[#allocation331_spill] sm:$0xff] %v10903_v55  ;;  %v10907_v52 = vpop.f32.mrf.mxu1  ;;  %v14826_v55 = vld [vmem:[#allocation198_spill] sm:$0xff] }
 0x346   :  { %14475 = vst [vmem:[#allocation332_spill] sm:$0xff] %v10905_v5  ;;  %v14810_v5 = vld [vmem:[#allocation182_spill] sm:$0xff] }
 0x347   :  { %14476 = vst [vmem:[#allocation333_spill] sm:$0xff] %v10907_v52  ;;  %7750 = vmatmul.msk.f32.gmra.mxu0 %vm113_vm1, %v10243_v0 }
 0x348   :  { %7783 = vmatmul.msk.f32.gmra.mxu1 %vm113_vm1, %v10243_v0  ;;  %7816 = vmatmul.msk.f32.gmra.mxu2 %vm113_vm1, %v10243_v0 }
 0x349   :  { %7849 = vmatmul.msk.f32.gmra.mxu3 %vm113_vm1, %v10243_v0  ;;  %v8533_v0 = vld [vmem:[%s14004_s2 + $0xa0] sm:$0xff]  }
 0x34a   :  { %v7957_v11 = vunpack.c.h.bf16 %v8533_v0 }
 0x34b   :  { %v10917_v10 = vpop.f32.mrf.mxu2 }
 0x34c   :  { %14477 = vst [vmem:[#allocation334_spill] sm:$0xff] %v10917_v10  ;;  %v10919_v53 = vpop.f32.mrf.mxu3  ;;  %v10921_v8 = vpop.f32.mrf.mxu0  ;;  %3323 = vmatpush.msra.mxu2 %v7957_v11 }
 0x34d   :  { %14478 = vst [vmem:[#allocation335_spill] sm:$0xff] %v10919_v53  ;;  %v10923_v3 = vpop.f32.mrf.mxu1 }
 0x34e   :  { %14479 = vst [vmem:[#allocation336_spill] sm:$0xff] %v10921_v8 }
 0x34f   :  { %14480 = vst [vmem:[#allocation337_spill] sm:$0xff] %v10923_v3  ;;  %7751 = vmatmul.msk.f32.gmra.mxu0 %vm113_vm1, %v10264_v4  ;;  %v8517_v3 = vld [vmem:[%s14004_s2 + $0x20] sm:$0xff]  }
 0x350   :  { %7784 = vmatmul.msk.f32.gmra.mxu1 %vm113_vm1, %v10264_v4  ;;  %7817 = vmatmul.msk.f32.gmra.mxu2 %vm113_vm1, %v10264_v4  ;;  %v7893_v8 = vunpack.c.h.bf16 %v8517_v3 }
 0x351   :  { %7850 = vmatmul.msk.f32.gmra.mxu3 %vm113_vm1, %v10264_v4  ;;  %v8541_v4 = vld [vmem:[%s14004_s2 + $0xe0] sm:$0xff]  }
 0x352   :  { %v7989_v53 = vunpack.c.h.bf16 %v8541_v4  ;;  %3097 = vmatpush.msra.mxu0 %v7893_v8 }
 0x353   :  { %v10936_v6 = vpop.f32.mrf.mxu2 }
 0x354   :  { %14481 = vst [vmem:[#allocation338_spill] sm:$0xff] %v10936_v6  ;;  %v10938_v1 = vpop.f32.mrf.mxu3  ;;  %v10940_v50 = vpop.f32.mrf.mxu0  ;;  %v8525_v6 = vld [vmem:[%s14004_s2 + $0x60] sm:$0xff]   ;;  %3436 = vmatpush.msra.mxu3 %v7989_v53 }
 0x355   :  { %14482 = vst [vmem:[#allocation339_spill] sm:$0xff] %v10938_v1  ;;  %v10942_v12 = vpop.f32.mrf.mxu1  ;;  %v7925_v1 = vunpack.c.h.bf16 %v8525_v6 }
 0x356   :  { %14483 = vst [vmem:[#allocation340_spill] sm:$0xff] %v10940_v50 }
 0x357   :  { %14484 = vst [vmem:[#allocation341_spill] sm:$0xff] %v10942_v12  ;;  %7752 = vmatmul.msk.f32.gmra.mxu0 %vm113_vm1, %v10285_v2  ;;  %3210 = vmatpush.msra.mxu1 %v7925_v1 }
 0x358   :  { %7785 = vmatmul.msk.f32.gmra.mxu1 %vm113_vm1, %v10285_v2  ;;  %7818 = vmatmul.msk.f32.gmra.mxu2 %vm113_vm1, %v10285_v2 }
 0x359   :  { %7851 = vmatmul.msk.f32.gmra.mxu3 %vm113_vm1, %v10285_v2  ;;  %v7956_v2 = vunpack.c.l.bf16 %v8533_v0 }
 0x35b   :  { %v10961_v11 = vpop.f32.mrf.mxu2  ;;  %3324 = vmatpush.msra.mxu2 %v7956_v2 }
 0x35c   :  { %14485 = vst [vmem:[#allocation342_spill] sm:$0xff] %v10961_v11  ;;  %v10963_v12 = vpop.f32.mrf.mxu3  ;;  %v10965_v50 = vpop.f32.mrf.mxu0  ;;  %v7924_v11 = vunpack.c.l.bf16 %v8525_v6 }
 0x35d   :  { %14486 = vst [vmem:[#allocation343_spill] sm:$0xff] %v10963_v12  ;;  %v10967_v10 = vpop.f32.mrf.mxu1  ;;  %v7988_v12 = vunpack.c.l.bf16 %v8541_v4 }
 0x35e   :  { %14487 = vst [vmem:[#allocation344_spill] sm:$0xff] %v10965_v50  ;;  %v7892_v50 = vunpack.c.l.bf16 %v8517_v3  ;;  %3211 = vmatpush.msra.mxu1 %v7924_v11 }
 0x35f   :  { %14488 = vst [vmem:[#allocation345_spill] sm:$0xff] %v10967_v10  ;;  %7753 = vmatmul.msk.f32.gmra.mxu0 %vm113_vm1, %v10306_v60  ;;  %3437 = vmatpush.msra.mxu3 %v7988_v12 }
 0x360   :  { %7786 = vmatmul.msk.f32.gmra.mxu1 %vm113_vm1, %v10306_v60  ;;  %7819 = vmatmul.msk.f32.gmra.mxu2 %vm113_vm1, %v10306_v60 }
 0x361   :  { %7852 = vmatmul.msk.f32.gmra.mxu3 %vm113_vm1, %v10306_v60  ;;  %3098 = vmatpush.msra.mxu0 %v7892_v50 }
 0x363   :  { %v10977_v53 = vpop.f32.mrf.mxu2 }
 0x364   :  { %14489 = vst [vmem:[#allocation346_spill] sm:$0xff] %v10977_v53  ;;  %v10979_v8 = vpop.f32.mrf.mxu3  ;;  %v10981_v1 = vpop.f32.mrf.mxu0  ;;  %v14807_v53 = vld [vmem:[#allocation179_spill] sm:$0xff] }
 0x365   :  { %14490 = vst [vmem:[#allocation347_spill] sm:$0xff] %v10979_v8  ;;  %v10983_v10 = vpop.f32.mrf.mxu1  ;;  %v2298_v52 = vmax.f32 %v14807_v53, 0.0  ;;  %v2313_v53 = vmax.f32 %v14810_v5, 0.0 }
 0x366   :  { %14491 = vst [vmem:[#allocation348_spill] sm:$0xff] %v10981_v1 }
 0x367   :  { %14492 = vst [vmem:[#allocation349_spill] sm:$0xff] %v10983_v10  ;;  %7754 = vmatmul.msk.f32.gmra.mxu0 %vm113_vm1, %v10327_v62 }
 0x368   :  { %7787 = vmatmul.msk.f32.gmra.mxu1 %vm113_vm1, %v10327_v62  ;;  %7820 = vmatmul.msk.f32.gmra.mxu2 %vm113_vm1, %v10327_v62 }
 0x369   :  { %7853 = vmatmul.msk.f32.gmra.mxu3 %vm113_vm1, %v10327_v62  ;;  %v8532_v62 = vld [vmem:[%s14004_s2 + $0x98] sm:$0xff]  }
 0x36a   :  { %v7953_v50 = vunpack.c.h.bf16 %v8532_v62 }
 0x36b   :  { %v10993_v60 = vpop.f32.mrf.mxu2 }
 0x36c   :  { %14493 = vst [vmem:[#allocation350_spill] sm:$0xff] %v10993_v60  ;;  %v10995_v3 = vpop.f32.mrf.mxu3  ;;  %v10997_v0 = vpop.f32.mrf.mxu0  ;;  %3325 = vmatpush.msra.mxu2 %v7953_v50 }
 0x36d   :  { %14494 = vst [vmem:[#allocation351_spill] sm:$0xff] %v10995_v3  ;;  %v10999_v6 = vpop.f32.mrf.mxu1 }
 0x36e   :  { %14495 = vst [vmem:[#allocation352_spill] sm:$0xff] %v10997_v0 }
 0x36f   :  { %14496 = vst [vmem:[#allocation353_spill] sm:$0xff] %v10999_v6  ;;  %7755 = vmatmul.msk.f32.gmra.mxu0 %vm113_vm1, %v10348_v63  ;;  %v8516_v6 = vld [vmem:[%s14004_s2 + $0x18] sm:$0xff]  }
 0x370   :  { %7788 = vmatmul.msk.f32.gmra.mxu1 %vm113_vm1, %v10348_v63  ;;  %7821 = vmatmul.msk.f32.gmra.mxu2 %vm113_vm1, %v10348_v63  ;;  %v7889_v0 = vunpack.c.h.bf16 %v8516_v6 }
 0x371   :  { %7854 = vmatmul.msk.f32.gmra.mxu3 %vm113_vm1, %v10348_v63  ;;  %v8540_v63 = vld [vmem:[%s14004_s2 + $0xd8] sm:$0xff]  }
 0x372   :  { %v7985_v3 = vunpack.c.h.bf16 %v8540_v63  ;;  %3099 = vmatpush.msra.mxu0 %v7889_v0 }
 0x373   :  { %v11012_v12 = vpop.f32.mrf.mxu2 }
 0x374   :  { %14497 = vst [vmem:[#allocation354_spill] sm:$0xff] %v11012_v12  ;;  %v11014_v4 = vpop.f32.mrf.mxu3  ;;  %v11016_v11 = vpop.f32.mrf.mxu0  ;;  %v8524_v12 = vld [vmem:[%s14004_s2 + $0x58] sm:$0xff]   ;;  %3438 = vmatpush.msra.mxu3 %v7985_v3 }
 0x375   :  { %14498 = vst [vmem:[#allocation355_spill] sm:$0xff] %v11014_v4  ;;  %v11018_v2 = vpop.f32.mrf.mxu1  ;;  %v7921_v4 = vunpack.c.h.bf16 %v8524_v12 }
 0x376   :  { %14499 = vst [vmem:[#allocation356_spill] sm:$0xff] %v11016_v11 }
 0x377   :  { %14500 = vst [vmem:[#allocation357_spill] sm:$0xff] %v11018_v2  ;;  %7756 = vmatmul.msk.f32.gmra.mxu0 %vm113_vm1, %v10369_v61  ;;  %3212 = vmatpush.msra.mxu1 %v7921_v4 }
 0x378   :  { %7789 = vmatmul.msk.f32.gmra.mxu1 %vm113_vm1, %v10369_v61  ;;  %7822 = vmatmul.msk.f32.gmra.mxu2 %vm113_vm1, %v10369_v61 }
 0x379   :  { %7855 = vmatmul.msk.f32.gmra.mxu3 %vm113_vm1, %v10369_v61  ;;  %v7952_v61 = vunpack.c.l.bf16 %v8532_v62 }
 0x37b   :  { %v11037_v50 = vpop.f32.mrf.mxu2  ;;  %3326 = vmatpush.msra.mxu2 %v7952_v61 }
 0x37c   :  { %14501 = vst [vmem:[#allocation358_spill] sm:$0xff] %v11037_v50  ;;  %v11039_v2 = vpop.f32.mrf.mxu3  ;;  %v11041_v11 = vpop.f32.mrf.mxu0  ;;  %v7920_v50 = vunpack.c.l.bf16 %v8524_v12 }
 0x37d   :  { %14502 = vst [vmem:[#allocation359_spill] sm:$0xff] %v11039_v2  ;;  %v11043_v60 = vpop.f32.mrf.mxu1  ;;  %v7984_v2 = vunpack.c.l.bf16 %v8540_v63 }
 0x37e   :  { %14503 = vst [vmem:[#allocation360_spill] sm:$0xff] %v11041_v11  ;;  %v7888_v11 = vunpack.c.l.bf16 %v8516_v6  ;;  %3213 = vmatpush.msra.mxu1 %v7920_v50 }
 0x37f   :  { %14504 = vst [vmem:[#allocation361_spill] sm:$0xff] %v11043_v60  ;;  %7757 = vmatmul.msk.f32.gmra.mxu0 %vm113_vm1, %v10390_v56  ;;  %3439 = vmatpush.msra.mxu3 %v7984_v2 }
 0x380   :  { %7790 = vmatmul.msk.f32.gmra.mxu1 %vm113_vm1, %v10390_v56  ;;  %7823 = vmatmul.msk.f32.gmra.mxu2 %vm113_vm1, %v10390_v56 }
 0x381   :  { %7856 = vmatmul.msk.f32.gmra.mxu3 %vm113_vm1, %v10390_v56  ;;  %3100 = vmatpush.msra.mxu0 %v7888_v11 }
 0x383   :  { %v11053_v3 = vpop.f32.mrf.mxu2 }
 0x384   :  { %14505 = vst [vmem:[#allocation362_spill] sm:$0xff] %v11053_v3  ;;  %v11055_v0 = vpop.f32.mrf.mxu3  ;;  %v11057_v4 = vpop.f32.mrf.mxu0  ;;  %v14791_v3 = vld [vmem:[#allocation163_spill] sm:$0xff] }
 0x385   :  { %14506 = vst [vmem:[#allocation363_spill] sm:$0xff] %v11055_v0  ;;  %v11059_v60 = vpop.f32.mrf.mxu1  ;;  %v2234_v10 = vmax.f32 %v14791_v3, 0.0 }
 0x386   :  { %14507 = vst [vmem:[#allocation364_spill] sm:$0xff] %v11057_v4 }
 0x387   :  { %14508 = vst [vmem:[#allocation365_spill] sm:$0xff] %v11059_v60  ;;  %7758 = vmatmul.msk.f32.gmra.mxu0 %vm113_vm1, %v10411_v51 }
 0x388   :  { %7791 = vmatmul.msk.f32.gmra.mxu1 %vm113_vm1, %v10411_v51  ;;  %7824 = vmatmul.msk.f32.gmra.mxu2 %vm113_vm1, %v10411_v51 }
 0x389   :  { %7857 = vmatmul.msk.f32.gmra.mxu3 %vm113_vm1, %v10411_v51  ;;  %v8531_v51 = vld [vmem:[%s14004_s2 + $0x90] sm:$0xff]  }
 0x38a   :  { %v7949_v11 = vunpack.c.h.bf16 %v8531_v51 }
 0x38b   :  { %v11069_v56 = vpop.f32.mrf.mxu2 }
 0x38c   :  { %14509 = vst [vmem:[#allocation366_spill] sm:$0xff] %v11069_v56  ;;  %v11071_v6 = vpop.f32.mrf.mxu3  ;;  %v11073_v62 = vpop.f32.mrf.mxu0  ;;  %3327 = vmatpush.msra.mxu2 %v7949_v11 }
 0x38d   :  { %14510 = vst [vmem:[#allocation367_spill] sm:$0xff] %v11071_v6  ;;  %v11075_v12 = vpop.f32.mrf.mxu1 }
 0x38e   :  { %14511 = vst [vmem:[#allocation368_spill] sm:$0xff] %v11073_v62 }
 0x38f   :  { %14512 = vst [vmem:[#allocation369_spill] sm:$0xff] %v11075_v12  ;;  %7759 = vmatmul.msk.f32.gmra.mxu0 %vm113_vm1, %v10432_v46  ;;  %v8515_v12 = vld [vmem:[%s14004_s2 + $0x10] sm:$0xff]  }
 0x390   :  { %7792 = vmatmul.msk.f32.gmra.mxu1 %vm113_vm1, %v10432_v46  ;;  %7825 = vmatmul.msk.f32.gmra.mxu2 %vm113_vm1, %v10432_v46  ;;  %v7885_v62 = vunpack.c.h.bf16 %v8515_v12 }
 0x391   :  { %7858 = vmatmul.msk.f32.gmra.mxu3 %vm113_vm1, %v10432_v46  ;;  %v8539_v46 = vld [vmem:[%s14004_s2 + $0xd0] sm:$0xff]  }
 0x392   :  { %v7981_v6 = vunpack.c.h.bf16 %v8539_v46  ;;  %3101 = vmatpush.msra.mxu0 %v7885_v62 }
 0x393   :  { %v11088_v2 = vpop.f32.mrf.mxu2 }
 0x394   :  { %14513 = vst [vmem:[#allocation370_spill] sm:$0xff] %v11088_v2  ;;  %v11090_v63 = vpop.f32.mrf.mxu3  ;;  %v11092_v50 = vpop.f32.mrf.mxu0  ;;  %v8523_v2 = vld [vmem:[%s14004_s2 + $0x50] sm:$0xff]   ;;  %3440 = vmatpush.msra.mxu3 %v7981_v6 }
 0x395   :  { %14514 = vst [vmem:[#allocation371_spill] sm:$0xff] %v11090_v63  ;;  %v11094_v61 = vpop.f32.mrf.mxu1  ;;  %v7917_v63 = vunpack.c.h.bf16 %v8523_v2 }
 0x396   :  { %14515 = vst [vmem:[#allocation372_spill] sm:$0xff] %v11092_v50 }
 0x397   :  { %14516 = vst [vmem:[#allocation373_spill] sm:$0xff] %v11094_v61  ;;  %7760 = vmatmul.msk.f32.gmra.mxu0 %vm113_vm1, %v10453_v41  ;;  %3214 = vmatpush.msra.mxu1 %v7917_v63 }
 0x398   :  { %7793 = vmatmul.msk.f32.gmra.mxu1 %vm113_vm1, %v10453_v41  ;;  %7826 = vmatmul.msk.f32.gmra.mxu2 %vm113_vm1, %v10453_v41 }
 0x399   :  { %7859 = vmatmul.msk.f32.gmra.mxu3 %vm113_vm1, %v10453_v41  ;;  %v7948_v41 = vunpack.c.l.bf16 %v8531_v51 }
 0x39b   :  { %v11113_v11 = vpop.f32.mrf.mxu2  ;;  %3328 = vmatpush.msra.mxu2 %v7948_v41 }
 0x39c   :  { %14517 = vst [vmem:[#allocation374_spill] sm:$0xff] %v11113_v11  ;;  %v11115_v61 = vpop.f32.mrf.mxu3  ;;  %v11117_v50 = vpop.f32.mrf.mxu0  ;;  %v7916_v11 = vunpack.c.l.bf16 %v8523_v2 }
 0x39d   :  { %14518 = vst [vmem:[#allocation375_spill] sm:$0xff] %v11115_v61  ;;  %v11119_v56 = vpop.f32.mrf.mxu1  ;;  %v7980_v61 = vunpack.c.l.bf16 %v8539_v46 }
 0x39e   :  { %14519 = vst [vmem:[#allocation376_spill] sm:$0xff] %v11117_v50  ;;  %v7884_v50 = vunpack.c.l.bf16 %v8515_v12  ;;  %3215 = vmatpush.msra.mxu1 %v7916_v11 }
 0x39f   :  { %14520 = vst [vmem:[#allocation377_spill] sm:$0xff] %v11119_v56  ;;  %7761 = vmatmul.msk.f32.gmra.mxu0 %vm113_vm1, %v10474_v36  ;;  %3441 = vmatpush.msra.mxu3 %v7980_v61 }
 0x3a0   :  { %7794 = vmatmul.msk.f32.gmra.mxu1 %vm113_vm1, %v10474_v36  ;;  %7827 = vmatmul.msk.f32.gmra.mxu2 %vm113_vm1, %v10474_v36 }
 0x3a1   :  { %7860 = vmatmul.msk.f32.gmra.mxu3 %vm113_vm1, %v10474_v36  ;;  %3102 = vmatpush.msra.mxu0 %v7884_v50 }
 0x3a3   :  { %v11129_v6 = vpop.f32.mrf.mxu2 }
 0x3a4   :  { %14521 = vst [vmem:[#allocation378_spill] sm:$0xff] %v11129_v6  ;;  %v11131_v62 = vpop.f32.mrf.mxu3  ;;  %v11133_v63 = vpop.f32.mrf.mxu0  ;;  %v14775_v6 = vld [vmem:[#allocation147_spill] sm:$0xff] }
 0x3a5   :  { %14522 = vst [vmem:[#allocation379_spill] sm:$0xff] %v11131_v62  ;;  %v11135_v56 = vpop.f32.mrf.mxu1  ;;  %v2170_v60 = vmax.f32 %v14775_v6, 0.0 }
 0x3a6   :  { %14523 = vst [vmem:[#allocation380_spill] sm:$0xff] %v11133_v63 }
 0x3a7   :  { %14524 = vst [vmem:[#allocation381_spill] sm:$0xff] %v11135_v56  ;;  %7762 = vmatmul.msk.f32.gmra.mxu0 %vm113_vm1, %v10495_v31 }
 0x3a8   :  { %7795 = vmatmul.msk.f32.gmra.mxu1 %vm113_vm1, %v10495_v31  ;;  %7828 = vmatmul.msk.f32.gmra.mxu2 %vm113_vm1, %v10495_v31 }
 0x3a9   :  { %7861 = vmatmul.msk.f32.gmra.mxu3 %vm113_vm1, %v10495_v31  ;;  %v8530_v31 = vld [vmem:[%s14004_s2 + $0x88] sm:$0xff]  }
 0x3aa   :  { %v7945_v50 = vunpack.c.h.bf16 %v8530_v31 }
 0x3ab   :  { %v11145_v36 = vpop.f32.mrf.mxu2 }
 0x3ac   :  { %14525 = vst [vmem:[#allocation382_spill] sm:$0xff] %v11145_v36  ;;  %v11147_v12 = vpop.f32.mrf.mxu3  ;;  %v11149_v51 = vpop.f32.mrf.mxu0  ;;  %3329 = vmatpush.msra.mxu2 %v7945_v50 }
 0x3ad   :  { %14526 = vst [vmem:[#allocation383_spill] sm:$0xff] %v11147_v12  ;;  %v11151_v2 = vpop.f32.mrf.mxu1 }
 0x3ae   :  { %14527 = vst [vmem:[#allocation384_spill] sm:$0xff] %v11149_v51 }
 0x3af   :  { %14528 = vst [vmem:[#allocation385_spill] sm:$0xff] %v11151_v2  ;;  %7763 = vmatmul.msk.f32.gmra.mxu0 %vm113_vm1, %v10516_v26  ;;  %v8514_v2 = vld [vmem:[%s14004_s2 + $0x8] sm:$0xff]  }
 0x3b0   :  { %7796 = vmatmul.msk.f32.gmra.mxu1 %vm113_vm1, %v10516_v26  ;;  %7829 = vmatmul.msk.f32.gmra.mxu2 %vm113_vm1, %v10516_v26  ;;  %v7881_v51 = vunpack.c.h.bf16 %v8514_v2 }
 0x3b1   :  { %7862 = vmatmul.msk.f32.gmra.mxu3 %vm113_vm1, %v10516_v26  ;;  %v8538_v26 = vld [vmem:[%s14004_s2 + $0xc8] sm:$0xff]  }
 0x3b2   :  { %v7977_v12 = vunpack.c.h.bf16 %v8538_v26  ;;  %3103 = vmatpush.msra.mxu0 %v7881_v51 }
 0x3b3   :  { %v11164_v61 = vpop.f32.mrf.mxu2 }
 0x3b4   :  { %14529 = vst [vmem:[#allocation386_spill] sm:$0xff] %v11164_v61  ;;  %v11166_v46 = vpop.f32.mrf.mxu3  ;;  %v11168_v11 = vpop.f32.mrf.mxu0  ;;  %v8522_v61 = vld [vmem:[%s14004_s2 + $0x48] sm:$0xff]   ;;  %3442 = vmatpush.msra.mxu3 %v7977_v12 }
 0x3b5   :  { %14530 = vst [vmem:[#allocation387_spill] sm:$0xff] %v11166_v46  ;;  %v11170_v41 = vpop.f32.mrf.mxu1  ;;  %v7913_v46 = vunpack.c.h.bf16 %v8522_v61 }
 0x3b6   :  { %14531 = vst [vmem:[#allocation388_spill] sm:$0xff] %v11168_v11 }
 0x3b7   :  { %14532 = vst [vmem:[#allocation389_spill] sm:$0xff] %v11170_v41  ;;  %7764 = vmatmul.msk.f32.gmra.mxu0 %vm113_vm1, %v10537_v23  ;;  %3216 = vmatpush.msra.mxu1 %v7913_v46 }
 0x3b8   :  { %7797 = vmatmul.msk.f32.gmra.mxu1 %vm113_vm1, %v10537_v23  ;;  %7830 = vmatmul.msk.f32.gmra.mxu2 %vm113_vm1, %v10537_v23 }
 0x3b9   :  { %7863 = vmatmul.msk.f32.gmra.mxu3 %vm113_vm1, %v10537_v23  ;;  %v7944_v23 = vunpack.c.l.bf16 %v8530_v31 }
 0x3bb   :  { %v11189_v50 = vpop.f32.mrf.mxu2  ;;  %3330 = vmatpush.msra.mxu2 %v7944_v23 }
 0x3bc   :  { %14533 = vst [vmem:[#allocation390_spill] sm:$0xff] %v11189_v50  ;;  %v11191_v41 = vpop.f32.mrf.mxu3  ;;  %v11193_v11 = vpop.f32.mrf.mxu0  ;;  %v7912_v50 = vunpack.c.l.bf16 %v8522_v61 }
 0x3bd   :  { %14534 = vst [vmem:[#allocation391_spill] sm:$0xff] %v11191_v41  ;;  %v11195_v36 = vpop.f32.mrf.mxu1  ;;  %v7976_v41 = vunpack.c.l.bf16 %v8538_v26 }
 0x3be   :  { %14535 = vst [vmem:[#allocation392_spill] sm:$0xff] %v11193_v11  ;;  %v7880_v11 = vunpack.c.l.bf16 %v8514_v2  ;;  %3217 = vmatpush.msra.mxu1 %v7912_v50 }
 0x3bf   :  { %14536 = vst [vmem:[#allocation393_spill] sm:$0xff] %v11195_v36  ;;  %7765 = vmatmul.msk.f32.gmra.mxu0 %vm113_vm1, %v10558_v22  ;;  %3443 = vmatpush.msra.mxu3 %v7976_v41 }
 0x3c0   :  { %7798 = vmatmul.msk.f32.gmra.mxu1 %vm113_vm1, %v10558_v22  ;;  %7831 = vmatmul.msk.f32.gmra.mxu2 %vm113_vm1, %v10558_v22 }
 0x3c1   :  { %7864 = vmatmul.msk.f32.gmra.mxu3 %vm113_vm1, %v10558_v22  ;;  %3104 = vmatpush.msra.mxu0 %v7880_v11 }
 0x3c3   :  { %v11205_v12 = vpop.f32.mrf.mxu2 }
 0x3c4   :  { %14537 = vst [vmem:[#allocation394_spill] sm:$0xff] %v11205_v12  ;;  %v11207_v51 = vpop.f32.mrf.mxu3  ;;  %v11209_v46 = vpop.f32.mrf.mxu0  ;;  %v14759_v12 = vld [vmem:[#allocation131_spill] sm:$0xff] }
 0x3c5   :  { %14538 = vst [vmem:[#allocation395_spill] sm:$0xff] %v11207_v51  ;;  %v11211_v36 = vpop.f32.mrf.mxu1  ;;  %v2106_v56 = vmax.f32 %v14759_v12, 0.0 }
 0x3c6   :  { %14539 = vst [vmem:[#allocation396_spill] sm:$0xff] %v11209_v46 }
 0x3c7   :  { %14540 = vst [vmem:[#allocation397_spill] sm:$0xff] %v11211_v36  ;;  %7766 = vmatmul.msk.f32.gmra.mxu0 %vm113_vm1, %v10579_v21 }
 0x3c8   :  { %7799 = vmatmul.msk.f32.gmra.mxu1 %vm113_vm1, %v10579_v21  ;;  %7832 = vmatmul.msk.f32.gmra.mxu2 %vm113_vm1, %v10579_v21 }
 0x3c9   :  { %7865 = vmatmul.msk.f32.gmra.mxu3 %vm113_vm1, %v10579_v21  ;;  %v8529_v21 = vld [vmem:[%s14004_s2 + $0x80] sm:$0xff]  }
 0x3ca   :  { %v7941_v11 = vunpack.c.h.bf16 %v8529_v21 }
 0x3cb   :  { %v11221_v22 = vpop.f32.mrf.mxu2 }
 0x3cc   :  { %14541 = vst [vmem:[#allocation398_spill] sm:$0xff] %v11221_v22  ;;  %v11223_v2 = vpop.f32.mrf.mxu3  ;;  %v11225_v31 = vpop.f32.mrf.mxu0  ;;  %3331 = vmatpush.msra.mxu2 %v7941_v11 }
 0x3cd   :  { %14542 = vst [vmem:[#allocation399_spill] sm:$0xff] %v11223_v2  ;;  %v11227_v61 = vpop.f32.mrf.mxu1 }
 0x3ce   :  { %14543 = vst [vmem:[#allocation400_spill] sm:$0xff] %v11225_v31 }
 0x3cf   :  { %14544 = vst [vmem:[#allocation401_spill] sm:$0xff] %v11227_v61  ;;  %7767 = vmatmul.msk.f32.gmra.mxu0 %vm113_vm1, %v10600_v20  ;;  %v7875_v61 = vld [vmem:[%s14004_s2] sm:$0xff]  }
 0x3d0   :  { %7800 = vmatmul.msk.f32.gmra.mxu1 %vm113_vm1, %v10600_v20  ;;  %7833 = vmatmul.msk.f32.gmra.mxu2 %vm113_vm1, %v10600_v20  ;;  %v7877_v31 = vunpack.c.h.bf16 %v7875_v61 }
 0x3d1   :  { %7866 = vmatmul.msk.f32.gmra.mxu3 %vm113_vm1, %v10600_v20  ;;  %v8537_v20 = vld [vmem:[%s14004_s2 + $0xc0] sm:$0xff]  }
 0x3d2   :  { %v7973_v2 = vunpack.c.h.bf16 %v8537_v20  ;;  %3105 = vmatpush.msra.mxu0 %v7877_v31 }
 0x3d3   :  { %v11240_v41 = vpop.f32.mrf.mxu2 }
 0x3d4   :  { %14545 = vst [vmem:[#allocation402_spill] sm:$0xff] %v11240_v41  ;;  %v11242_v26 = vpop.f32.mrf.mxu3  ;;  %v11244_v50 = vpop.f32.mrf.mxu0  ;;  %v8521_v41 = vld [vmem:[%s14004_s2 + $0x40] sm:$0xff]   ;;  %3444 = vmatpush.msra.mxu3 %v7973_v2 }
 0x3d5   :  { %14546 = vst [vmem:[#allocation403_spill] sm:$0xff] %v11242_v26  ;;  %v11246_v23 = vpop.f32.mrf.mxu1  ;;  %v7909_v26 = vunpack.c.h.bf16 %v8521_v41 }
 0x3d6   :  { %14547 = vst [vmem:[#allocation404_spill] sm:$0xff] %v11244_v50 }
 0x3d7   :  { %14548 = vst [vmem:[#allocation405_spill] sm:$0xff] %v11246_v23  ;;  %7768 = vmatmul.msk.f32.gmra.mxu0 %vm113_vm1, %v10621_v19  ;;  %3218 = vmatpush.msra.mxu1 %v7909_v26 }
 0x3d8   :  { %7801 = vmatmul.msk.f32.gmra.mxu1 %vm113_vm1, %v10621_v19  ;;  %7834 = vmatmul.msk.f32.gmra.mxu2 %vm113_vm1, %v10621_v19 }
 0x3d9   :  { %7867 = vmatmul.msk.f32.gmra.mxu3 %vm113_vm1, %v10621_v19  ;;  %v7940_v19 = vunpack.c.l.bf16 %v8529_v21 }
 0x3db   :  { %v11265_v11 = vpop.f32.mrf.mxu2  ;;  %3332 = vmatpush.msra.mxu2 %v7940_v19 }
 0x3dc   :  { %14549 = vst [vmem:[#allocation406_spill] sm:$0xff] %v11265_v11  ;;  %v11267_v23 = vpop.f32.mrf.mxu3  ;;  %v11269_v50 = vpop.f32.mrf.mxu0  ;;  %v7908_v11 = vunpack.c.l.bf16 %v8521_v41 }
 0x3dd   :  { %14550 = vst [vmem:[#allocation407_spill] sm:$0xff] %v11267_v23  ;;  %v11271_v22 = vpop.f32.mrf.mxu1  ;;  %v7972_v23 = vunpack.c.l.bf16 %v8537_v20 }
 0x3de   :  { %14551 = vst [vmem:[#allocation408_spill] sm:$0xff] %v11269_v50  ;;  %v7876_v50 = vunpack.c.l.bf16 %v7875_v61  ;;  %3219 = vmatpush.msra.mxu1 %v7908_v11 }
 0x3df   :  { %14552 = vst [vmem:[#allocation409_spill] sm:$0xff] %v11271_v22  ;;  %7769 = vmatmul.msk.f32.gmra.mxu0 %vm113_vm1, %v10642_v18  ;;  %3445 = vmatpush.msra.mxu3 %v7972_v23 }
 0x3e0   :  { %7802 = vmatmul.msk.f32.gmra.mxu1 %vm113_vm1, %v10642_v18  ;;  %7835 = vmatmul.msk.f32.gmra.mxu2 %vm113_vm1, %v10642_v18 }
 0x3e1   :  { %7868 = vmatmul.msk.f32.gmra.mxu3 %vm113_vm1, %v10642_v18  ;;  %3106 = vmatpush.msra.mxu0 %v7876_v50 }
 0x3e3   :  { %v11281_v2 = vpop.f32.mrf.mxu2 }
 0x3e4   :  { %14553 = vst [vmem:[#allocation410_spill] sm:$0xff] %v11281_v2  ;;  %v11283_v31 = vpop.f32.mrf.mxu3  ;;  %v11285_v26 = vpop.f32.mrf.mxu0 }
 0x3e5   :  { %14554 = vst [vmem:[#allocation411_spill] sm:$0xff] %v11283_v31  ;;  %v11287_v22 = vpop.f32.mrf.mxu1  ;;  %v14747_v31 = vld [vmem:[#allocation119_spill] sm:$0xff] }
 0x3e6   :  { %14555 = vst [vmem:[#allocation412_spill] sm:$0xff] %v11285_v26 }
 0x3e7   :  { %14556 = vst [vmem:[#allocation413_spill] sm:$0xff] %v11287_v22  ;;  %7770 = vmatmul.msk.f32.gmra.mxu0 %vm113_vm1, %v10663_v17 }
 0x3e8   :  { %7803 = vmatmul.msk.f32.gmra.mxu1 %vm113_vm1, %v10663_v17  ;;  %7836 = vmatmul.msk.f32.gmra.mxu2 %vm113_vm1, %v10663_v17 }
 0x3e9   :  { %7869 = vmatmul.msk.f32.gmra.mxu3 %vm113_vm1, %v10663_v17 }
 0x3eb   :  { %v11297_v18 = vpop.f32.mrf.mxu2 }
 0x3ec   :  { %14557 = vst [vmem:[#allocation414_spill] sm:$0xff] %v11297_v18  ;;  %v11299_v61 = vpop.f32.mrf.mxu3  ;;  %v11301_v21 = vpop.f32.mrf.mxu0 }
 0x3ed   :  { %14558 = vst [vmem:[#allocation415_spill] sm:$0xff] %v11299_v61  ;;  %v11303_v41 = vpop.f32.mrf.mxu1 }
 0x3ee   :  { %14559 = vst [vmem:[#allocation416_spill] sm:$0xff] %v11301_v21  ;;  %v2070_v21 = vmax.f32 %v9248_v28, 0.0 }
 0x3ef   :  { %14560 = vst [vmem:[#allocation417_spill] sm:$0xff] %v11303_v41  ;;  %7771 = vmatmul.msk.f32.gmra.mxu0 %vm113_vm1, %v10684_v16 }
 0x3f0   :  { %7804 = vmatmul.msk.f32.gmra.mxu1 %vm113_vm1, %v10684_v16  ;;  %7837 = vmatmul.msk.f32.gmra.mxu2 %vm113_vm1, %v10684_v16 }
 0x3f1   :  { %7870 = vmatmul.msk.f32.gmra.mxu3 %vm113_vm1, %v10684_v16 }
 0x3f3   :  { %v11313_v17 = vpop.f32.mrf.mxu2 }
 0x3f4   :  { %14561 = vst [vmem:[#allocation418_spill] sm:$0xff] %v11313_v17  ;;  %v11315_v50 = vpop.f32.mrf.mxu3  ;;  %v11317_v23 = vpop.f32.mrf.mxu0  ;;  %v2068_v17 = vmax.f32 %v9231_v25, 0.0 }
 0x3f5   :  { %14562 = vst [vmem:[#allocation419_spill] sm:$0xff] %v11315_v50  ;;  %v11319_v20 = vpop.f32.mrf.mxu1  ;;  %v2067_v50 = vmax.f32 %v9229_v24, 0.0  ;;  %v8567_v24 = vld [vmem:[%s14004_s2 + $0x1b0] sm:$0xff]  }
 0x3f6   :  { %14563 = vst [vmem:[#allocation420_spill] sm:$0xff] %v11317_v23  ;;  %v8093_v25 = vunpack.c.h.bf16 %v8567_v24 }
 0x3f7   :  { %14564 = vst [vmem:[#allocation421_spill] sm:$0xff] %v11319_v20  ;;  %7772 = vmatmul.msk.f32.gmra.mxu0 %vm113_vm1, %v10705_v15 }
 0x3f8   :  { %7805 = vmatmul.msk.f32.gmra.mxu1 %vm113_vm1, %v10705_v15  ;;  %7838 = vmatmul.msk.f32.gmra.mxu2 %vm113_vm1, %v10705_v15 }
 0x3f9   :  { %7871 = vmatmul.msk.f32.gmra.mxu3 %vm113_vm1, %v10705_v15 }
 0x3fb   :  { %v11329_v16 = vpop.f32.mrf.mxu2 }
 0x3fc   :  { %14565 = vst [vmem:[#allocation422_spill] sm:$0xff] %v11329_v16  ;;  %v11331_v11 = vpop.f32.mrf.mxu3  ;;  %v11333_v19 = vpop.f32.mrf.mxu0 }
 0x3fd   :  { %14566 = vst [vmem:[#allocation423_spill] sm:$0xff] %v11331_v11  ;;  %v11335_v23 = vpop.f32.mrf.mxu1 }
 0x3fe   :  { %14567 = vst [vmem:[#allocation424_spill] sm:$0xff] %v11333_v19 }
 0x3ff   :  { %14568 = vst [vmem:[#allocation425_spill] sm:$0xff] %v11335_v23  ;;  %7773 = vmatmul.msk.f32.gmra.mxu0 %vm113_vm1, %v10726_v14 }
 0x400   :  { %7806 = vmatmul.msk.f32.gmra.mxu1 %vm113_vm1, %v10726_v14  ;;  %7839 = vmatmul.msk.f32.gmra.mxu2 %vm113_vm1, %v10726_v14 }
 0x401   :  { %7872 = vmatmul.msk.f32.gmra.mxu3 %vm113_vm1, %v10726_v14  ;;  %v8568_v14 = vld [vmem:[%s14004_s2 + $0x1b8] sm:$0xff]  }
 0x402   :  { %v8097_v41 = vunpack.c.h.bf16 %v8568_v14  ;;  %v8096_v22 = vunpack.c.l.bf16 %v8568_v14  ;;  %v2101_v14 = vmax.f32 %v9288_v37, 0.0  ;;  %v2115_v37 = vmax.f32 %v9292_v39, 0.0 }
 0x403   :  { %v11345_v15 = vpop.f32.mrf.mxu2 }
 0x404   :  { %14569 = vst [vmem:[#allocation426_spill] sm:$0xff] %v11345_v15  ;;  %v11347_v16 = vpop.f32.mrf.mxu3  ;;  %v11349_v11 = vpop.f32.mrf.mxu0  ;;  %v8576_v15 = vld [vmem:[%s14004_s2 + $0x1f8] sm:$0xff]  }
 0x405   :  { %14570 = vst [vmem:[#allocation427_spill] sm:$0xff] %v11347_v16  ;;  %v11351_v19 = vpop.f32.mrf.mxu1  ;;  %v8129_v61 = vunpack.c.h.bf16 %v8576_v15 }
 0x406   :  { %14571 = vst [vmem:[#allocation428_spill] sm:$0xff] %v11349_v11 }
 0x407   :  { %14572 = vst [vmem:[#allocation429_spill] sm:$0xff] %v11351_v19  ;;  %7774 = vmatmul.msk.f32.gmra.mxu0 %vm113_vm1, %v10747_v13  ;;  %v8552_v19 = vld [vmem:[%s14004_s2 + $0x138] sm:$0xff]  }
 0x408   :  { %7807 = vmatmul.msk.f32.gmra.mxu1 %vm113_vm1, %v10747_v13  ;;  %7840 = vmatmul.msk.f32.gmra.mxu2 %vm113_vm1, %v10747_v13  ;;  %v8032_v26 = vunpack.c.l.bf16 %v8552_v19 }
 0x409   :  { %7873 = vmatmul.msk.f32.gmra.mxu3 %vm113_vm1, %v10747_v13  ;;  %v8560_v13 = vld [vmem:[%s14004_s2 + $0x178] sm:$0xff]  }
 0x40a   :  { %v8065_v18 = vunpack.c.h.bf16 %v8560_v13 }
 0x40b   :  { %v11367_v11 = vpop.f32.mrf.mxu2 }
 0x40c   :  { %14573 = vst [vmem:[#allocation430_spill] sm:$0xff] %v11367_v11  ;;  %v11369_v16 = vpop.f32.mrf.mxu3  ;;  %v11377_v23 = vpop.f32.mrf.mxu0  ;;  %v8033_v11 = vunpack.c.h.bf16 %v8552_v19 }
 0x40d   :  { %14574 = vst [vmem:[#allocation431_spill] sm:$0xff] %v11369_v16  ;;  %v11379_v20 = vpop.f32.mrf.mxu1  ;;  %v2069_v16 = vmax.f32 %v9246_v27, 0.0 }
 0x40e   :  { %14575 = vst [vmem:[#allocation432_spill] sm:$0xff] %v11377_v23  ;;  %v8128_v23 = vunpack.c.l.bf16 %v8576_v15 }
 0x40f   :  { %14576 = vst [vmem:[#allocation433_spill] sm:$0xff] %v11379_v20  ;;  %3107 = vmatmul.f32.vlgmr.msra.gmra.mxu0 %v2067_v50  ;;  %v8064_v20 = vunpack.c.l.bf16 %v8560_v13  ;;  %v2084_v50 = vmax.f32 %v9252_v30, 0.0  ;;  %v2102_v13 = vmax.f32 %v9290_v38, 0.0  ;;  %v2116_v38 = vmax.f32 %v9294_v40, 0.0 }
 0x410   :  { %3220 = vmatmul.f32.vlgmr.msra.gmra.mxu1 %v2068_v17  ;;  %3333 = vmatmul.f32.vlgmr.msra.gmra.mxu2 %v2069_v16  ;;  %v2086_v16 = vmax.f32 %v9269_v33, 0.0  ;;  %v2100_v33 = vmax.f32 %v9273_v35, 0.0  ;;  %v2131_v40 = vmax.f32 %v9313_v44, 0.0 }
 0x411   :  { %3446 = vmatmul.f32.vlgmr.msra.gmra.mxu3 %v2070_v21  ;;  %3769 = vmatpush.msra.mxu2 %v8097_v41  ;;  %v8551_v41 = vld [vmem:[%s14004_s2 + $0x130] sm:$0xff]  }
 0x412   :  { %3543 = vmatpush.msra.mxu0 %v8033_v11  ;;  %3882 = vmatpush.msra.mxu3 %v8129_v61  ;;  %v2083_v61 = vmax.f32 %v9250_v29, 0.0 }
 0x413   :  { %3656 = vmatpush.msra.mxu1 %v8065_v18  ;;  %v11388_v27 = vpop.f32.mrf.mxu2  ;;  %3770 = vmatpush.msra.mxu2 %v8096_v22  ;;  %v8575_v18 = vld [vmem:[%s14004_s2 + $0x1f0] sm:$0xff]   ;;  %v8029_v22 = vunpack.c.h.bf16 %v8551_v41 }
 0x414   :  { %14577 = vst [vmem:[#allocation434_spill] sm:$0xff] %v11388_v27  ;;  %v11390_v28 = vpop.f32.mrf.mxu3  ;;  %3544 = vmatpush.msra.mxu0 %v8032_v26  ;;  %v11392_v17 = vpop.f32.mrf.mxu0  ;;  %3883 = vmatpush.msra.mxu3 %v8128_v23  ;;  %v8125_v26 = vunpack.c.h.bf16 %v8575_v18  ;;  %v8559_v23 = vld [vmem:[%s14004_s2 + $0x170] sm:$0xff]   ;;  %v8124_v35 = vunpack.c.l.bf16 %v8575_v18 }
 0x415   :  { %14578 = vst [vmem:[#allocation435_spill] sm:$0xff] %v11390_v28  ;;  %v11394_v21 = vpop.f32.mrf.mxu1  ;;  %3657 = vmatpush.msra.mxu1 %v8064_v20  ;;  %3771 = vmatpush.msra.mxu2 %v8093_v25  ;;  %v2085_v20 = vmax.f32 %v9267_v32, 0.0  ;;  %v8061_v11 = vunpack.c.h.bf16 %v8559_v23  ;;  %v2099_v32 = vmax.f32 %v9271_v34, 0.0  ;;  %v8092_v25 = vunpack.c.l.bf16 %v8567_v24 }
 0x416   :  { %14579 = vst [vmem:[#allocation436_spill] sm:$0xff] %v11392_v17  ;;  %3545 = vmatpush.msra.mxu0 %v8029_v22  ;;  %3884 = vmatpush.msra.mxu3 %v8125_v26  ;;  %v8028_v34 = vunpack.c.l.bf16 %v8551_v41  ;;  %v2118_v24 = vmax.f32 %v9311_v43, 0.0  ;;  %v2133_v43 = vmax.f32 %v9330_v47, 0.0  ;;  %v8550_v47 = vld [vmem:[%s14004_s2 + $0x128] sm:$0xff]  }
 0x417   :  { %14580 = vst [vmem:[#allocation437_spill] sm:$0xff] %v11394_v21  ;;  %3110 = vmatmul.f32.gmra.mxu0 %v2083_v61  ;;  %3658 = vmatpush.msra.mxu1 %v8061_v11  ;;  %v14727_v17 = vld [vmem:[#allocation99_spill] sm:$0xff] }
 0x418   :  { %3223 = vmatmul.f32.gmra.mxu1 %v2084_v50  ;;  %3336 = vmatmul.f32.gmra.mxu2 %v2085_v20  ;;  %v8060_v20 = vunpack.c.l.bf16 %v8559_v23  ;;  %v14593_v23 = vld [vmem:[#allocation11_spill] sm:$0xff]  ;;  %v2486_v28 = vmax.f32 %v14727_v17, 0.0 }
 0x419   :  { %3449 = vmatmul.f32.gmra.mxu3 %v2086_v16  ;;  %3772 = vmatpush.msra.mxu2 %v8092_v25  ;;  %v2117_v16 = vmax.f32 %v9309_v42, 0.0  ;;  %v2132_v42 = vmax.f32 %v9315_v45, 0.0 }
 0x41a   :  { %3546 = vmatpush.msra.mxu0 %v8028_v34  ;;  %3885 = vmatpush.msra.mxu3 %v8124_v35  ;;  %v8574_v34 = vld [vmem:[%s14004_s2 + $0x1e8] sm:$0xff]   ;;  %v14598_v35 = vld [vmem:[#allocation12_spill] sm:$0xff] }
 0x41b   :  { %v11409_v29 = vpop.f32.mrf.mxu2  ;;  %3659 = vmatpush.msra.mxu1 %v8060_v20 }
 0x41c   :  { %14581 = vst [vmem:[#allocation438_spill] sm:$0xff] %v11409_v29  ;;  %v11411_v30 = vpop.f32.mrf.mxu3  ;;  %v11413_v19 = vpop.f32.mrf.mxu0 }
 0x41d   :  { %14582 = vst [vmem:[#allocation439_spill] sm:$0xff] %v11411_v30  ;;  %v11415_v15 = vpop.f32.mrf.mxu1 }
 0x41e   :  { %14583 = vst [vmem:[#allocation440_spill] sm:$0xff] %v11413_v19  ;;  %v14711_v19 = vld [vmem:[#allocation83_spill] sm:$0xff] }
 0x41f   :  { %14584 = vst [vmem:[#allocation441_spill] sm:$0xff] %v11415_v15  ;;  %3113 = vmatmul.f32.gmra.mxu0 %v2099_v32  ;;  %v2134_v32 = vmax.f32 %v14593_v23, 0.0  ;;  %v14601_v23 = vld [vmem:[#allocation15_spill] sm:$0xff]  ;;  %v2422_v30 = vmax.f32 %v14711_v19, 0.0 }
 0x420   :  { %3226 = vmatmul.f32.gmra.mxu1 %v2100_v33  ;;  %3339 = vmatmul.f32.gmra.mxu2 %v2101_v14  ;;  %v8566_v33 = vld [vmem:[%s14004_s2 + $0x1a8] sm:$0xff]  }
 0x421   :  { %3452 = vmatmul.f32.gmra.mxu3 %v2102_v13  ;;  %v8089_v14 = vunpack.c.h.bf16 %v8566_v33 }
 0x423   :  { %v11421_v61 = vpop.f32.mrf.mxu2  ;;  %3773 = vmatpush.msra.mxu2 %v8089_v14 }
 0x424   :  { %14585 = vst [vmem:[#allocation442_spill] sm:$0xff] %v11421_v61  ;;  %v11423_v50 = vpop.f32.mrf.mxu3  ;;  %v11425_v22 = vpop.f32.mrf.mxu0 }
 0x425   :  { %14586 = vst [vmem:[#allocation443_spill] sm:$0xff] %v11423_v50  ;;  %v11427_v26 = vpop.f32.mrf.mxu1 }
 0x426   :  { %14587 = vst [vmem:[#allocation444_spill] sm:$0xff] %v11425_v22  ;;  %v14695_v22 = vld [vmem:[#allocation67_spill] sm:$0xff] }
 0x427   :  { %14588 = vst [vmem:[#allocation445_spill] sm:$0xff] %v11427_v26  ;;  %3116 = vmatmul.f32.gmra.mxu0 %v2115_v37  ;;  %v2147_v37 = vmax.f32 %v14598_v35, 0.0  ;;  %v2358_v50 = vmax.f32 %v14695_v22, 0.0 }
 0x428   :  { %3229 = vmatmul.f32.gmra.mxu1 %v2116_v38  ;;  %3342 = vmatmul.f32.gmra.mxu2 %v2117_v16  ;;  %v14599_v38 = vld [vmem:[#allocation13_spill] sm:$0xff]  ;;  %v8025_v16 = vunpack.c.h.bf16 %v8550_v47 }
 0x429   :  { %3455 = vmatmul.f32.gmra.mxu3 %v2118_v24  ;;  %v2148_v20 = vmax.f32 %v14599_v38, 0.0  ;;  %v8121_v24 = vunpack.c.h.bf16 %v8574_v34 }
 0x42a   :  { %3547 = vmatpush.msra.mxu0 %v8025_v16  ;;  %v8088_v16 = vunpack.c.l.bf16 %v8566_v33 }
 0x42b   :  { %v11433_v11 = vpop.f32.mrf.mxu2  ;;  %3886 = vmatpush.msra.mxu3 %v8121_v24 }
 0x42c   :  { %14589 = vst [vmem:[#allocation446_spill] sm:$0xff] %v11433_v11  ;;  %v11435_v41 = vpop.f32.mrf.mxu3  ;;  %v11437_v18 = vpop.f32.mrf.mxu0  ;;  %3774 = vmatpush.msra.mxu2 %v8088_v16  ;;  %v14693_v11 = vld [vmem:[#allocation65_spill] sm:$0xff] }
 0x42d   :  { %14590 = vst [vmem:[#allocation447_spill] sm:$0xff] %v11435_v41  ;;  %v11439_v39 = vpop.f32.mrf.mxu1  ;;  %v2356_v26 = vmax.f32 %v14693_v11, 0.0 }
 0x42e   :  { %14591 = vst [vmem:[#allocation448_spill] sm:$0xff] %v11437_v18  ;;  %v14692_v18 = vld [vmem:[#allocation64_spill] sm:$0xff] }
 0x42f   :  { %14592 = vst [vmem:[#allocation449_spill] sm:$0xff] %v11439_v39  ;;  %3119 = vmatmul.f32.gmra.mxu0 %v2131_v40  ;;  %v8558_v40 = vld [vmem:[%s14004_s2 + $0x168] sm:$0xff]   ;;  %v14608_v39 = vld [vmem:[#allocation18_spill] sm:$0xff]  ;;  %v2355_v41 = vmax.f32 %v14692_v18, 0.0 }
 0x430   :  { %3232 = vmatmul.f32.gmra.mxu1 %v2132_v42  ;;  %3345 = vmatmul.f32.gmra.mxu2 %v2133_v43  ;;  %v14600_v42 = vld [vmem:[#allocation14_spill] sm:$0xff]  ;;  %v8057_v14 = vunpack.c.h.bf16 %v8558_v40 }
 0x431   :  { %3458 = vmatmul.f32.gmra.mxu3 %v2134_v32  ;;  %v2149_v43 = vmax.f32 %v14600_v42, 0.0  ;;  %v2150_v32 = vmax.f32 %v14601_v23, 0.0 }
 0x432   :  { %3660 = vmatpush.msra.mxu1 %v8057_v14 }
 0x433   :  { %v11448_v13 = vpop.f32.mrf.mxu2 }
 0x434   :  { %14594 = vst [vmem:[#allocation11_spill] sm:$0xff] %v11448_v13  ;;  %v11450_v25 = vpop.f32.mrf.mxu3  ;;  %v11452_v44 = vpop.f32.mrf.mxu0  ;;  %v14607_v13 = vld [vmem:[#allocation17_spill] sm:$0xff] }
 0x435   :  { %14595 = vst [vmem:[#allocation450_spill] sm:$0xff] %v11450_v25  ;;  %v11454_v45 = vpop.f32.mrf.mxu1  ;;  %v14606_v25 = vld [vmem:[#allocation16_spill] sm:$0xff]  ;;  %v2164_v23 = vmax.f32 %v14607_v13, 0.0  ;;  %v8120_v13 = vunpack.c.l.bf16 %v8574_v34 }
 0x436   :  { %14596 = vst [vmem:[#allocation451_spill] sm:$0xff] %v11452_v44  ;;  %v2163_v42 = vmax.f32 %v14606_v25, 0.0  ;;  %v8024_v25 = vunpack.c.l.bf16 %v8550_v47 }
 0x437   :  { %14597 = vst [vmem:[#allocation452_spill] sm:$0xff] %v11454_v45  ;;  %3122 = vmatmul.f32.gmra.mxu0 %v2147_v37  ;;  %v2165_v37 = vmax.f32 %v14608_v39, 0.0  ;;  %3887 = vmatpush.msra.mxu3 %v8120_v13  ;;  %v14625_v13 = vld [vmem:[#allocation27_spill] sm:$0xff] }
 0x438   :  { %3235 = vmatmul.f32.gmra.mxu1 %v2148_v20  ;;  %3348 = vmatmul.f32.gmra.mxu2 %v2149_v43  ;;  %v14609_v20 = vld [vmem:[#allocation19_spill] sm:$0xff] }
 0x439   :  { %3461 = vmatmul.f32.gmra.mxu3 %v2150_v32  ;;  %v2166_v43 = vmax.f32 %v14609_v20, 0.0  ;;  %3548 = vmatpush.msra.mxu0 %v8024_v25 }
 0x43b   :  { %v11469_v35 = vpop.f32.mrf.mxu2 }
 0x43c   :  { %14602 = vst [vmem:[#allocation12_spill] sm:$0xff] %v11469_v35  ;;  %v11471_v38 = vpop.f32.mrf.mxu3  ;;  %v11473_v45 = vpop.f32.mrf.mxu0  ;;  %v14640_v35 = vld [vmem:[#allocation34_spill] sm:$0xff] }
 0x43d   :  { %14603 = vst [vmem:[#allocation13_spill] sm:$0xff] %v11471_v38  ;;  %v11475_v44 = vpop.f32.mrf.mxu1  ;;  %v14615_v38 = vld [vmem:[#allocation21_spill] sm:$0xff] }
 0x43e   :  { %14604 = vst [vmem:[#allocation14_spill] sm:$0xff] %v11473_v45  ;;  %v14614_v45 = vld [vmem:[#allocation20_spill] sm:$0xff]  ;;  %v2180_v20 = vmax.f32 %v14615_v38, 0.0 }
 0x43f   :  { %14605 = vst [vmem:[#allocation15_spill] sm:$0xff] %v11475_v44  ;;  %3125 = vmatmul.f32.gmra.mxu0 %v2163_v42  ;;  %v2179_v39 = vmax.f32 %v14614_v45, 0.0  ;;  %v8056_v42 = vunpack.c.l.bf16 %v8558_v40  ;;  %v14622_v40 = vld [vmem:[#allocation24_spill] sm:$0xff] }
 0x440   :  { %3238 = vmatmul.f32.gmra.mxu1 %v2164_v23  ;;  %3351 = vmatmul.f32.gmra.mxu2 %v2165_v37  ;;  %v14616_v23 = vld [vmem:[#allocation22_spill] sm:$0xff]  ;;  %v2195_v38 = vmax.f32 %v14622_v40, 0.0 }
 0x441   :  { %3464 = vmatmul.f32.gmra.mxu3 %v2166_v43  ;;  %v2181_v37 = vmax.f32 %v14616_v23, 0.0  ;;  %v14617_v43 = vld [vmem:[#allocation23_spill] sm:$0xff]  ;;  %3661 = vmatpush.msra.mxu1 %v8056_v42  ;;  %v14623_v23 = vld [vmem:[#allocation25_spill] sm:$0xff] }
 0x442   :  { %v2182_v33 = vmax.f32 %v14617_v43, 0.0  ;;  %v14624_v43 = vld [vmem:[#allocation26_spill] sm:$0xff] }
 0x443   :  { %v11481_v24 = vpop.f32.mrf.mxu2  ;;  %v2197_v25 = vmax.f32 %v14624_v43, 0.0  ;;  %v14630_v43 = vld [vmem:[#allocation28_spill] sm:$0xff] }
 0x444   :  { %14610 = vst [vmem:[#allocation16_spill] sm:$0xff] %v11481_v24  ;;  %v11483_v32 = vpop.f32.mrf.mxu3  ;;  %v11485_v14 = vpop.f32.mrf.mxu0  ;;  %v14639_v24 = vld [vmem:[#allocation33_spill] sm:$0xff] }
 0x445   :  { %14611 = vst [vmem:[#allocation17_spill] sm:$0xff] %v11483_v32  ;;  %v11487_v44 = vpop.f32.mrf.mxu1  ;;  %v14638_v32 = vld [vmem:[#allocation32_spill] sm:$0xff] }
 0x446   :  { %14612 = vst [vmem:[#allocation18_spill] sm:$0xff] %v11485_v14 }
 0x447   :  { %14613 = vst [vmem:[#allocation19_spill] sm:$0xff] %v11487_v44  ;;  %3128 = vmatmul.f32.gmra.mxu0 %v2179_v39  ;;  %v2196_v44 = vmax.f32 %v14623_v23, 0.0  ;;  %v2198_v39 = vmax.f32 %v14625_v13, 0.0  ;;  %v14631_v13 = vld [vmem:[#allocation29_spill] sm:$0xff] }
 0x448   :  { %3241 = vmatmul.f32.gmra.mxu1 %v2180_v20  ;;  %3354 = vmatmul.f32.gmra.mxu2 %v2181_v37  ;;  %v8565_v20 = vld [vmem:[%s14004_s2 + $0x1a0] sm:$0xff]  }
 0x449   :  { %3467 = vmatmul.f32.gmra.mxu3 %v2182_v33  ;;  %v8085_v42 = vunpack.c.h.bf16 %v8565_v20 }
 0x44b   :  { %v11493_v16 = vpop.f32.mrf.mxu2  ;;  %3775 = vmatpush.msra.mxu2 %v8085_v42  ;;  %v8557_v42 = vld [vmem:[%s14004_s2 + $0x160] sm:$0xff]  }
 0x44c   :  { %14618 = vst [vmem:[#allocation20_spill] sm:$0xff] %v11493_v16  ;;  %v11495_v47 = vpop.f32.mrf.mxu3  ;;  %v11497_v34 = vpop.f32.mrf.mxu0 }
 0x44d   :  { %14619 = vst [vmem:[#allocation21_spill] sm:$0xff] %v11495_v47  ;;  %v11499_v45 = vpop.f32.mrf.mxu1  ;;  %v8053_v47 = vunpack.c.h.bf16 %v8557_v42 }
 0x44e   :  { %14620 = vst [vmem:[#allocation22_spill] sm:$0xff] %v11497_v34 }
 0x44f   :  { %14621 = vst [vmem:[#allocation23_spill] sm:$0xff] %v11499_v45  ;;  %3131 = vmatmul.f32.gmra.mxu0 %v2195_v38  ;;  %v8573_v38 = vld [vmem:[%s14004_s2 + $0x1e0] sm:$0xff]   ;;  %3662 = vmatpush.msra.mxu1 %v8053_v47  ;;  %v8084_v47 = vunpack.c.l.bf16 %v8565_v20 }
 0x450   :  { %3244 = vmatmul.f32.gmra.mxu1 %v2196_v44  ;;  %3357 = vmatmul.f32.gmra.mxu2 %v2197_v25  ;;  %v8549_v44 = vld [vmem:[%s14004_s2 + $0x120] sm:$0xff]   ;;  %v2211_v25 = vmax.f32 %v14630_v43, 0.0  ;;  %v8117_v45 = vunpack.c.h.bf16 %v8573_v38 }
 0x451   :  { %3470 = vmatmul.f32.gmra.mxu3 %v2198_v39  ;;  %v2212_v39 = vmax.f32 %v14631_v13, 0.0  ;;  %3776 = vmatpush.msra.mxu2 %v8084_v47 }
 0x452   :  { %3888 = vmatpush.msra.mxu3 %v8117_v45 }
 0x453   :  { %v11508_v37 = vpop.f32.mrf.mxu2 }
 0x454   :  { %14626 = vst [vmem:[#allocation24_spill] sm:$0xff] %v11508_v37  ;;  %v11510_v33 = vpop.f32.mrf.mxu3  ;;  %v11512_v40 = vpop.f32.mrf.mxu0  ;;  %v8021_v37 = vunpack.c.h.bf16 %v8549_v44 }
 0x455   :  { %14627 = vst [vmem:[#allocation25_spill] sm:$0xff] %v11510_v33  ;;  %v11514_v23 = vpop.f32.mrf.mxu1  ;;  %v14633_v33 = vld [vmem:[#allocation31_spill] sm:$0xff] }
 0x456   :  { %14628 = vst [vmem:[#allocation26_spill] sm:$0xff] %v11512_v40  ;;  %v14632_v40 = vld [vmem:[#allocation30_spill] sm:$0xff]  ;;  %v2214_v34 = vmax.f32 %v14633_v33, 0.0  ;;  %3549 = vmatpush.msra.mxu0 %v8021_v37  ;;  %v2228_v33 = vmax.f32 %v14639_v24, 0.0  ;;  %v8116_v24 = vunpack.c.l.bf16 %v8573_v38 }
 0x457   :  { %14629 = vst [vmem:[#allocation27_spill] sm:$0xff] %v11514_v23  ;;  %v2213_v23 = vmax.f32 %v14632_v40, 0.0  ;;  %3134 = vmatmul.f32.gmra.mxu0 %v2211_v25  ;;  %v2227_v40 = vmax.f32 %v14638_v32, 0.0  ;;  %v2229_v25 = vmax.f32 %v14640_v35, 0.0  ;;  %v8020_v32 = vunpack.c.l.bf16 %v8549_v44 }
 0x458   :  { %3247 = vmatmul.f32.gmra.mxu1 %v2212_v39  ;;  %v14641_v39 = vld [vmem:[#allocation35_spill] sm:$0xff]  ;;  %3889 = vmatpush.msra.mxu3 %v8116_v24 }
 0x459   :  { %3360 = vmatmul.f32.gmra.mxu2 %v2213_v23  ;;  %3473 = vmatmul.f32.gmra.mxu3 %v2214_v34  ;;  %v2230_v23 = vmax.f32 %v14641_v39, 0.0  ;;  %v14657_v24 = vld [vmem:[#allocation43_spill] sm:$0xff] }
 0x45a   :  { %3550 = vmatpush.msra.mxu0 %v8020_v32 }
 0x45b   :  { %v11529_v43 = vpop.f32.mrf.mxu2 }
 0x45c   :  { %14634 = vst [vmem:[#allocation28_spill] sm:$0xff] %v11529_v43  ;;  %v11531_v13 = vpop.f32.mrf.mxu3  ;;  %v11533_v16 = vpop.f32.mrf.mxu0  ;;  %v14673_v43 = vld [vmem:[#allocation51_spill] sm:$0xff] }
 0x45d   :  { %14635 = vst [vmem:[#allocation29_spill] sm:$0xff] %v11531_v13  ;;  %v11535_v14 = vpop.f32.mrf.mxu1  ;;  %v14647_v13 = vld [vmem:[#allocation37_spill] sm:$0xff] }
 0x45e   :  { %14636 = vst [vmem:[#allocation30_spill] sm:$0xff] %v11533_v16  ;;  %v14646_v16 = vld [vmem:[#allocation36_spill] sm:$0xff]  ;;  %v2244_v39 = vmax.f32 %v14647_v13, 0.0 }
 0x45f   :  { %14637 = vst [vmem:[#allocation31_spill] sm:$0xff] %v11535_v14  ;;  %3137 = vmatmul.f32.gmra.mxu0 %v2227_v40  ;;  %v2243_v35 = vmax.f32 %v14646_v16, 0.0  ;;  %v8052_v40 = vunpack.c.l.bf16 %v8557_v42  ;;  %v14654_v42 = vld [vmem:[#allocation40_spill] sm:$0xff] }
 0x460   :  { %3250 = vmatmul.f32.gmra.mxu1 %v2228_v33  ;;  %v14648_v33 = vld [vmem:[#allocation38_spill] sm:$0xff]  ;;  %v2259_v13 = vmax.f32 %v14654_v42, 0.0 }
 0x461   :  { %3363 = vmatmul.f32.gmra.mxu2 %v2229_v25  ;;  %3476 = vmatmul.f32.gmra.mxu3 %v2230_v23  ;;  %v2245_v25 = vmax.f32 %v14648_v33, 0.0  ;;  %v14649_v23 = vld [vmem:[#allocation39_spill] sm:$0xff]  ;;  %v14655_v33 = vld [vmem:[#allocation41_spill] sm:$0xff] }
 0x462   :  { %v2246_v20 = vmax.f32 %v14649_v23, 0.0  ;;  %3663 = vmatpush.msra.mxu1 %v8052_v40  ;;  %v14656_v23 = vld [vmem:[#allocation42_spill] sm:$0xff] }
 0x463   :  { %v11541_v34 = vpop.f32.mrf.mxu2  ;;  %v2261_v32 = vmax.f32 %v14656_v23, 0.0  ;;  %v14662_v23 = vld [vmem:[#allocation44_spill] sm:$0xff] }
 0x464   :  { %14642 = vst [vmem:[#allocation32_spill] sm:$0xff] %v11541_v34  ;;  %v11543_v45 = vpop.f32.mrf.mxu3  ;;  %v11545_v37 = vpop.f32.mrf.mxu0 }
 0x465   :  { %14643 = vst [vmem:[#allocation33_spill] sm:$0xff] %v11543_v45  ;;  %v11547_v14 = vpop.f32.mrf.mxu1  ;;  %v14672_v45 = vld [vmem:[#allocation50_spill] sm:$0xff] }
 0x466   :  { %14644 = vst [vmem:[#allocation34_spill] sm:$0xff] %v11545_v37  ;;  %v2293_v34 = vmax.f32 %v14672_v45, 0.0 }
 0x467   :  { %14645 = vst [vmem:[#allocation35_spill] sm:$0xff] %v11547_v14  ;;  %3140 = vmatmul.f32.gmra.mxu0 %v2243_v35  ;;  %v2260_v14 = vmax.f32 %v14655_v33, 0.0  ;;  %v2262_v35 = vmax.f32 %v14657_v24, 0.0  ;;  %v2275_v24 = vmax.f32 %v14662_v23, 0.0 }
 0x468   :  { %3253 = vmatmul.f32.gmra.mxu1 %v2244_v39  ;;  %v8564_v39 = vld [vmem:[%s14004_s2 + $0x198] sm:$0xff]  }
 0x469   :  { %3366 = vmatmul.f32.gmra.mxu2 %v2245_v25  ;;  %3479 = vmatmul.f32.gmra.mxu3 %v2246_v20  ;;  %v8081_v40 = vunpack.c.h.bf16 %v8564_v39 }
 0x46b   :  { %v11553_v47 = vpop.f32.mrf.mxu2  ;;  %3777 = vmatpush.msra.mxu2 %v8081_v40  ;;  %v8572_v40 = vld [vmem:[%s14004_s2 + $0x1d8] sm:$0xff]  }
 0x46c   :  { %14650 = vst [vmem:[#allocation36_spill] sm:$0xff] %v11553_v47  ;;  %v11555_v44 = vpop.f32.mrf.mxu3  ;;  %v11557_v38 = vpop.f32.mrf.mxu0  ;;  %v14670_v47 = vld [vmem:[#allocation48_spill] sm:$0xff] }
 0x46d   :  { %14651 = vst [vmem:[#allocation37_spill] sm:$0xff] %v11555_v44  ;;  %v11559_v16 = vpop.f32.mrf.mxu1  ;;  %v8548_v44 = vld [vmem:[%s14004_s2 + $0x118] sm:$0xff]   ;;  %v2291_v37 = vmax.f32 %v14670_v47, 0.0  ;;  %v14678_v47 = vld [vmem:[#allocation52_spill] sm:$0xff] }
 0x46e   :  { %14652 = vst [vmem:[#allocation38_spill] sm:$0xff] %v11557_v38  ;;  %v8017_v23 = vunpack.c.h.bf16 %v8548_v44 }
 0x46f   :  { %14653 = vst [vmem:[#allocation39_spill] sm:$0xff] %v11559_v16  ;;  %3143 = vmatmul.f32.gmra.mxu0 %v2259_v13  ;;  %v14663_v13 = vld [vmem:[#allocation45_spill] sm:$0xff]  ;;  %v14665_v16 = vld [vmem:[#allocation47_spill] sm:$0xff] }
 0x470   :  { %3256 = vmatmul.f32.gmra.mxu1 %v2260_v14  ;;  %v2276_v14 = vmax.f32 %v14663_v13, 0.0  ;;  %v2278_v38 = vmax.f32 %v14665_v16, 0.0  ;;  %v8113_v13 = vunpack.c.h.bf16 %v8572_v40  ;;  %3551 = vmatpush.msra.mxu0 %v8017_v23 }
 0x471   :  { %3369 = vmatmul.f32.gmra.mxu2 %v2261_v32  ;;  %3482 = vmatmul.f32.gmra.mxu3 %v2262_v35  ;;  %v14664_v32 = vld [vmem:[#allocation46_spill] sm:$0xff] }
 0x472   :  { %v2277_v35 = vmax.f32 %v14664_v32, 0.0  ;;  %3890 = vmatpush.msra.mxu3 %v8113_v13 }
 0x473   :  { %v11568_v25 = vpop.f32.mrf.mxu2 }
 0x474   :  { %14658 = vst [vmem:[#allocation40_spill] sm:$0xff] %v11568_v25  ;;  %v11570_v20 = vpop.f32.mrf.mxu3  ;;  %v11572_v42 = vpop.f32.mrf.mxu0 }
 0x475   :  { %14659 = vst [vmem:[#allocation41_spill] sm:$0xff] %v11570_v20  ;;  %v11574_v33 = vpop.f32.mrf.mxu1 }
 0x476   :  { %14660 = vst [vmem:[#allocation42_spill] sm:$0xff] %v11572_v42 }
 0x477   :  { %14661 = vst [vmem:[#allocation43_spill] sm:$0xff] %v11574_v33  ;;  %v8556_v33 = vld [vmem:[%s14004_s2 + $0x158] sm:$0xff]   ;;  %3146 = vmatmul.f32.gmra.mxu0 %v2275_v24 }
 0x478   :  { %3259 = vmatmul.f32.gmra.mxu1 %v2276_v14  ;;  %v8049_v42 = vunpack.c.h.bf16 %v8556_v33  ;;  %v14671_v24 = vld [vmem:[#allocation49_spill] sm:$0xff] }
 0x479   :  { %3372 = vmatmul.f32.gmra.mxu2 %v2277_v35  ;;  %3485 = vmatmul.f32.gmra.mxu3 %v2278_v38  ;;  %v2292_v14 = vmax.f32 %v14671_v24, 0.0  ;;  %v2294_v35 = vmax.f32 %v14673_v43, 0.0  ;;  %v8080_v38 = vunpack.c.l.bf16 %v8564_v39  ;;  %v2307_v24 = vmax.f32 %v14678_v47, 0.0 }
 0x47a   :  { %3664 = vmatpush.msra.mxu1 %v8049_v42  ;;  %v8048_v39 = vunpack.c.l.bf16 %v8556_v33  ;;  %v14687_v33 = vld [vmem:[#allocation59_spill] sm:$0xff] }
 0x47b   :  { %v11589_v16 = vpop.f32.mrf.mxu2  ;;  %3778 = vmatpush.msra.mxu2 %v8080_v38 }
 0x47c   :  { %14666 = vst [vmem:[#allocation44_spill] sm:$0xff] %v11589_v16  ;;  %v11591_v32 = vpop.f32.mrf.mxu3  ;;  %v11593_v20 = vpop.f32.mrf.mxu0  ;;  %3665 = vmatpush.msra.mxu1 %v8048_v39 }
 0x47d   :  { %14667 = vst [vmem:[#allocation45_spill] sm:$0xff] %v11591_v32  ;;  %v11595_v25 = vpop.f32.mrf.mxu1  ;;  %v14680_v32 = vld [vmem:[#allocation54_spill] sm:$0xff] }
 0x47e   :  { %14668 = vst [vmem:[#allocation46_spill] sm:$0xff] %v11593_v20  ;;  %v14679_v20 = vld [vmem:[#allocation53_spill] sm:$0xff]  ;;  %v2309_v43 = vmax.f32 %v14680_v32, 0.0 }
 0x47f   :  { %14669 = vst [vmem:[#allocation47_spill] sm:$0xff] %v11595_v25  ;;  %3149 = vmatmul.f32.gmra.mxu0 %v2291_v37  ;;  %v2308_v45 = vmax.f32 %v14679_v20, 0.0  ;;  %v14681_v37 = vld [vmem:[#allocation55_spill] sm:$0xff] }
 0x480   :  { %3262 = vmatmul.f32.gmra.mxu1 %v2292_v14  ;;  %v2310_v14 = vmax.f32 %v14681_v37, 0.0 }
 0x481   :  { %3375 = vmatmul.f32.gmra.mxu2 %v2293_v34  ;;  %3488 = vmatmul.f32.gmra.mxu3 %v2294_v35  ;;  %v8016_v34 = vunpack.c.l.bf16 %v8548_v44  ;;  %v8112_v35 = vunpack.c.l.bf16 %v8572_v40  ;;  %v14686_v44 = vld [vmem:[#allocation58_spill] sm:$0xff] }
 0x482   :  { %v2325_v40 = vmax.f32 %v14686_v44, 0.0 }
 0x483   :  { %v11601_v42 = vpop.f32.mrf.mxu2  ;;  %3552 = vmatpush.msra.mxu0 %v8016_v34  ;;  %3891 = vmatpush.msra.mxu3 %v8112_v35 }
 0x484   :  { %14674 = vst [vmem:[#allocation48_spill] sm:$0xff] %v11601_v42  ;;  %v11603_v23 = vpop.f32.mrf.mxu3  ;;  %v11605_v13 = vpop.f32.mrf.mxu0 }
 0x485   :  { %14675 = vst [vmem:[#allocation49_spill] sm:$0xff] %v11603_v23  ;;  %v11607_v25 = vpop.f32.mrf.mxu1  ;;  %v14685_v23 = vld [vmem:[#allocation57_spill] sm:$0xff] }
 0x486   :  { %14676 = vst [vmem:[#allocation50_spill] sm:$0xff] %v11605_v13  ;;  %v14684_v13 = vld [vmem:[#allocation56_spill] sm:$0xff]  ;;  %v2324_v37 = vmax.f32 %v14685_v23, 0.0 }
 0x487   :  { %14677 = vst [vmem:[#allocation51_spill] sm:$0xff] %v11607_v25  ;;  %3152 = vmatmul.f32.gmra.mxu0 %v2307_v24  ;;  %v2323_v32 = vmax.f32 %v14684_v13, 0.0  ;;  %v2326_v24 = vmax.f32 %v14687_v33, 0.0 }
 0x488   :  { %3265 = vmatmul.f32.gmra.mxu1 %v2308_v45  ;;  %v8563_v45 = vld [vmem:[%s14004_s2 + $0x190] sm:$0xff]  }
 0x489   :  { %3378 = vmatmul.f32.gmra.mxu2 %v2309_v43  ;;  %3491 = vmatmul.f32.gmra.mxu3 %v2310_v14  ;;  %v8077_v43 = vunpack.c.h.bf16 %v8563_v45 }
 0x48b   :  { %v11613_v38 = vpop.f32.mrf.mxu2  ;;  %3779 = vmatpush.msra.mxu2 %v8077_v43 }
 0x48c   :  { %14682 = vst [vmem:[#allocation52_spill] sm:$0xff] %v11613_v38  ;;  %v11615_v25 = vpop.f32.mrf.mxu3  ;;  %v3108_v47 = vpop.f32.mrf.mxu0  ;;  %v14689_v38 = vld [vmem:[#allocation61_spill] sm:$0xff] }
 0x48d   :  { %14683 = vst [vmem:[#allocation53_spill] sm:$0xff] %v11615_v25  ;;  %v3221_v20 = vpop.f32.mrf.mxu1  ;;  %v14688_v25 = vld [vmem:[#allocation60_spill] sm:$0xff]  ;;  %v2340_v33 = vmax.f32 %v14689_v38, 0.0 }
 0x48e   :  { %v3222_v14 = vadd.f32 %v3221_v20, %v3108_v47  ;;  %v2339_v44 = vmax.f32 %v14688_v25, 0.0  ;;  %v8547_v47 = vld [vmem:[%s14004_s2 + $0x110] sm:$0xff]  }
 0x48f   :  { %3155 = vmatmul.f32.gmra.mxu0 %v2323_v32  ;;  %v14690_v32 = vld [vmem:[#allocation62_spill] sm:$0xff]  ;;  %v8571_v20 = vld [vmem:[%s14004_s2 + $0x1d0] sm:$0xff]   ;;  %v8013_v38 = vunpack.c.h.bf16 %v8547_v47 }
 0x490   :  { %3268 = vmatmul.f32.gmra.mxu1 %v2324_v37  ;;  %v2341_v37 = vmax.f32 %v14690_v32, 0.0  ;;  %v8555_v25 = vld [vmem:[%s14004_s2 + $0x150] sm:$0xff]   ;;  %v8109_v43 = vunpack.c.h.bf16 %v8571_v20 }
 0x491   :  { %3381 = vmatmul.f32.gmra.mxu2 %v2325_v40  ;;  %3494 = vmatmul.f32.gmra.mxu3 %v2326_v24  ;;  %v14691_v40 = vld [vmem:[#allocation63_spill] sm:$0xff] }
 0x492   :  { %v2342_v24 = vmax.f32 %v14691_v40, 0.0  ;;  %3553 = vmatpush.msra.mxu0 %v8013_v38  ;;  %3892 = vmatpush.msra.mxu3 %v8109_v43 }
 0x493   :  { %v3334_v34 = vpop.f32.mrf.mxu2 }
 0x494   :  { %v3447_v35 = vpop.f32.mrf.mxu3  ;;  %v3335_v13 = vadd.f32 %v3334_v34, %v3222_v14  ;;  %v3111_v39 = vpop.f32.mrf.mxu0  ;;  %v8045_v14 = vunpack.c.h.bf16 %v8555_v25 }
 0x495   :  { %v3224_v23 = vpop.f32.mrf.mxu1 }
 0x496   :  { %v11628_v42 = vadd.f32 %v3447_v35, %v3335_v13  ;;  %v3225_v34 = vadd.f32 %v3224_v23, %v3111_v39  ;;  %3666 = vmatpush.msra.mxu1 %v8045_v14  ;;  %v8076_v39 = vunpack.c.l.bf16 %v8563_v45  ;;  %v14696_v14 = vld [vmem:[#allocation68_spill] sm:$0xff]  ;;  %v8044_v45 = vunpack.c.l.bf16 %v8555_v25  ;;  %v14703_v25 = vld [vmem:[#allocation75_spill] sm:$0xff] }
 0x497   :  { %3158 = vmatmul.f32.gmra.mxu0 %v2339_v44  ;;  %v14694_v44 = vld [vmem:[#allocation66_spill] sm:$0xff]  ;;  %v2371_v11 = vmax.f32 %v14696_v14, 0.0  ;;  %v14700_v14 = vld [vmem:[#allocation72_spill] sm:$0xff] }
 0x498   :  { %3271 = vmatmul.f32.gmra.mxu1 %v2340_v33  ;;  %v2357_v33 = vmax.f32 %v14694_v44, 0.0  ;;  %3780 = vmatpush.msra.mxu2 %v8076_v39  ;;  %v14698_v44 = vld [vmem:[#allocation70_spill] sm:$0xff] }
 0x499   :  { %3384 = vmatmul.f32.gmra.mxu2 %v2341_v37  ;;  %3497 = vmatmul.f32.gmra.mxu3 %v2342_v24  ;;  %v2373_v22 = vmax.f32 %v14698_v44, 0.0 }
 0x49a   :  { %3667 = vmatpush.msra.mxu1 %v8044_v45  ;;  %v14704_v45 = vld [vmem:[#allocation76_spill] sm:$0xff] }
 0x49b   :  { %v3337_v35 = vpop.f32.mrf.mxu2 }
 0x49c   :  { %v3450_v13 = vpop.f32.mrf.mxu3  ;;  %v3338_v32 = vadd.f32 %v3337_v35, %v3225_v34  ;;  %v3114_v40 = vpop.f32.mrf.mxu0  ;;  %v14697_v34 = vld [vmem:[#allocation69_spill] sm:$0xff] }
 0x49d   :  { %v3227_v16 = vpop.f32.mrf.mxu1  ;;  %v2372_v35 = vmax.f32 %v14697_v34, 0.0  ;;  %v2387_v34 = vmax.f32 %v14700_v14, 0.0 }
 0x49e   :  { %v11643_v61 = vadd.f32 %v3450_v13, %v3338_v32  ;;  %v3228_v23 = vadd.f32 %v3227_v16, %v3114_v40  ;;  %v14699_v13 = vld [vmem:[#allocation71_spill] sm:$0xff] }
 0x49f   :  { %3161 = vmatmul.f32.gmra.mxu0 %v2355_v41  ;;  %v2374_v32 = vmax.f32 %v14699_v13, 0.0 }
 0x4a0   :  { %3274 = vmatmul.f32.gmra.mxu1 %v2356_v26  ;;  %v8012_v26 = vunpack.c.l.bf16 %v8547_v47  ;;  %v14702_v47 = vld [vmem:[#allocation74_spill] sm:$0xff] }
 0x4a1   :  { %3387 = vmatmul.f32.gmra.mxu2 %v2357_v33  ;;  %3500 = vmatmul.f32.gmra.mxu3 %v2358_v50  ;;  %v8108_v50 = vunpack.c.l.bf16 %v8571_v20  ;;  %v2389_v20 = vmax.f32 %v14702_v47, 0.0  ;;  %v8554_v47 = vld [vmem:[%s14004_s2 + $0x148] sm:$0xff]  }
 0x4a2   :  { %3554 = vmatpush.msra.mxu0 %v8012_v26 }
 0x4a3   :  { %v3340_v37 = vpop.f32.mrf.mxu2  ;;  %3893 = vmatpush.msra.mxu3 %v8108_v50 }
 0x4a4   :  { %v3453_v24 = vpop.f32.mrf.mxu3  ;;  %v3341_v38 = vadd.f32 %v3340_v37, %v3228_v23  ;;  %v3117_v43 = vpop.f32.mrf.mxu0 }
 0x4a5   :  { %v3230_v18 = vpop.f32.mrf.mxu1 }
 0x4a6   :  { %v11649_v41 = vadd.f32 %v3453_v24, %v3341_v38  ;;  %v3231_v16 = vadd.f32 %v3230_v18, %v3117_v43  ;;  %v14701_v24 = vld [vmem:[#allocation73_spill] sm:$0xff]  ;;  %v8562_v43 = vld [vmem:[%s14004_s2 + $0x188] sm:$0xff]  }
 0x4a7   :  { %3164 = vmatmul.f32.gmra.mxu0 %v2371_v11  ;;  %v2388_v38 = vmax.f32 %v14701_v24, 0.0  ;;  %v2390_v11 = vmax.f32 %v14703_v25, 0.0  ;;  %v8073_v18 = vunpack.c.h.bf16 %v8562_v43 }
 0x4a8   :  { %3277 = vmatmul.f32.gmra.mxu1 %v2372_v35 }
 0x4a9   :  { %3390 = vmatmul.f32.gmra.mxu2 %v2373_v22  ;;  %3503 = vmatmul.f32.gmra.mxu3 %v2374_v32 }
 0x4aa   :  { %3781 = vmatpush.msra.mxu2 %v8073_v18 }
 0x4ab   :  { %v3343_v40 = vpop.f32.mrf.mxu2 }
 0x4ac   :  { %v3456_v33 = vpop.f32.mrf.mxu3  ;;  %v3344_v39 = vadd.f32 %v3343_v40, %v3231_v16  ;;  %v3120_v23 = vpop.f32.mrf.mxu0  ;;  %v2403_v16 = vmax.f32 %v14704_v45, 0.0  ;;  %v14705_v40 = vld [vmem:[#allocation77_spill] sm:$0xff] }
 0x4ad   :  { %v3233_v37 = vpop.f32.mrf.mxu1 }
 0x4ae   :  { %v11655_v35 = vadd.f32 %v3456_v33, %v3344_v39  ;;  %v3234_v44 = vadd.f32 %v3233_v37, %v3120_v23  ;;  %v2404_v33 = vmax.f32 %v14705_v40, 0.0  ;;  %v14706_v39 = vld [vmem:[#allocation78_spill] sm:$0xff]  ;;  %v8546_v23 = vld [vmem:[%s14004_s2 + $0x108] sm:$0xff]   ;;  %v14708_v40 = vld [vmem:[#allocation80_spill] sm:$0xff] }
 0x4af   :  { %3167 = vmatmul.f32.gmra.mxu0 %v2387_v34  ;;  %v2405_v14 = vmax.f32 %v14706_v39, 0.0  ;;  %v14707_v34 = vld [vmem:[#allocation79_spill] sm:$0xff]  ;;  %v2419_v39 = vmax.f32 %v14708_v40, 0.0  ;;  %v14713_v40 = vld [vmem:[#allocation85_spill] sm:$0xff] }
 0x4b0   :  { %3280 = vmatmul.f32.gmra.mxu1 %v2388_v38  ;;  %v2406_v24 = vmax.f32 %v14707_v34, 0.0  ;;  %v8570_v37 = vld [vmem:[%s14004_s2 + $0x1c8] sm:$0xff]   ;;  %v14709_v34 = vld [vmem:[#allocation81_spill] sm:$0xff] }
 0x4b1   :  { %3393 = vmatmul.f32.gmra.mxu2 %v2389_v20  ;;  %3506 = vmatmul.f32.gmra.mxu3 %v2390_v11  ;;  %v8009_v20 = vunpack.c.h.bf16 %v8546_v23  ;;  %v8105_v25 = vunpack.c.h.bf16 %v8570_v37  ;;  %v8041_v11 = vunpack.c.h.bf16 %v8554_v47  ;;  %v2420_v15 = vmax.f32 %v14709_v34, 0.0 }
 0x4b2   :  { %v2436_v34 = vmax.f32 %v14713_v40, 0.0 }
 0x4b3   :  { %v3346_v22 = vpop.f32.mrf.mxu2  ;;  %3555 = vmatpush.msra.mxu0 %v8009_v20  ;;  %3894 = vmatpush.msra.mxu3 %v8105_v25 }
 0x4b4   :  { %v3459_v13 = vpop.f32.mrf.mxu3  ;;  %v3347_v32 = vadd.f32 %v3346_v22, %v3234_v44  ;;  %v3123_v26 = vpop.f32.mrf.mxu0  ;;  %3668 = vmatpush.msra.mxu1 %v8041_v11 }
 0x4b5   :  { %v3236_v50 = vpop.f32.mrf.mxu1 }
 0x4b6   :  { %v11664_v38 = vadd.f32 %v3459_v13, %v3347_v32  ;;  %v3237_v18 = vadd.f32 %v3236_v50, %v3123_v26  ;;  %v8072_v26 = vunpack.c.l.bf16 %v8562_v43  ;;  %v8040_v43 = vunpack.c.l.bf16 %v8554_v47  ;;  %v14719_v47 = vld [vmem:[#allocation91_spill] sm:$0xff] }
 0x4b7   :  { %3170 = vmatmul.f32.gmra.mxu0 %v2403_v16  ;;  %v14710_v16 = vld [vmem:[#allocation82_spill] sm:$0xff] }
 0x4b8   :  { %3283 = vmatmul.f32.gmra.mxu1 %v2404_v33  ;;  %v2421_v33 = vmax.f32 %v14710_v16, 0.0  ;;  %3782 = vmatpush.msra.mxu2 %v8072_v26  ;;  %v14714_v16 = vld [vmem:[#allocation86_spill] sm:$0xff] }
 0x4b9   :  { %3396 = vmatmul.f32.gmra.mxu2 %v2405_v14  ;;  %3509 = vmatmul.f32.gmra.mxu3 %v2406_v24  ;;  %v2437_v19 = vmax.f32 %v14714_v16, 0.0 }
 0x4ba   :  { %3669 = vmatpush.msra.mxu1 %v8040_v43  ;;  %v14720_v43 = vld [vmem:[#allocation92_spill] sm:$0xff] }
 0x4bb   :  { %v3349_v44 = vpop.f32.mrf.mxu2 }
 0x4bc   :  { %v3462_v22 = vpop.f32.mrf.mxu3  ;;  %v3350_v13 = vadd.f32 %v3349_v44, %v3237_v18  ;;  %v3126_v32 = vpop.f32.mrf.mxu0  ;;  %v14712_v18 = vld [vmem:[#allocation84_spill] sm:$0xff] }
 0x4bd   :  { %v3239_v45 = vpop.f32.mrf.mxu1  ;;  %v2435_v44 = vmax.f32 %v14712_v18, 0.0  ;;  %v14716_v18 = vld [vmem:[#allocation88_spill] sm:$0xff] }
 0x4be   :  { %v11679_v29 = vadd.f32 %v3462_v22, %v3350_v13  ;;  %v3240_v50 = vadd.f32 %v3239_v45, %v3126_v32  ;;  %v14715_v22 = vld [vmem:[#allocation87_spill] sm:$0xff]  ;;  %v2451_v40 = vmax.f32 %v14716_v18, 0.0 }
 0x4bf   :  { %3173 = vmatmul.f32.gmra.mxu0 %v2419_v39  ;;  %v2438_v13 = vmax.f32 %v14715_v22, 0.0 }
 0x4c0   :  { %3286 = vmatmul.f32.gmra.mxu1 %v2420_v15  ;;  %v8008_v15 = vunpack.c.l.bf16 %v8546_v23  ;;  %v14718_v23 = vld [vmem:[#allocation90_spill] sm:$0xff] }
 0x4c1   :  { %3399 = vmatmul.f32.gmra.mxu2 %v2421_v33  ;;  %3512 = vmatmul.f32.gmra.mxu3 %v2422_v30  ;;  %v8104_v30 = vunpack.c.l.bf16 %v8570_v37  ;;  %v2453_v37 = vmax.f32 %v14718_v23, 0.0  ;;  %v8553_v23 = vld [vmem:[%s14004_s2 + $0x140] sm:$0xff]  }
 0x4c2   :  { %3556 = vmatpush.msra.mxu0 %v8008_v15 }
 0x4c3   :  { %v3352_v14 = vpop.f32.mrf.mxu2  ;;  %3895 = vmatpush.msra.mxu3 %v8104_v30 }
 0x4c4   :  { %v3465_v24 = vpop.f32.mrf.mxu3  ;;  %v3353_v20 = vadd.f32 %v3352_v14, %v3240_v50  ;;  %v3129_v25 = vpop.f32.mrf.mxu0 }
 0x4c5   :  { %v3242_v11 = vpop.f32.mrf.mxu1 }
 0x4c6   :  { %v11685_v39 = vadd.f32 %v3465_v24, %v3353_v20  ;;  %v3243_v32 = vadd.f32 %v3242_v11, %v3129_v25  ;;  %v14717_v24 = vld [vmem:[#allocation89_spill] sm:$0xff]  ;;  %v8561_v25 = vld [vmem:[%s14004_s2 + $0x180] sm:$0xff]  }
 0x4c7   :  { %3176 = vmatmul.f32.gmra.mxu0 %v2435_v44  ;;  %v2452_v20 = vmax.f32 %v14717_v24, 0.0  ;;  %v2454_v44 = vmax.f32 %v14719_v47, 0.0  ;;  %v8069_v11 = vunpack.c.h.bf16 %v8561_v25 }
 0x4c8   :  { %3289 = vmatmul.f32.gmra.mxu1 %v2436_v34 }
 0x4c9   :  { %3402 = vmatmul.f32.gmra.mxu2 %v2437_v19  ;;  %3515 = vmatmul.f32.gmra.mxu3 %v2438_v13 }
 0x4ca   :  { %3783 = vmatpush.msra.mxu2 %v8069_v11 }
 0x4cb   :  { %v3355_v45 = vpop.f32.mrf.mxu2 }
 0x4cc   :  { %v3468_v33 = vpop.f32.mrf.mxu3  ;;  %v3356_v26 = vadd.f32 %v3355_v45, %v3243_v32  ;;  %v3132_v50 = vpop.f32.mrf.mxu0  ;;  %v2467_v32 = vmax.f32 %v14720_v43, 0.0  ;;  %v14721_v45 = vld [vmem:[#allocation93_spill] sm:$0xff] }
 0x4cd   :  { %v3245_v14 = vpop.f32.mrf.mxu1 }
 0x4ce   :  { %v11691_v34 = vadd.f32 %v3468_v33, %v3356_v26  ;;  %v3246_v16 = vadd.f32 %v3245_v14, %v3132_v50  ;;  %v2468_v33 = vmax.f32 %v14721_v45, 0.0  ;;  %v14722_v26 = vld [vmem:[#allocation94_spill] sm:$0xff]  ;;  %v14724_v45 = vld [vmem:[#allocation96_spill] sm:$0xff] }
 0x4cf   :  { %3179 = vmatmul.f32.gmra.mxu0 %v2451_v40  ;;  %v2469_v18 = vmax.f32 %v14722_v26, 0.0  ;;  %v14723_v40 = vld [vmem:[#allocation95_spill] sm:$0xff]  ;;  %v8545_v50 = vld [vmem:[%s14004_s2 + $0x100] sm:$0xff]   ;;  %v2483_v26 = vmax.f32 %v14724_v45, 0.0  ;;  %v14729_v45 = vld [vmem:[#allocation101_spill] sm:$0xff] }
 0x4d0   :  { %3292 = vmatmul.f32.gmra.mxu1 %v2452_v20  ;;  %v2470_v24 = vmax.f32 %v14723_v40, 0.0  ;;  %v8569_v14 = vld [vmem:[%s14004_s2 + $0x1c0] sm:$0xff]   ;;  %v14725_v40 = vld [vmem:[#allocation97_spill] sm:$0xff] }
 0x4d1   :  { %3405 = vmatmul.f32.gmra.mxu2 %v2453_v37  ;;  %3518 = vmatmul.f32.gmra.mxu3 %v2454_v44  ;;  %v8005_v37 = vunpack.c.h.bf16 %v8545_v50  ;;  %v8101_v47 = vunpack.c.h.bf16 %v8569_v14  ;;  %v8037_v44 = vunpack.c.h.bf16 %v8553_v23  ;;  %v2484_v21 = vmax.f32 %v14725_v40, 0.0 }
 0x4d2   :  { %v2500_v40 = vmax.f32 %v14729_v45, 0.0 }
 0x4d3   :  { %v3358_v19 = vpop.f32.mrf.mxu2  ;;  %3557 = vmatpush.msra.mxu0 %v8005_v37  ;;  %3896 = vmatpush.msra.mxu3 %v8101_v47 }
 0x4d4   :  { %v3471_v22 = vpop.f32.mrf.mxu3  ;;  %v3359_v13 = vadd.f32 %v3358_v19, %v3246_v16  ;;  %v3135_v15 = vpop.f32.mrf.mxu0  ;;  %3670 = vmatpush.msra.mxu1 %v8037_v44 }
 0x4d5   :  { %v3248_v30 = vpop.f32.mrf.mxu1 }
 0x4d6   :  { %v11700_v20 = vadd.f32 %v3471_v22, %v3359_v13  ;;  %v3249_v11 = vadd.f32 %v3248_v30, %v3135_v15  ;;  %v8068_v15 = vunpack.c.l.bf16 %v8561_v25  ;;  %v8036_v25 = vunpack.c.l.bf16 %v8553_v23  ;;  %v14735_v23 = vld [vmem:[#allocation107_spill] sm:$0xff] }
 0x4d7   :  { %3182 = vmatmul.f32.gmra.mxu0 %v2467_v32  ;;  %v14726_v32 = vld [vmem:[#allocation98_spill] sm:$0xff] }
 0x4d8   :  { %3295 = vmatmul.f32.gmra.mxu1 %v2468_v33  ;;  %v2485_v33 = vmax.f32 %v14726_v32, 0.0  ;;  %3784 = vmatpush.msra.mxu2 %v8068_v15  ;;  %v14730_v32 = vld [vmem:[#allocation102_spill] sm:$0xff] }
 0x4d9   :  { %3408 = vmatmul.f32.gmra.mxu2 %v2469_v18  ;;  %3521 = vmatmul.f32.gmra.mxu3 %v2470_v24  ;;  %v2501_v17 = vmax.f32 %v14730_v32, 0.0 }
 0x4da   :  { %3671 = vmatpush.msra.mxu1 %v8036_v25  ;;  %v14737_v25 = vld [vmem:[#allocation109_spill] sm:$0xff] }
 0x4dc   :  { %v3361_v16 = vpop.f32.mrf.mxu2  ;;  %v3474_v19 = vpop.f32.mrf.mxu3 }
 0x4dd   :  { %v3362_v22 = vadd.f32 %v3361_v16, %v3249_v11  ;;  %v3138_v13 = vpop.f32.mrf.mxu0  ;;  %v3251_v43 = vpop.f32.mrf.mxu1  ;;  %v14728_v11 = vld [vmem:[#allocation100_spill] sm:$0xff] }
 0x4de   :  { %v3252_v30 = vadd.f32 %v3251_v43, %v3138_v13  ;;  %v2499_v16 = vmax.f32 %v14728_v11, 0.0  ;;  %v14732_v11 = vld [vmem:[#allocation104_spill] sm:$0xff] }
 0x4df   :  { %v11715_v27 = vadd.f32 %v3474_v19, %v3362_v22  ;;  %3185 = vmatmul.f32.gmra.mxu0 %v2483_v26  ;;  %v14731_v19 = vld [vmem:[#allocation103_spill] sm:$0xff]  ;;  %v2515_v45 = vmax.f32 %v14732_v11, 0.0 }
 0x4e0   :  { %3298 = vmatmul.f32.gmra.mxu1 %v2484_v21  ;;  %v2502_v22 = vmax.f32 %v14731_v19, 0.0  ;;  %v8004_v21 = vunpack.c.l.bf16 %v8545_v50  ;;  %v14734_v50 = vld [vmem:[#allocation106_spill] sm:$0xff] }
 0x4e1   :  { %3411 = vmatmul.f32.gmra.mxu2 %v2485_v33  ;;  %3524 = vmatmul.f32.gmra.mxu3 %v2486_v28  ;;  %v8100_v28 = vunpack.c.l.bf16 %v8569_v14  ;;  %v2517_v14 = vmax.f32 %v14734_v50, 0.0 }
 0x4e2   :  { %3558 = vmatpush.msra.mxu0 %v8004_v21  ;;  %v14736_v21 = vld [vmem:[#allocation108_spill] sm:$0xff] }
 0x4e3   :  { %3897 = vmatpush.msra.mxu3 %v8100_v28  ;;  %v2531_v28 = vmax.f32 %v14736_v21, 0.0  ;;  %v14742_v21 = vld [vmem:[#allocation114_spill] sm:$0xff] }
 0x4e4   :  { %v3364_v18 = vpop.f32.mrf.mxu2  ;;  %v3477_v24 = vpop.f32.mrf.mxu3 }
 0x4e5   :  { %v3365_v37 = vadd.f32 %v3364_v18, %v3252_v30  ;;  %v3141_v47 = vpop.f32.mrf.mxu0  ;;  %v3254_v44 = vpop.f32.mrf.mxu1 }
 0x4e6   :  { %v3255_v13 = vadd.f32 %v3254_v44, %v3141_v47 }
 0x4e7   :  { %v11721_v26 = vadd.f32 %v3477_v24, %v3365_v37  ;;  %3188 = vmatmul.f32.gmra.mxu0 %v2499_v16  ;;  %v14733_v24 = vld [vmem:[#allocation105_spill] sm:$0xff]  ;;  %v2518_v16 = vmax.f32 %v14735_v23, 0.0  ;;  %v14740_v23 = vld [vmem:[#allocation112_spill] sm:$0xff] }
 0x4e8   :  { %3301 = vmatmul.f32.gmra.mxu1 %v2500_v40  ;;  %v2516_v37 = vmax.f32 %v14733_v24, 0.0  ;;  %v14739_v24 = vld [vmem:[#allocation111_spill] sm:$0xff] }
 0x4e9   :  { %3414 = vmatmul.f32.gmra.mxu2 %v2501_v17  ;;  %3527 = vmatmul.f32.gmra.mxu3 %v2502_v22  ;;  %v2534_v50 = vmax.f32 %v14739_v24, 0.0 }
 0x4ec   :  { %v3367_v43 = vpop.f32.mrf.mxu2  ;;  %v3480_v33 = vpop.f32.mrf.mxu3 }
 0x4ed   :  { %v3368_v15 = vadd.f32 %v3367_v43, %v3255_v13  ;;  %v3144_v30 = vpop.f32.mrf.mxu0  ;;  %v3257_v18 = vpop.f32.mrf.mxu1  ;;  %v2532_v13 = vmax.f32 %v14737_v25, 0.0  ;;  %v14738_v43 = vld [vmem:[#allocation110_spill] sm:$0xff]  ;;  %v2549_v25 = vmax.f32 %v14742_v21, 0.0 }
 0x4ee   :  { %v3258_v47 = vadd.f32 %v3257_v18, %v3144_v30  ;;  %v2533_v11 = vmax.f32 %v14738_v43, 0.0  ;;  %v14743_v43 = vld [vmem:[#allocation115_spill] sm:$0xff] }
 0x4ef   :  { %v11727_v40 = vadd.f32 %v3480_v33, %v3368_v15  ;;  %3191 = vmatmul.f32.gmra.mxu0 %v2515_v45  ;;  %v2550_v24 = vmax.f32 %v14743_v43, 0.0  ;;  %v2566_v43 = vmax.f32 %v14747_v31, 0.0  ;;  %v8608_v31 = vld [vmem:[%s14004_s2 + $0x2f8] sm:$0xff]  }
 0x4f0   :  { %3304 = vmatmul.f32.gmra.mxu1 %v2516_v37  ;;  %v8257_v2 = vunpack.c.h.bf16 %v8608_v31 }
 0x4f1   :  { %3417 = vmatmul.f32.gmra.mxu2 %v2517_v14  ;;  %3530 = vmatmul.f32.gmra.mxu3 %v2518_v16  ;;  %v2547_v16 = vmax.f32 %v14740_v23, 0.0 }
 0x4f4   :  { %v3370_v44 = vpop.f32.mrf.mxu2  ;;  %v3483_v32 = vpop.f32.mrf.mxu3 }
 0x4f5   :  { %v3371_v17 = vadd.f32 %v3370_v44, %v3258_v47  ;;  %v3147_v19 = vpop.f32.mrf.mxu0  ;;  %v3260_v22 = vpop.f32.mrf.mxu1  ;;  %v14741_v47 = vld [vmem:[#allocation113_spill] sm:$0xff] }
 0x4f6   :  { %v3261_v15 = vadd.f32 %v3260_v22, %v3147_v19  ;;  %v2548_v44 = vmax.f32 %v14741_v47, 0.0  ;;  %v14746_v47 = vld [vmem:[#allocation118_spill] sm:$0xff] }
 0x4f7   :  { %v11733_v33 = vadd.f32 %v3483_v32, %v3371_v17  ;;  %3194 = vmatmul.f32.gmra.mxu0 %v2531_v28  ;;  %v2565_v21 = vmax.f32 %v14746_v47, 0.0  ;;  %v14751_v47 = vld [vmem:[#allocation123_spill] sm:$0xff] }
 0x4f8   :  { %3307 = vmatmul.f32.gmra.mxu1 %v2532_v13 }
 0x4f9   :  { %3420 = vmatmul.f32.gmra.mxu2 %v2533_v11  ;;  %3533 = vmatmul.f32.gmra.mxu3 %v2534_v50  ;;  %v14744_v50 = vld [vmem:[#allocation116_spill] sm:$0xff] }
 0x4fc   :  { %v3373_v30 = vpop.f32.mrf.mxu2  ;;  %v3486_v18 = vpop.f32.mrf.mxu3 }
 0x4fd   :  { %v3374_v45 = vadd.f32 %v3373_v30, %v3261_v15  ;;  %v3150_v37 = vpop.f32.mrf.mxu0  ;;  %v3263_v14 = vpop.f32.mrf.mxu1  ;;  %v2563_v15 = vmax.f32 %v14744_v50, 0.0  ;;  %v14745_v30 = vld [vmem:[#allocation117_spill] sm:$0xff]  ;;  %v14750_v50 = vld [vmem:[#allocation122_spill] sm:$0xff] }
 0x4fe   :  { %v3264_v17 = vadd.f32 %v3263_v14, %v3150_v37  ;;  %v2564_v23 = vmax.f32 %v14745_v30, 0.0  ;;  %v8600_v37 = vld [vmem:[%s14004_s2 + $0x2b8] sm:$0xff]  }
 0x4ff   :  { %v11739_v32 = vadd.f32 %v3486_v18, %v3374_v45  ;;  %3197 = vmatmul.f32.gmra.mxu0 %v2547_v16  ;;  %v8584_v14 = vld [vmem:[%s14004_s2 + $0x238] sm:$0xff]   ;;  %v8225_v30 = vunpack.c.h.bf16 %v8600_v37  ;;  %v8224_v46 = vunpack.c.l.bf16 %v8600_v37 }
 0x500   :  { %3310 = vmatmul.f32.gmra.mxu1 %v2548_v44  ;;  %v8160_v51 = vunpack.c.l.bf16 %v8584_v14 }
 0x501   :  { %3423 = vmatmul.f32.gmra.mxu2 %v2549_v25  ;;  %3536 = vmatmul.f32.gmra.mxu3 %v2550_v24  ;;  %v8592_v25 = vld [vmem:[%s14004_s2 + $0x278] sm:$0xff]   ;;  %v14748_v24 = vld [vmem:[#allocation120_spill] sm:$0xff] }
 0x502   :  { %v8193_v36 = vunpack.c.h.bf16 %v8592_v25 }
 0x504   :  { %v3376_v19 = vpop.f32.mrf.mxu2  ;;  %v3489_v22 = vpop.f32.mrf.mxu3 }
 0x505   :  { %v3377_v28 = vadd.f32 %v3376_v19, %v3264_v17  ;;  %v3153_v13 = vpop.f32.mrf.mxu0  ;;  %v3266_v11 = vpop.f32.mrf.mxu1  ;;  %v2071_v17 = vmax.f32 %v14748_v24, 0.0  ;;  %v8599_v24 = vld [vmem:[%s14004_s2 + $0x2b0] sm:$0xff]  }
 0x506   :  { %v3267_v45 = vadd.f32 %v3266_v11, %v3153_v13  ;;  %v14749_v13 = vld [vmem:[#allocation121_spill] sm:$0xff] }
 0x507   :  { %v11745_v18 = vadd.f32 %v3489_v22, %v3377_v28  ;;  %3200 = vmatmul.f32.gmra.mxu0 %v2563_v15  ;;  %v2072_v11 = vmax.f32 %v14749_v13, 0.0  ;;  %v2073_v15 = vmax.f32 %v14750_v50, 0.0  ;;  %v8221_v13 = vunpack.c.h.bf16 %v8599_v24 }
 0x508   :  { %3313 = vmatmul.f32.gmra.mxu1 %v2564_v23  ;;  %v8161_v23 = vunpack.c.h.bf16 %v8584_v14 }
 0x509   :  { %3426 = vmatmul.f32.gmra.mxu2 %v2565_v21  ;;  %3539 = vmatmul.f32.gmra.mxu3 %v2566_v43  ;;  %v2074_v21 = vmax.f32 %v14751_v47, 0.0  ;;  %v14755_v47 = vld [vmem:[#allocation127_spill] sm:$0xff] }
 0x50c   :  { %v3379_v16 = vpop.f32.mrf.mxu2  ;;  %v3492_v44 = vpop.f32.mrf.mxu3 }
 0x50d   :  { %v3380_v19 = vadd.f32 %v3379_v16, %v3267_v45  ;;  %v3156_v22 = vpop.f32.mrf.mxu0  ;;  %v3269_v28 = vpop.f32.mrf.mxu1  ;;  %v8256_v45 = vunpack.c.l.bf16 %v8608_v31  ;;  %v8192_v16 = vunpack.c.l.bf16 %v8592_v25  ;;  %v14752_v31 = vld [vmem:[#allocation124_spill] sm:$0xff] }
 0x50e   :  { %v3270_v50 = vadd.f32 %v3269_v28, %v3156_v22  ;;  %v2087_v25 = vmax.f32 %v14752_v31, 0.0  ;;  %v2090_v22 = vmax.f32 %v14755_v47, 0.0  ;;  %v14756_v31 = vld [vmem:[#allocation128_spill] sm:$0xff] }
 0x50f   :  { %v11763_v43 = vadd.f32 %v3492_v44, %v3380_v19  ;;  %3559 = vmatmul.f32.vlgmr.msra.gmra.mxu0 %v2071_v17 }
 0x510   :  { %3672 = vmatmul.f32.vlgmr.msra.gmra.mxu1 %v2072_v11  ;;  %3995 = vmatpush.msra.mxu0 %v8161_v23  ;;  %v14753_v11 = vld [vmem:[#allocation125_spill] sm:$0xff] }
 0x511   :  { %3785 = vmatmul.f32.vlgmr.msra.gmra.mxu2 %v2073_v15  ;;  %3898 = vmatmul.f32.vlgmr.msra.gmra.mxu3 %v2074_v21  ;;  %v2088_v15 = vmax.f32 %v14753_v11, 0.0  ;;  %v2103_v11 = vmax.f32 %v14756_v31, 0.0  ;;  %v14761_v31 = vld [vmem:[#allocation133_spill] sm:$0xff] }
 0x512   :  { %4221 = vmatpush.msra.mxu2 %v8225_v30  ;;  %4334 = vmatpush.msra.mxu3 %v8257_v2  ;;  %v14754_v30 = vld [vmem:[#allocation126_spill] sm:$0xff] }
 0x513   :  { %4108 = vmatpush.msra.mxu1 %v8193_v36  ;;  %3996 = vmatpush.msra.mxu0 %v8160_v51  ;;  %v2089_v23 = vmax.f32 %v14754_v30, 0.0  ;;  %v8583_v36 = vld [vmem:[%s14004_s2 + $0x230] sm:$0xff]   ;;  %v14757_v30 = vld [vmem:[#allocation129_spill] sm:$0xff] }
 0x514   :  { %v3382_v44 = vpop.f32.mrf.mxu2  ;;  %v3495_v19 = vpop.f32.mrf.mxu3  ;;  %4222 = vmatpush.msra.mxu2 %v8224_v46  ;;  %4335 = vmatpush.msra.mxu3 %v8256_v45  ;;  %v8607_v51 = vld [vmem:[%s14004_s2 + $0x2f0] sm:$0xff]   ;;  %v8157_v28 = vunpack.c.h.bf16 %v8583_v36  ;;  %v2104_v47 = vmax.f32 %v14757_v30, 0.0  ;;  %v2120_v30 = vmax.f32 %v14761_v31, 0.0 }
 0x515   :  { %v3383_v37 = vadd.f32 %v3382_v44, %v3270_v50  ;;  %v3159_v14 = vpop.f32.mrf.mxu0  ;;  %v3272_v17 = vpop.f32.mrf.mxu1  ;;  %4109 = vmatpush.msra.mxu1 %v8192_v16  ;;  %v8591_v46 = vld [vmem:[%s14004_s2 + $0x270] sm:$0xff]   ;;  %v8253_v21 = vunpack.c.h.bf16 %v8607_v51 }
 0x516   :  { %4223 = vmatpush.msra.mxu2 %v8221_v13  ;;  %v8189_v45 = vunpack.c.h.bf16 %v8591_v46  ;;  %3997 = vmatpush.msra.mxu0 %v8157_v28  ;;  %v3273_v16 = vadd.f32 %v3272_v17, %v3159_v14  ;;  %v8220_v14 = vunpack.c.l.bf16 %v8599_v24  ;;  %v8188_v24 = vunpack.c.l.bf16 %v8591_v46  ;;  %v14767_v46 = vld [vmem:[#allocation139_spill] sm:$0xff] }
 0x517   :  { %v11772_v2 = vadd.f32 %v3495_v19, %v3383_v37  ;;  %3562 = vmatmul.f32.gmra.mxu0 %v2087_v25  ;;  %4336 = vmatpush.msra.mxu3 %v8253_v21  ;;  %v14758_v25 = vld [vmem:[#allocation130_spill] sm:$0xff] }
 0x518   :  { %3675 = vmatmul.f32.gmra.mxu1 %v2088_v15  ;;  %v2105_v15 = vmax.f32 %v14758_v25, 0.0  ;;  %4224 = vmatpush.msra.mxu2 %v8220_v14  ;;  %v14762_v25 = vld [vmem:[#allocation134_spill] sm:$0xff] }
 0x519   :  { %3788 = vmatmul.f32.gmra.mxu2 %v2089_v23  ;;  %3901 = vmatmul.f32.gmra.mxu3 %v2090_v22  ;;  %v2121_v12 = vmax.f32 %v14762_v25, 0.0 }
 0x51a   :  { %4110 = vmatpush.msra.mxu1 %v8189_v45 }
 0x51c   :  { %v3385_v13 = vpop.f32.mrf.mxu2  ;;  %v3498_v50 = vpop.f32.mrf.mxu3  ;;  %4111 = vmatpush.msra.mxu1 %v8188_v24  ;;  %v14768_v24 = vld [vmem:[#allocation140_spill] sm:$0xff] }
 0x51d   :  { %v3386_v44 = vadd.f32 %v3385_v13, %v3273_v16  ;;  %v3162_v19 = vpop.f32.mrf.mxu0  ;;  %v3275_v37 = vpop.f32.mrf.mxu1  ;;  %v14760_v16 = vld [vmem:[#allocation132_spill] sm:$0xff] }
 0x51e   :  { %v3276_v17 = vadd.f32 %v3275_v37, %v3162_v19  ;;  %v2119_v13 = vmax.f32 %v14760_v16, 0.0  ;;  %v14764_v16 = vld [vmem:[#allocation136_spill] sm:$0xff] }
 0x51f   :  { %v11787_v63 = vadd.f32 %v3498_v50, %v3386_v44  ;;  %3565 = vmatmul.f32.gmra.mxu0 %v2103_v11  ;;  %v14763_v50 = vld [vmem:[#allocation135_spill] sm:$0xff]  ;;  %v2135_v31 = vmax.f32 %v14764_v16, 0.0 }
 0x520   :  { %3678 = vmatmul.f32.gmra.mxu1 %v2104_v47  ;;  %v2122_v44 = vmax.f32 %v14763_v50, 0.0  ;;  %v8156_v47 = vunpack.c.l.bf16 %v8583_v36  ;;  %v14766_v36 = vld [vmem:[#allocation138_spill] sm:$0xff] }
 0x521   :  { %3791 = vmatmul.f32.gmra.mxu2 %v2105_v15  ;;  %3904 = vmatmul.f32.gmra.mxu3 %v2106_v56  ;;  %v8252_v56 = vunpack.c.l.bf16 %v8607_v51  ;;  %v2137_v51 = vmax.f32 %v14766_v36, 0.0  ;;  %v8590_v36 = vld [vmem:[%s14004_s2 + $0x268] sm:$0xff]  }
 0x522   :  { %3998 = vmatpush.msra.mxu0 %v8156_v47 }
 0x523   :  { %4337 = vmatpush.msra.mxu3 %v8252_v56 }
 0x524   :  { %v3388_v23 = vpop.f32.mrf.mxu2  ;;  %v3501_v22 = vpop.f32.mrf.mxu3 }
 0x525   :  { %v3389_v28 = vadd.f32 %v3388_v23, %v3276_v17  ;;  %v3165_v21 = vpop.f32.mrf.mxu0  ;;  %v3278_v45 = vpop.f32.mrf.mxu1 }
 0x526   :  { %v3279_v19 = vadd.f32 %v3278_v45, %v3165_v21  ;;  %v8598_v21 = vld [vmem:[%s14004_s2 + $0x2a8] sm:$0xff]  }
 0x527   :  { %v11793_v11 = vadd.f32 %v3501_v22, %v3389_v28  ;;  %3568 = vmatmul.f32.gmra.mxu0 %v2119_v13  ;;  %v14765_v22 = vld [vmem:[#allocation137_spill] sm:$0xff]  ;;  %v2138_v13 = vmax.f32 %v14767_v46, 0.0  ;;  %v8217_v45 = vunpack.c.h.bf16 %v8598_v21 }
 0x528   :  { %3681 = vmatmul.f32.gmra.mxu1 %v2120_v30  ;;  %v2136_v28 = vmax.f32 %v14765_v22, 0.0 }
 0x529   :  { %3794 = vmatmul.f32.gmra.mxu2 %v2121_v12  ;;  %3907 = vmatmul.f32.gmra.mxu3 %v2122_v44 }
 0x52a   :  { %4225 = vmatpush.msra.mxu2 %v8217_v45 }
 0x52c   :  { %v3391_v37 = vpop.f32.mrf.mxu2  ;;  %v3504_v15 = vpop.f32.mrf.mxu3 }
 0x52d   :  { %v3392_v14 = vadd.f32 %v3391_v37, %v3279_v19  ;;  %v3168_v17 = vpop.f32.mrf.mxu0  ;;  %v3281_v23 = vpop.f32.mrf.mxu1  ;;  %v2151_v19 = vmax.f32 %v14768_v24, 0.0  ;;  %v14769_v37 = vld [vmem:[#allocation141_spill] sm:$0xff] }
 0x52e   :  { %v3282_v25 = vadd.f32 %v3281_v23, %v3168_v17  ;;  %v8582_v17 = vld [vmem:[%s14004_s2 + $0x228] sm:$0xff]  }
 0x52f   :  { %v11799_v30 = vadd.f32 %v3504_v15, %v3392_v14  ;;  %3571 = vmatmul.f32.gmra.mxu0 %v2135_v31  ;;  %v2152_v15 = vmax.f32 %v14769_v37, 0.0  ;;  %v14770_v14 = vld [vmem:[#allocation142_spill] sm:$0xff]  ;;  %v14771_v31 = vld [vmem:[#allocation143_spill] sm:$0xff]  ;;  %v14772_v37 = vld [vmem:[#allocation144_spill] sm:$0xff] }
 0x530   :  { %3684 = vmatmul.f32.gmra.mxu1 %v2136_v28  ;;  %v2153_v16 = vmax.f32 %v14770_v14, 0.0  ;;  %v2154_v22 = vmax.f32 %v14771_v31, 0.0  ;;  %v8606_v23 = vld [vmem:[%s14004_s2 + $0x2e8] sm:$0xff]   ;;  %v2167_v14 = vmax.f32 %v14772_v37, 0.0  ;;  %v14773_v31 = vld [vmem:[#allocation145_spill] sm:$0xff] }
 0x531   :  { %3797 = vmatmul.f32.gmra.mxu2 %v2137_v51  ;;  %3910 = vmatmul.f32.gmra.mxu3 %v2138_v13  ;;  %v8153_v51 = vunpack.c.h.bf16 %v8582_v17  ;;  %v8249_v46 = vunpack.c.h.bf16 %v8606_v23  ;;  %v8185_v13 = vunpack.c.h.bf16 %v8590_v36  ;;  %v2168_v62 = vmax.f32 %v14773_v31, 0.0  ;;  %v14777_v37 = vld [vmem:[#allocation149_spill] sm:$0xff] }
 0x532   :  { %v2184_v31 = vmax.f32 %v14777_v37, 0.0 }
 0x533   :  { %3999 = vmatpush.msra.mxu0 %v8153_v51  ;;  %4338 = vmatpush.msra.mxu3 %v8249_v46 }
 0x534   :  { %v3394_v12 = vpop.f32.mrf.mxu2  ;;  %v3507_v50 = vpop.f32.mrf.mxu3  ;;  %4112 = vmatpush.msra.mxu1 %v8185_v13 }
 0x535   :  { %v3395_v44 = vadd.f32 %v3394_v12, %v3282_v25  ;;  %v3171_v47 = vpop.f32.mrf.mxu0  ;;  %v3284_v56 = vpop.f32.mrf.mxu1 }
 0x536   :  { %v3285_v45 = vadd.f32 %v3284_v56, %v3171_v47  ;;  %v8216_v47 = vunpack.c.l.bf16 %v8598_v21  ;;  %v8184_v21 = vunpack.c.l.bf16 %v8590_v36  ;;  %v14783_v36 = vld [vmem:[#allocation155_spill] sm:$0xff] }
 0x537   :  { %v11808_v28 = vadd.f32 %v3507_v50, %v3395_v44  ;;  %3574 = vmatmul.f32.gmra.mxu0 %v2151_v19  ;;  %v14774_v19 = vld [vmem:[#allocation146_spill] sm:$0xff] }
 0x538   :  { %3687 = vmatmul.f32.gmra.mxu1 %v2152_v15  ;;  %v2169_v15 = vmax.f32 %v14774_v19, 0.0  ;;  %4226 = vmatpush.msra.mxu2 %v8216_v47  ;;  %v14778_v19 = vld [vmem:[#allocation150_spill] sm:$0xff] }
 0x539   :  { %3800 = vmatmul.f32.gmra.mxu2 %v2153_v16  ;;  %3913 = vmatmul.f32.gmra.mxu3 %v2154_v22  ;;  %v2185_v6 = vmax.f32 %v14778_v19, 0.0 }
 0x53a   :  { %4113 = vmatpush.msra.mxu1 %v8184_v21  ;;  %v14784_v21 = vld [vmem:[#allocation156_spill] sm:$0xff] }
 0x53c   :  { %v3397_v25 = vpop.f32.mrf.mxu2  ;;  %v3510_v12 = vpop.f32.mrf.mxu3 }
 0x53d   :  { %v3398_v50 = vadd.f32 %v3397_v25, %v3285_v45  ;;  %v3174_v44 = vpop.f32.mrf.mxu0  ;;  %v3287_v24 = vpop.f32.mrf.mxu1  ;;  %v14776_v45 = vld [vmem:[#allocation148_spill] sm:$0xff] }
 0x53e   :  { %v3288_v56 = vadd.f32 %v3287_v24, %v3174_v44  ;;  %v2183_v25 = vmax.f32 %v14776_v45, 0.0  ;;  %v14780_v45 = vld [vmem:[#allocation152_spill] sm:$0xff] }
 0x53f   :  { %v11823_v4 = vadd.f32 %v3510_v12, %v3398_v50  ;;  %3577 = vmatmul.f32.gmra.mxu0 %v2167_v14  ;;  %v14779_v12 = vld [vmem:[#allocation151_spill] sm:$0xff]  ;;  %v2199_v37 = vmax.f32 %v14780_v45, 0.0 }
 0x540   :  { %3690 = vmatmul.f32.gmra.mxu1 %v2168_v62  ;;  %v2186_v50 = vmax.f32 %v14779_v12, 0.0  ;;  %v8152_v62 = vunpack.c.l.bf16 %v8582_v17  ;;  %v14782_v17 = vld [vmem:[#allocation154_spill] sm:$0xff] }
 0x541   :  { %3803 = vmatmul.f32.gmra.mxu2 %v2169_v15  ;;  %3916 = vmatmul.f32.gmra.mxu3 %v2170_v60  ;;  %v8248_v60 = vunpack.c.l.bf16 %v8606_v23  ;;  %v2201_v23 = vmax.f32 %v14782_v17, 0.0  ;;  %v8589_v17 = vld [vmem:[%s14004_s2 + $0x260] sm:$0xff]  }
 0x542   :  { %4000 = vmatpush.msra.mxu0 %v8152_v62 }
 0x543   :  { %4339 = vmatpush.msra.mxu3 %v8248_v60 }
 0x544   :  { %v3400_v16 = vpop.f32.mrf.mxu2  ;;  %v3513_v22 = vpop.f32.mrf.mxu3 }
 0x545   :  { %v3401_v51 = vadd.f32 %v3400_v16, %v3288_v56  ;;  %v3177_v46 = vpop.f32.mrf.mxu0  ;;  %v3290_v13 = vpop.f32.mrf.mxu1 }
 0x546   :  { %v3291_v44 = vadd.f32 %v3290_v13, %v3177_v46  ;;  %v8597_v46 = vld [vmem:[%s14004_s2 + $0x2a0] sm:$0xff]  }
 0x547   :  { %v11829_v14 = vadd.f32 %v3513_v22, %v3401_v51  ;;  %3580 = vmatmul.f32.gmra.mxu0 %v2183_v25  ;;  %v14781_v22 = vld [vmem:[#allocation153_spill] sm:$0xff]  ;;  %v2202_v25 = vmax.f32 %v14783_v36, 0.0  ;;  %v8213_v13 = vunpack.c.h.bf16 %v8597_v46 }
 0x548   :  { %3693 = vmatmul.f32.gmra.mxu1 %v2184_v31  ;;  %v2200_v51 = vmax.f32 %v14781_v22, 0.0 }
 0x549   :  { %3806 = vmatmul.f32.gmra.mxu2 %v2185_v6  ;;  %3919 = vmatmul.f32.gmra.mxu3 %v2186_v50 }
 0x54a   :  { %4227 = vmatpush.msra.mxu2 %v8213_v13 }
 0x54c   :  { %v3403_v24 = vpop.f32.mrf.mxu2  ;;  %v3516_v15 = vpop.f32.mrf.mxu3 }
 0x54d   :  { %v3404_v47 = vadd.f32 %v3403_v24, %v3291_v44  ;;  %v3180_v56 = vpop.f32.mrf.mxu0  ;;  %v3293_v16 = vpop.f32.mrf.mxu1  ;;  %v2215_v44 = vmax.f32 %v14784_v21, 0.0  ;;  %v14785_v24 = vld [vmem:[#allocation157_spill] sm:$0xff] }
 0x54e   :  { %v3294_v19 = vadd.f32 %v3293_v16, %v3180_v56  ;;  %v8581_v56 = vld [vmem:[%s14004_s2 + $0x220] sm:$0xff]  }
 0x54f   :  { %v11835_v31 = vadd.f32 %v3516_v15, %v3404_v47  ;;  %3583 = vmatmul.f32.gmra.mxu0 %v2199_v37  ;;  %v2216_v15 = vmax.f32 %v14785_v24, 0.0  ;;  %v14786_v47 = vld [vmem:[#allocation158_spill] sm:$0xff]  ;;  %v14787_v37 = vld [vmem:[#allocation159_spill] sm:$0xff]  ;;  %v14788_v24 = vld [vmem:[#allocation160_spill] sm:$0xff] }
 0x550   :  { %3696 = vmatmul.f32.gmra.mxu1 %v2200_v51  ;;  %v2217_v45 = vmax.f32 %v14786_v47, 0.0  ;;  %v2218_v22 = vmax.f32 %v14787_v37, 0.0  ;;  %v8605_v16 = vld [vmem:[%s14004_s2 + $0x2e0] sm:$0xff]   ;;  %v2231_v47 = vmax.f32 %v14788_v24, 0.0  ;;  %v14789_v37 = vld [vmem:[#allocation161_spill] sm:$0xff] }
 0x551   :  { %3809 = vmatmul.f32.gmra.mxu2 %v2201_v23  ;;  %3922 = vmatmul.f32.gmra.mxu3 %v2202_v25  ;;  %v8149_v23 = vunpack.c.h.bf16 %v8581_v56  ;;  %v8245_v36 = vunpack.c.h.bf16 %v8605_v16  ;;  %v8181_v25 = vunpack.c.h.bf16 %v8589_v17  ;;  %v2232_v0 = vmax.f32 %v14789_v37, 0.0  ;;  %v14793_v24 = vld [vmem:[#allocation165_spill] sm:$0xff] }
 0x552   :  { %v2248_v37 = vmax.f32 %v14793_v24, 0.0 }
 0x553   :  { %4001 = vmatpush.msra.mxu0 %v8149_v23  ;;  %4340 = vmatpush.msra.mxu3 %v8245_v36 }
 0x554   :  { %v3406_v6 = vpop.f32.mrf.mxu2  ;;  %v3519_v12 = vpop.f32.mrf.mxu3  ;;  %4114 = vmatpush.msra.mxu1 %v8181_v25 }
 0x555   :  { %v3407_v50 = vadd.f32 %v3406_v6, %v3294_v19  ;;  %v3183_v62 = vpop.f32.mrf.mxu0  ;;  %v3296_v60 = vpop.f32.mrf.mxu1 }
 0x556   :  { %v3297_v13 = vadd.f32 %v3296_v60, %v3183_v62  ;;  %v8212_v62 = vunpack.c.l.bf16 %v8597_v46  ;;  %v8180_v46 = vunpack.c.l.bf16 %v8589_v17  ;;  %v14799_v17 = vld [vmem:[#allocation171_spill] sm:$0xff] }
 0x557   :  { %v11844_v51 = vadd.f32 %v3519_v12, %v3407_v50  ;;  %3586 = vmatmul.f32.gmra.mxu0 %v2215_v44  ;;  %v14790_v44 = vld [vmem:[#allocation162_spill] sm:$0xff] }
 0x558   :  { %3699 = vmatmul.f32.gmra.mxu1 %v2216_v15  ;;  %v2233_v15 = vmax.f32 %v14790_v44, 0.0  ;;  %4228 = vmatpush.msra.mxu2 %v8212_v62  ;;  %v14794_v44 = vld [vmem:[#allocation166_spill] sm:$0xff] }
 0x559   :  { %3812 = vmatmul.f32.gmra.mxu2 %v2217_v45  ;;  %3925 = vmatmul.f32.gmra.mxu3 %v2218_v22  ;;  %v2249_v3 = vmax.f32 %v14794_v44, 0.0 }
 0x55a   :  { %4115 = vmatpush.msra.mxu1 %v8180_v46  ;;  %v14800_v46 = vld [vmem:[#allocation172_spill] sm:$0xff] }
 0x55c   :  { %v3409_v19 = vpop.f32.mrf.mxu2  ;;  %v3522_v6 = vpop.f32.mrf.mxu3 }
 0x55d   :  { %v3410_v12 = vadd.f32 %v3409_v19, %v3297_v13  ;;  %v3186_v50 = vpop.f32.mrf.mxu0  ;;  %v3299_v21 = vpop.f32.mrf.mxu1  ;;  %v14792_v13 = vld [vmem:[#allocation164_spill] sm:$0xff] }
 0x55e   :  { %v3300_v60 = vadd.f32 %v3299_v21, %v3186_v50  ;;  %v2247_v19 = vmax.f32 %v14792_v13, 0.0  ;;  %v14796_v13 = vld [vmem:[#allocation168_spill] sm:$0xff] }
 0x55f   :  { %v11859_v1 = vadd.f32 %v3522_v6, %v3410_v12  ;;  %3589 = vmatmul.f32.gmra.mxu0 %v2231_v47  ;;  %v14795_v6 = vld [vmem:[#allocation167_spill] sm:$0xff]  ;;  %v2263_v24 = vmax.f32 %v14796_v13, 0.0 }
 0x560   :  { %3702 = vmatmul.f32.gmra.mxu1 %v2232_v0  ;;  %v2250_v12 = vmax.f32 %v14795_v6, 0.0  ;;  %v8148_v0 = vunpack.c.l.bf16 %v8581_v56  ;;  %v14798_v56 = vld [vmem:[#allocation170_spill] sm:$0xff] }
 0x561   :  { %3815 = vmatmul.f32.gmra.mxu2 %v2233_v15  ;;  %3928 = vmatmul.f32.gmra.mxu3 %v2234_v10  ;;  %v8244_v10 = vunpack.c.l.bf16 %v8605_v16  ;;  %v2265_v16 = vmax.f32 %v14798_v56, 0.0 }
 0x562   :  { %4002 = vmatpush.msra.mxu0 %v8148_v0 }
 0x563   :  { %4341 = vmatpush.msra.mxu3 %v8244_v10 }
 0x564   :  { %v3412_v45 = vpop.f32.mrf.mxu2  ;;  %v3525_v22 = vpop.f32.mrf.mxu3 }
 0x565   :  { %v3413_v23 = vadd.f32 %v3412_v45, %v3300_v60  ;;  %v3189_v36 = vpop.f32.mrf.mxu0  ;;  %v3302_v25 = vpop.f32.mrf.mxu1 }
 0x566   :  { %v3303_v50 = vadd.f32 %v3302_v25, %v3189_v36  ;;  %v8596_v36 = vld [vmem:[%s14004_s2 + $0x298] sm:$0xff]  }
 0x567   :  { %v11865_v47 = vadd.f32 %v3525_v22, %v3413_v23  ;;  %3592 = vmatmul.f32.gmra.mxu0 %v2247_v19  ;;  %v14797_v22 = vld [vmem:[#allocation169_spill] sm:$0xff]  ;;  %v2266_v19 = vmax.f32 %v14799_v17, 0.0  ;;  %v8209_v25 = vunpack.c.h.bf16 %v8596_v36 }
 0x568   :  { %3705 = vmatmul.f32.gmra.mxu1 %v2248_v37  ;;  %v2264_v23 = vmax.f32 %v14797_v22, 0.0  ;;  %v8588_v17 = vld [vmem:[%s14004_s2 + $0x258] sm:$0xff]  }
 0x569   :  { %3818 = vmatmul.f32.gmra.mxu2 %v2249_v3  ;;  %3931 = vmatmul.f32.gmra.mxu3 %v2250_v12 }
 0x56a   :  { %4229 = vmatpush.msra.mxu2 %v8209_v25 }
 0x56c   :  { %v3415_v21 = vpop.f32.mrf.mxu2  ;;  %v3528_v15 = vpop.f32.mrf.mxu3 }
 0x56d   :  { %v3416_v62 = vadd.f32 %v3415_v21, %v3303_v50  ;;  %v3192_v60 = vpop.f32.mrf.mxu0  ;;  %v3305_v45 = vpop.f32.mrf.mxu1  ;;  %v2279_v50 = vmax.f32 %v14800_v46, 0.0  ;;  %v14801_v21 = vld [vmem:[#allocation173_spill] sm:$0xff] }
 0x56e   :  { %v3306_v44 = vadd.f32 %v3305_v45, %v3192_v60  ;;  %v8580_v60 = vld [vmem:[%s14004_s2 + $0x218] sm:$0xff]  }
 0x56f   :  { %v11871_v37 = vadd.f32 %v3528_v15, %v3416_v62  ;;  %3595 = vmatmul.f32.gmra.mxu0 %v2263_v24  ;;  %v2280_v15 = vmax.f32 %v14801_v21, 0.0  ;;  %v14802_v62 = vld [vmem:[#allocation174_spill] sm:$0xff]  ;;  %v14803_v24 = vld [vmem:[#allocation175_spill] sm:$0xff]  ;;  %v8604_v45 = vld [vmem:[%s14004_s2 + $0x2d8] sm:$0xff]   ;;  %v8145_v56 = vunpack.c.h.bf16 %v8580_v60 }
 0x570   :  { %3708 = vmatmul.f32.gmra.mxu1 %v2264_v23  ;;  %v2281_v13 = vmax.f32 %v14802_v62, 0.0  ;;  %v2282_v22 = vmax.f32 %v14803_v24, 0.0  ;;  %v14806_v24 = vld [vmem:[#allocation178_spill] sm:$0xff] }
 0x571   :  { %3821 = vmatmul.f32.gmra.mxu2 %v2265_v16  ;;  %3934 = vmatmul.f32.gmra.mxu3 %v2266_v19  ;;  %v8241_v16 = vunpack.c.h.bf16 %v8604_v45  ;;  %v8177_v19 = vunpack.c.h.bf16 %v8588_v17  ;;  %v2297_v8 = vmax.f32 %v14806_v24, 0.0 }
 0x572   :  { %4003 = vmatpush.msra.mxu0 %v8145_v56 }
 0x573   :  { %4342 = vmatpush.msra.mxu3 %v8241_v16  ;;  %4116 = vmatpush.msra.mxu1 %v8177_v19 }
 0x574   :  { %v3418_v3 = vpop.f32.mrf.mxu2  ;;  %v3531_v6 = vpop.f32.mrf.mxu3 }
 0x575   :  { %v3419_v12 = vadd.f32 %v3418_v3, %v3306_v44  ;;  %v3195_v0 = vpop.f32.mrf.mxu0  ;;  %v3308_v10 = vpop.f32.mrf.mxu1 }
 0x576   :  { %v3309_v25 = vadd.f32 %v3308_v10, %v3195_v0  ;;  %v8208_v0 = vunpack.c.l.bf16 %v8596_v36  ;;  %v8176_v36 = vunpack.c.l.bf16 %v8588_v17  ;;  %v14815_v17 = vld [vmem:[#allocation187_spill] sm:$0xff] }
 0x577   :  { %v11880_v23 = vadd.f32 %v3531_v6, %v3419_v12  ;;  %3598 = vmatmul.f32.gmra.mxu0 %v2279_v50  ;;  %v14804_v50 = vld [vmem:[#allocation176_spill] sm:$0xff] }
 0x578   :  { %3711 = vmatmul.f32.gmra.mxu1 %v2280_v15  ;;  %v2295_v21 = vmax.f32 %v14804_v50, 0.0  ;;  %v14805_v15 = vld [vmem:[#allocation177_spill] sm:$0xff]  ;;  %4230 = vmatpush.msra.mxu2 %v8208_v0 }
 0x579   :  { %3824 = vmatmul.f32.gmra.mxu2 %v2281_v13  ;;  %3937 = vmatmul.f32.gmra.mxu3 %v2282_v22  ;;  %v2296_v62 = vmax.f32 %v14805_v15, 0.0  ;;  %v14809_v15 = vld [vmem:[#allocation181_spill] sm:$0xff] }
 0x57a   :  { %v2312_v24 = vmax.f32 %v14809_v15, 0.0  ;;  %4117 = vmatpush.msra.mxu1 %v8176_v36  ;;  %v2330_v15 = vmax.f32 %v14815_v17, 0.0  ;;  %v14816_v36 = vld [vmem:[#allocation188_spill] sm:$0xff] }
 0x57c   :  { %v3421_v44 = vpop.f32.mrf.mxu2  ;;  %v3534_v3 = vpop.f32.mrf.mxu3 }
 0x57d   :  { %v3422_v6 = vadd.f32 %v3421_v44, %v3309_v25  ;;  %v3198_v12 = vpop.f32.mrf.mxu0  ;;  %v3311_v46 = vpop.f32.mrf.mxu1  ;;  %v14808_v44 = vld [vmem:[#allocation180_spill] sm:$0xff] }
 0x57e   :  { %v3312_v10 = vadd.f32 %v3311_v46, %v3198_v12  ;;  %v2311_v50 = vmax.f32 %v14808_v44, 0.0 }
 0x57f   :  { %v11895_v13 = vadd.f32 %v3534_v3, %v3422_v6  ;;  %3601 = vmatmul.f32.gmra.mxu0 %v2295_v21  ;;  %v14811_v3 = vld [vmem:[#allocation183_spill] sm:$0xff] }
 0x580   :  { %3714 = vmatmul.f32.gmra.mxu1 %v2296_v62  ;;  %v2314_v6 = vmax.f32 %v14811_v3, 0.0 }
 0x581   :  { %3827 = vmatmul.f32.gmra.mxu2 %v2297_v8  ;;  %3940 = vmatmul.f32.gmra.mxu3 %v2298_v52  ;;  %v8144_v8 = vunpack.c.l.bf16 %v8580_v60  ;;  %v8240_v52 = vunpack.c.l.bf16 %v8604_v45  ;;  %v14814_v45 = vld [vmem:[#allocation186_spill] sm:$0xff] }
 0x583   :  { %4004 = vmatpush.msra.mxu0 %v8144_v8  ;;  %4343 = vmatpush.msra.mxu3 %v8240_v52 }
 0x584   :  { %v3424_v22 = vpop.f32.mrf.mxu2  ;;  %v3537_v56 = vpop.f32.mrf.mxu3 }
 0x585   :  { %v3425_v16 = vadd.f32 %v3424_v22, %v3312_v10  ;;  %v3201_v19 = vpop.f32.mrf.mxu0  ;;  %v3314_v25 = vpop.f32.mrf.mxu1  ;;  %v14812_v22 = vld [vmem:[#allocation184_spill] sm:$0xff] }
 0x586   :  { %v3315_v12 = vadd.f32 %v3314_v25, %v3201_v19  ;;  %v2327_v44 = vmax.f32 %v14812_v22, 0.0  ;;  %v8595_v19 = vld [vmem:[%s14004_s2 + $0x290] sm:$0xff]   ;;  %v14819_v22 = vld [vmem:[#allocation191_spill] sm:$0xff] }
 0x587   :  { %v11901_v21 = vadd.f32 %v3537_v56, %v3425_v16  ;;  %3604 = vmatmul.f32.gmra.mxu0 %v2311_v50  ;;  %v14813_v56 = vld [vmem:[#allocation185_spill] sm:$0xff]  ;;  %v2329_v50 = vmax.f32 %v14814_v45, 0.0  ;;  %v8205_v25 = vunpack.c.h.bf16 %v8595_v19 }
 0x588   :  { %3717 = vmatmul.f32.gmra.mxu1 %v2312_v24  ;;  %v2328_v16 = vmax.f32 %v14813_v56, 0.0 }
 0x589   :  { %3830 = vmatmul.f32.gmra.mxu2 %v2313_v53  ;;  %3943 = vmatmul.f32.gmra.mxu3 %v2314_v6 }
 0x58a   :  { %4231 = vmatpush.msra.mxu2 %v8205_v25 }
 0x58c   :  { %v3427_v46 = vpop.f32.mrf.mxu2  ;;  %v3540_v62 = vpop.f32.mrf.mxu3 }
 0x58d   :  { %v3428_v0 = vadd.f32 %v3427_v46, %v3315_v12  ;;  %v3560_v10 = vpop.f32.mrf.mxu0  ;;  %v3673_v5 = vpop.f32.mrf.mxu1  ;;  %v2343_v12 = vmax.f32 %v14816_v36, 0.0  ;;  %v14817_v46 = vld [vmem:[#allocation189_spill] sm:$0xff] }
 0x58e   :  { %v3561_v60 = vadd.f32 %v3560_v10, %v11628_v42  ;;  %v14818_v10 = vld [vmem:[#allocation190_spill] sm:$0xff]  ;;  %v14821_v36 = vld [vmem:[#allocation193_spill] sm:$0xff] }
 0x58f   :  { %v11908_v24 = vadd.f32 %v3540_v62, %v3428_v0  ;;  %3607 = vmatmul.f32.gmra.mxu0 %v2327_v44  ;;  %v2344_v62 = vmax.f32 %v14817_v46, 0.0  ;;  %v2346_v44 = vmax.f32 %v14819_v22, 0.0 }
 0x590   :  { %v3674_v53 = vadd.f32 %v3673_v5, %v3561_v60  ;;  %3720 = vmatmul.f32.gmra.mxu1 %v2328_v16  ;;  %v2345_v5 = vmax.f32 %v14818_v10, 0.0  ;;  %v8579_v16 = vld [vmem:[%s14004_s2 + $0x210] sm:$0xff]   ;;  %v14823_v10 = vld [vmem:[#allocation195_spill] sm:$0xff] }
 0x591   :  { %3833 = vmatmul.f32.gmra.mxu2 %v2329_v50  ;;  %3946 = vmatmul.f32.gmra.mxu3 %v2330_v15  ;;  %v8603_v60 = vld [vmem:[%s14004_s2 + $0x2d0] sm:$0xff]   ;;  %v8141_v50 = vunpack.c.h.bf16 %v8579_v16 }
 0x592   :  { %v8237_v17 = vunpack.c.h.bf16 %v8603_v60 }
 0x593   :  { %4005 = vmatpush.msra.mxu0 %v8141_v50 }
 0x594   :  { %v3786_v3 = vpop.f32.mrf.mxu2  ;;  %v3899_v6 = vpop.f32.mrf.mxu3  ;;  %4344 = vmatpush.msra.mxu3 %v8237_v17 }
 0x595   :  { %v3787_v42 = vadd.f32 %v3786_v3, %v3674_v53  ;;  %v3563_v8 = vpop.f32.mrf.mxu0  ;;  %v3676_v52 = vpop.f32.mrf.mxu1 }
 0x596   :  { %v3564_v0 = vadd.f32 %v3563_v8, %v11643_v61  ;;  %v8587_v61 = vld [vmem:[%s14004_s2 + $0x250] sm:$0xff]  }
 0x597   :  { %v11918_v56 = vadd.f32 %v3899_v6, %v3787_v42  ;;  %3610 = vmatmul.f32.gmra.mxu0 %v2343_v12  ;;  %v8173_v15 = vunpack.c.h.bf16 %v8587_v61  ;;  %v14820_v8 = vld [vmem:[#allocation192_spill] sm:$0xff]  ;;  %v2360_v12 = vmax.f32 %v14821_v36, 0.0 }
 0x598   :  { %v3677_v45 = vadd.f32 %v3676_v52, %v3564_v0  ;;  %3723 = vmatmul.f32.gmra.mxu1 %v2344_v62  ;;  %v2359_v52 = vmax.f32 %v14820_v8, 0.0  ;;  %v14822_v62 = vld [vmem:[#allocation194_spill] sm:$0xff]  ;;  %v14824_v36 = vld [vmem:[#allocation196_spill] sm:$0xff] }
 0x599   :  { %3836 = vmatmul.f32.gmra.mxu2 %v2345_v5  ;;  %3949 = vmatmul.f32.gmra.mxu3 %v2346_v44  ;;  %v2361_v0 = vmax.f32 %v14822_v62, 0.0  ;;  %v2362_v5 = vmax.f32 %v14823_v10, 0.0  ;;  %v2377_v10 = vmax.f32 %v14826_v55, 0.0 }
 0x59a   :  { %4118 = vmatpush.msra.mxu1 %v8173_v15 }
 0x59c   :  { %v3789_v53 = vpop.f32.mrf.mxu2  ;;  %v3902_v25 = vpop.f32.mrf.mxu3 }
 0x59d   :  { %v3790_v3 = vadd.f32 %v3789_v53, %v3677_v45  ;;  %v3566_v6 = vpop.f32.mrf.mxu0  ;;  %v3679_v42 = vpop.f32.mrf.mxu1  ;;  %v8204_v45 = vunpack.c.l.bf16 %v8595_v19  ;;  %v8236_v19 = vunpack.c.l.bf16 %v8603_v60  ;;  %v14830_v60 = vld [vmem:[#allocation202_spill] sm:$0xff] }
 0x59e   :  { %v3567_v46 = vadd.f32 %v3566_v6, %v11649_v41  ;;  %v2375_v41 = vmax.f32 %v14824_v36, 0.0  ;;  %v14825_v6 = vld [vmem:[#allocation197_spill] sm:$0xff]  ;;  %v14831_v36 = vld [vmem:[#allocation203_spill] sm:$0xff] }
 0x59f   :  { %v11934_v22 = vadd.f32 %v3902_v25, %v3790_v3  ;;  %3613 = vmatmul.f32.gmra.mxu0 %v2359_v52  ;;  %4232 = vmatpush.msra.mxu2 %v8204_v45  ;;  %v2376_v62 = vmax.f32 %v14825_v6, 0.0  ;;  %v14827_v3 = vld [vmem:[#allocation199_spill] sm:$0xff] }
 0x5a0   :  { %v3680_v44 = vadd.f32 %v3679_v42, %v3567_v46  ;;  %3726 = vmatmul.f32.gmra.mxu1 %v2360_v12  ;;  %v2378_v42 = vmax.f32 %v14827_v3, 0.0  ;;  %v8140_v12 = vunpack.c.l.bf16 %v8579_v16  ;;  %4345 = vmatpush.msra.mxu3 %v8236_v19  ;;  %v14832_v19 = vld [vmem:[#allocation204_spill] sm:$0xff] }
 0x5a1   :  { %3839 = vmatmul.f32.gmra.mxu2 %v2361_v0  ;;  %3952 = vmatmul.f32.gmra.mxu3 %v2362_v5  ;;  %v8172_v0 = vunpack.c.l.bf16 %v8587_v61  ;;  %v2394_v61 = vmax.f32 %v14831_v36, 0.0 }
 0x5a2   :  { %4006 = vmatpush.msra.mxu0 %v8140_v12 }
 0x5a3   :  { %4119 = vmatpush.msra.mxu1 %v8172_v0  ;;  %v14833_v0 = vld [vmem:[#allocation205_spill] sm:$0xff] }
 0x5a4   :  { %v3792_v50 = vpop.f32.mrf.mxu2  ;;  %v3905_v17 = vpop.f32.mrf.mxu3 }
 0x5a5   :  { %v3793_v15 = vadd.f32 %v3792_v50, %v3680_v44  ;;  %v3569_v53 = vpop.f32.mrf.mxu0  ;;  %v3682_v8 = vpop.f32.mrf.mxu1  ;;  %v14828_v50 = vld [vmem:[#allocation200_spill] sm:$0xff] }
 0x5a6   :  { %v3570_v25 = vadd.f32 %v3569_v53, %v11655_v35  ;;  %v2391_v53 = vmax.f32 %v14828_v50, 0.0 }
 0x5a7   :  { %v11941_v52 = vadd.f32 %v3905_v17, %v3793_v15  ;;  %3616 = vmatmul.f32.gmra.mxu0 %v2375_v41  ;;  %v14829_v17 = vld [vmem:[#allocation201_spill] sm:$0xff] }
 0x5a8   :  { %v3683_v46 = vadd.f32 %v3682_v8, %v3570_v25  ;;  %3729 = vmatmul.f32.gmra.mxu1 %v2376_v62  ;;  %v2392_v15 = vmax.f32 %v14829_v17, 0.0  ;;  %v2393_v8 = vmax.f32 %v14830_v60, 0.0  ;;  %v8594_v62 = vld [vmem:[%s14004_s2 + $0x288] sm:$0xff]  }
 0x5a9   :  { %3842 = vmatmul.f32.gmra.mxu2 %v2377_v10  ;;  %3955 = vmatmul.f32.gmra.mxu3 %v2378_v42  ;;  %v8201_v10 = vunpack.c.h.bf16 %v8594_v62  ;;  %v8578_v17 = vld [vmem:[%s14004_s2 + $0x208] sm:$0xff]  }
 0x5aa   :  { %v8137_v60 = vunpack.c.h.bf16 %v8578_v17 }
 0x5ab   :  { %4233 = vmatpush.msra.mxu2 %v8201_v10 }
 0x5ac   :  { %v3795_v5 = vpop.f32.mrf.mxu2  ;;  %v3908_v44 = vpop.f32.mrf.mxu3  ;;  %4007 = vmatpush.msra.mxu0 %v8137_v60 }
 0x5ad   :  { %v3796_v55 = vadd.f32 %v3795_v5, %v3683_v46  ;;  %v3572_v45 = vpop.f32.mrf.mxu0  ;;  %v3685_v35 = vpop.f32.mrf.mxu1  ;;  %v2407_v46 = vmax.f32 %v14832_v19, 0.0  ;;  %v2408_v5 = vmax.f32 %v14833_v0, 0.0  ;;  %v14838_v0 = vld [vmem:[#allocation210_spill] sm:$0xff] }
 0x5ae   :  { %v3573_v16 = vadd.f32 %v3572_v45, %v11664_v38 }
 0x5af   :  { %v11948_v41 = vadd.f32 %v3908_v44, %v3796_v55  ;;  %3619 = vmatmul.f32.gmra.mxu0 %v2391_v53  ;;  %v14834_v55 = vld [vmem:[#allocation206_spill] sm:$0xff] }
 0x5b0   :  { %v3686_v6 = vadd.f32 %v3685_v35, %v3573_v16  ;;  %3732 = vmatmul.f32.gmra.mxu1 %v2392_v15  ;;  %v2409_v45 = vmax.f32 %v14834_v55, 0.0  ;;  %v14835_v35 = vld [vmem:[#allocation207_spill] sm:$0xff] }
 0x5b1   :  { %3845 = vmatmul.f32.gmra.mxu2 %v2393_v8  ;;  %3958 = vmatmul.f32.gmra.mxu3 %v2394_v61  ;;  %v2410_v50 = vmax.f32 %v14835_v35, 0.0  ;;  %v8602_v15 = vld [vmem:[%s14004_s2 + $0x2c8] sm:$0xff]  }
 0x5b2   :  { %v8233_v8 = vunpack.c.h.bf16 %v8602_v15 }
 0x5b4   :  { %v3798_v25 = vpop.f32.mrf.mxu2  ;;  %v3911_v3 = vpop.f32.mrf.mxu3  ;;  %4346 = vmatpush.msra.mxu3 %v8233_v8 }
 0x5b5   :  { %v3799_v38 = vadd.f32 %v3798_v25, %v3686_v6  ;;  %v3575_v42 = vpop.f32.mrf.mxu0  ;;  %v3688_v12 = vpop.f32.mrf.mxu1 }
 0x5b6   :  { %v3576_v44 = vadd.f32 %v3575_v42, %v11679_v29  ;;  %v8586_v29 = vld [vmem:[%s14004_s2 + $0x248] sm:$0xff]  }
 0x5b7   :  { %v11958_v53 = vadd.f32 %v3911_v3, %v3799_v38  ;;  %3622 = vmatmul.f32.gmra.mxu0 %v2407_v46  ;;  %v8169_v36 = vunpack.c.h.bf16 %v8586_v29  ;;  %v14836_v38 = vld [vmem:[#allocation208_spill] sm:$0xff] }
 0x5b8   :  { %v3689_v16 = vadd.f32 %v3688_v12, %v3576_v44  ;;  %3735 = vmatmul.f32.gmra.mxu1 %v2408_v5  ;;  %v2423_v42 = vmax.f32 %v14836_v38, 0.0  ;;  %v14837_v12 = vld [vmem:[#allocation209_spill] sm:$0xff]  ;;  %v2425_v5 = vmax.f32 %v14838_v0, 0.0  ;;  %v14839_v44 = vld [vmem:[#allocation211_spill] sm:$0xff]  ;;  %v14840_v38 = vld [vmem:[#allocation212_spill] sm:$0xff] }
 0x5b9   :  { %3848 = vmatmul.f32.gmra.mxu2 %v2409_v45  ;;  %3961 = vmatmul.f32.gmra.mxu3 %v2410_v50  ;;  %v2424_v19 = vmax.f32 %v14837_v12, 0.0  ;;  %v2426_v55 = vmax.f32 %v14839_v44, 0.0  ;;  %v8200_v50 = vunpack.c.l.bf16 %v8594_v62  ;;  %v14842_v0 = vld [vmem:[#allocation214_spill] sm:$0xff]  ;;  %v8232_v62 = vunpack.c.l.bf16 %v8602_v15 }
 0x5ba   :  { %4120 = vmatpush.msra.mxu1 %v8169_v36  ;;  %v2441_v44 = vmax.f32 %v14842_v0, 0.0  ;;  %v14846_v15 = vld [vmem:[#allocation218_spill] sm:$0xff] }
 0x5bb   :  { %4234 = vmatpush.msra.mxu2 %v8200_v50  ;;  %4347 = vmatpush.msra.mxu3 %v8232_v62  ;;  %v8593_v0 = vld [vmem:[%s14004_s2 + $0x280] sm:$0xff]   ;;  %v14848_v62 = vld [vmem:[#allocation220_spill] sm:$0xff] }
 0x5bc   :  { %v3801_v61 = vpop.f32.mrf.mxu2  ;;  %v3914_v6 = vpop.f32.mrf.mxu3 }
 0x5bd   :  { %v3802_v10 = vadd.f32 %v3801_v61, %v3689_v16  ;;  %v3578_v25 = vpop.f32.mrf.mxu0  ;;  %v3691_v3 = vpop.f32.mrf.mxu1 }
 0x5be   :  { %v3579_v46 = vadd.f32 %v3578_v25, %v11685_v39  ;;  %v2439_v39 = vmax.f32 %v14840_v38, 0.0  ;;  %v14841_v25 = vld [vmem:[#allocation213_spill] sm:$0xff] }
 0x5bf   :  { %v11974_v45 = vadd.f32 %v3914_v6, %v3802_v10  ;;  %3625 = vmatmul.f32.gmra.mxu0 %v2423_v42  ;;  %v2440_v12 = vmax.f32 %v14841_v25, 0.0  ;;  %v14843_v10 = vld [vmem:[#allocation215_spill] sm:$0xff] }
 0x5c0   :  { %v3692_v35 = vadd.f32 %v3691_v3, %v3579_v46  ;;  %3738 = vmatmul.f32.gmra.mxu1 %v2424_v19  ;;  %v2442_v3 = vmax.f32 %v14843_v10, 0.0  ;;  %v8136_v19 = vunpack.c.l.bf16 %v8578_v17 }
 0x5c1   :  { %3851 = vmatmul.f32.gmra.mxu2 %v2425_v5  ;;  %3964 = vmatmul.f32.gmra.mxu3 %v2426_v55  ;;  %v8168_v5 = vunpack.c.l.bf16 %v8586_v29 }
 0x5c2   :  { %4008 = vmatpush.msra.mxu0 %v8136_v19 }
 0x5c3   :  { %4121 = vmatpush.msra.mxu1 %v8168_v5  ;;  %v14849_v5 = vld [vmem:[#allocation221_spill] sm:$0xff] }
 0x5c4   :  { %v3804_v16 = vpop.f32.mrf.mxu2  ;;  %v3917_v60 = vpop.f32.mrf.mxu3 }
 0x5c5   :  { %v3805_v8 = vadd.f32 %v3804_v16, %v3692_v35  ;;  %v3581_v36 = vpop.f32.mrf.mxu0  ;;  %v3694_v61 = vpop.f32.mrf.mxu1 }
 0x5c6   :  { %v3582_v6 = vadd.f32 %v3581_v36, %v11691_v34  ;;  %v14844_v36 = vld [vmem:[#allocation216_spill] sm:$0xff] }
 0x5c7   :  { %v11981_v42 = vadd.f32 %v3917_v60, %v3805_v8  ;;  %3628 = vmatmul.f32.gmra.mxu0 %v2439_v39  ;;  %v2455_v38 = vmax.f32 %v14844_v36, 0.0  ;;  %v14845_v60 = vld [vmem:[#allocation217_spill] sm:$0xff]  ;;  %v14847_v39 = vld [vmem:[#allocation219_spill] sm:$0xff] }
 0x5c8   :  { %v3695_v46 = vadd.f32 %v3694_v61, %v3582_v6  ;;  %3741 = vmatmul.f32.gmra.mxu1 %v2440_v12  ;;  %v2456_v8 = vmax.f32 %v14845_v60, 0.0  ;;  %v2457_v61 = vmax.f32 %v14846_v15, 0.0  ;;  %v2458_v29 = vmax.f32 %v14847_v39, 0.0  ;;  %v8577_v60 = vld [vmem:[%s14004_s2 + $0x200] sm:$0xff]  }
 0x5c9   :  { %3854 = vmatmul.f32.gmra.mxu2 %v2441_v44  ;;  %3967 = vmatmul.f32.gmra.mxu3 %v2442_v3  ;;  %v8197_v44 = vunpack.c.h.bf16 %v8593_v0  ;;  %v8133_v15 = vunpack.c.h.bf16 %v8577_v60 }
 0x5cb   :  { %4235 = vmatpush.msra.mxu2 %v8197_v44  ;;  %4009 = vmatpush.msra.mxu0 %v8133_v15 }
 0x5cc   :  { %v3807_v55 = vpop.f32.mrf.mxu2  ;;  %v3920_v35 = vpop.f32.mrf.mxu3 }
 0x5cd   :  { %v3808_v50 = vadd.f32 %v3807_v55, %v3695_v46  ;;  %v3584_v16 = vpop.f32.mrf.mxu0  ;;  %v3697_v34 = vpop.f32.mrf.mxu1  ;;  %v2471_v46 = vmax.f32 %v14848_v62, 0.0  ;;  %v2472_v55 = vmax.f32 %v14849_v5, 0.0  ;;  %v14854_v5 = vld [vmem:[#allocation226_spill] sm:$0xff] }
 0x5ce   :  { %v3585_v17 = vadd.f32 %v3584_v16, %v11700_v20 }
 0x5cf   :  { %v11988_v25 = vadd.f32 %v3920_v35, %v3808_v50  ;;  %3631 = vmatmul.f32.gmra.mxu0 %v2455_v38  ;;  %v14850_v50 = vld [vmem:[#allocation222_spill] sm:$0xff] }
 0x5d0   :  { %v3698_v12 = vadd.f32 %v3697_v34, %v3585_v17  ;;  %3744 = vmatmul.f32.gmra.mxu1 %v2456_v8  ;;  %v2473_v16 = vmax.f32 %v14850_v50, 0.0  ;;  %v14851_v34 = vld [vmem:[#allocation223_spill] sm:$0xff]  ;;  %v8601_v8 = vld [vmem:[%s14004_s2 + $0x2c0] sm:$0xff]  }
 0x5d1   :  { %3857 = vmatmul.f32.gmra.mxu2 %v2457_v61  ;;  %3970 = vmatmul.f32.gmra.mxu3 %v2458_v29  ;;  %v2474_v36 = vmax.f32 %v14851_v34, 0.0  ;;  %v8229_v61 = vunpack.c.h.bf16 %v8601_v8 }
 0x5d3   :  { %4348 = vmatpush.msra.mxu3 %v8229_v61 }
 0x5d4   :  { %v3810_v6 = vpop.f32.mrf.mxu2  ;;  %v3923_v10 = vpop.f32.mrf.mxu3 }
 0x5d5   :  { %v3811_v20 = vadd.f32 %v3810_v6, %v3698_v12  ;;  %v3587_v3 = vpop.f32.mrf.mxu0  ;;  %v3700_v19 = vpop.f32.mrf.mxu1 }
 0x5d6   :  { %v3588_v35 = vadd.f32 %v3587_v3, %v11715_v27  ;;  %v8585_v27 = vld [vmem:[%s14004_s2 + $0x240] sm:$0xff]  }
 0x5d7   :  { %v11998_v38 = vadd.f32 %v3923_v10, %v3811_v20  ;;  %3634 = vmatmul.f32.gmra.mxu0 %v2471_v46  ;;  %v8165_v39 = vunpack.c.h.bf16 %v8585_v27  ;;  %v14852_v20 = vld [vmem:[#allocation224_spill] sm:$0xff] }
 0x5d8   :  { %v3701_v17 = vadd.f32 %v3700_v19, %v3588_v35  ;;  %3747 = vmatmul.f32.gmra.mxu1 %v2472_v55  ;;  %v2487_v3 = vmax.f32 %v14852_v20, 0.0  ;;  %v14853_v19 = vld [vmem:[#allocation225_spill] sm:$0xff]  ;;  %v2489_v55 = vmax.f32 %v14854_v5, 0.0  ;;  %v14855_v35 = vld [vmem:[#allocation227_spill] sm:$0xff]  ;;  %v14856_v20 = vld [vmem:[#allocation228_spill] sm:$0xff] }
 0x5d9   :  { %3860 = vmatmul.f32.gmra.mxu2 %v2473_v16  ;;  %3973 = vmatmul.f32.gmra.mxu3 %v2474_v36  ;;  %v2488_v62 = vmax.f32 %v14853_v19, 0.0  ;;  %v2490_v50 = vmax.f32 %v14855_v35, 0.0  ;;  %v8196_v36 = vunpack.c.l.bf16 %v8593_v0  ;;  %v14858_v5 = vld [vmem:[#allocation230_spill] sm:$0xff]  ;;  %v8228_v0 = vunpack.c.l.bf16 %v8601_v8 }
 0x5da   :  { %4122 = vmatpush.msra.mxu1 %v8165_v39  ;;  %v2505_v35 = vmax.f32 %v14858_v5, 0.0  ;;  %v14862_v8 = vld [vmem:[#allocation234_spill] sm:$0xff] }
 0x5db   :  { %4236 = vmatpush.msra.mxu2 %v8196_v36  ;;  %4349 = vmatpush.msra.mxu3 %v8228_v0 }
 0x5dc   :  { %v3813_v29 = vpop.f32.mrf.mxu2  ;;  %v3926_v12 = vpop.f32.mrf.mxu3 }
 0x5dd   :  { %v3814_v44 = vadd.f32 %v3813_v29, %v3701_v17  ;;  %v3590_v6 = vpop.f32.mrf.mxu0  ;;  %v3703_v10 = vpop.f32.mrf.mxu1 }
 0x5de   :  { %v3591_v46 = vadd.f32 %v3590_v6, %v11721_v26  ;;  %v2503_v26 = vmax.f32 %v14856_v20, 0.0  ;;  %v14857_v6 = vld [vmem:[#allocation229_spill] sm:$0xff] }
 0x5df   :  { %v12014_v16 = vadd.f32 %v3926_v12, %v3814_v44  ;;  %3637 = vmatmul.f32.gmra.mxu0 %v2487_v3  ;;  %v2504_v19 = vmax.f32 %v14857_v6, 0.0  ;;  %v14859_v44 = vld [vmem:[#allocation231_spill] sm:$0xff] }
 0x5e0   :  { %v3704_v34 = vadd.f32 %v3703_v10, %v3591_v46  ;;  %3750 = vmatmul.f32.gmra.mxu1 %v2488_v62  ;;  %v2506_v10 = vmax.f32 %v14859_v44, 0.0  ;;  %v8132_v62 = vunpack.c.l.bf16 %v8577_v60 }
 0x5e1   :  { %3863 = vmatmul.f32.gmra.mxu2 %v2489_v55  ;;  %3976 = vmatmul.f32.gmra.mxu3 %v2490_v50  ;;  %v8164_v55 = vunpack.c.l.bf16 %v8585_v27 }
 0x5e2   :  { %4010 = vmatpush.msra.mxu0 %v8132_v62  ;;  %v14864_v62 = vld [vmem:[#allocation236_spill] sm:$0xff] }
 0x5e3   :  { %4123 = vmatpush.msra.mxu1 %v8164_v55  ;;  %v2535_v0 = vmax.f32 %v14864_v62, 0.0 }
 0x5e4   :  { %v3816_v17 = vpop.f32.mrf.mxu2  ;;  %v3929_v15 = vpop.f32.mrf.mxu3 }
 0x5e5   :  { %v3817_v61 = vadd.f32 %v3816_v17, %v3704_v34  ;;  %v3593_v39 = vpop.f32.mrf.mxu0  ;;  %v3706_v29 = vpop.f32.mrf.mxu1 }
 0x5e6   :  { %v3594_v12 = vadd.f32 %v3593_v39, %v11727_v40  ;;  %v14860_v39 = vld [vmem:[#allocation232_spill] sm:$0xff] }
 0x5e7   :  { %v12021_v3 = vadd.f32 %v3929_v15, %v3817_v61  ;;  %3640 = vmatmul.f32.gmra.mxu0 %v2503_v26  ;;  %v2519_v20 = vmax.f32 %v14860_v39, 0.0  ;;  %v14861_v15 = vld [vmem:[#allocation233_spill] sm:$0xff]  ;;  %v14863_v26 = vld [vmem:[#allocation235_spill] sm:$0xff] }
 0x5e8   :  { %v3707_v46 = vadd.f32 %v3706_v29, %v3594_v12  ;;  %3753 = vmatmul.f32.gmra.mxu1 %v2504_v19  ;;  %v2520_v61 = vmax.f32 %v14861_v15, 0.0  ;;  %v2521_v29 = vmax.f32 %v14862_v8, 0.0  ;;  %v2522_v27 = vmax.f32 %v14863_v26, 0.0 }
 0x5e9   :  { %3866 = vmatmul.f32.gmra.mxu2 %v2505_v35  ;;  %3979 = vmatmul.f32.gmra.mxu3 %v2506_v10 }
 0x5ec   :  { %v3819_v50 = vpop.f32.mrf.mxu2  ;;  %v3932_v34 = vpop.f32.mrf.mxu3 }
 0x5ed   :  { %v3820_v36 = vadd.f32 %v3819_v50, %v3707_v46  ;;  %v3596_v17 = vpop.f32.mrf.mxu0  ;;  %v3709_v40 = vpop.f32.mrf.mxu1  ;;  %v14865_v46 = vld [vmem:[#allocation237_spill] sm:$0xff]  ;;  %v14866_v50 = vld [vmem:[#allocation238_spill] sm:$0xff] }
 0x5ee   :  { %v3597_v60 = vadd.f32 %v3596_v17, %v11733_v33  ;;  %v2536_v33 = vmax.f32 %v14865_v46, 0.0  ;;  %v2537_v17 = vmax.f32 %v14866_v50, 0.0 }
 0x5ef   :  { %v12028_v6 = vadd.f32 %v3932_v34, %v3820_v36  ;;  %3643 = vmatmul.f32.gmra.mxu0 %v2519_v20  ;;  %v14867_v34 = vld [vmem:[#allocation239_spill] sm:$0xff] }
 0x5f0   :  { %v3710_v19 = vadd.f32 %v3709_v40, %v3597_v60  ;;  %3756 = vmatmul.f32.gmra.mxu1 %v2520_v61  ;;  %v2538_v36 = vmax.f32 %v14867_v34, 0.0 }
 0x5f1   :  { %3869 = vmatmul.f32.gmra.mxu2 %v2521_v29  ;;  %3982 = vmatmul.f32.gmra.mxu3 %v2522_v27  ;;  %v14868_v29 = vld [vmem:[#allocation240_spill] sm:$0xff]  ;;  %v14869_v27 = vld [vmem:[#allocation241_spill] sm:$0xff] }
 0x5f2   :  { %v2551_v26 = vmax.f32 %v14868_v29, 0.0 }
 0x5f4   :  { %v3822_v5 = vpop.f32.mrf.mxu2  ;;  %v3935_v35 = vpop.f32.mrf.mxu3 }
 0x5f5   :  { %v3823_v12 = vadd.f32 %v3822_v5, %v3710_v19  ;;  %v3599_v44 = vpop.f32.mrf.mxu0  ;;  %v3712_v10 = vpop.f32.mrf.mxu1  ;;  %v14870_v5 = vld [vmem:[#allocation242_spill] sm:$0xff] }
 0x5f6   :  { %v3600_v55 = vadd.f32 %v3599_v44, %v11739_v32  ;;  %v2552_v32 = vmax.f32 %v14869_v27, 0.0  ;;  %v2553_v44 = vmax.f32 %v14870_v5, 0.0  ;;  %v8616_v27 = vld [vmem:[%s14004_s2 + $0x338] sm:$0xff]  }
 0x5f7   :  { %v12035_v40 = vadd.f32 %v3935_v35, %v3823_v12  ;;  %3646 = vmatmul.f32.gmra.mxu0 %v2535_v0  ;;  %v14871_v35 = vld [vmem:[#allocation243_spill] sm:$0xff]  ;;  %v8624_v5 = vld [vmem:[%s14004_s2 + $0x378] sm:$0xff]  }
 0x5f8   :  { %v3713_v39 = vadd.f32 %v3712_v10, %v3600_v55  ;;  %3759 = vmatmul.f32.gmra.mxu1 %v2536_v33  ;;  %v2554_v12 = vmax.f32 %v14871_v35, 0.0 }
 0x5f9   :  { %3872 = vmatmul.f32.gmra.mxu2 %v2537_v17  ;;  %3985 = vmatmul.f32.gmra.mxu3 %v2538_v36  ;;  %v14872_v17 = vld [vmem:[#allocation244_spill] sm:$0xff]  ;;  %v14873_v36 = vld [vmem:[#allocation245_spill] sm:$0xff] }
 0x5fa   :  { %v2567_v34 = vmax.f32 %v14872_v17, 0.0 }
 0x5fc   :  { %v3825_v20 = vpop.f32.mrf.mxu2  ;;  %v3938_v15 = vpop.f32.mrf.mxu3 }
 0x5fd   :  { %v3826_v61 = vadd.f32 %v3825_v20, %v3713_v39  ;;  %v3602_v60 = vpop.f32.mrf.mxu0  ;;  %v3715_v8 = vpop.f32.mrf.mxu1  ;;  %v14874_v20 = vld [vmem:[#allocation246_spill] sm:$0xff] }
 0x5fe   :  { %v3603_v19 = vadd.f32 %v3602_v60, %v11745_v18  ;;  %v2568_v18 = vmax.f32 %v14873_v36, 0.0  ;;  %v2569_v60 = vmax.f32 %v14874_v20, 0.0  ;;  %v8289_v36 = vunpack.c.h.bf16 %v8616_v27 }
 0x5ff   :  { %v12042_v10 = vadd.f32 %v3938_v15, %v3826_v61  ;;  %3649 = vmatmul.f32.gmra.mxu0 %v2551_v26  ;;  %v14875_v15 = vld [vmem:[#allocation247_spill] sm:$0xff]  ;;  %v8632_v26 = vld [vmem:[%s14004_s2 + $0x3b8] sm:$0xff]  }
 0x600   :  { %v3716_v62 = vadd.f32 %v3715_v8, %v3603_v19  ;;  %3762 = vmatmul.f32.gmra.mxu1 %v2552_v32  ;;  %v2570_v61 = vmax.f32 %v14875_v15, 0.0  ;;  %v8640_v19 = vld [vmem:[%s14004_s2 + $0x3f8] sm:$0xff]   ;;  %v8321_v15 = vunpack.c.h.bf16 %v8624_v5 }
 0x601   :  { %3875 = vmatmul.f32.gmra.mxu2 %v2553_v44  ;;  %3988 = vmatmul.f32.gmra.mxu3 %v2554_v12  ;;  %v14876_v44 = vld [vmem:[#allocation248_spill] sm:$0xff]  ;;  %v14877_v12 = vld [vmem:[#allocation249_spill] sm:$0xff] }
 0x602   :  { %v2075_v35 = vmax.f32 %v14876_v44, 0.0  ;;  %v8352_v44 = vunpack.c.l.bf16 %v8632_v26 }
 0x604   :  { %v3828_v0 = vpop.f32.mrf.mxu2  ;;  %v3941_v46 = vpop.f32.mrf.mxu3 }
 0x605   :  { %v3829_v33 = vadd.f32 %v3828_v0, %v3716_v62  ;;  %v3605_v55 = vpop.f32.mrf.mxu0  ;;  %v3718_v50 = vpop.f32.mrf.mxu1  ;;  %v2076_v62 = vmax.f32 %v14877_v12, 0.0  ;;  %v8288_v12 = vunpack.c.l.bf16 %v8616_v27 }
 0x606   :  { %v3606_v39 = vadd.f32 %v3605_v55, %v11763_v43  ;;  %v14878_v55 = vld [vmem:[#allocation250_spill] sm:$0xff] }
 0x607   :  { %v12049_v8 = vadd.f32 %v3941_v46, %v3829_v33  ;;  %3652 = vmatmul.f32.gmra.mxu0 %v2567_v34  ;;  %v8353_v34 = vunpack.c.h.bf16 %v8632_v26 }
 0x608   :  { %v3719_v29 = vadd.f32 %v3718_v50, %v3606_v39  ;;  %3765 = vmatmul.f32.gmra.mxu1 %v2568_v18  ;;  %v2077_v50 = vmax.f32 %v14878_v55, 0.0  ;;  %v14879_v18 = vld [vmem:[#allocation251_spill] sm:$0xff] }
 0x609   :  { %3878 = vmatmul.f32.gmra.mxu2 %v2569_v60  ;;  %3991 = vmatmul.f32.gmra.mxu3 %v2570_v61  ;;  %v2078_v39 = vmax.f32 %v14879_v18, 0.0  ;;  %v8385_v60 = vunpack.c.h.bf16 %v8640_v19 }
 0x60c   :  { %v3831_v43 = vpop.f32.mrf.mxu2  ;;  %v3944_v32 = vpop.f32.mrf.mxu3 }
 0x60d   :  { %v3832_v0 = vadd.f32 %v3831_v43, %v3719_v29  ;;  %v3608_v46 = vpop.f32.mrf.mxu0  ;;  %v3721_v33 = vpop.f32.mrf.mxu1  ;;  %v8384_v29 = vunpack.c.l.bf16 %v8640_v19  ;;  %v8320_v43 = vunpack.c.l.bf16 %v8624_v5  ;;  %v14880_v19 = vld [vmem:[#allocation252_spill] sm:$0xff] }
 0x60e   :  { %v3609_v17 = vadd.f32 %v3608_v46, %v11772_v2  ;;  %v8631_v2 = vld [vmem:[%s14004_s2 + $0x3b0] sm:$0xff]   ;;  %v2091_v5 = vmax.f32 %v14880_v19, 0.0 }
 0x60f   :  { %v12068_v20 = vadd.f32 %v3944_v32, %v3832_v0  ;;  %4011 = vmatmul.f32.vlgmr.msra.gmra.mxu0 %v2075_v35  ;;  %v8349_v46 = vunpack.c.h.bf16 %v8631_v2 }
 0x610   :  { %v3722_v61 = vadd.f32 %v3721_v33, %v3609_v17  ;;  %4124 = vmatmul.f32.vlgmr.msra.gmra.mxu1 %v2076_v62  ;;  %4447 = vmatpush.msra.mxu0 %v8289_v36  ;;  %v14881_v62 = vld [vmem:[#allocation253_spill] sm:$0xff] }
 0x611   :  { %4237 = vmatmul.f32.vlgmr.msra.gmra.mxu2 %v2077_v50  ;;  %4350 = vmatmul.f32.vlgmr.msra.gmra.mxu3 %v2078_v39  ;;  %v2092_v33 = vmax.f32 %v14881_v62, 0.0  ;;  %v14882_v50 = vld [vmem:[#allocation254_spill] sm:$0xff]  ;;  %v8615_v39 = vld [vmem:[%s14004_s2 + $0x330] sm:$0xff]  }
 0x612   :  { %4673 = vmatpush.msra.mxu2 %v8353_v34  ;;  %4786 = vmatpush.msra.mxu3 %v8385_v60  ;;  %v2093_v17 = vmax.f32 %v14882_v50, 0.0  ;;  %v14883_v34 = vld [vmem:[#allocation255_spill] sm:$0xff]  ;;  %v8639_v60 = vld [vmem:[%s14004_s2 + $0x3f0] sm:$0xff]   ;;  %v14886_v62 = vld [vmem:[#allocation258_spill] sm:$0xff] }
 0x613   :  { %4560 = vmatpush.msra.mxu1 %v8321_v15  ;;  %4448 = vmatpush.msra.mxu0 %v8288_v12  ;;  %v2094_v36 = vmax.f32 %v14883_v34, 0.0 }
 0x614   :  { %v3834_v32 = vpop.f32.mrf.mxu2  ;;  %v3947_v0 = vpop.f32.mrf.mxu3  ;;  %4674 = vmatpush.msra.mxu2 %v8352_v44  ;;  %4787 = vmatpush.msra.mxu3 %v8384_v29  ;;  %v8623_v44 = vld [vmem:[%s14004_s2 + $0x370] sm:$0xff]  }
 0x615   :  { %v3835_v35 = vadd.f32 %v3834_v32, %v3722_v61  ;;  %v3611_v26 = vpop.f32.mrf.mxu0  ;;  %v3724_v27 = vpop.f32.mrf.mxu1  ;;  %4561 = vmatpush.msra.mxu1 %v8320_v43  ;;  %v8285_v61 = vunpack.c.h.bf16 %v8615_v39  ;;  %v8317_v12 = vunpack.c.h.bf16 %v8623_v44 }
 0x616   :  { %v3612_v55 = vadd.f32 %v3611_v26, %v11787_v63  ;;  %4675 = vmatpush.msra.mxu2 %v8349_v46  ;;  %v8381_v63 = vunpack.c.h.bf16 %v8639_v60 }
 0x617   :  { %v12078_v18 = vadd.f32 %v3947_v0, %v3835_v35  ;;  %4014 = vmatmul.f32.gmra.mxu0 %v2091_v5  ;;  %4562 = vmatpush.msra.mxu1 %v8317_v12  ;;  %v14884_v35 = vld [vmem:[#allocation256_spill] sm:$0xff] }
 0x618   :  { %v3725_v15 = vadd.f32 %v3724_v27, %v3612_v55  ;;  %4127 = vmatmul.f32.gmra.mxu1 %v2092_v33  ;;  %4449 = vmatpush.msra.mxu0 %v8285_v61  ;;  %v2107_v26 = vmax.f32 %v14884_v35, 0.0  ;;  %v14885_v27 = vld [vmem:[#allocation257_spill] sm:$0xff]  ;;  %v2109_v33 = vmax.f32 %v14886_v62, 0.0  ;;  %v14887_v55 = vld [vmem:[#allocation259_spill] sm:$0xff]  ;;  %v14888_v35 = vld [vmem:[#allocation260_spill] sm:$0xff] }
 0x619   :  { %4240 = vmatmul.f32.gmra.mxu2 %v2093_v17  ;;  %4353 = vmatmul.f32.gmra.mxu3 %v2094_v36  ;;  %v2108_v19 = vmax.f32 %v14885_v27, 0.0  ;;  %v2110_v50 = vmax.f32 %v14887_v55, 0.0  ;;  %v8348_v36 = vunpack.c.l.bf16 %v8631_v2  ;;  %v14890_v62 = vld [vmem:[#allocation262_spill] sm:$0xff]  ;;  %v8380_v2 = vunpack.c.l.bf16 %v8639_v60 }
 0x61a   :  { %4788 = vmatpush.msra.mxu3 %v8381_v63  ;;  %v2125_v55 = vmax.f32 %v14890_v62, 0.0  ;;  %v14894_v60 = vld [vmem:[#allocation266_spill] sm:$0xff]  ;;  %v8630_v62 = vld [vmem:[%s14004_s2 + $0x3a8] sm:$0xff]  }
 0x61b   :  { %4676 = vmatpush.msra.mxu2 %v8348_v36 }
 0x61c   :  { %v3837_v29 = vpop.f32.mrf.mxu2  ;;  %v3950_v43 = vpop.f32.mrf.mxu3  ;;  %4789 = vmatpush.msra.mxu3 %v8380_v2  ;;  %v14896_v2 = vld [vmem:[#allocation268_spill] sm:$0xff] }
 0x61d   :  { %v3838_v46 = vadd.f32 %v3837_v29, %v3725_v15  ;;  %v3614_v32 = vpop.f32.mrf.mxu0  ;;  %v3727_v0 = vpop.f32.mrf.mxu1 }
 0x61e   :  { %v3615_v5 = vadd.f32 %v3614_v32, %v11793_v11  ;;  %v2123_v11 = vmax.f32 %v14888_v35, 0.0  ;;  %v14889_v32 = vld [vmem:[#allocation261_spill] sm:$0xff] }
 0x61f   :  { %v12094_v17 = vadd.f32 %v3950_v43, %v3838_v46  ;;  %4017 = vmatmul.f32.gmra.mxu0 %v2107_v26  ;;  %v2124_v27 = vmax.f32 %v14889_v32, 0.0  ;;  %v14891_v46 = vld [vmem:[#allocation263_spill] sm:$0xff] }
 0x620   :  { %v3728_v34 = vadd.f32 %v3727_v0, %v3615_v5  ;;  %4130 = vmatmul.f32.gmra.mxu1 %v2108_v19  ;;  %v2126_v0 = vmax.f32 %v14891_v46, 0.0  ;;  %v8284_v19 = vunpack.c.l.bf16 %v8615_v39 }
 0x621   :  { %4243 = vmatmul.f32.gmra.mxu2 %v2109_v33  ;;  %4356 = vmatmul.f32.gmra.mxu3 %v2110_v50  ;;  %v8316_v33 = vunpack.c.l.bf16 %v8623_v44 }
 0x622   :  { %4450 = vmatpush.msra.mxu0 %v8284_v19 }
 0x623   :  { %4563 = vmatpush.msra.mxu1 %v8316_v33  ;;  %v14897_v33 = vld [vmem:[#allocation269_spill] sm:$0xff] }
 0x624   :  { %v3840_v15 = vpop.f32.mrf.mxu2  ;;  %v3953_v61 = vpop.f32.mrf.mxu3 }
 0x625   :  { %v3841_v63 = vadd.f32 %v3840_v15, %v3728_v34  ;;  %v3617_v12 = vpop.f32.mrf.mxu0  ;;  %v3730_v29 = vpop.f32.mrf.mxu1 }
 0x626   :  { %v3618_v43 = vadd.f32 %v3617_v12, %v11799_v30  ;;  %v14892_v12 = vld [vmem:[#allocation264_spill] sm:$0xff] }
 0x627   :  { %v12101_v26 = vadd.f32 %v3953_v61, %v3841_v63  ;;  %4020 = vmatmul.f32.gmra.mxu0 %v2123_v11  ;;  %v2139_v35 = vmax.f32 %v14892_v12, 0.0  ;;  %v14893_v61 = vld [vmem:[#allocation265_spill] sm:$0xff]  ;;  %v14895_v11 = vld [vmem:[#allocation267_spill] sm:$0xff] }
 0x628   :  { %v3731_v5 = vadd.f32 %v3730_v29, %v3618_v43  ;;  %4133 = vmatmul.f32.gmra.mxu1 %v2124_v27  ;;  %v2140_v63 = vmax.f32 %v14893_v61, 0.0  ;;  %v2141_v29 = vmax.f32 %v14894_v60, 0.0  ;;  %v2142_v44 = vmax.f32 %v14895_v11, 0.0  ;;  %v8614_v61 = vld [vmem:[%s14004_s2 + $0x328] sm:$0xff]  }
 0x629   :  { %4246 = vmatmul.f32.gmra.mxu2 %v2125_v55  ;;  %4359 = vmatmul.f32.gmra.mxu3 %v2126_v0  ;;  %v8345_v55 = vunpack.c.h.bf16 %v8630_v62  ;;  %v8281_v60 = vunpack.c.h.bf16 %v8614_v61 }
 0x62b   :  { %4677 = vmatpush.msra.mxu2 %v8345_v55  ;;  %4451 = vmatpush.msra.mxu0 %v8281_v60 }
 0x62c   :  { %v3843_v50 = vpop.f32.mrf.mxu2  ;;  %v3956_v34 = vpop.f32.mrf.mxu3 }
 0x62d   :  { %v3844_v36 = vadd.f32 %v3843_v50, %v3731_v5  ;;  %v3620_v15 = vpop.f32.mrf.mxu0  ;;  %v3733_v30 = vpop.f32.mrf.mxu1  ;;  %v2155_v5 = vmax.f32 %v14896_v2, 0.0  ;;  %v2156_v50 = vmax.f32 %v14897_v33, 0.0  ;;  %v14902_v33 = vld [vmem:[#allocation274_spill] sm:$0xff] }
 0x62e   :  { %v3621_v39 = vadd.f32 %v3620_v15, %v11808_v28 }
 0x62f   :  { %v12108_v32 = vadd.f32 %v3956_v34, %v3844_v36  ;;  %4023 = vmatmul.f32.gmra.mxu0 %v2139_v35  ;;  %v14898_v36 = vld [vmem:[#allocation270_spill] sm:$0xff] }
 0x630   :  { %v3734_v27 = vadd.f32 %v3733_v30, %v3621_v39  ;;  %4136 = vmatmul.f32.gmra.mxu1 %v2140_v63  ;;  %v2157_v15 = vmax.f32 %v14898_v36, 0.0  ;;  %v14899_v30 = vld [vmem:[#allocation271_spill] sm:$0xff] }
 0x631   :  { %4249 = vmatmul.f32.gmra.mxu2 %v2141_v29  ;;  %4362 = vmatmul.f32.gmra.mxu3 %v2142_v44  ;;  %v2158_v12 = vmax.f32 %v14899_v30, 0.0  ;;  %v8638_v63 = vld [vmem:[%s14004_s2 + $0x3e8] sm:$0xff]  }
 0x632   :  { %v8377_v29 = vunpack.c.h.bf16 %v8638_v63 }
 0x634   :  { %v3846_v43 = vpop.f32.mrf.mxu2  ;;  %v3959_v46 = vpop.f32.mrf.mxu3  ;;  %4790 = vmatpush.msra.mxu3 %v8377_v29 }
 0x635   :  { %v3847_v28 = vadd.f32 %v3846_v43, %v3734_v27  ;;  %v3623_v0 = vpop.f32.mrf.mxu0  ;;  %v3736_v19 = vpop.f32.mrf.mxu1 }
 0x636   :  { %v3624_v34 = vadd.f32 %v3623_v0, %v11823_v4  ;;  %v8622_v4 = vld [vmem:[%s14004_s2 + $0x368] sm:$0xff]  }
 0x637   :  { %v12118_v35 = vadd.f32 %v3959_v46, %v3847_v28  ;;  %4026 = vmatmul.f32.gmra.mxu0 %v2155_v5  ;;  %v8313_v11 = vunpack.c.h.bf16 %v8622_v4  ;;  %v14900_v28 = vld [vmem:[#allocation272_spill] sm:$0xff] }
 0x638   :  { %v3737_v39 = vadd.f32 %v3736_v19, %v3624_v34  ;;  %4139 = vmatmul.f32.gmra.mxu1 %v2156_v50  ;;  %v2171_v0 = vmax.f32 %v14900_v28, 0.0  ;;  %v14901_v19 = vld [vmem:[#allocation273_spill] sm:$0xff]  ;;  %v2173_v50 = vmax.f32 %v14902_v33, 0.0  ;;  %v14903_v34 = vld [vmem:[#allocation275_spill] sm:$0xff]  ;;  %v14904_v28 = vld [vmem:[#allocation276_spill] sm:$0xff] }
 0x639   :  { %4252 = vmatmul.f32.gmra.mxu2 %v2157_v15  ;;  %4365 = vmatmul.f32.gmra.mxu3 %v2158_v12  ;;  %v2172_v2 = vmax.f32 %v14901_v19, 0.0  ;;  %v2174_v36 = vmax.f32 %v14903_v34, 0.0  ;;  %v8344_v12 = vunpack.c.l.bf16 %v8630_v62  ;;  %v14906_v33 = vld [vmem:[#allocation278_spill] sm:$0xff]  ;;  %v8376_v62 = vunpack.c.l.bf16 %v8638_v63 }
 0x63a   :  { %4564 = vmatpush.msra.mxu1 %v8313_v11  ;;  %v2189_v34 = vmax.f32 %v14906_v33, 0.0  ;;  %v14910_v63 = vld [vmem:[#allocation282_spill] sm:$0xff] }
 0x63b   :  { %4678 = vmatpush.msra.mxu2 %v8344_v12  ;;  %4791 = vmatpush.msra.mxu3 %v8376_v62  ;;  %v8629_v33 = vld [vmem:[%s14004_s2 + $0x3a0] sm:$0xff]   ;;  %v14912_v62 = vld [vmem:[#allocation284_spill] sm:$0xff] }
 0x63c   :  { %v3849_v44 = vpop.f32.mrf.mxu2  ;;  %v3962_v27 = vpop.f32.mrf.mxu3 }
 0x63d   :  { %v3850_v55 = vadd.f32 %v3849_v44, %v3737_v39  ;;  %v3626_v43 = vpop.f32.mrf.mxu0  ;;  %v3739_v46 = vpop.f32.mrf.mxu1 }
 0x63e   :  { %v3627_v5 = vadd.f32 %v3626_v43, %v11829_v14  ;;  %v2187_v14 = vmax.f32 %v14904_v28, 0.0  ;;  %v14905_v43 = vld [vmem:[#allocation277_spill] sm:$0xff] }
 0x63f   :  { %v12134_v15 = vadd.f32 %v3962_v27, %v3850_v55  ;;  %4029 = vmatmul.f32.gmra.mxu0 %v2171_v0  ;;  %v2188_v19 = vmax.f32 %v14905_v43, 0.0  ;;  %v14907_v55 = vld [vmem:[#allocation279_spill] sm:$0xff] }
 0x640   :  { %v3740_v30 = vadd.f32 %v3739_v46, %v3627_v5  ;;  %4142 = vmatmul.f32.gmra.mxu1 %v2172_v2  ;;  %v2190_v46 = vmax.f32 %v14907_v55, 0.0  ;;  %v8280_v2 = vunpack.c.l.bf16 %v8614_v61 }
 0x641   :  { %4255 = vmatmul.f32.gmra.mxu2 %v2173_v50  ;;  %4368 = vmatmul.f32.gmra.mxu3 %v2174_v36  ;;  %v8312_v50 = vunpack.c.l.bf16 %v8622_v4 }
 0x642   :  { %4452 = vmatpush.msra.mxu0 %v8280_v2 }
 0x643   :  { %4565 = vmatpush.msra.mxu1 %v8312_v50  ;;  %v14913_v50 = vld [vmem:[#allocation285_spill] sm:$0xff] }
 0x644   :  { %v3852_v39 = vpop.f32.mrf.mxu2  ;;  %v3965_v60 = vpop.f32.mrf.mxu3 }
 0x645   :  { %v3853_v29 = vadd.f32 %v3852_v39, %v3740_v30  ;;  %v3629_v11 = vpop.f32.mrf.mxu0  ;;  %v3742_v44 = vpop.f32.mrf.mxu1 }
 0x646   :  { %v3630_v27 = vadd.f32 %v3629_v11, %v11835_v31  ;;  %v14908_v11 = vld [vmem:[#allocation280_spill] sm:$0xff] }
 0x647   :  { %v12141_v0 = vadd.f32 %v3965_v60, %v3853_v29  ;;  %4032 = vmatmul.f32.gmra.mxu0 %v2187_v14  ;;  %v2203_v28 = vmax.f32 %v14908_v11, 0.0  ;;  %v14909_v60 = vld [vmem:[#allocation281_spill] sm:$0xff]  ;;  %v14911_v14 = vld [vmem:[#allocation283_spill] sm:$0xff] }
 0x648   :  { %v3743_v5 = vadd.f32 %v3742_v44, %v3630_v27  ;;  %4145 = vmatmul.f32.gmra.mxu1 %v2188_v19  ;;  %v2204_v29 = vmax.f32 %v14909_v60, 0.0  ;;  %v2205_v44 = vmax.f32 %v14910_v63, 0.0  ;;  %v2206_v4 = vmax.f32 %v14911_v14, 0.0  ;;  %v8613_v60 = vld [vmem:[%s14004_s2 + $0x320] sm:$0xff]  }
 0x649   :  { %4258 = vmatmul.f32.gmra.mxu2 %v2189_v34  ;;  %4371 = vmatmul.f32.gmra.mxu3 %v2190_v46  ;;  %v8341_v34 = vunpack.c.h.bf16 %v8629_v33  ;;  %v8277_v63 = vunpack.c.h.bf16 %v8613_v60 }
 0x64b   :  { %4679 = vmatpush.msra.mxu2 %v8341_v34  ;;  %4453 = vmatpush.msra.mxu0 %v8277_v63 }
 0x64c   :  { %v3855_v36 = vpop.f32.mrf.mxu2  ;;  %v3968_v30 = vpop.f32.mrf.mxu3 }
 0x64d   :  { %v3856_v12 = vadd.f32 %v3855_v36, %v3743_v5  ;;  %v3632_v39 = vpop.f32.mrf.mxu0  ;;  %v3745_v31 = vpop.f32.mrf.mxu1  ;;  %v2219_v5 = vmax.f32 %v14912_v62, 0.0  ;;  %v2220_v36 = vmax.f32 %v14913_v50, 0.0  ;;  %v14918_v50 = vld [vmem:[#allocation290_spill] sm:$0xff] }
 0x64e   :  { %v3633_v61 = vadd.f32 %v3632_v39, %v11844_v51 }
 0x64f   :  { %v12148_v43 = vadd.f32 %v3968_v30, %v3856_v12  ;;  %4035 = vmatmul.f32.gmra.mxu0 %v2203_v28  ;;  %v14914_v12 = vld [vmem:[#allocation286_spill] sm:$0xff] }
 0x650   :  { %v3746_v19 = vadd.f32 %v3745_v31, %v3633_v61  ;;  %4148 = vmatmul.f32.gmra.mxu1 %v2204_v29  ;;  %v2221_v39 = vmax.f32 %v14914_v12, 0.0  ;;  %v14915_v31 = vld [vmem:[#allocation287_spill] sm:$0xff]  ;;  %v8637_v29 = vld [vmem:[%s14004_s2 + $0x3e0] sm:$0xff]  }
 0x651   :  { %4261 = vmatmul.f32.gmra.mxu2 %v2205_v44  ;;  %4374 = vmatmul.f32.gmra.mxu3 %v2206_v4  ;;  %v2222_v11 = vmax.f32 %v14915_v31, 0.0  ;;  %v8373_v44 = vunpack.c.h.bf16 %v8637_v29 }
 0x653   :  { %4792 = vmatpush.msra.mxu3 %v8373_v44 }
 0x654   :  { %v3858_v27 = vpop.f32.mrf.mxu2  ;;  %v3971_v55 = vpop.f32.mrf.mxu3 }
 0x655   :  { %v3859_v51 = vadd.f32 %v3858_v27, %v3746_v19  ;;  %v3635_v46 = vpop.f32.mrf.mxu0  ;;  %v3748_v2 = vpop.f32.mrf.mxu1 }
 0x656   :  { %v3636_v30 = vadd.f32 %v3635_v46, %v11859_v1  ;;  %v8621_v1 = vld [vmem:[%s14004_s2 + $0x360] sm:$0xff]  }
 0x657   :  { %v12158_v28 = vadd.f32 %v3971_v55, %v3859_v51  ;;  %4038 = vmatmul.f32.gmra.mxu0 %v2219_v5  ;;  %v8309_v14 = vunpack.c.h.bf16 %v8621_v1  ;;  %v14916_v51 = vld [vmem:[#allocation288_spill] sm:$0xff] }
 0x658   :  { %v3749_v61 = vadd.f32 %v3748_v2, %v3636_v30  ;;  %4151 = vmatmul.f32.gmra.mxu1 %v2220_v36  ;;  %v2235_v46 = vmax.f32 %v14916_v51, 0.0  ;;  %v14917_v2 = vld [vmem:[#allocation289_spill] sm:$0xff]  ;;  %v2237_v36 = vmax.f32 %v14918_v50, 0.0  ;;  %v14919_v30 = vld [vmem:[#allocation291_spill] sm:$0xff]  ;;  %v14920_v51 = vld [vmem:[#allocation292_spill] sm:$0xff] }
 0x659   :  { %4264 = vmatmul.f32.gmra.mxu2 %v2221_v39  ;;  %4377 = vmatmul.f32.gmra.mxu3 %v2222_v11  ;;  %v2236_v62 = vmax.f32 %v14917_v2, 0.0  ;;  %v2238_v12 = vmax.f32 %v14919_v30, 0.0  ;;  %v8340_v11 = vunpack.c.l.bf16 %v8629_v33  ;;  %v14922_v50 = vld [vmem:[#allocation294_spill] sm:$0xff]  ;;  %v8372_v33 = vunpack.c.l.bf16 %v8637_v29 }
 0x65a   :  { %4566 = vmatpush.msra.mxu1 %v8309_v14  ;;  %v2253_v30 = vmax.f32 %v14922_v50, 0.0  ;;  %v14926_v29 = vld [vmem:[#allocation298_spill] sm:$0xff]  ;;  %v8628_v50 = vld [vmem:[%s14004_s2 + $0x398] sm:$0xff]  }
 0x65b   :  { %4680 = vmatpush.msra.mxu2 %v8340_v11  ;;  %4793 = vmatpush.msra.mxu3 %v8372_v33  ;;  %v14928_v33 = vld [vmem:[#allocation300_spill] sm:$0xff] }
 0x65c   :  { %v3861_v4 = vpop.f32.mrf.mxu2  ;;  %v3974_v19 = vpop.f32.mrf.mxu3 }
 0x65d   :  { %v3862_v34 = vadd.f32 %v3861_v4, %v3749_v61  ;;  %v3638_v27 = vpop.f32.mrf.mxu0  ;;  %v3751_v55 = vpop.f32.mrf.mxu1 }
 0x65e   :  { %v3639_v5 = vadd.f32 %v3638_v27, %v11865_v47  ;;  %v2251_v47 = vmax.f32 %v14920_v51, 0.0  ;;  %v14921_v27 = vld [vmem:[#allocation293_spill] sm:$0xff] }
 0x65f   :  { %v12174_v39 = vadd.f32 %v3974_v19, %v3862_v34  ;;  %4041 = vmatmul.f32.gmra.mxu0 %v2235_v46  ;;  %v2252_v2 = vmax.f32 %v14921_v27, 0.0  ;;  %v14923_v34 = vld [vmem:[#allocation295_spill] sm:$0xff] }
 0x660   :  { %v3752_v31 = vadd.f32 %v3751_v55, %v3639_v5  ;;  %4154 = vmatmul.f32.gmra.mxu1 %v2236_v62  ;;  %v2254_v55 = vmax.f32 %v14923_v34, 0.0  ;;  %v8276_v62 = vunpack.c.l.bf16 %v8613_v60 }
 0x661   :  { %4267 = vmatmul.f32.gmra.mxu2 %v2237_v36  ;;  %4380 = vmatmul.f32.gmra.mxu3 %v2238_v12  ;;  %v8308_v36 = vunpack.c.l.bf16 %v8621_v1 }
 0x662   :  { %4454 = vmatpush.msra.mxu0 %v8276_v62 }
 0x663   :  { %4567 = vmatpush.msra.mxu1 %v8308_v36  ;;  %v14929_v36 = vld [vmem:[#allocation301_spill] sm:$0xff] }
 0x664   :  { %v3864_v61 = vpop.f32.mrf.mxu2  ;;  %v3977_v63 = vpop.f32.mrf.mxu3 }
 0x665   :  { %v3865_v44 = vadd.f32 %v3864_v61, %v3752_v31  ;;  %v3641_v14 = vpop.f32.mrf.mxu0  ;;  %v3754_v4 = vpop.f32.mrf.mxu1 }
 0x666   :  { %v3642_v19 = vadd.f32 %v3641_v14, %v11871_v37  ;;  %v14924_v14 = vld [vmem:[#allocation296_spill] sm:$0xff] }
 0x667   :  { %v12181_v46 = vadd.f32 %v3977_v63, %v3865_v44  ;;  %4044 = vmatmul.f32.gmra.mxu0 %v2251_v47  ;;  %v2267_v51 = vmax.f32 %v14924_v14, 0.0  ;;  %v14925_v63 = vld [vmem:[#allocation297_spill] sm:$0xff]  ;;  %v14927_v47 = vld [vmem:[#allocation299_spill] sm:$0xff] }
 0x668   :  { %v3755_v5 = vadd.f32 %v3754_v4, %v3642_v19  ;;  %4157 = vmatmul.f32.gmra.mxu1 %v2252_v2  ;;  %v2268_v44 = vmax.f32 %v14925_v63, 0.0  ;;  %v2269_v4 = vmax.f32 %v14926_v29, 0.0  ;;  %v2270_v1 = vmax.f32 %v14927_v47, 0.0  ;;  %v8612_v63 = vld [vmem:[%s14004_s2 + $0x318] sm:$0xff]  }
 0x669   :  { %4270 = vmatmul.f32.gmra.mxu2 %v2253_v30  ;;  %4383 = vmatmul.f32.gmra.mxu3 %v2254_v55  ;;  %v8337_v30 = vunpack.c.h.bf16 %v8628_v50  ;;  %v8273_v29 = vunpack.c.h.bf16 %v8612_v63 }
 0x66b   :  { %4681 = vmatpush.msra.mxu2 %v8337_v30  ;;  %4455 = vmatpush.msra.mxu0 %v8273_v29 }
 0x66c   :  { %v3867_v12 = vpop.f32.mrf.mxu2  ;;  %v3980_v31 = vpop.f32.mrf.mxu3 }
 0x66d   :  { %v3868_v11 = vadd.f32 %v3867_v12, %v3755_v5  ;;  %v3644_v61 = vpop.f32.mrf.mxu0  ;;  %v3757_v37 = vpop.f32.mrf.mxu1  ;;  %v2283_v5 = vmax.f32 %v14928_v33, 0.0  ;;  %v2284_v12 = vmax.f32 %v14929_v36, 0.0  ;;  %v14934_v36 = vld [vmem:[#allocation306_spill] sm:$0xff] }
 0x66e   :  { %v3645_v60 = vadd.f32 %v3644_v61, %v11880_v23 }
 0x66f   :  { %v12188_v27 = vadd.f32 %v3980_v31, %v3868_v11  ;;  %4047 = vmatmul.f32.gmra.mxu0 %v2267_v51  ;;  %v14930_v11 = vld [vmem:[#allocation302_spill] sm:$0xff] }
 0x670   :  { %v3758_v2 = vadd.f32 %v3757_v37, %v3645_v60  ;;  %4160 = vmatmul.f32.gmra.mxu1 %v2268_v44  ;;  %v2285_v61 = vmax.f32 %v14930_v11, 0.0  ;;  %v14931_v37 = vld [vmem:[#allocation303_spill] sm:$0xff]  ;;  %v8636_v44 = vld [vmem:[%s14004_s2 + $0x3d8] sm:$0xff]  }
 0x671   :  { %4273 = vmatmul.f32.gmra.mxu2 %v2269_v4  ;;  %4386 = vmatmul.f32.gmra.mxu3 %v2270_v1  ;;  %v2286_v14 = vmax.f32 %v14931_v37, 0.0  ;;  %v8369_v4 = vunpack.c.h.bf16 %v8636_v44 }
 0x673   :  { %4794 = vmatpush.msra.mxu3 %v8369_v4 }
 0x674   :  { %v3870_v19 = vpop.f32.mrf.mxu2  ;;  %v3983_v34 = vpop.f32.mrf.mxu3 }
 0x675   :  { %v3871_v23 = vadd.f32 %v3870_v19, %v3758_v2  ;;  %v3647_v55 = vpop.f32.mrf.mxu0  ;;  %v3760_v62 = vpop.f32.mrf.mxu1 }
 0x676   :  { %v3648_v31 = vadd.f32 %v3647_v55, %v11895_v13  ;;  %v8620_v13 = vld [vmem:[%s14004_s2 + $0x358] sm:$0xff]  }
 0x677   :  { %v12198_v51 = vadd.f32 %v3983_v34, %v3871_v23  ;;  %4050 = vmatmul.f32.gmra.mxu0 %v2283_v5  ;;  %v8305_v47 = vunpack.c.h.bf16 %v8620_v13  ;;  %v14932_v23 = vld [vmem:[#allocation304_spill] sm:$0xff] }
 0x678   :  { %v3761_v60 = vadd.f32 %v3760_v62, %v3648_v31  ;;  %4163 = vmatmul.f32.gmra.mxu1 %v2284_v12  ;;  %v2299_v55 = vmax.f32 %v14932_v23, 0.0  ;;  %v14933_v62 = vld [vmem:[#allocation305_spill] sm:$0xff]  ;;  %v2301_v12 = vmax.f32 %v14934_v36, 0.0  ;;  %v14935_v31 = vld [vmem:[#allocation307_spill] sm:$0xff]  ;;  %v14936_v23 = vld [vmem:[#allocation308_spill] sm:$0xff] }
 0x679   :  { %4276 = vmatmul.f32.gmra.mxu2 %v2285_v61  ;;  %4389 = vmatmul.f32.gmra.mxu3 %v2286_v14  ;;  %v2300_v33 = vmax.f32 %v14933_v62, 0.0  ;;  %v2302_v11 = vmax.f32 %v14935_v31, 0.0  ;;  %v8336_v14 = vunpack.c.l.bf16 %v8628_v50  ;;  %v14938_v36 = vld [vmem:[#allocation310_spill] sm:$0xff]  ;;  %v8368_v50 = vunpack.c.l.bf16 %v8636_v44 }
 0x67a   :  { %4568 = vmatpush.msra.mxu1 %v8305_v47  ;;  %v2317_v31 = vmax.f32 %v14938_v36, 0.0  ;;  %v2333_v44 = vmax.f32 %v10787_v49, 0.0 }
 0x67b   :  { %4682 = vmatpush.msra.mxu2 %v8336_v14  ;;  %4795 = vmatpush.msra.mxu3 %v8368_v50  ;;  %v14943_v50 = vld [vmem:[#allocation315_spill] sm:$0xff] }
 0x67c   :  { %v3873_v1 = vpop.f32.mrf.mxu2  ;;  %v3986_v2 = vpop.f32.mrf.mxu3 }
 0x67d   :  { %v3874_v30 = vadd.f32 %v3873_v1, %v3761_v60  ;;  %v3650_v19 = vpop.f32.mrf.mxu0  ;;  %v3763_v34 = vpop.f32.mrf.mxu1 }
 0x67e   :  { %v3651_v5 = vadd.f32 %v3650_v19, %v11901_v21  ;;  %v2315_v21 = vmax.f32 %v14936_v23, 0.0  ;;  %v14937_v19 = vld [vmem:[#allocation309_spill] sm:$0xff] }
 0x67f   :  { %v12214_v61 = vadd.f32 %v3986_v2, %v3874_v30  ;;  %4053 = vmatmul.f32.gmra.mxu0 %v2299_v55  ;;  %v2316_v62 = vmax.f32 %v14937_v19, 0.0  ;;  %v14939_v30 = vld [vmem:[#allocation311_spill] sm:$0xff]  ;;  %v8627_v19 = vld [vmem:[%s14004_s2 + $0x390] sm:$0xff]  }
 0x680   :  { %v3764_v37 = vadd.f32 %v3763_v34, %v3651_v5  ;;  %4166 = vmatmul.f32.gmra.mxu1 %v2300_v33  ;;  %v2318_v34 = vmax.f32 %v14939_v30, 0.0  ;;  %v8272_v33 = vunpack.c.l.bf16 %v8612_v63  ;;  %v14942_v30 = vld [vmem:[#allocation314_spill] sm:$0xff] }
 0x681   :  { %4279 = vmatmul.f32.gmra.mxu2 %v2301_v12  ;;  %4392 = vmatmul.f32.gmra.mxu3 %v2302_v11  ;;  %v8304_v12 = vunpack.c.l.bf16 %v8620_v13  ;;  %v2334_v13 = vmax.f32 %v10789_v48, 0.0  ;;  %v2347_v48 = vmax.f32 %v10791_v9, 0.0 }
 0x682   :  { %4456 = vmatpush.msra.mxu0 %v8272_v33 }
 0x683   :  { %4569 = vmatpush.msra.mxu1 %v8304_v12  ;;  %v14944_v12 = vld [vmem:[#allocation316_spill] sm:$0xff] }
 0x684   :  { %v3876_v60 = vpop.f32.mrf.mxu2  ;;  %v3989_v29 = vpop.f32.mrf.mxu3 }
 0x685   :  { %v3877_v4 = vadd.f32 %v3876_v60, %v3764_v37  ;;  %v3653_v47 = vpop.f32.mrf.mxu0  ;;  %v3766_v1 = vpop.f32.mrf.mxu1 }
 0x686   :  { %v3654_v2 = vadd.f32 %v3653_v47, %v11908_v24  ;;  %v14940_v47 = vld [vmem:[#allocation312_spill] sm:$0xff] }
 0x687   :  { %v12221_v55 = vadd.f32 %v3989_v29, %v3877_v4  ;;  %4056 = vmatmul.f32.gmra.mxu0 %v2315_v21  ;;  %v2331_v23 = vmax.f32 %v14940_v47, 0.0  ;;  %v14941_v29 = vld [vmem:[#allocation313_spill] sm:$0xff] }
 0x688   :  { %v3767_v5 = vadd.f32 %v3766_v1, %v3654_v2  ;;  %4169 = vmatmul.f32.gmra.mxu1 %v2316_v62  ;;  %v2332_v4 = vmax.f32 %v14941_v29, 0.0  ;;  %v8333_v62 = vunpack.c.h.bf16 %v8627_v19 }
 0x689   :  { %4282 = vmatmul.f32.gmra.mxu2 %v2317_v31  ;;  %4395 = vmatmul.f32.gmra.mxu3 %v2318_v34  ;;  %v2348_v34 = vmax.f32 %v14942_v30, 0.0 }
 0x68a   :  { %4683 = vmatpush.msra.mxu2 %v8333_v62 }
 0x68c   :  { %v3879_v11 = vpop.f32.mrf.mxu2  ;;  %v3992_v37 = vpop.f32.mrf.mxu3 }
 0x68d   :  { %v3880_v14 = vadd.f32 %v3879_v11, %v3767_v5  ;;  %v4012_v60 = vpop.f32.mrf.mxu0  ;;  %v4125_v24 = vpop.f32.mrf.mxu1  ;;  %v2349_v5 = vmax.f32 %v14943_v50, 0.0  ;;  %v2350_v11 = vmax.f32 %v14944_v12, 0.0 }
 0x68e   :  { %v4013_v63 = vadd.f32 %v4012_v60, %v11918_v56  ;;  %v8635_v60 = vld [vmem:[%s14004_s2 + $0x3d0] sm:$0xff]  }
 0x68f   :  { %v12228_v1 = vadd.f32 %v3992_v37, %v3880_v14  ;;  %4059 = vmatmul.f32.gmra.mxu0 %v2331_v23  ;;  %v8611_v14 = vld [vmem:[%s14004_s2 + $0x310] sm:$0xff]   ;;  %v8365_v47 = vunpack.c.h.bf16 %v8635_v60 }
 0x690   :  { %v4126_v21 = vadd.f32 %v4125_v24, %v4013_v63  ;;  %4172 = vmatmul.f32.gmra.mxu1 %v2332_v4  ;;  %v8269_v9 = vunpack.c.h.bf16 %v8611_v14 }
 0x691   :  { %4285 = vmatmul.f32.gmra.mxu2 %v2333_v44  ;;  %4398 = vmatmul.f32.gmra.mxu3 %v2334_v13 }
 0x692   :  { %4457 = vmatpush.msra.mxu0 %v8269_v9  ;;  %4796 = vmatpush.msra.mxu3 %v8365_v47  ;;  %v14948_v47 = vld [vmem:[#allocation320_spill] sm:$0xff] }
 0x694   :  { %v4238_v36 = vpop.f32.mrf.mxu2  ;;  %v4351_v31 = vpop.f32.mrf.mxu3 }
 0x695   :  { %v4239_v56 = vadd.f32 %v4238_v36, %v4126_v21  ;;  %v4015_v2 = vpop.f32.mrf.mxu0  ;;  %v4128_v49 = vpop.f32.mrf.mxu1  ;;  %v14945_v21 = vld [vmem:[#allocation317_spill] sm:$0xff]  ;;  %v14946_v36 = vld [vmem:[#allocation318_spill] sm:$0xff] }
 0x696   :  { %v4016_v33 = vadd.f32 %v4015_v2, %v11934_v22  ;;  %v8619_v22 = vld [vmem:[%s14004_s2 + $0x350] sm:$0xff]   ;;  %v2363_v62 = vmax.f32 %v14945_v21, 0.0  ;;  %v2365_v2 = vmax.f32 %v10826_v7, 0.0  ;;  %v2380_v7 = vmax.f32 %v10832_v59, 0.0 }
 0x697   :  { %v12238_v37 = vadd.f32 %v4351_v31, %v4239_v56  ;;  %4062 = vmatmul.f32.gmra.mxu0 %v2347_v48  ;;  %v8301_v23 = vunpack.c.h.bf16 %v8619_v22  ;;  %v2364_v31 = vmax.f32 %v14946_v36, 0.0 }
 0x698   :  { %v4129_v24 = vadd.f32 %v4128_v49, %v4016_v33  ;;  %4175 = vmatmul.f32.gmra.mxu1 %v2348_v34  ;;  %v2366_v49 = vmax.f32 %v10828_v58, 0.0  ;;  %v8332_v34 = vunpack.c.l.bf16 %v8627_v19  ;;  %v8364_v19 = vunpack.c.l.bf16 %v8635_v60  ;;  %v14951_v60 = vld [vmem:[#allocation323_spill] sm:$0xff] }
 0x699   :  { %4288 = vmatmul.f32.gmra.mxu2 %v2349_v5  ;;  %4401 = vmatmul.f32.gmra.mxu3 %v2350_v11 }
 0x69a   :  { %4570 = vmatpush.msra.mxu1 %v8301_v23  ;;  %4684 = vmatpush.msra.mxu2 %v8332_v34  ;;  %v2382_v23 = vmax.f32 %v14948_v47, 0.0 }
 0x69b   :  { %4797 = vmatpush.msra.mxu3 %v8364_v19  ;;  %v14956_v19 = vld [vmem:[#allocation328_spill] sm:$0xff] }
 0x69c   :  { %v4241_v29 = vpop.f32.mrf.mxu2  ;;  %v4354_v4 = vpop.f32.mrf.mxu3 }
 0x69d   :  { %v4242_v63 = vadd.f32 %v4241_v29, %v4129_v24  ;;  %v4018_v44 = vpop.f32.mrf.mxu0  ;;  %v4131_v13 = vpop.f32.mrf.mxu1  ;;  %v14947_v24 = vld [vmem:[#allocation319_spill] sm:$0xff] }
 0x69e   :  { %v4019_v56 = vadd.f32 %v4018_v44, %v11941_v52  ;;  %v2379_v52 = vmax.f32 %v10830_v54, 0.0  ;;  %v2381_v58 = vmax.f32 %v14947_v24, 0.0  ;;  %v8300_v44 = vunpack.c.l.bf16 %v8619_v22 }
 0x69f   :  { %v12254_v48 = vadd.f32 %v4354_v4, %v4242_v63  ;;  %4065 = vmatmul.f32.gmra.mxu0 %v2363_v62  ;;  %v8268_v4 = vunpack.c.l.bf16 %v8611_v14  ;;  %v14949_v62 = vld [vmem:[#allocation321_spill] sm:$0xff] }
 0x6a0   :  { %v4132_v30 = vadd.f32 %v4131_v13, %v4019_v56  ;;  %4178 = vmatmul.f32.gmra.mxu1 %v2364_v31  ;;  %v2395_v36 = vmax.f32 %v14949_v62, 0.0  ;;  %v14950_v31 = vld [vmem:[#allocation322_spill] sm:$0xff] }
 0x6a1   :  { %4291 = vmatmul.f32.gmra.mxu2 %v2365_v2  ;;  %4404 = vmatmul.f32.gmra.mxu3 %v2366_v49  ;;  %v2396_v56 = vmax.f32 %v14950_v31, 0.0  ;;  %v2397_v2 = vmax.f32 %v14951_v60, 0.0  ;;  %v14952_v49 = vld [vmem:[#allocation324_spill] sm:$0xff] }
 0x6a2   :  { %4458 = vmatpush.msra.mxu0 %v8268_v4  ;;  %4571 = vmatpush.msra.mxu1 %v8300_v44  ;;  %v2398_v22 = vmax.f32 %v14952_v49, 0.0 }
 0x6a4   :  { %v4244_v33 = vpop.f32.mrf.mxu2  ;;  %v4357_v50 = vpop.f32.mrf.mxu3 }
 0x6a5   :  { %v4245_v5 = vadd.f32 %v4244_v33, %v4132_v30  ;;  %v4021_v12 = vpop.f32.mrf.mxu0  ;;  %v4134_v11 = vpop.f32.mrf.mxu1  ;;  %v8626_v33 = vld [vmem:[%s14004_s2 + $0x388] sm:$0xff]  }
 0x6a6   :  { %v4022_v9 = vadd.f32 %v4021_v12, %v11948_v41 }
 0x6a7   :  { %v12261_v29 = vadd.f32 %v4357_v50, %v4245_v5  ;;  %4068 = vmatmul.f32.gmra.mxu0 %v2379_v52  ;;  %v8329_v50 = vunpack.c.h.bf16 %v8626_v33 }
 0x6a8   :  { %v4135_v63 = vadd.f32 %v4134_v11, %v4022_v9  ;;  %4181 = vmatmul.f32.gmra.mxu1 %v2380_v7  ;;  %v14953_v7 = vld [vmem:[#allocation325_spill] sm:$0xff] }
 0x6a9   :  { %4294 = vmatmul.f32.gmra.mxu2 %v2381_v58  ;;  %4407 = vmatmul.f32.gmra.mxu3 %v2382_v23  ;;  %v2411_v24 = vmax.f32 %v14953_v7, 0.0  ;;  %v14954_v58 = vld [vmem:[#allocation326_spill] sm:$0xff]  ;;  %v14955_v23 = vld [vmem:[#allocation327_spill] sm:$0xff]  ;;  %v8328_v7 = vunpack.c.l.bf16 %v8626_v33 }
 0x6aa   :  { %4685 = vmatpush.msra.mxu2 %v8329_v50  ;;  %v2412_v9 = vmax.f32 %v14954_v58, 0.0  ;;  %v2413_v4 = vmax.f32 %v14955_v23, 0.0 }
 0x6ac   :  { %v4247_v59 = vpop.f32.mrf.mxu2  ;;  %v4360_v54 = vpop.f32.mrf.mxu3  ;;  %4686 = vmatpush.msra.mxu2 %v8328_v7 }
 0x6ad   :  { %v4248_v13 = vadd.f32 %v4247_v59, %v4135_v63  ;;  %v4024_v21 = vpop.f32.mrf.mxu0  ;;  %v4137_v41 = vpop.f32.mrf.mxu1  ;;  %v2414_v63 = vmax.f32 %v14956_v19, 0.0  ;;  %v8610_v59 = vld [vmem:[%s14004_s2 + $0x308] sm:$0xff]   ;;  %v14961_v19 = vld [vmem:[#allocation333_spill] sm:$0xff] }
 0x6ae   :  { %v4025_v14 = vadd.f32 %v4024_v21, %v11958_v53  ;;  %v8265_v21 = vunpack.c.h.bf16 %v8610_v59 }
 0x6af   :  { %v12268_v30 = vadd.f32 %v4360_v54, %v4248_v13  ;;  %4071 = vmatmul.f32.gmra.mxu0 %v2395_v36  ;;  %v8634_v54 = vld [vmem:[%s14004_s2 + $0x3c8] sm:$0xff]  }
 0x6b0   :  { %v4138_v34 = vadd.f32 %v4137_v41, %v4025_v14  ;;  %4184 = vmatmul.f32.gmra.mxu1 %v2396_v56  ;;  %v8361_v41 = vunpack.c.h.bf16 %v8634_v54  ;;  %4459 = vmatpush.msra.mxu0 %v8265_v21  ;;  %v8360_v33 = vunpack.c.l.bf16 %v8634_v54  ;;  %v14966_v54 = vld [vmem:[#allocation338_spill] sm:$0xff] }
 0x6b1   :  { %4297 = vmatmul.f32.gmra.mxu2 %v2397_v2  ;;  %4410 = vmatmul.f32.gmra.mxu3 %v2398_v22  ;;  %v14957_v2 = vld [vmem:[#allocation329_spill] sm:$0xff]  ;;  %v14958_v22 = vld [vmem:[#allocation330_spill] sm:$0xff] }
 0x6b2   :  { %4798 = vmatpush.msra.mxu3 %v8361_v41  ;;  %v2427_v49 = vmax.f32 %v14957_v2, 0.0  ;;  %v14963_v41 = vld [vmem:[#allocation335_spill] sm:$0xff] }
 0x6b4   :  { %v4250_v5 = vpop.f32.mrf.mxu2  ;;  %v4363_v12 = vpop.f32.mrf.mxu3  ;;  %4799 = vmatpush.msra.mxu3 %v8360_v33 }
 0x6b5   :  { %v4251_v53 = vadd.f32 %v4250_v5, %v4138_v34  ;;  %v4027_v11 = vpop.f32.mrf.mxu0  ;;  %v4140_v52 = vpop.f32.mrf.mxu1  ;;  %v2428_v34 = vmax.f32 %v14958_v22, 0.0  ;;  %v2429_v5 = vmax.f32 %v10901_v57, 0.0  ;;  %v2444_v57 = vmax.f32 %v14961_v19, 0.0  ;;  %v14968_v19 = vld [vmem:[#allocation340_spill] sm:$0xff] }
 0x6b6   :  { %v4028_v47 = vadd.f32 %v4027_v11, %v11974_v45  ;;  %v8618_v45 = vld [vmem:[%s14004_s2 + $0x348] sm:$0xff]  }
 0x6b7   :  { %v12278_v44 = vadd.f32 %v4363_v12, %v4251_v53  ;;  %4074 = vmatmul.f32.gmra.mxu0 %v2411_v24  ;;  %v8297_v62 = vunpack.c.h.bf16 %v8618_v45  ;;  %v14959_v12 = vld [vmem:[#allocation331_spill] sm:$0xff] }
 0x6b8   :  { %v4141_v13 = vadd.f32 %v4140_v52, %v4028_v47  ;;  %4187 = vmatmul.f32.gmra.mxu1 %v2412_v9  ;;  %v2430_v53 = vmax.f32 %v14959_v12, 0.0 }
 0x6b9   :  { %4300 = vmatmul.f32.gmra.mxu2 %v2413_v4  ;;  %4413 = vmatmul.f32.gmra.mxu3 %v2414_v63  ;;  %v14960_v4 = vld [vmem:[#allocation332_spill] sm:$0xff]  ;;  %v14962_v63 = vld [vmem:[#allocation334_spill] sm:$0xff] }
 0x6ba   :  { %4572 = vmatpush.msra.mxu1 %v8297_v62  ;;  %v2446_v62 = vmax.f32 %v14963_v41, 0.0  ;;  %v14970_v41 = vld [vmem:[#allocation342_spill] sm:$0xff] }
 0x6bc   :  { %v4253_v36 = vpop.f32.mrf.mxu2  ;;  %v4366_v31 = vpop.f32.mrf.mxu3 }
 0x6bd   :  { %v4254_v56 = vadd.f32 %v4253_v36, %v4141_v13  ;;  %v4030_v14 = vpop.f32.mrf.mxu0  ;;  %v4143_v60 = vpop.f32.mrf.mxu1  ;;  %v2445_v13 = vmax.f32 %v14962_v63, 0.0  ;;  %v14969_v63 = vld [vmem:[#allocation341_spill] sm:$0xff] }
 0x6be   :  { %v4031_v50 = vadd.f32 %v4030_v14, %v11981_v42  ;;  %v2443_v42 = vmax.f32 %v14960_v4, 0.0  ;;  %v8296_v14 = vunpack.c.l.bf16 %v8618_v45 }
 0x6bf   :  { %v12294_v11 = vadd.f32 %v4366_v31, %v4254_v56  ;;  %4077 = vmatmul.f32.gmra.mxu0 %v2427_v49  ;;  %v8264_v31 = vunpack.c.l.bf16 %v8610_v59 }
 0x6c0   :  { %v4144_v52 = vadd.f32 %v4143_v60, %v4031_v50  ;;  %4190 = vmatmul.f32.gmra.mxu1 %v2428_v34  ;;  %v14964_v34 = vld [vmem:[#allocation336_spill] sm:$0xff] }
 0x6c1   :  { %4303 = vmatmul.f32.gmra.mxu2 %v2429_v5  ;;  %4416 = vmatmul.f32.gmra.mxu3 %v2430_v53  ;;  %v2459_v50 = vmax.f32 %v14964_v34, 0.0  ;;  %v14965_v5 = vld [vmem:[#allocation337_spill] sm:$0xff]  ;;  %v2461_v53 = vmax.f32 %v14966_v54, 0.0  ;;  %v14972_v54 = vld [vmem:[#allocation344_spill] sm:$0xff] }
 0x6c2   :  { %4460 = vmatpush.msra.mxu0 %v8264_v31  ;;  %4573 = vmatpush.msra.mxu1 %v8296_v14  ;;  %v2460_v12 = vmax.f32 %v14965_v5, 0.0  ;;  %v14971_v31 = vld [vmem:[#allocation343_spill] sm:$0xff]  ;;  %v8609_v14 = vld [vmem:[%s14004_s2 + $0x300] sm:$0xff]  }
 0x6c3   :  { %v2478_v33 = vmax.f32 %v14971_v31, 0.0  ;;  %v14977_v31 = vld [vmem:[#allocation349_spill] sm:$0xff] }
 0x6c4   :  { %v4256_v24 = vpop.f32.mrf.mxu2  ;;  %v4369_v58 = vpop.f32.mrf.mxu3 }
 0x6c5   :  { %v4257_v9 = vadd.f32 %v4256_v24, %v4144_v52  ;;  %v4033_v47 = vpop.f32.mrf.mxu0  ;;  %v4146_v23 = vpop.f32.mrf.mxu1  ;;  %v14967_v52 = vld [vmem:[#allocation339_spill] sm:$0xff] }
 0x6c6   :  { %v4034_v21 = vadd.f32 %v4033_v47, %v11988_v25  ;;  %v2462_v45 = vmax.f32 %v14967_v52, 0.0  ;;  %v14973_v52 = vld [vmem:[#allocation345_spill] sm:$0xff] }
 0x6c7   :  { %v12301_v36 = vadd.f32 %v4369_v58, %v4257_v9  ;;  %4080 = vmatmul.f32.gmra.mxu0 %v2443_v42  ;;  %v8625_v58 = vld [vmem:[%s14004_s2 + $0x380] sm:$0xff]  }
 0x6c8   :  { %v4147_v56 = vadd.f32 %v4146_v23, %v4034_v21  ;;  %4193 = vmatmul.f32.gmra.mxu1 %v2444_v57  ;;  %v8325_v9 = vunpack.c.h.bf16 %v8625_v58  ;;  %v2475_v57 = vmax.f32 %v14968_v19, 0.0  ;;  %v8324_v19 = vunpack.c.l.bf16 %v8625_v58 }
 0x6c9   :  { %4306 = vmatmul.f32.gmra.mxu2 %v2445_v13  ;;  %4419 = vmatmul.f32.gmra.mxu3 %v2446_v62  ;;  %v2476_v13 = vmax.f32 %v14969_v63, 0.0  ;;  %v2477_v62 = vmax.f32 %v14970_v41, 0.0 }
 0x6ca   :  { %4687 = vmatpush.msra.mxu2 %v8325_v9  ;;  %v14974_v9 = vld [vmem:[#allocation346_spill] sm:$0xff] }
 0x6cc   :  { %v4259_v60 = vpop.f32.mrf.mxu2  ;;  %v4372_v2 = vpop.f32.mrf.mxu3  ;;  %4688 = vmatpush.msra.mxu2 %v8324_v19 }
 0x6cd   :  { %v4260_v49 = vadd.f32 %v4259_v60, %v4147_v56  ;;  %v4036_v22 = vpop.f32.mrf.mxu0  ;;  %v4149_v25 = vpop.f32.mrf.mxu1  ;;  %v8633_v60 = vld [vmem:[%s14004_s2 + $0x3c0] sm:$0xff]  }
 0x6ce   :  { %v4037_v59 = vadd.f32 %v4036_v22, %v11998_v38  ;;  %v8357_v22 = vunpack.c.h.bf16 %v8633_v60  ;;  %v8356_v58 = vunpack.c.l.bf16 %v8633_v60  ;;  %v14982_v60 = vld [vmem:[#allocation354_spill] sm:$0xff] }
 0x6cf   :  { %v12308_v7 = vadd.f32 %v4372_v2, %v4260_v49  ;;  %4083 = vmatmul.f32.gmra.mxu0 %v2459_v50  ;;  %v8261_v49 = vunpack.c.h.bf16 %v8609_v14 }
 0x6d0   :  { %v4150_v24 = vadd.f32 %v4149_v25, %v4037_v59  ;;  %4196 = vmatmul.f32.gmra.mxu1 %v2460_v12  ;;  %4800 = vmatpush.msra.mxu3 %v8357_v22 }
 0x6d1   :  { %4309 = vmatmul.f32.gmra.mxu2 %v2461_v53  ;;  %4422 = vmatmul.f32.gmra.mxu3 %v2462_v45  ;;  %v2491_v53 = vmax.f32 %v14972_v54, 0.0  ;;  %v2492_v45 = vmax.f32 %v14973_v52, 0.0 }
 0x6d2   :  { %4461 = vmatpush.msra.mxu0 %v8261_v49  ;;  %4801 = vmatpush.msra.mxu3 %v8356_v58 }
 0x6d4   :  { %v4262_v47 = vpop.f32.mrf.mxu2  ;;  %v4375_v23 = vpop.f32.mrf.mxu3 }
 0x6d5   :  { %v4263_v38 = vadd.f32 %v4262_v47, %v4150_v24  ;;  %v4039_v4 = vpop.f32.mrf.mxu0  ;;  %v4152_v42 = vpop.f32.mrf.mxu1  ;;  %v2493_v47 = vmax.f32 %v14974_v9, 0.0 }
 0x6d6   :  { %v4040_v21 = vadd.f32 %v4039_v4, %v12014_v16  ;;  %v8617_v16 = vld [vmem:[%s14004_s2 + $0x340] sm:$0xff]  }
 0x6d7   :  { %v12318_v56 = vadd.f32 %v4375_v23, %v4263_v38  ;;  %4086 = vmatmul.f32.gmra.mxu0 %v2475_v57  ;;  %v8293_v25 = vunpack.c.h.bf16 %v8617_v16  ;;  %v14975_v23 = vld [vmem:[#allocation347_spill] sm:$0xff] }
 0x6d8   :  { %v4153_v2 = vadd.f32 %v4152_v42, %v4040_v21  ;;  %4199 = vmatmul.f32.gmra.mxu1 %v2476_v13  ;;  %v2494_v38 = vmax.f32 %v14975_v23, 0.0 }
 0x6d9   :  { %4312 = vmatmul.f32.gmra.mxu2 %v2477_v62  ;;  %4425 = vmatmul.f32.gmra.mxu3 %v2478_v33  ;;  %v14976_v62 = vld [vmem:[#allocation348_spill] sm:$0xff]  ;;  %v2508_v33 = vmax.f32 %v14977_v31, 0.0 }
 0x6da   :  { %4574 = vmatpush.msra.mxu1 %v8293_v25  ;;  %v14979_v25 = vld [vmem:[#allocation351_spill] sm:$0xff] }
 0x6dc   :  { %v4265_v34 = vpop.f32.mrf.mxu2  ;;  %v4378_v50 = vpop.f32.mrf.mxu3 }
 0x6dd   :  { %v4266_v5 = vadd.f32 %v4265_v34, %v4153_v2  ;;  %v4042_v12 = vpop.f32.mrf.mxu0  ;;  %v4155_v59 = vpop.f32.mrf.mxu1  ;;  %v14978_v2 = vld [vmem:[#allocation350_spill] sm:$0xff]  ;;  %v2510_v34 = vmax.f32 %v14979_v25, 0.0  ;;  %v14987_v25 = vld [vmem:[#allocation359_spill] sm:$0xff] }
 0x6de   :  { %v4043_v24 = vadd.f32 %v4042_v12, %v12021_v3  ;;  %v2507_v3 = vmax.f32 %v14976_v62, 0.0  ;;  %v2509_v49 = vmax.f32 %v14978_v2, 0.0 }
 0x6df   :  { %v12334_v4 = vadd.f32 %v4378_v50, %v4266_v5  ;;  %4089 = vmatmul.f32.gmra.mxu0 %v2491_v53  ;;  %v8260_v5 = vunpack.c.l.bf16 %v8609_v14 }
 0x6e0   :  { %v4156_v42 = vadd.f32 %v4155_v59, %v4043_v24  ;;  %4202 = vmatmul.f32.gmra.mxu1 %v2492_v45  ;;  %v8292_v59 = vunpack.c.l.bf16 %v8617_v16  ;;  %v14980_v24 = vld [vmem:[#allocation352_spill] sm:$0xff] }
 0x6e1   :  { %4315 = vmatmul.f32.gmra.mxu2 %v2493_v47  ;;  %4428 = vmatmul.f32.gmra.mxu3 %v2494_v38  ;;  %v2523_v9 = vmax.f32 %v14980_v24, 0.0  ;;  %v14981_v47 = vld [vmem:[#allocation353_spill] sm:$0xff]  ;;  %v2525_v38 = vmax.f32 %v14982_v60, 0.0 }
 0x6e2   :  { %4462 = vmatpush.msra.mxu0 %v8260_v5  ;;  %4575 = vmatpush.msra.mxu1 %v8292_v59  ;;  %v2524_v23 = vmax.f32 %v14981_v47, 0.0  ;;  %v14989_v24 = vld [vmem:[#allocation361_spill] sm:$0xff]  ;;  %v14990_v47 = vld [vmem:[#allocation362_spill] sm:$0xff] }
 0x6e4   :  { %v4268_v57 = vpop.f32.mrf.mxu2  ;;  %v4381_v63 = vpop.f32.mrf.mxu3 }
 0x6e5   :  { %v4269_v13 = vadd.f32 %v4268_v57, %v4156_v42  ;;  %v4045_v21 = vpop.f32.mrf.mxu0  ;;  %v4158_v41 = vpop.f32.mrf.mxu1  ;;  %v14983_v42 = vld [vmem:[#allocation355_spill] sm:$0xff] }
 0x6e6   :  { %v4046_v22 = vadd.f32 %v4045_v21, %v12028_v6  ;;  %v2526_v16 = vmax.f32 %v14983_v42, 0.0 }
 0x6e7   :  { %v12341_v50 = vadd.f32 %v4381_v63, %v4269_v13  ;;  %4092 = vmatmul.f32.gmra.mxu0 %v2507_v3  ;;  %v14984_v3 = vld [vmem:[#allocation356_spill] sm:$0xff] }
 0x6e8   :  { %v4159_v12 = vadd.f32 %v4158_v41, %v4046_v22  ;;  %4205 = vmatmul.f32.gmra.mxu1 %v2508_v33  ;;  %v2539_v31 = vmax.f32 %v14984_v3, 0.0  ;;  %v14985_v33 = vld [vmem:[#allocation357_spill] sm:$0xff] }
 0x6e9   :  { %4318 = vmatmul.f32.gmra.mxu2 %v2509_v49  ;;  %4431 = vmatmul.f32.gmra.mxu3 %v2510_v34  ;;  %v14986_v49 = vld [vmem:[#allocation358_spill] sm:$0xff]  ;;  %v2542_v34 = vmax.f32 %v14987_v25, 0.0  ;;  %v14993_v3 = vld [vmem:[#allocation365_spill] sm:$0xff] }
 0x6ea   :  { %v2541_v22 = vmax.f32 %v14986_v49, 0.0 }
 0x6ec   :  { %v4271_v54 = vpop.f32.mrf.mxu2  ;;  %v4384_v53 = vpop.f32.mrf.mxu3 }
 0x6ed   :  { %v4272_v52 = vadd.f32 %v4271_v54, %v4159_v12  ;;  %v4048_v45 = vpop.f32.mrf.mxu0  ;;  %v4161_v6 = vpop.f32.mrf.mxu1 }
 0x6ee   :  { %v4049_v14 = vadd.f32 %v4048_v45, %v12035_v40  ;;  %v2540_v40 = vmax.f32 %v14985_v33, 0.0  ;;  %v14988_v45 = vld [vmem:[#allocation360_spill] sm:$0xff]  ;;  %v14994_v33 = vld [vmem:[#allocation366_spill] sm:$0xff] }
 0x6ef   :  { %v12348_v19 = vadd.f32 %v4384_v53, %v4272_v52  ;;  %4095 = vmatmul.f32.gmra.mxu0 %v2523_v9 }
 0x6f0   :  { %v4162_v57 = vadd.f32 %v4161_v6, %v4049_v14  ;;  %4208 = vmatmul.f32.gmra.mxu1 %v2524_v23  ;;  %v2555_v6 = vmax.f32 %v14988_v45, 0.0  ;;  %v2557_v23 = vmax.f32 %v14990_v47, 0.0  ;;  %v14991_v14 = vld [vmem:[#allocation363_spill] sm:$0xff]  ;;  %v14997_v45 = vld [vmem:[#allocation369_spill] sm:$0xff] }
 0x6f1   :  { %4321 = vmatmul.f32.gmra.mxu2 %v2525_v38  ;;  %4434 = vmatmul.f32.gmra.mxu3 %v2526_v16  ;;  %v2558_v60 = vmax.f32 %v14991_v14, 0.0 }
 0x6f4   :  { %v4274_v63 = vpop.f32.mrf.mxu2  ;;  %v4387_v13 = vpop.f32.mrf.mxu3 }
 0x6f5   :  { %v4275_v21 = vadd.f32 %v4274_v63, %v4162_v57  ;;  %v4051_v41 = vpop.f32.mrf.mxu0  ;;  %v4164_v62 = vpop.f32.mrf.mxu1 }
 0x6f6   :  { %v4052_v2 = vadd.f32 %v4051_v41, %v12042_v10  ;;  %v2556_v10 = vmax.f32 %v14989_v24, 0.0  ;;  %v14992_v41 = vld [vmem:[#allocation364_spill] sm:$0xff]  ;;  %v14998_v24 = vld [vmem:[#allocation370_spill] sm:$0xff] }
 0x6f7   :  { %v12355_v5 = vadd.f32 %v4387_v13, %v4275_v21  ;;  %4098 = vmatmul.f32.gmra.mxu0 %v2539_v31 }
 0x6f8   :  { %v4165_v58 = vadd.f32 %v4164_v62, %v4052_v2  ;;  %4211 = vmatmul.f32.gmra.mxu1 %v2540_v40  ;;  %v2571_v62 = vmax.f32 %v14992_v41, 0.0  ;;  %v2573_v40 = vmax.f32 %v14994_v33, 0.0  ;;  %v14995_v2 = vld [vmem:[#allocation367_spill] sm:$0xff]  ;;  %v15001_v41 = vld [vmem:[#allocation373_spill] sm:$0xff] }
 0x6f9   :  { %4324 = vmatmul.f32.gmra.mxu2 %v2541_v22  ;;  %4437 = vmatmul.f32.gmra.mxu3 %v2542_v34  ;;  %v2574_v49 = vmax.f32 %v14995_v2, 0.0 }
 0x6fc   :  { %v4277_v12 = vpop.f32.mrf.mxu2  ;;  %v4390_v59 = vpop.f32.mrf.mxu3 }
 0x6fd   :  { %v4278_v54 = vadd.f32 %v4277_v12, %v4165_v58  ;;  %v4054_v53 = vpop.f32.mrf.mxu0  ;;  %v4167_v52 = vpop.f32.mrf.mxu1 }
 0x6fe   :  { %v4055_v9 = vadd.f32 %v4054_v53, %v12049_v8  ;;  %v2572_v8 = vmax.f32 %v14993_v3, 0.0  ;;  %v14996_v53 = vld [vmem:[#allocation368_spill] sm:$0xff]  ;;  %v15002_v3 = vld [vmem:[#allocation374_spill] sm:$0xff] }
 0x6ff   :  { %v12362_v38 = vadd.f32 %v4390_v59, %v4278_v54  ;;  %4101 = vmatmul.f32.gmra.mxu0 %v2555_v6 }
 0x700   :  { %v4168_v42 = vadd.f32 %v4167_v52, %v4055_v9  ;;  %4214 = vmatmul.f32.gmra.mxu1 %v2556_v10  ;;  %v2079_v52 = vmax.f32 %v14996_v53, 0.0  ;;  %v2081_v10 = vmax.f32 %v14998_v24, 0.0  ;;  %v14999_v9 = vld [vmem:[#allocation371_spill] sm:$0xff]  ;;  %v15006_v53 = vld [vmem:[#allocation377_spill] sm:$0xff] }
 0x701   :  { %4327 = vmatmul.f32.gmra.mxu2 %v2557_v23  ;;  %4440 = vmatmul.f32.gmra.mxu3 %v2558_v60  ;;  %v2082_v47 = vmax.f32 %v14999_v9, 0.0 }
 0x704   :  { %v4280_v16 = vpop.f32.mrf.mxu2  ;;  %v4393_v57 = vpop.f32.mrf.mxu3 }
 0x705   :  { %v4281_v63 = vadd.f32 %v4280_v16, %v4168_v42  ;;  %v4057_v13 = vpop.f32.mrf.mxu0  ;;  %v4170_v21 = vpop.f32.mrf.mxu1 }
 0x706   :  { %v4058_v31 = vadd.f32 %v4057_v13, %v12068_v20  ;;  %v2080_v20 = vmax.f32 %v14997_v45, 0.0  ;;  %v15000_v13 = vld [vmem:[#allocation372_spill] sm:$0xff]  ;;  %v15007_v45 = vld [vmem:[#allocation378_spill] sm:$0xff] }
 0x707   :  { %v12369_v22 = vadd.f32 %v4393_v57, %v4281_v63  ;;  %4104 = vmatmul.f32.gmra.mxu0 %v2571_v62 }
 0x708   :  { %v4171_v25 = vadd.f32 %v4170_v21, %v4058_v31  ;;  %4217 = vmatmul.f32.gmra.mxu1 %v2572_v8  ;;  %v2095_v21 = vmax.f32 %v15000_v13, 0.0  ;;  %v2097_v8 = vmax.f32 %v15002_v3, 0.0  ;;  %v15003_v31 = vld [vmem:[#allocation375_spill] sm:$0xff]  ;;  %v15011_v13 = vld [vmem:[#allocation381_spill] sm:$0xff] }
 0x709   :  { %4330 = vmatmul.f32.gmra.mxu2 %v2573_v40  ;;  %4443 = vmatmul.f32.gmra.mxu3 %v2574_v49  ;;  %v2098_v33 = vmax.f32 %v15003_v31, 0.0 }
 0x70c   :  { %v4283_v34 = vpop.f32.mrf.mxu2  ;;  %v4396_v58 = vpop.f32.mrf.mxu3 }
 0x70d   :  { %v4284_v12 = vadd.f32 %v4283_v34, %v4171_v25  ;;  %v4060_v59 = vpop.f32.mrf.mxu0  ;;  %v4173_v54 = vpop.f32.mrf.mxu1 }
 0x70e   :  { %v4061_v6 = vadd.f32 %v4060_v59, %v12078_v18  ;;  %v2096_v18 = vmax.f32 %v15001_v41, 0.0  ;;  %v15005_v59 = vld [vmem:[#allocation376_spill] sm:$0xff]  ;;  %v15012_v41 = vld [vmem:[#allocation382_spill] sm:$0xff] }
 0x70f   :  { %v12376_v23 = vadd.f32 %v4396_v58, %v4284_v12  ;;  %4463 = vmatmul.f32.vlgmr.msra.gmra.mxu0 %v2079_v52 }
 0x710   :  { %v4174_v14 = vadd.f32 %v4173_v54, %v4061_v6  ;;  %4576 = vmatmul.f32.vlgmr.msra.gmra.mxu1 %v2080_v20  ;;  %v2111_v54 = vmax.f32 %v15005_v59, 0.0  ;;  %v2113_v20 = vmax.f32 %v15007_v45, 0.0  ;;  %v15008_v6 = vld [vmem:[#allocation379_spill] sm:$0xff]  ;;  %v15016_v59 = vld [vmem:[#allocation385_spill] sm:$0xff] }
 0x711   :  { %4689 = vmatmul.f32.vlgmr.msra.gmra.mxu2 %v2081_v10  ;;  %4802 = vmatmul.f32.vlgmr.msra.gmra.mxu3 %v2082_v47  ;;  %v2114_v24 = vmax.f32 %v15008_v6, 0.0 }
 0x714   :  { %v4286_v60 = vpop.f32.mrf.mxu2  ;;  %v4399_v42 = vpop.f32.mrf.mxu3 }
 0x715   :  { %v4287_v16 = vadd.f32 %v4286_v60, %v4174_v14  ;;  %v4063_v57 = vpop.f32.mrf.mxu0  ;;  %v4176_v63 = vpop.f32.mrf.mxu1 }
 0x716   :  { %v4064_v62 = vadd.f32 %v4063_v57, %v12094_v17  ;;  %v2112_v17 = vmax.f32 %v15006_v53, 0.0  ;;  %v15010_v57 = vld [vmem:[#allocation380_spill] sm:$0xff]  ;;  %v15017_v53 = vld [vmem:[#allocation386_spill] sm:$0xff] }
 0x717   :  { %v12383_v40 = vadd.f32 %v4399_v42, %v4287_v16  ;;  %4466 = vmatmul.f32.gmra.mxu0 %v2095_v21 }
 0x718   :  { %v4177_v2 = vadd.f32 %v4176_v63, %v4064_v62  ;;  %4579 = vmatmul.f32.gmra.mxu1 %v2096_v18  ;;  %v2127_v63 = vmax.f32 %v15010_v57, 0.0  ;;  %v2129_v18 = vmax.f32 %v15012_v41, 0.0  ;;  %v15013_v62 = vld [vmem:[#allocation383_spill] sm:$0xff]  ;;  %v15021_v57 = vld [vmem:[#allocation389_spill] sm:$0xff] }
 0x719   :  { %15004 = vst [vmem:[#allocation54_spill] sm:$0xff] %v12383_v40  ;;  %4692 = vmatmul.f32.gmra.mxu2 %v2097_v8  ;;  %4805 = vmatmul.f32.gmra.mxu3 %v2098_v33  ;;  %v2130_v3 = vmax.f32 %v15013_v62, 0.0 }
 0x71c   :  { %v4289_v49 = vpop.f32.mrf.mxu2  ;;  %v4402_v25 = vpop.f32.mrf.mxu3 }
 0x71d   :  { %v4290_v34 = vadd.f32 %v4289_v49, %v4177_v2  ;;  %v4066_v58 = vpop.f32.mrf.mxu0  ;;  %v4179_v12 = vpop.f32.mrf.mxu1 }
 0x71e   :  { %v4067_v52 = vadd.f32 %v4066_v58, %v12101_v26  ;;  %v2128_v26 = vmax.f32 %v15011_v13, 0.0  ;;  %v15015_v58 = vld [vmem:[#allocation384_spill] sm:$0xff]  ;;  %v15022_v13 = vld [vmem:[#allocation390_spill] sm:$0xff] }
 0x71f   :  { %v12390_v10 = vadd.f32 %v4402_v25, %v4290_v34  ;;  %4469 = vmatmul.f32.gmra.mxu0 %v2111_v54 }
 0x720   :  { %v4180_v9 = vadd.f32 %v4179_v12, %v4067_v52  ;;  %4582 = vmatmul.f32.gmra.mxu1 %v2112_v17  ;;  %v2143_v12 = vmax.f32 %v15015_v58, 0.0  ;;  %v2145_v17 = vmax.f32 %v15017_v53, 0.0  ;;  %v15018_v52 = vld [vmem:[#allocation387_spill] sm:$0xff]  ;;  %v15026_v58 = vld [vmem:[#allocation393_spill] sm:$0xff] }
 0x721   :  { %15009 = vst [vmem:[#allocation55_spill] sm:$0xff] %v12390_v10  ;;  %4695 = vmatmul.f32.gmra.mxu2 %v2113_v20  ;;  %4808 = vmatmul.f32.gmra.mxu3 %v2114_v24  ;;  %v2146_v45 = vmax.f32 %v15018_v52, 0.0 }
 0x724   :  { %v4292_v47 = vpop.f32.mrf.mxu2  ;;  %v4405_v14 = vpop.f32.mrf.mxu3 }
 0x725   :  { %v4293_v60 = vadd.f32 %v4292_v47, %v4180_v9  ;;  %v4069_v42 = vpop.f32.mrf.mxu0  ;;  %v4182_v16 = vpop.f32.mrf.mxu1 }
 0x726   :  { %v4070_v21 = vadd.f32 %v4069_v42, %v12108_v32  ;;  %v2144_v32 = vmax.f32 %v15016_v59, 0.0  ;;  %v15020_v42 = vld [vmem:[#allocation388_spill] sm:$0xff]  ;;  %v15027_v59 = vld [vmem:[#allocation394_spill] sm:$0xff] }
 0x727   :  { %v12397_v8 = vadd.f32 %v4405_v14, %v4293_v60  ;;  %4472 = vmatmul.f32.gmra.mxu0 %v2127_v63 }
 0x728   :  { %v4183_v31 = vadd.f32 %v4182_v16, %v4070_v21  ;;  %4585 = vmatmul.f32.gmra.mxu1 %v2128_v26  ;;  %v2159_v16 = vmax.f32 %v15020_v42, 0.0  ;;  %v2161_v26 = vmax.f32 %v15022_v13, 0.0  ;;  %v15023_v21 = vld [vmem:[#allocation391_spill] sm:$0xff]  ;;  %v15030_v42 = vld [vmem:[#allocation397_spill] sm:$0xff] }
 0x729   :  { %15014 = vst [vmem:[#allocation56_spill] sm:$0xff] %v12397_v8  ;;  %4698 = vmatmul.f32.gmra.mxu2 %v2129_v18  ;;  %4811 = vmatmul.f32.gmra.mxu3 %v2130_v3  ;;  %v2162_v41 = vmax.f32 %v15023_v21, 0.0 }
 0x72c   :  { %v4295_v33 = vpop.f32.mrf.mxu2  ;;  %v4408_v2 = vpop.f32.mrf.mxu3 }
 0x72d   :  { %v4296_v49 = vadd.f32 %v4295_v33, %v4183_v31  ;;  %v4072_v25 = vpop.f32.mrf.mxu0  ;;  %v4185_v34 = vpop.f32.mrf.mxu1 }
 0x72e   :  { %v4073_v54 = vadd.f32 %v4072_v25, %v12118_v35  ;;  %v2160_v35 = vmax.f32 %v15021_v57, 0.0  ;;  %v15025_v25 = vld [vmem:[#allocation392_spill] sm:$0xff]  ;;  %v15031_v57 = vld [vmem:[#allocation398_spill] sm:$0xff] }
 0x72f   :  { %v12404_v20 = vadd.f32 %v4408_v2, %v4296_v49  ;;  %4475 = vmatmul.f32.gmra.mxu0 %v2143_v12 }
 0x730   :  { %v4186_v6 = vadd.f32 %v4185_v34, %v4073_v54  ;;  %4588 = vmatmul.f32.gmra.mxu1 %v2144_v32  ;;  %v2175_v34 = vmax.f32 %v15025_v25, 0.0  ;;  %v2177_v32 = vmax.f32 %v15027_v59, 0.0  ;;  %v15028_v54 = vld [vmem:[#allocation395_spill] sm:$0xff]  ;;  %v15034_v25 = vld [vmem:[#allocation401_spill] sm:$0xff] }
 0x731   :  { %15019 = vst [vmem:[#allocation57_spill] sm:$0xff] %v12404_v20  ;;  %4701 = vmatmul.f32.gmra.mxu2 %v2145_v17  ;;  %4814 = vmatmul.f32.gmra.mxu3 %v2146_v45  ;;  %v2178_v53 = vmax.f32 %v15028_v54, 0.0 }
 0x734   :  { %v4298_v24 = vpop.f32.mrf.mxu2  ;;  %v4411_v9 = vpop.f32.mrf.mxu3 }
 0x735   :  { %v4299_v47 = vadd.f32 %v4298_v24, %v4186_v6  ;;  %v4075_v14 = vpop.f32.mrf.mxu0  ;;  %v4188_v60 = vpop.f32.mrf.mxu1 }
 0x736   :  { %v4076_v63 = vadd.f32 %v4075_v14, %v12134_v15  ;;  %v2176_v15 = vmax.f32 %v15026_v58, 0.0  ;;  %v15029_v14 = vld [vmem:[#allocation396_spill] sm:$0xff]  ;;  %v15035_v58 = vld [vmem:[#allocation402_spill] sm:$0xff] }
 0x737   :  { %v12411_v18 = vadd.f32 %v4411_v9, %v4299_v47  ;;  %4478 = vmatmul.f32.gmra.mxu0 %v2159_v16 }
 0x738   :  { %v4189_v62 = vadd.f32 %v4188_v60, %v4076_v63  ;;  %4591 = vmatmul.f32.gmra.mxu1 %v2160_v35  ;;  %v2191_v60 = vmax.f32 %v15029_v14, 0.0  ;;  %v2193_v35 = vmax.f32 %v15031_v57, 0.0  ;;  %v15032_v63 = vld [vmem:[#allocation399_spill] sm:$0xff]  ;;  %v15038_v14 = vld [vmem:[#allocation405_spill] sm:$0xff] }
 0x739   :  { %15024 = vst [vmem:[#allocation58_spill] sm:$0xff] %v12411_v18  ;;  %4704 = vmatmul.f32.gmra.mxu2 %v2161_v26  ;;  %4817 = vmatmul.f32.gmra.mxu3 %v2162_v41  ;;  %v2194_v13 = vmax.f32 %v15032_v63, 0.0 }
 0x73c   :  { %v4301_v3 = vpop.f32.mrf.mxu2  ;;  %v4414_v31 = vpop.f32.mrf.mxu3 }
 0x73d   :  { %v4302_v33 = vadd.f32 %v4301_v3, %v4189_v62  ;;  %v4078_v2 = vpop.f32.mrf.mxu0  ;;  %v4191_v49 = vpop.f32.mrf.mxu1 }
 0x73e   :  { %v4079_v12 = vadd.f32 %v4078_v2, %v12141_v0  ;;  %v2192_v0 = vmax.f32 %v15030_v42, 0.0  ;;  %v15033_v2 = vld [vmem:[#allocation400_spill] sm:$0xff]  ;;  %v15039_v42 = vld [vmem:[#allocation406_spill] sm:$0xff] }
 0x73f   :  { %v12418_v17 = vadd.f32 %v4414_v31, %v4302_v33  ;;  %4481 = vmatmul.f32.gmra.mxu0 %v2175_v34 }
 0x740   :  { %v4192_v52 = vadd.f32 %v4191_v49, %v4079_v12  ;;  %4594 = vmatmul.f32.gmra.mxu1 %v2176_v15  ;;  %v2207_v49 = vmax.f32 %v15033_v2, 0.0  ;;  %v2209_v15 = vmax.f32 %v15035_v58, 0.0  ;;  %v15036_v12 = vld [vmem:[#allocation403_spill] sm:$0xff]  ;;  %v15043_v2 = vld [vmem:[#allocation409_spill] sm:$0xff] }
 0x741   :  { %4707 = vmatmul.f32.gmra.mxu2 %v2177_v32  ;;  %4820 = vmatmul.f32.gmra.mxu3 %v2178_v53  ;;  %v2210_v59 = vmax.f32 %v15036_v12, 0.0 }
 0x744   :  { %v4304_v45 = vpop.f32.mrf.mxu2  ;;  %v4417_v6 = vpop.f32.mrf.mxu3 }
 0x745   :  { %v4305_v24 = vadd.f32 %v4304_v45, %v4192_v52  ;;  %v4081_v9 = vpop.f32.mrf.mxu0  ;;  %v4194_v47 = vpop.f32.mrf.mxu1 }
 0x746   :  { %v4082_v16 = vadd.f32 %v4081_v9, %v12148_v43  ;;  %v2208_v43 = vmax.f32 %v15034_v25, 0.0  ;;  %v15037_v9 = vld [vmem:[#allocation404_spill] sm:$0xff]  ;;  %v15044_v25 = vld [vmem:[#allocation410_spill] sm:$0xff] }
 0x747   :  { %v12425_v26 = vadd.f32 %v4417_v6, %v4305_v24  ;;  %4484 = vmatmul.f32.gmra.mxu0 %v2191_v60 }
 0x748   :  { %v4195_v21 = vadd.f32 %v4194_v47, %v4082_v16  ;;  %4597 = vmatmul.f32.gmra.mxu1 %v2192_v0  ;;  %v2223_v47 = vmax.f32 %v15037_v9, 0.0  ;;  %v2225_v0 = vmax.f32 %v15039_v42, 0.0  ;;  %v15040_v16 = vld [vmem:[#allocation407_spill] sm:$0xff]  ;;  %v15048_v9 = vld [vmem:[#allocation413_spill] sm:$0xff] }
 0x749   :  { %4710 = vmatmul.f32.gmra.mxu2 %v2193_v35  ;;  %4823 = vmatmul.f32.gmra.mxu3 %v2194_v13  ;;  %v2226_v57 = vmax.f32 %v15040_v16, 0.0 }
 0x74c   :  { %v4307_v41 = vpop.f32.mrf.mxu2  ;;  %v4420_v62 = vpop.f32.mrf.mxu3 }
 0x74d   :  { %v4308_v3 = vadd.f32 %v4307_v41, %v4195_v21  ;;  %v4084_v31 = vpop.f32.mrf.mxu0  ;;  %v4197_v33 = vpop.f32.mrf.mxu1 }
 0x74e   :  { %v4085_v34 = vadd.f32 %v4084_v31, %v12158_v28  ;;  %v2224_v28 = vmax.f32 %v15038_v14, 0.0  ;;  %v15042_v31 = vld [vmem:[#allocation408_spill] sm:$0xff]  ;;  %v15049_v14 = vld [vmem:[#allocation414_spill] sm:$0xff] }
 0x74f   :  { %v12432_v32 = vadd.f32 %v4420_v62, %v4308_v3  ;;  %4487 = vmatmul.f32.gmra.mxu0 %v2207_v49 }
 0x750   :  { %v4198_v54 = vadd.f32 %v4197_v33, %v4085_v34  ;;  %4600 = vmatmul.f32.gmra.mxu1 %v2208_v43  ;;  %v2239_v33 = vmax.f32 %v15042_v31, 0.0  ;;  %v2241_v43 = vmax.f32 %v15044_v25, 0.0  ;;  %v15045_v34 = vld [vmem:[#allocation411_spill] sm:$0xff]  ;;  %v15053_v31 = vld [vmem:[#allocation417_spill] sm:$0xff] }
 0x751   :  { %4713 = vmatmul.f32.gmra.mxu2 %v2209_v15  ;;  %4826 = vmatmul.f32.gmra.mxu3 %v2210_v59  ;;  %v2242_v58 = vmax.f32 %v15045_v34, 0.0 }
 0x754   :  { %v4310_v53 = vpop.f32.mrf.mxu2  ;;  %v4423_v52 = vpop.f32.mrf.mxu3 }
 0x755   :  { %v4311_v45 = vadd.f32 %v4310_v53, %v4198_v54  ;;  %v4087_v6 = vpop.f32.mrf.mxu0  ;;  %v4200_v24 = vpop.f32.mrf.mxu1 }
 0x756   :  { %v4088_v60 = vadd.f32 %v4087_v6, %v12174_v39  ;;  %v2240_v39 = vmax.f32 %v15043_v2, 0.0  ;;  %v15047_v6 = vld [vmem:[#allocation412_spill] sm:$0xff]  ;;  %v15054_v2 = vld [vmem:[#allocation418_spill] sm:$0xff] }
 0x757   :  { %v12439_v35 = vadd.f32 %v4423_v52, %v4311_v45  ;;  %4490 = vmatmul.f32.gmra.mxu0 %v2223_v47 }
 0x758   :  { %v4201_v63 = vadd.f32 %v4200_v24, %v4088_v60  ;;  %4603 = vmatmul.f32.gmra.mxu1 %v2224_v28  ;;  %v2255_v24 = vmax.f32 %v15047_v6, 0.0  ;;  %v2257_v28 = vmax.f32 %v15049_v14, 0.0  ;;  %v15050_v60 = vld [vmem:[#allocation415_spill] sm:$0xff]  ;;  %v15058_v6 = vld [vmem:[#allocation421_spill] sm:$0xff] }
 0x759   :  { %15041 = vst [vmem:[#allocation59_spill] sm:$0xff] %v12439_v35  ;;  %4716 = vmatmul.f32.gmra.mxu2 %v2225_v0  ;;  %4829 = vmatmul.f32.gmra.mxu3 %v2226_v57  ;;  %v2258_v42 = vmax.f32 %v15050_v60, 0.0 }
 0x75c   :  { %v4313_v13 = vpop.f32.mrf.mxu2  ;;  %v4426_v21 = vpop.f32.mrf.mxu3 }
 0x75d   :  { %v4314_v41 = vadd.f32 %v4313_v13, %v4201_v63  ;;  %v4090_v62 = vpop.f32.mrf.mxu0  ;;  %v4203_v3 = vpop.f32.mrf.mxu1 }
 0x75e   :  { %v4091_v49 = vadd.f32 %v4090_v62, %v12181_v46  ;;  %v2256_v46 = vmax.f32 %v15048_v9, 0.0  ;;  %v15052_v62 = vld [vmem:[#allocation416_spill] sm:$0xff]  ;;  %v15059_v9 = vld [vmem:[#allocation422_spill] sm:$0xff] }
 0x75f   :  { %v12446_v15 = vadd.f32 %v4426_v21, %v4314_v41  ;;  %4493 = vmatmul.f32.gmra.mxu0 %v2239_v33 }
 0x760   :  { %v4204_v12 = vadd.f32 %v4203_v3, %v4091_v49  ;;  %4606 = vmatmul.f32.gmra.mxu1 %v2240_v39  ;;  %v2271_v3 = vmax.f32 %v15052_v62, 0.0  ;;  %v2273_v39 = vmax.f32 %v15054_v2, 0.0  ;;  %v15055_v49 = vld [vmem:[#allocation419_spill] sm:$0xff]  ;;  %v15063_v62 = vld [vmem:[#allocation425_spill] sm:$0xff] }
 0x761   :  { %15046 = vst [vmem:[#allocation60_spill] sm:$0xff] %v12446_v15  ;;  %4719 = vmatmul.f32.gmra.mxu2 %v2241_v43  ;;  %4832 = vmatmul.f32.gmra.mxu3 %v2242_v58  ;;  %v2274_v25 = vmax.f32 %v15055_v49, 0.0  ;;  %v15129_v15 = vld [vmem:[#allocation46_spill] sm:$0xff] }
 0x764   :  { %v4316_v59 = vpop.f32.mrf.mxu2  ;;  %v4429_v54 = vpop.f32.mrf.mxu3 }
 0x765   :  { %v4317_v53 = vadd.f32 %v4316_v59, %v4204_v12  ;;  %v4093_v52 = vpop.f32.mrf.mxu0  ;;  %v4206_v45 = vpop.f32.mrf.mxu1 }
 0x766   :  { %v4094_v47 = vadd.f32 %v4093_v52, %v12188_v27  ;;  %v2272_v27 = vmax.f32 %v15053_v31, 0.0  ;;  %v15057_v52 = vld [vmem:[#allocation420_spill] sm:$0xff]  ;;  %v15064_v31 = vld [vmem:[#allocation426_spill] sm:$0xff] }
 0x767   :  { %v12453_v0 = vadd.f32 %v4429_v54, %v4317_v53  ;;  %4496 = vmatmul.f32.gmra.mxu0 %v2255_v24 }
 0x768   :  { %v4207_v16 = vadd.f32 %v4206_v45, %v4094_v47  ;;  %4609 = vmatmul.f32.gmra.mxu1 %v2256_v46  ;;  %v2287_v45 = vmax.f32 %v15057_v52, 0.0  ;;  %v2289_v46 = vmax.f32 %v15059_v9, 0.0  ;;  %v15060_v47 = vld [vmem:[#allocation423_spill] sm:$0xff]  ;;  %v15068_v52 = vld [vmem:[#allocation429_spill] sm:$0xff] }
 0x769   :  { %15051 = vst [vmem:[#allocation61_spill] sm:$0xff] %v12453_v0  ;;  %4722 = vmatmul.f32.gmra.mxu2 %v2257_v28  ;;  %4835 = vmatmul.f32.gmra.mxu3 %v2258_v42  ;;  %v2290_v14 = vmax.f32 %v15060_v47, 0.0  ;;  %v15130_v0 = vld [vmem:[#allocation47_spill] sm:$0xff] }
 0x76c   :  { %v4319_v57 = vpop.f32.mrf.mxu2  ;;  %v4432_v63 = vpop.f32.mrf.mxu3 }
 0x76d   :  { %v4320_v13 = vadd.f32 %v4319_v57, %v4207_v16  ;;  %v4096_v21 = vpop.f32.mrf.mxu0  ;;  %v4209_v41 = vpop.f32.mrf.mxu1 }
 0x76e   :  { %v4097_v33 = vadd.f32 %v4096_v21, %v12198_v51  ;;  %v2288_v51 = vmax.f32 %v15058_v6, 0.0  ;;  %v15062_v21 = vld [vmem:[#allocation424_spill] sm:$0xff]  ;;  %v15069_v6 = vld [vmem:[#allocation430_spill] sm:$0xff] }
 0x76f   :  { %v12460_v43 = vadd.f32 %v4432_v63, %v4320_v13  ;;  %4499 = vmatmul.f32.gmra.mxu0 %v2271_v3 }
 0x770   :  { %v4210_v34 = vadd.f32 %v4209_v41, %v4097_v33  ;;  %4612 = vmatmul.f32.gmra.mxu1 %v2272_v27  ;;  %v2303_v41 = vmax.f32 %v15062_v21, 0.0  ;;  %v2305_v27 = vmax.f32 %v15064_v31, 0.0  ;;  %v15065_v33 = vld [vmem:[#allocation427_spill] sm:$0xff]  ;;  %v15073_v21 = vld [vmem:[#allocation433_spill] sm:$0xff] }
 0x771   :  { %15056 = vst [vmem:[#allocation62_spill] sm:$0xff] %v12460_v43  ;;  %4725 = vmatmul.f32.gmra.mxu2 %v2273_v39  ;;  %4838 = vmatmul.f32.gmra.mxu3 %v2274_v25  ;;  %v2306_v2 = vmax.f32 %v15065_v33, 0.0  ;;  %v15131_v43 = vld [vmem:[#allocation48_spill] sm:$0xff] }
 0x774   :  { %v4322_v58 = vpop.f32.mrf.mxu2  ;;  %v4435_v12 = vpop.f32.mrf.mxu3 }
 0x775   :  { %v4323_v59 = vadd.f32 %v4322_v58, %v4210_v34  ;;  %v4099_v54 = vpop.f32.mrf.mxu0  ;;  %v4212_v53 = vpop.f32.mrf.mxu1 }
 0x776   :  { %v4100_v24 = vadd.f32 %v4099_v54, %v12214_v61  ;;  %v2304_v61 = vmax.f32 %v15063_v62, 0.0  ;;  %v15067_v54 = vld [vmem:[#allocation428_spill] sm:$0xff]  ;;  %v15074_v62 = vld [vmem:[#allocation434_spill] sm:$0xff] }
 0x777   :  { %v12467_v28 = vadd.f32 %v4435_v12, %v4323_v59  ;;  %4502 = vmatmul.f32.gmra.mxu0 %v2287_v45 }
 0x778   :  { %v4213_v60 = vadd.f32 %v4212_v53, %v4100_v24  ;;  %4615 = vmatmul.f32.gmra.mxu1 %v2288_v51  ;;  %v2319_v53 = vmax.f32 %v15067_v54, 0.0  ;;  %v2321_v51 = vmax.f32 %v15069_v6, 0.0  ;;  %v15070_v24 = vld [vmem:[#allocation431_spill] sm:$0xff]  ;;  %v15078_v54 = vld [vmem:[#allocation437_spill] sm:$0xff] }
 0x779   :  { %15061 = vst [vmem:[#allocation63_spill] sm:$0xff] %v12467_v28  ;;  %4728 = vmatmul.f32.gmra.mxu2 %v2289_v46  ;;  %4841 = vmatmul.f32.gmra.mxu3 %v2290_v14  ;;  %v2322_v9 = vmax.f32 %v15070_v24, 0.0  ;;  %v15132_v28 = vld [vmem:[#allocation49_spill] sm:$0xff] }
 0x77c   :  { %v4325_v42 = vpop.f32.mrf.mxu2  ;;  %v4438_v16 = vpop.f32.mrf.mxu3 }
 0x77d   :  { %v4326_v57 = vadd.f32 %v4325_v42, %v4213_v60  ;;  %v4102_v63 = vpop.f32.mrf.mxu0  ;;  %v4215_v13 = vpop.f32.mrf.mxu1 }
 0x77e   :  { %v4103_v3 = vadd.f32 %v4102_v63, %v12221_v55  ;;  %v2320_v55 = vmax.f32 %v15068_v52, 0.0  ;;  %v15072_v63 = vld [vmem:[#allocation432_spill] sm:$0xff]  ;;  %v15079_v52 = vld [vmem:[#allocation438_spill] sm:$0xff] }
 0x77f   :  { %v12474_v39 = vadd.f32 %v4438_v16, %v4326_v57  ;;  %4505 = vmatmul.f32.gmra.mxu0 %v2303_v41 }
 0x780   :  { %v4216_v49 = vadd.f32 %v4215_v13, %v4103_v3  ;;  %4618 = vmatmul.f32.gmra.mxu1 %v2304_v61  ;;  %v2335_v13 = vmax.f32 %v15072_v63, 0.0  ;;  %v2337_v61 = vmax.f32 %v15074_v62, 0.0  ;;  %v15075_v3 = vld [vmem:[#allocation435_spill] sm:$0xff]  ;;  %v15082_v63 = vld [vmem:[#allocation441_spill] sm:$0xff] }
 0x781   :  { %15066 = vst [vmem:[#allocation64_spill] sm:$0xff] %v12474_v39  ;;  %4731 = vmatmul.f32.gmra.mxu2 %v2305_v27  ;;  %4844 = vmatmul.f32.gmra.mxu3 %v2306_v2  ;;  %v2338_v31 = vmax.f32 %v15075_v3, 0.0 }
 0x784   :  { %v4328_v25 = vpop.f32.mrf.mxu2  ;;  %v4441_v34 = vpop.f32.mrf.mxu3 }
 0x785   :  { %v4329_v58 = vadd.f32 %v4328_v25, %v4216_v49  ;;  %v4105_v12 = vpop.f32.mrf.mxu0  ;;  %v4218_v59 = vpop.f32.mrf.mxu1 }
 0x786   :  { %v4106_v45 = vadd.f32 %v4105_v12, %v12228_v1  ;;  %v2336_v1 = vmax.f32 %v15073_v21, 0.0  ;;  %v15077_v12 = vld [vmem:[#allocation436_spill] sm:$0xff]  ;;  %v15083_v21 = vld [vmem:[#allocation442_spill] sm:$0xff] }
 0x787   :  { %v12481_v46 = vadd.f32 %v4441_v34, %v4329_v58  ;;  %4508 = vmatmul.f32.gmra.mxu0 %v2319_v53 }
 0x788   :  { %v4219_v47 = vadd.f32 %v4218_v59, %v4106_v45  ;;  %4621 = vmatmul.f32.gmra.mxu1 %v2320_v55  ;;  %v2351_v59 = vmax.f32 %v15077_v12, 0.0  ;;  %v2353_v55 = vmax.f32 %v15079_v52, 0.0  ;;  %v15080_v45 = vld [vmem:[#allocation439_spill] sm:$0xff]  ;;  %v15086_v12 = vld [vmem:[#allocation445_spill] sm:$0xff] }
 0x789   :  { %15071 = vst [vmem:[#allocation65_spill] sm:$0xff] %v12481_v46  ;;  %4734 = vmatmul.f32.gmra.mxu2 %v2321_v51  ;;  %4847 = vmatmul.f32.gmra.mxu3 %v2322_v9  ;;  %v2354_v6 = vmax.f32 %v15080_v45, 0.0 }
 0x78c   :  { %v4331_v14 = vpop.f32.mrf.mxu2  ;;  %v4444_v60 = vpop.f32.mrf.mxu3 }
 0x78d   :  { %v4332_v42 = vadd.f32 %v4331_v14, %v4219_v47  ;;  %v4464_v16 = vpop.f32.mrf.mxu0  ;;  %v4577_v57 = vpop.f32.mrf.mxu1 }
 0x78e   :  { %v4465_v41 = vadd.f32 %v4464_v16, %v12238_v37  ;;  %v2352_v37 = vmax.f32 %v15078_v54, 0.0  ;;  %v15081_v16 = vld [vmem:[#allocation440_spill] sm:$0xff]  ;;  %v15087_v54 = vld [vmem:[#allocation446_spill] sm:$0xff] }
 0x78f   :  { %v12488_v27 = vadd.f32 %v4444_v60, %v4332_v42  ;;  %4511 = vmatmul.f32.gmra.mxu0 %v2335_v13 }
 0x790   :  { %v4578_v33 = vadd.f32 %v4577_v57, %v4465_v41  ;;  %4624 = vmatmul.f32.gmra.mxu1 %v2336_v1  ;;  %v2367_v57 = vmax.f32 %v15081_v16, 0.0  ;;  %v2369_v1 = vmax.f32 %v15083_v21, 0.0  ;;  %v15084_v41 = vld [vmem:[#allocation443_spill] sm:$0xff]  ;;  %v15090_v16 = vld [vmem:[#allocation449_spill] sm:$0xff] }
 0x791   :  { %15076 = vst [vmem:[#allocation66_spill] sm:$0xff] %v12488_v27  ;;  %4737 = vmatmul.f32.gmra.mxu2 %v2337_v61  ;;  %4850 = vmatmul.f32.gmra.mxu3 %v2338_v31  ;;  %v2370_v62 = vmax.f32 %v15084_v41, 0.0 }
 0x794   :  { %v4690_v2 = vpop.f32.mrf.mxu2  ;;  %v4803_v49 = vpop.f32.mrf.mxu3 }
 0x795   :  { %v4691_v25 = vadd.f32 %v4690_v2, %v4578_v33  ;;  %v4467_v34 = vpop.f32.mrf.mxu0  ;;  %v4580_v58 = vpop.f32.mrf.mxu1 }
 0x796   :  { %v4468_v53 = vadd.f32 %v4467_v34, %v12254_v48  ;;  %v2368_v48 = vmax.f32 %v15082_v63, 0.0  ;;  %v15085_v34 = vld [vmem:[#allocation444_spill] sm:$0xff]  ;;  %v15091_v63 = vld [vmem:[#allocation11_spill] sm:$0xff] }
 0x797   :  { %v12495_v51 = vadd.f32 %v4803_v49, %v4691_v25  ;;  %4514 = vmatmul.f32.gmra.mxu0 %v2351_v59 }
 0x798   :  { %v4581_v24 = vadd.f32 %v4580_v58, %v4468_v53  ;;  %4627 = vmatmul.f32.gmra.mxu1 %v2352_v37  ;;  %v2383_v58 = vmax.f32 %v15085_v34, 0.0  ;;  %v2385_v37 = vmax.f32 %v15087_v54, 0.0  ;;  %v15088_v53 = vld [vmem:[#allocation447_spill] sm:$0xff] }
 0x799   :  { %4740 = vmatmul.f32.gmra.mxu2 %v2353_v55  ;;  %4853 = vmatmul.f32.gmra.mxu3 %v2354_v6  ;;  %v2386_v52 = vmax.f32 %v15088_v53, 0.0  ;;  %v15095_v53 = vld [vmem:[#allocation12_spill] sm:$0xff] }
 0x79c   :  { %v4693_v9 = vpop.f32.mrf.mxu2  ;;  %v4806_v47 = vpop.f32.mrf.mxu3 }
 0x79d   :  { %v4694_v14 = vadd.f32 %v4693_v9, %v4581_v24  ;;  %v4470_v60 = vpop.f32.mrf.mxu0  ;;  %v4583_v42 = vpop.f32.mrf.mxu1 }
 0x79e   :  { %v4471_v13 = vadd.f32 %v4470_v60, %v12261_v29  ;;  %v2384_v29 = vmax.f32 %v15086_v12, 0.0  ;;  %v15089_v60 = vld [vmem:[#allocation448_spill] sm:$0xff]  ;;  %v15093_v12 = vld [vmem:[#allocation451_spill] sm:$0xff] }
 0x79f   :  { %v12502_v61 = vadd.f32 %v4806_v47, %v4694_v14  ;;  %4517 = vmatmul.f32.gmra.mxu0 %v2367_v57 }
 0x7a0   :  { %v4584_v3 = vadd.f32 %v4583_v42, %v4471_v13  ;;  %4630 = vmatmul.f32.gmra.mxu1 %v2368_v48  ;;  %v2399_v42 = vmax.f32 %v15089_v60, 0.0  ;;  %v2401_v48 = vmax.f32 %v15091_v63, 0.0  ;;  %v15092_v13 = vld [vmem:[#allocation450_spill] sm:$0xff]  ;;  %v15098_v63 = vld [vmem:[#allocation15_spill] sm:$0xff] }
 0x7a1   :  { %4743 = vmatmul.f32.gmra.mxu2 %v2369_v1  ;;  %4856 = vmatmul.f32.gmra.mxu3 %v2370_v62  ;;  %v2402_v21 = vmax.f32 %v15092_v13, 0.0  ;;  %v5023_v62 = vld [vmem:[#allocation2 + $0x1e0] sm:$0xff] }
 0x7a4   :  { %v4696_v31 = vpop.f32.mrf.mxu2  ;;  %v4809_v33 = vpop.f32.mrf.mxu3 }
 0x7a5   :  { %v4697_v2 = vadd.f32 %v4696_v31, %v4584_v3  ;;  %v4473_v49 = vpop.f32.mrf.mxu0  ;;  %v4586_v25 = vpop.f32.mrf.mxu1  ;;  %v5212_v3 = vunpack.c.h.bf16 %v5023_v62  ;;  %v5087_v31 = vld [vmem:[#allocation2 + $0x3e0] sm:$0xff] }
 0x7a6   :  { %v4474_v59 = vadd.f32 %v4473_v49, %v12268_v30  ;;  %v2400_v30 = vmax.f32 %v15090_v16, 0.0 }
 0x7a7   :  { %v12509_v55 = vadd.f32 %v4809_v33, %v4697_v2  ;;  %4520 = vmatmul.f32.gmra.mxu0 %v2383_v58  ;;  %v5340_v33 = vunpack.c.h.bf16 %v5087_v31  ;;  %5405 = vmatpush.msra.mxu2 %v5212_v3  ;;  %v5211_v58 = vunpack.c.l.bf16 %v5023_v62  ;;  %v15100_v62 = vld [vmem:[#allocation17_spill] sm:$0xff] }
 0x7a8   :  { %v4587_v45 = vadd.f32 %v4586_v25, %v4474_v59  ;;  %4633 = vmatmul.f32.gmra.mxu1 %v2384_v29  ;;  %v2415_v29 = vmax.f32 %v15093_v12, 0.0  ;;  %v15094_v59 = vld [vmem:[#allocation452_spill] sm:$0xff]  ;;  %v2434_v3 = vmax.f32 %v15100_v62, 0.0 }
 0x7a9   :  { %4746 = vmatmul.f32.gmra.mxu2 %v2385_v37  ;;  %4859 = vmatmul.f32.gmra.mxu3 %v2386_v52  ;;  %v2416_v54 = vmax.f32 %v15094_v59, 0.0  ;;  %v2417_v52 = vmax.f32 %v15095_v53, 0.0  ;;  %v15102_v53 = vld [vmem:[#allocation19_spill] sm:$0xff]  ;;  %v15107_v62 = vld [vmem:[#allocation24_spill] sm:$0xff] }
 0x7aa   :  { %5425 = vmatpush.msra.mxu3 %v5340_v33  ;;  %5365 = vmatpush.msra.mxu0 %v5211_v58 }
 0x7ac   :  { %v4699_v6 = vpop.f32.mrf.mxu2  ;;  %v4812_v24 = vpop.f32.mrf.mxu3 }
 0x7ad   :  { %v4700_v9 = vadd.f32 %v4699_v6, %v4587_v45  ;;  %v4476_v47 = vpop.f32.mrf.mxu0  ;;  %v4589_v14 = vpop.f32.mrf.mxu1  ;;  %v15096_v45 = vld [vmem:[#allocation13_spill] sm:$0xff] }
 0x7ae   :  { %v4477_v57 = vadd.f32 %v4476_v47, %v12278_v44  ;;  %v2418_v6 = vmax.f32 %v15096_v45, 0.0  ;;  %v5339_v47 = vunpack.c.l.bf16 %v5087_v31 }
 0x7af   :  { %v12516_v1 = vadd.f32 %v4812_v24, %v4700_v9  ;;  %4523 = vmatmul.f32.gmra.mxu0 %v2399_v42 }
 0x7b0   :  { %v4590_v41 = vadd.f32 %v4589_v14, %v4477_v57  ;;  %4636 = vmatmul.f32.gmra.mxu1 %v2400_v30 }
 0x7b1   :  { %4749 = vmatmul.f32.gmra.mxu2 %v2401_v48  ;;  %4862 = vmatmul.f32.gmra.mxu3 %v2402_v21  ;;  %v2432_v48 = vmax.f32 %v15098_v63, 0.0  ;;  %v15099_v21 = vld [vmem:[#allocation16_spill] sm:$0xff] }
 0x7b2   :  { %5385 = vmatpush.msra.mxu1 %v5339_v47  ;;  %v15104_v47 = vld [vmem:[#allocation21_spill] sm:$0xff] }
 0x7b4   :  { %v4702_v2 = vpop.f32.mrf.mxu2  ;;  %v4815_v49 = vpop.f32.mrf.mxu3 }
 0x7b5   :  { %v4703_v44 = vadd.f32 %v4702_v2, %v4590_v41  ;;  %v4479_v25 = vpop.f32.mrf.mxu0  ;;  %v4592_v34 = vpop.f32.mrf.mxu1  ;;  %v2433_v41 = vmax.f32 %v15099_v21, 0.0  ;;  %v5019_v2 = vld [vmem:[#allocation2 + $0x1c0] sm:$0xff]  ;;  %v15106_v21 = vld [vmem:[#allocation23_spill] sm:$0xff] }
 0x7b6   :  { %v4480_v37 = vadd.f32 %v4479_v25, %v12294_v11  ;;  %v15097_v11 = vld [vmem:[#allocation14_spill] sm:$0xff]  ;;  %v5203_v59 = vunpack.c.l.bf16 %v5019_v2 }
 0x7b7   :  { %v12523_v24 = vadd.f32 %v4815_v49, %v4703_v44  ;;  %4526 = vmatmul.f32.gmra.mxu0 %v2415_v29  ;;  %v2431_v57 = vmax.f32 %v15097_v11, 0.0  ;;  %v5204_v49 = vunpack.c.h.bf16 %v5019_v2  ;;  %v5083_v44 = vld [vmem:[#allocation2 + $0x3c0] sm:$0xff] }
 0x7b8   :  { %v4593_v9 = vadd.f32 %v4592_v34, %v4480_v37  ;;  %4639 = vmatmul.f32.gmra.mxu1 %v2416_v54  ;;  %v5332_v25 = vunpack.c.h.bf16 %v5083_v44  ;;  %v15101_v54 = vld [vmem:[#allocation18_spill] sm:$0xff]  ;;  %5366 = vmatpush.msra.mxu0 %v5203_v59 }
 0x7b9   :  { %4752 = vmatmul.f32.gmra.mxu2 %v2417_v52  ;;  %4865 = vmatmul.f32.gmra.mxu3 %v2418_v6  ;;  %v2447_v37 = vmax.f32 %v15101_v54, 0.0  ;;  %v2448_v52 = vmax.f32 %v15102_v53, 0.0  ;;  %v15103_v6 = vld [vmem:[#allocation20_spill] sm:$0xff] }
 0x7ba   :  { %5406 = vmatpush.msra.mxu2 %v5204_v49  ;;  %5426 = vmatpush.msra.mxu3 %v5332_v25 }
 0x7bc   :  { %v4705_v14 = vpop.f32.mrf.mxu2  ;;  %v4818_v60 = vpop.f32.mrf.mxu3 }
 0x7bd   :  { %v4706_v42 = vadd.f32 %v4705_v14, %v4593_v9  ;;  %v4482_v16 = vpop.f32.mrf.mxu0  ;;  %v4595_v30 = vpop.f32.mrf.mxu1  ;;  %v2449_v9 = vmax.f32 %v15103_v6, 0.0  ;;  %v2450_v14 = vmax.f32 %v15104_v47, 0.0  ;;  %v15111_v6 = vld [vmem:[#allocation28_spill] sm:$0xff]  ;;  %v15112_v47 = vld [vmem:[#allocation29_spill] sm:$0xff] }
 0x7be   :  { %v4483_v13 = vadd.f32 %v4482_v16, %v12301_v36  ;;  %v5331_v16 = vunpack.c.l.bf16 %v5083_v44  ;;  %v5015_v44 = vld [vmem:[#allocation2 + $0x1a0] sm:$0xff] }
 0x7bf   :  { %v12530_v33 = vadd.f32 %v4818_v60, %v4706_v42  ;;  %4529 = vmatmul.f32.gmra.mxu0 %v2431_v57  ;;  %v5196_v25 = vunpack.c.h.bf16 %v5015_v44  ;;  %v5195_v54 = vunpack.c.l.bf16 %v5015_v44  ;;  %v5011_v44 = vld [vmem:[#allocation2 + $0x180] sm:$0xff] }
 0x7c0   :  { %v4596_v31 = vadd.f32 %v4595_v30, %v4483_v13  ;;  %4642 = vmatmul.f32.gmra.mxu1 %v2432_v48  ;;  %v15105_v48 = vld [vmem:[#allocation22_spill] sm:$0xff] }
 0x7c1   :  { %4755 = vmatmul.f32.gmra.mxu2 %v2433_v41  ;;  %4868 = vmatmul.f32.gmra.mxu3 %v2434_v3  ;;  %v2463_v13 = vmax.f32 %v15105_v48, 0.0  ;;  %v2464_v41 = vmax.f32 %v15106_v21, 0.0  ;;  %v2465_v3 = vmax.f32 %v15107_v62, 0.0  ;;  %v15113_v48 = vld [vmem:[#allocation30_spill] sm:$0xff]  ;;  %v15114_v21 = vld [vmem:[#allocation31_spill] sm:$0xff]  ;;  %v15115_v62 = vld [vmem:[#allocation32_spill] sm:$0xff] }
 0x7c2   :  { %5386 = vmatpush.msra.mxu1 %v5331_v16  ;;  %5407 = vmatpush.msra.mxu2 %v5196_v25  ;;  %v5188_v25 = vunpack.c.h.bf16 %v5011_v44 }
 0x7c3   :  { %5367 = vmatpush.msra.mxu0 %v5195_v54 }
 0x7c4   :  { %v4708_v34 = vpop.f32.mrf.mxu2  ;;  %v4821_v58 = vpop.f32.mrf.mxu3  ;;  %5408 = vmatpush.msra.mxu2 %v5188_v25 }
 0x7c5   :  { %v4709_v36 = vadd.f32 %v4708_v34, %v4596_v31  ;;  %v4485_v12 = vpop.f32.mrf.mxu0  ;;  %v4598_v29 = vpop.f32.mrf.mxu1  ;;  %v15108_v31 = vld [vmem:[#allocation25_spill] sm:$0xff]  ;;  %v5079_v34 = vld [vmem:[#allocation2 + $0x3a0] sm:$0xff] }
 0x7c6   :  { %v4486_v45 = vadd.f32 %v4485_v12, %v12308_v7  ;;  %v2466_v2 = vmax.f32 %v15108_v31, 0.0  ;;  %v15116_v31 = vld [vmem:[#allocation33_spill] sm:$0xff] }
 0x7c7   :  { %v12537_v60 = vadd.f32 %v4821_v58, %v4709_v36  ;;  %4532 = vmatmul.f32.gmra.mxu0 %v2447_v37  ;;  %v5324_v58 = vunpack.c.h.bf16 %v5079_v34  ;;  %v15109_v37 = vld [vmem:[#allocation26_spill] sm:$0xff] }
 0x7c8   :  { %v4599_v42 = vadd.f32 %v4598_v29, %v4486_v45  ;;  %4645 = vmatmul.f32.gmra.mxu1 %v2448_v52  ;;  %v2479_v53 = vmax.f32 %v15109_v37, 0.0  ;;  %v15110_v52 = vld [vmem:[#allocation27_spill] sm:$0xff] }
 0x7c9   :  { %4758 = vmatmul.f32.gmra.mxu2 %v2449_v9  ;;  %4871 = vmatmul.f32.gmra.mxu3 %v2450_v14  ;;  %v2480_v45 = vmax.f32 %v15110_v52, 0.0  ;;  %v2481_v9 = vmax.f32 %v15111_v6, 0.0  ;;  %v2482_v14 = vmax.f32 %v15112_v47, 0.0  ;;  %v15117_v6 = vld [vmem:[#allocation34_spill] sm:$0xff]  ;;  %v15118_v47 = vld [vmem:[#allocation35_spill] sm:$0xff] }
 0x7ca   :  { %5427 = vmatpush.msra.mxu3 %v5324_v58 }
 0x7cc   :  { %v4711_v30 = vpop.f32.mrf.mxu2  ;;  %v4824_v11 = vpop.f32.mrf.mxu3 }
 0x7cd   :  { %v4712_v57 = vadd.f32 %v4711_v30, %v4599_v42  ;;  %v12539_v63 = vpop.f32.mrf.mxu0  ;;  %v12541_v7 = vpop.f32.mrf.mxu1  ;;  %v5323_v42 = vunpack.c.l.bf16 %v5079_v34  ;;  %v5075_v34 = vld [vmem:[#allocation2 + $0x380] sm:$0xff] }
 0x7ce   :  { %v5316_v58 = vunpack.c.h.bf16 %v5075_v34 }
 0x7cf   :  { %v12547_v49 = vadd.f32 %v4824_v11, %v4712_v57  ;;  %4535 = vmatmul.f32.gmra.mxu0 %v2463_v13  ;;  %5387 = vmatpush.msra.mxu1 %v5323_v42  ;;  %v2495_v13 = vmax.f32 %v15113_v48, 0.0  ;;  %v15119_v42 = vld [vmem:[#allocation36_spill] sm:$0xff] }
 0x7d0   :  { %4648 = vmatmul.f32.gmra.mxu1 %v2464_v41  ;;  %v2496_v41 = vmax.f32 %v15114_v21, 0.0  ;;  %5428 = vmatpush.msra.mxu3 %v5316_v58  ;;  %v2513_v48 = vmax.f32 %v15119_v42, 0.0  ;;  %v15122_v58 = vld [vmem:[#allocation39_spill] sm:$0xff] }
 0x7d1   :  { %4761 = vmatmul.f32.gmra.mxu2 %v2465_v3  ;;  %4874 = vmatmul.f32.gmra.mxu3 %v2466_v2  ;;  %v2497_v3 = vmax.f32 %v15115_v62, 0.0  ;;  %v2498_v2 = vmax.f32 %v15116_v31, 0.0 }
 0x7d4   :  { %v12549_v36 = vpop.f32.mrf.mxu2  ;;  %v12551_v12 = vpop.f32.mrf.mxu3 }
 0x7d5   :  { %v12553_v29 = vpop.f32.mrf.mxu0  ;;  %v12555_v59 = vpop.f32.mrf.mxu1 }
 0x7d7   :  { %4538 = vmatmul.f32.gmra.mxu0 %v2479_v53 }
 0x7d8   :  { %4651 = vmatmul.f32.gmra.mxu1 %v2480_v45  ;;  %v5187_v45 = vunpack.c.l.bf16 %v5011_v44  ;;  %v15121_v44 = vld [vmem:[#allocation38_spill] sm:$0xff] }
 0x7d9   :  { %4764 = vmatmul.f32.gmra.mxu2 %v2481_v9  ;;  %4877 = vmatmul.f32.gmra.mxu3 %v2482_v14  ;;  %v2511_v9 = vmax.f32 %v15117_v6, 0.0  ;;  %v2512_v14 = vmax.f32 %v15118_v47, 0.0  ;;  %v2527_v25 = vmax.f32 %v15121_v44, 0.0  ;;  %v2528_v6 = vmax.f32 %v15122_v58, 0.0  ;;  %v15123_v47 = vld [vmem:[#allocation40_spill] sm:$0xff] }
 0x7da   :  { %5368 = vmatpush.msra.mxu0 %v5187_v45  ;;  %v2529_v45 = vmax.f32 %v15123_v47, 0.0  ;;  %v15125_v47 = vld [vmem:[#allocation42_spill] sm:$0xff] }
 0x7db   :  { %v2543_v10 = vmax.f32 %v15125_v47, 0.0  ;;  %v2559_v47 = vmax.f32 %v15129_v15, 0.0 }
 0x7dc   :  { %v12561_v16 = vpop.f32.mrf.mxu2  ;;  %v12563_v30 = vpop.f32.mrf.mxu3 }
 0x7dd   :  { %v12565_v11 = vpop.f32.mrf.mxu0  ;;  %v12567_v57 = vpop.f32.mrf.mxu1 }
 0x7df   :  { %4541 = vmatmul.f32.gmra.mxu0 %v2495_v13  ;;  %v15120_v13 = vld [vmem:[#allocation37_spill] sm:$0xff] }
 0x7e0   :  { %4654 = vmatmul.f32.gmra.mxu1 %v2496_v41  ;;  %v2514_v21 = vmax.f32 %v15120_v13, 0.0  ;;  %v5315_v41 = vunpack.c.l.bf16 %v5075_v34  ;;  %v5007_v34 = vld [vmem:[#allocation2 + $0x160] sm:$0xff] }
 0x7e1   :  { %4767 = vmatmul.f32.gmra.mxu2 %v2497_v3  ;;  %4880 = vmatmul.f32.gmra.mxu3 %v2498_v2  ;;  %v5180_v42 = vunpack.c.h.bf16 %v5007_v34  ;;  %v5179_v40 = vunpack.c.l.bf16 %v5007_v34 }
 0x7e2   :  { %5388 = vmatpush.msra.mxu1 %v5315_v41 }
 0x7e3   :  { %5409 = vmatpush.msra.mxu2 %v5180_v42  ;;  %5369 = vmatpush.msra.mxu0 %v5179_v40  ;;  %v5003_v40 = vld [vmem:[#allocation2 + $0x140] sm:$0xff] }
 0x7e4   :  { %v12573_v54 = vpop.f32.mrf.mxu2  ;;  %v12575_v37 = vpop.f32.mrf.mxu3  ;;  %v5171_v39 = vunpack.c.l.bf16 %v5003_v40 }
 0x7e5   :  { %v12577_v53 = vpop.f32.mrf.mxu0  ;;  %v12579_v52 = vpop.f32.mrf.mxu1 }
 0x7e6   :  { %5370 = vmatpush.msra.mxu0 %v5171_v39 }
 0x7e7   :  { %4544 = vmatmul.f32.gmra.mxu0 %v2511_v9  ;;  %v15124_v9 = vld [vmem:[#allocation41_spill] sm:$0xff] }
 0x7e8   :  { %4657 = vmatmul.f32.gmra.mxu1 %v2512_v14  ;;  %v2530_v14 = vmax.f32 %v15124_v9, 0.0  ;;  %v15126_v9 = vld [vmem:[#allocation43_spill] sm:$0xff] }
 0x7e9   :  { %4770 = vmatmul.f32.gmra.mxu2 %v2513_v48  ;;  %4883 = vmatmul.f32.gmra.mxu3 %v2514_v21  ;;  %v5071_v48 = vld [vmem:[#allocation2 + $0x360] sm:$0xff] }
 0x7ea   :  { %v5308_v13 = vunpack.c.h.bf16 %v5071_v48  ;;  %v5307_v42 = vunpack.c.l.bf16 %v5071_v48 }
 0x7ec   :  { %v12585_v62 = vpop.f32.mrf.mxu2  ;;  %v12587_v3 = vpop.f32.mrf.mxu3  ;;  %5429 = vmatpush.msra.mxu3 %v5308_v13  ;;  %5389 = vmatpush.msra.mxu1 %v5307_v42 }
 0x7ed   :  { %v12589_v31 = vpop.f32.mrf.mxu0  ;;  %v12591_v2 = vpop.f32.mrf.mxu1 }
 0x7ef   :  { %4547 = vmatmul.f32.gmra.mxu0 %v2527_v25  ;;  %v2544_v25 = vmax.f32 %v15126_v9, 0.0  ;;  %v2560_v9 = vmax.f32 %v15130_v0, 0.0  ;;  %v15133_v0 = vld [vmem:[#allocation50_spill] sm:$0xff] }
 0x7f0   :  { %4660 = vmatmul.f32.gmra.mxu1 %v2528_v6  ;;  %v15127_v6 = vld [vmem:[#allocation44_spill] sm:$0xff]  ;;  %v2575_v27 = vmax.f32 %v15133_v0, 0.0 }
 0x7f1   :  { %4773 = vmatmul.f32.gmra.mxu2 %v2529_v45  ;;  %4886 = vmatmul.f32.gmra.mxu3 %v2530_v14  ;;  %v2545_v8 = vmax.f32 %v15127_v6, 0.0  ;;  %v15128_v45 = vld [vmem:[#allocation45_spill] sm:$0xff]  ;;  %v2561_v6 = vmax.f32 %v15131_v43, 0.0  ;;  %v15134_v43 = vld [vmem:[#allocation51_spill] sm:$0xff] }
 0x7f2   :  { %v2546_v14 = vmax.f32 %v15128_v45, 0.0  ;;  %v2562_v45 = vmax.f32 %v15132_v28, 0.0  ;;  %v2576_v46 = vmax.f32 %v15134_v43, 0.0  ;;  %v15135_v28 = vld [vmem:[#allocation52_spill] sm:$0xff] }
 0x7f4   :  { %v12597_v21 = vpop.f32.mrf.mxu2  ;;  %v12599_v41 = vpop.f32.mrf.mxu3 }
 0x7f5   :  { %v4503_v44 = vpop.f32.mrf.mxu0  ;;  %v4616_v58 = vpop.f32.mrf.mxu1 }
 0x7f7   :  { %4550 = vmatmul.f32.gmra.mxu0 %v2543_v10  ;;  %v5172_v10 = vunpack.c.h.bf16 %v5003_v40  ;;  %v4501_v40 = vadd.f32 %v12589_v31, %v12355_v5 }
 0x7f8   :  { %4663 = vmatmul.f32.gmra.mxu1 %v2544_v25 }
 0x7f9   :  { %4776 = vmatmul.f32.gmra.mxu2 %v2545_v8  ;;  %4889 = vmatmul.f32.gmra.mxu3 %v2546_v14  ;;  %v5067_v8 = vld [vmem:[#allocation2 + $0x340] sm:$0xff] }
 0x7fa   :  { %v5300_v48 = vunpack.c.h.bf16 %v5067_v8  ;;  %5410 = vmatpush.msra.mxu2 %v5172_v10  ;;  %v5299_v10 = vunpack.c.l.bf16 %v5067_v8 }
 0x7fc   :  { %v4729_v20 = vpop.f32.mrf.mxu2  ;;  %v12605_v13 = vpop.f32.mrf.mxu3  ;;  %5430 = vmatpush.msra.mxu3 %v5300_v48  ;;  %v4504_v48 = vadd.f32 %v4503_v44, %v12362_v38  ;;  %5390 = vmatpush.msra.mxu1 %v5299_v10  ;;  %v4495_v38 = vadd.f32 %v12565_v11, %v12341_v50  ;;  %v4492_v44 = vadd.f32 %v12553_v29, %v12334_v4 }
 0x7fd   :  { %v4506_v18 = vpop.f32.mrf.mxu0  ;;  %v4619_v34 = vpop.f32.mrf.mxu1  ;;  %v4489_v50 = vadd.f32 %v12539_v63, %v12318_v56 }
 0x7ff   :  { %4553 = vmatmul.f32.gmra.mxu0 %v2559_v47  ;;  %v2577_v47 = vmax.f32 %v15135_v28, 0.0  ;;  %v4498_v28 = vadd.f32 %v12577_v53, %v12348_v19  ;;  %v4999_v53 = vld [vmem:[#allocation2 + $0x120] sm:$0xff] }
 0x800   :  { %4666 = vmatmul.f32.gmra.mxu1 %v2560_v9  ;;  %v15136_v9 = vld [vmem:[#allocation53_spill] sm:$0xff] }
 0x801   :  { %4779 = vmatmul.f32.gmra.mxu2 %v2561_v6  ;;  %4892 = vmatmul.f32.gmra.mxu3 %v2562_v45  ;;  %v2578_v35 = vmax.f32 %v15136_v9, 0.0  ;;  %v4507_v6 = vadd.f32 %v4506_v18, %v12369_v22  ;;  %v4611_v19 = vadd.f32 %v12579_v52, %v4498_v28 }
 0x803   :  { %v4620_v0 = vadd.f32 %v4619_v34, %v4507_v6  ;;  %v4724_v11 = vadd.f32 %v12585_v62, %v4611_v19  ;;  %v5163_v62 = vunpack.c.l.bf16 %v4999_v53 }
 0x804   :  { %v4732_v25 = vpop.f32.mrf.mxu2  ;;  %v4845_v14 = vpop.f32.mrf.mxu3 }
 0x805   :  { %v4509_v42 = vpop.f32.mrf.mxu0  ;;  %v4622_v15 = vpop.f32.mrf.mxu1  ;;  %v4733_v39 = vadd.f32 %v4732_v25, %v4620_v0 }
 0x806   :  { %v4510_v45 = vadd.f32 %v4509_v42, %v12376_v23  ;;  %v4617_v23 = vadd.f32 %v4616_v58, %v4504_v48  ;;  %v5063_v58 = vld [vmem:[#allocation2 + $0x320] sm:$0xff]  ;;  %v5164_v42 = vunpack.c.h.bf16 %v4999_v53 }
 0x807   :  { %4556 = vmatmul.f32.gmra.mxu0 %v2575_v27  ;;  %v4846_v25 = vadd.f32 %v4845_v14, %v4733_v39 }
 0x808   :  { %4669 = vmatmul.f32.gmra.mxu1 %v2576_v46  ;;  %v4623_v43 = vadd.f32 %v4622_v15, %v4510_v45  ;;  %v4730_v5 = vadd.f32 %v4729_v20, %v4617_v23  ;;  %v5292_v15 = vunpack.c.h.bf16 %v5063_v58  ;;  %v4608_v20 = vadd.f32 %v12567_v57, %v4495_v38  ;;  %v5059_v45 = vld [vmem:[#allocation2 + $0x300] sm:$0xff] }
 0x809   :  { %4782 = vmatmul.f32.gmra.mxu2 %v2577_v47  ;;  %4895 = vmatmul.f32.gmra.mxu3 %v2578_v35  ;;  %v4614_v35 = vadd.f32 %v12591_v2, %v4501_v40  ;;  %v4605_v2 = vadd.f32 %v12555_v59, %v4492_v44  ;;  %v4837_v47 = vadd.f32 %v12587_v3, %v4724_v11  ;;  %v5291_v59 = vunpack.c.l.bf16 %v5063_v58 }
 0x80a   :  { %v4843_v4 = vadd.f32 %v12605_v13, %v4730_v5  ;;  %5431 = vmatpush.msra.mxu3 %v5292_v15  ;;  %v4602_v13 = vadd.f32 %v12541_v7, %v4489_v50  ;;  %v5284_v10 = vunpack.c.h.bf16 %v5059_v45  ;;  %v4987_v15 = vld [vmem:[#allocation2 + $0xc0] sm:$0xff] }
 0x80b   :  { %v4727_v34 = vadd.f32 %v12597_v21, %v4614_v35  ;;  %v4721_v21 = vadd.f32 %v12573_v54, %v4608_v20  ;;  %v4718_v14 = vadd.f32 %v12561_v16, %v4605_v2  ;;  %5391 = vmatpush.msra.mxu1 %v5291_v59  ;;  %v5051_v50 = vld [vmem:[#allocation2 + $0x2c0] sm:$0xff]  ;;  %v5140_v20 = vunpack.c.h.bf16 %v4987_v15 }
 0x80c   :  { %v4735_v22 = vpop.f32.mrf.mxu2  ;;  %v4848_v18 = vpop.f32.mrf.mxu3  ;;  %v4715_v54 = vadd.f32 %v12549_v36, %v4602_v13  ;;  %5432 = vmatpush.msra.mxu3 %v5284_v10  ;;  %v5268_v11 = vunpack.c.h.bf16 %v5051_v50 }
 0x80d   :  { %v4736_v27 = vadd.f32 %v4735_v22, %v4623_v43  ;;  %v12622_v46 = vpop.f32.mrf.mxu0  ;;  %v12624_v8 = vpop.f32.mrf.mxu1  ;;  %v4840_v57 = vadd.f32 %v12599_v41, %v4727_v34  ;;  %v4834_v9 = vadd.f32 %v12575_v37, %v4721_v21  ;;  %v4831_v41 = vadd.f32 %v12563_v30, %v4718_v14  ;;  %v4995_v37 = vld [vmem:[#allocation2 + $0x100] sm:$0xff] }
 0x80e   :  { %v4828_v36 = vadd.f32 %v12551_v12, %v4715_v54  ;;  %v5156_v30 = vunpack.c.h.bf16 %v4995_v37  ;;  %v5055_v22 = vld [vmem:[#allocation2 + $0x2e0] sm:$0xff]  ;;  %v5139_v14 = vunpack.c.l.bf16 %v4987_v15 }
 0x80f   :  { %v4849_v31 = vadd.f32 %v4848_v18, %v4736_v27  ;;  %v5276_v18 = vunpack.c.h.bf16 %v5055_v22 }
 0x811   :  { %8684 = vmatpush.lsf.msrb.mxu0 %v4849_v31  ;;  %8750 = vmatpush.lsf.msrb.mxu2 %v4849_v31  ;;  %v5275_v31 = vunpack.c.l.bf16 %v5055_v22 }
 0x812   :  { %5433 = vmatpush.msra.mxu3 %v5276_v18 }
 0x813   :  { %8685 = vmatpush.lsf.msrb.mxu0 %v4846_v25  ;;  %8751 = vmatpush.lsf.msrb.mxu2 %v4846_v25 }
 0x814   :  { %v12638_v29 = vpop.f32.mrf.mxu2  ;;  %v12640_v52 = vpop.f32.mrf.mxu3  ;;  %5434 = vmatpush.msra.mxu3 %v5268_v11 }
 0x815   :  { %15137 = vst [vmem:[#allocation67_spill] sm:$0xff] %v12638_v29  ;;  %5411 = vmatpush.msra.mxu2 %v5164_v42  ;;  %8686 = vmatpush.lsf.msrb.mxu0 %v4843_v4  ;;  %v12644_v56 = vpop.f32.mrf.mxu0  ;;  %v12646_v63 = vpop.f32.mrf.mxu1 }
 0x816   :  { %15138 = vst [vmem:[#allocation68_spill] sm:$0xff] %v12640_v52 }
 0x817   :  { %8752 = vmatpush.lsf.msrb.mxu2 %v4843_v4  ;;  %8687 = vmatpush.lsf.msrb.mxu0 %v4840_v57 }
 0x819   :  { %8753 = vmatpush.lsf.msrb.mxu2 %v4840_v57  ;;  %5371 = vmatpush.msra.mxu0 %v5163_v62 }
 0x81b   :  { %8688 = vmatpush.lsf.msrb.mxu0 %v4837_v47  ;;  %8754 = vmatpush.lsf.msrb.mxu2 %v4837_v47  ;;  %v5267_v47 = vunpack.c.l.bf16 %v5051_v50 }
 0x81c   :  { %v12655_v7 = vpop.f32.mrf.mxu2  ;;  %v12657_v16 = vpop.f32.mrf.mxu3 }
 0x81d   :  { %8689 = vmatpush.lsf.msrb.mxu0 %v4834_v9  ;;  %8755 = vmatpush.lsf.msrb.mxu2 %v4834_v9  ;;  %15139 = vst [vmem:[#allocation69_spill] sm:$0xff] %v12657_v16  ;;  %v12659_v3 = vpop.f32.mrf.mxu0  ;;  %v12661_v6 = vpop.f32.mrf.mxu1  ;;  %v15147_v16 = vld [vmem:[#allocation62_spill] sm:$0xff] }
 0x81f   :  { %8690 = vmatpush.lsf.msrb.mxu0 %v4831_v41  ;;  %8756 = vmatpush.lsf.msrb.mxu2 %v4831_v41 }
 0x821   :  { %8691 = vmatpush.lsf.msrb.mxu0 %v4828_v36  ;;  %8757 = vmatpush.lsf.msrb.mxu2 %v4828_v36 }
 0x823   :  { %8692 = vmatpush.lsf.msrb.mxu0 %v12547_v49  ;;  %8758 = vmatpush.lsf.msrb.mxu2 %v12547_v49  ;;  %v5155_v49 = vunpack.c.l.bf16 %v4995_v37  ;;  %v15142_v37 = vld [vmem:[#allocation59_spill] sm:$0xff] }
 0x824   :  { %v12668_v48 = vpop.f32.mrf.mxu2  ;;  %v12670_v40 = vpop.f32.mrf.mxu3 }
 0x825   :  { %8693 = vmatpush.lsf.msrb.mxu0 %v12537_v60  ;;  %8759 = vmatpush.lsf.msrb.mxu2 %v12537_v60  ;;  %15140 = vst [vmem:[#allocation70_spill] sm:$0xff] %v12670_v40  ;;  %v12674_v12 = vpop.f32.mrf.mxu0  ;;  %v12676_v0 = vpop.f32.mrf.mxu1  ;;  %v5283_v60 = vunpack.c.l.bf16 %v5059_v45 }
 0x827   :  { %5412 = vmatpush.msra.mxu2 %v5156_v30  ;;  %8694 = vmatpush.lsf.msrb.mxu0 %v12530_v33 }
 0x828   :  { %5392 = vmatpush.msra.mxu1 %v5283_v60  ;;  %v5047_v60 = vld [vmem:[#allocation2 + $0x2a0] sm:$0xff] }
 0x829   :  { %8760 = vmatpush.lsf.msrb.mxu2 %v12530_v33  ;;  %8695 = vmatpush.lsf.msrb.mxu0 %v12523_v24 }
 0x82a   :  { %5393 = vmatpush.msra.mxu1 %v5275_v31 }
 0x82b   :  { %8761 = vmatpush.lsf.msrb.mxu2 %v12523_v24  ;;  %8696 = vmatpush.lsf.msrb.mxu0 %v12516_v1 }
 0x82c   :  { %v12684_v33 = vpop.f32.mrf.mxu2  ;;  %v12686_v43 = vpop.f32.mrf.mxu3  ;;  %5394 = vmatpush.msra.mxu1 %v5267_v47  ;;  %v5039_v47 = vld [vmem:[#allocation2 + $0x260] sm:$0xff] }
 0x82d   :  { %8762 = vmatpush.lsf.msrb.mxu2 %v12516_v1  ;;  %5372 = vmatpush.msra.mxu0 %v5155_v49  ;;  %15141 = vst [vmem:[#allocation71_spill] sm:$0xff] %v12686_v43  ;;  %v12690_v24 = vpop.f32.mrf.mxu0  ;;  %v12692_v28 = vpop.f32.mrf.mxu1  ;;  %v4991_v1 = vld [vmem:[#allocation2 + $0xe0] sm:$0xff] }
 0x82e   :  { %v5147_v35 = vunpack.c.l.bf16 %v4991_v1  ;;  %v4983_v49 = vld [vmem:[#allocation2 + $0xa0] sm:$0xff] }
 0x82f   :  { %8697 = vmatpush.lsf.msrb.mxu0 %v12509_v55  ;;  %8763 = vmatpush.lsf.msrb.mxu2 %v12509_v55  ;;  %v5148_v55 = vunpack.c.h.bf16 %v4991_v1  ;;  %v5260_v1 = vunpack.c.h.bf16 %v5047_v60 }
 0x831   :  { %8698 = vmatpush.lsf.msrb.mxu0 %v12502_v61  ;;  %8764 = vmatpush.lsf.msrb.mxu2 %v12502_v61 }
 0x832   :  { %5435 = vmatpush.msra.mxu3 %v5260_v1 }
 0x833   :  { %8699 = vmatpush.lsf.msrb.mxu0 %v12495_v51  ;;  %8765 = vmatpush.lsf.msrb.mxu2 %v12495_v51 }
 0x834   :  { %8700 = vllmr.1.mxu0  ;;  %8766 = vllmr.1.mxu2  ;;  %v12696_v23 = vpop.f32.mrf.mxu2  ;;  %v12698_v39 = vpop.f32.mrf.mxu3 }
 0x835   :  { %5413 = vmatpush.msra.mxu2 %v5148_v55  ;;  %v4527_v61 = vpop.f32.mrf.mxu0  ;;  %v4640_v27 = vpop.f32.mrf.mxu1  ;;  %5373 = vmatpush.msra.mxu0 %v5147_v35  ;;  %v5131_v35 = vunpack.c.l.bf16 %v4983_v49 }
 0x836   :  { %v4528_v38 = vadd.f32 %v4527_v61, %v12418_v17 }
 0x837   :  { %5414 = vmatpush.msra.mxu2 %v5140_v20  ;;  %5374 = vmatpush.msra.mxu0 %v5139_v14  ;;  %v4975_v14 = vld [vmem:[#allocation2 + $0x60] sm:$0xff] }
 0x838   :  { %v4641_v5 = vadd.f32 %v4640_v27, %v4528_v38 }
 0x839   :  { %5375 = vmatpush.msra.mxu0 %v5131_v35 }
 0x83c   :  { %v4753_v51 = vpop.f32.mrf.mxu2  ;;  %v4866_v44 = vpop.f32.mrf.mxu3 }
 0x83d   :  { %v4754_v19 = vadd.f32 %v4753_v51, %v4641_v5  ;;  %v4530_v53 = vpop.f32.mrf.mxu0  ;;  %v4643_v58 = vpop.f32.mrf.mxu1  ;;  %v5259_v5 = vunpack.c.l.bf16 %v5047_v60 }
 0x83e   :  { %v4531_v34 = vadd.f32 %v4530_v53, %v12425_v26  ;;  %v4979_v53 = vld [vmem:[#allocation2 + $0x80] sm:$0xff] }
 0x83f   :  { %v12702_v25 = vadd.f32 %v4866_v44, %v4754_v19  ;;  %5395 = vmatpush.msra.mxu1 %v5259_v5 }
 0x840   :  { %v4644_v42 = vadd.f32 %v4643_v58, %v4531_v34  ;;  %v5043_v58 = vld [vmem:[#allocation2 + $0x280] sm:$0xff]  ;;  %v5124_v34 = vunpack.c.h.bf16 %v4979_v53 }
 0x844   :  { %v4756_v17 = vpop.f32.mrf.mxu2  ;;  %v4869_v4 = vpop.f32.mrf.mxu3 }
 0x845   :  { %v4757_v2 = vadd.f32 %v4756_v17, %v4644_v42  ;;  %v4533_v21 = vpop.f32.mrf.mxu0  ;;  %v4646_v57 = vpop.f32.mrf.mxu1  ;;  %v5252_v42 = vunpack.c.h.bf16 %v5043_v58  ;;  %v5123_v17 = vunpack.c.l.bf16 %v4979_v53 }
 0x846   :  { %v4534_v62 = vadd.f32 %v4533_v21, %v12432_v32  ;;  %v5132_v32 = vunpack.c.h.bf16 %v4983_v49 }
 0x847   :  { %v12705_v13 = vadd.f32 %v4869_v4, %v4757_v2  ;;  %5436 = vmatpush.msra.mxu3 %v5252_v42  ;;  %v5251_v4 = vunpack.c.l.bf16 %v5043_v58  ;;  %5376 = vmatpush.msra.mxu0 %v5123_v17  ;;  %v15143_v42 = vld [vmem:[#allocation65_spill] sm:$0xff] }
 0x848   :  { %v4647_v26 = vadd.f32 %v4646_v57, %v4534_v62  ;;  %5415 = vmatpush.msra.mxu2 %v5132_v32  ;;  %v4971_v32 = vld [vmem:[#allocation2 + $0x40] sm:$0xff] }
 0x849   :  { %5396 = vmatpush.msra.mxu1 %v5251_v4  ;;  %v5107_v35 = vunpack.c.l.bf16 %v4971_v32  ;;  %v15144_v4 = vld [vmem:[#allocation66_spill] sm:$0xff] }
 0x84a   :  { %5416 = vmatpush.msra.mxu2 %v5124_v34 }
 0x84c   :  { %v4759_v59 = vpop.f32.mrf.mxu2  ;;  %v4872_v54 = vpop.f32.mrf.mxu3 }
 0x84d   :  { %v4760_v9 = vadd.f32 %v4759_v59, %v4647_v26  ;;  %v4536_v41 = vpop.f32.mrf.mxu0  ;;  %v4649_v36 = vpop.f32.mrf.mxu1  ;;  %v5116_v26 = vunpack.c.h.bf16 %v4975_v14  ;;  %v5244_v59 = vunpack.c.h.bf16 %v5039_v47 }
 0x84e   :  { %v4537_v45 = vadd.f32 %v4536_v41, %v15142_v37  ;;  %v5243_v37 = vunpack.c.l.bf16 %v5039_v47 }
 0x84f   :  { %v12708_v30 = vadd.f32 %v4872_v54, %v4760_v9  ;;  %5417 = vmatpush.msra.mxu2 %v5116_v26  ;;  %v5115_v54 = vunpack.c.l.bf16 %v4975_v14  ;;  %5437 = vmatpush.msra.mxu3 %v5244_v59  ;;  %v15145_v26 = vld [vmem:[#allocation64_spill] sm:$0xff] }
 0x850   :  { %v4650_v10 = vadd.f32 %v4649_v36, %v4537_v45  ;;  %5397 = vmatpush.msra.mxu1 %v5243_v37 }
 0x851   :  { %5377 = vmatpush.msra.mxu0 %v5115_v54  ;;  %v15146_v54 = vld [vmem:[#allocation63_spill] sm:$0xff] }
 0x853   :  { %5378 = vmatpush.msra.mxu0 %v5107_v35 }
 0x854   :  { %v4762_v22 = vpop.f32.mrf.mxu2  ;;  %v4875_v55 = vpop.f32.mrf.mxu3 }
 0x855   :  { %v4763_v18 = vadd.f32 %v4762_v22, %v4650_v10  ;;  %v12710_v61 = vpop.f32.mrf.mxu0  ;;  %v12712_v27 = vpop.f32.mrf.mxu1  ;;  %v5108_v22 = vunpack.c.h.bf16 %v4971_v32 }
 0x857   :  { %v12714_v38 = vadd.f32 %v4875_v55, %v4763_v18  ;;  %v5035_v55 = vld [vmem:[#allocation2 + $0x240] sm:$0xff]  ;;  %5418 = vmatpush.msra.mxu2 %v5108_v22 }
 0x858   :  { %v5236_v18 = vunpack.c.h.bf16 %v5035_v55  ;;  %v5235_v34 = vunpack.c.l.bf16 %v5035_v55  ;;  %v15148_v55 = vld [vmem:[#allocation61_spill] sm:$0xff] }
 0x85a   :  { %5438 = vmatpush.msra.mxu3 %v5236_v18  ;;  %5398 = vmatpush.msra.mxu1 %v5235_v34 }
 0x85c   :  { %v12716_v31 = vpop.f32.mrf.mxu2  ;;  %v12718_v51 = vpop.f32.mrf.mxu3 }
 0x85d   :  { %v12720_v44 = vpop.f32.mrf.mxu0  ;;  %v12722_v19 = vpop.f32.mrf.mxu1 }
 0x864   :  { %v12724_v15 = vpop.f32.mrf.mxu2  ;;  %v12726_v50 = vpop.f32.mrf.mxu3 }
 0x865   :  { %v4545_v20 = vpop.f32.mrf.mxu0  ;;  %v4658_v11 = vpop.f32.mrf.mxu1 }
 0x866   :  { %v4546_v32 = vadd.f32 %v4545_v20, %v15147_v16  ;;  %v5027_v20 = vld [vmem:[#allocation2 + $0x200] sm:$0xff] }
 0x86c   :  { %v12728_v2 = vpop.f32.mrf.mxu2  ;;  %v12730_v21 = vpop.f32.mrf.mxu3 }
 0x86d   :  { %v4548_v57 = vpop.f32.mrf.mxu0  ;;  %v4661_v62 = vpop.f32.mrf.mxu1 }
 0x86e   :  { %v4549_v37 = vadd.f32 %v4548_v57, %v15146_v54  ;;  %v4967_v57 = vld [vmem:[#allocation2 + $0x20] sm:$0xff] }
 0x86f   :  { %v5100_v16 = vunpack.c.h.bf16 %v4967_v57 }
 0x871   :  { %5419 = vmatpush.msra.mxu2 %v5100_v16 }
 0x874   :  { %v4774_v9 = vpop.f32.mrf.mxu2  ;;  %v12732_v41 = vpop.f32.mrf.mxu3 }
 0x875   :  { %v4551_v36 = vpop.f32.mrf.mxu0  ;;  %v4664_v45 = vpop.f32.mrf.mxu1 }
 0x876   :  { %v4552_v47 = vadd.f32 %v4551_v36, %v15145_v26  ;;  %v4659_v26 = vadd.f32 %v4658_v11, %v4546_v32  ;;  %v5220_v11 = vunpack.c.h.bf16 %v5027_v20 }
 0x878   :  { %v4665_v29 = vadd.f32 %v4664_v45, %v4552_v47  ;;  %v5099_v45 = vunpack.c.l.bf16 %v4967_v57  ;;  %v5024_v47 = vld [vmem:[#allocation2 + $0x1e8] sm:$0xff] }
 0x87a   :  { %5379 = vmatpush.msra.mxu0 %v5099_v45  ;;  %v5000_v45 = vld [vmem:[#allocation2 + $0x128] sm:$0xff] }
 0x87c   :  { %v4777_v10 = vpop.f32.mrf.mxu2  ;;  %v4890_v49 = vpop.f32.mrf.mxu3 }
 0x87d   :  { %v4554_v60 = vpop.f32.mrf.mxu0  ;;  %v4667_v1 = vpop.f32.mrf.mxu1 }
 0x87e   :  { %v4555_v17 = vadd.f32 %v4554_v60, %v15143_v42  ;;  %v4543_v60 = vadd.f32 %v12720_v44, %v15148_v55  ;;  %v4662_v42 = vadd.f32 %v4661_v62, %v4549_v37 }
 0x880   :  { %v4668_v52 = vadd.f32 %v4667_v1, %v4555_v17  ;;  %v5031_v1 = vld [vmem:[#allocation2 + $0x220] sm:$0xff]  ;;  %v4775_v17 = vadd.f32 %v4774_v9, %v4662_v42  ;;  %v4656_v44 = vadd.f32 %v12722_v19, %v4543_v60  ;;  %v15158_v60 = vld [vmem:[#allocation69_spill] sm:$0xff]  ;;  %v5020_v42 = vld [vmem:[#allocation2 + $0x1c8] sm:$0xff] }
 0x882   :  { %v4769_v9 = vadd.f32 %v12724_v15, %v4656_v44  ;;  %v5213_v15 = vunpack.c.l.bf16 %v5024_v47  ;;  %v5166_v44 = vunpack.c.h.bf16 %v5000_v45 }
 0x884   :  { %v4780_v5 = vpop.f32.mrf.mxu2  ;;  %v4893_v53 = vpop.f32.mrf.mxu3 }
 0x885   :  { %v4557_v58 = vpop.f32.mrf.mxu0  ;;  %v4670_v59 = vpop.f32.mrf.mxu1  ;;  %v4781_v18 = vadd.f32 %v4780_v5, %v4668_v52  ;;  %v5228_v52 = vunpack.c.h.bf16 %v5031_v1  ;;  %v5227_v5 = vunpack.c.l.bf16 %v5031_v1 }
 0x886   :  { %v4558_v14 = vadd.f32 %v4557_v58, %v15144_v4  ;;  %v4778_v58 = vadd.f32 %v4777_v10, %v4665_v29  ;;  %v15149_v4 = vld [vmem:[#allocation60_spill] sm:$0xff]  ;;  %v4772_v29 = vadd.f32 %v12728_v2, %v4659_v26  ;;  %v4888_v10 = vadd.f32 %v12732_v41, %v4775_v17  ;;  %v5012_v26 = vld [vmem:[#allocation2 + $0x188] sm:$0xff] }
 0x887   :  { %v4540_v36 = vadd.f32 %v12710_v61, %v15149_v4  ;;  %v5214_v41 = vunpack.c.h.bf16 %v5024_v47  ;;  %v5189_v57 = vunpack.c.l.bf16 %v5012_v26  ;;  %v5190_v1 = vunpack.c.h.bf16 %v5012_v26  ;;  %v5008_v17 = vld [vmem:[#allocation2 + $0x168] sm:$0xff] }
 0x888   :  { %v4671_v22 = vadd.f32 %v4670_v59, %v4558_v14  ;;  %v4894_v14 = vadd.f32 %v4893_v53, %v4781_v18  ;;  %v5219_v53 = vunpack.c.l.bf16 %v5027_v20  ;;  %v15150_v59 = vld [vmem:[#allocation58_spill] sm:$0xff]  ;;  %v5182_v16 = vunpack.c.h.bf16 %v5008_v17  ;;  %v5068_v26 = vld [vmem:[#allocation2 + $0x348] sm:$0xff] }
 0x889   :  { %v4653_v62 = vadd.f32 %v12712_v27, %v4540_v36  ;;  %v4882_v27 = vadd.f32 %v12726_v50, %v4769_v9  ;;  %v4525_v54 = vadd.f32 %v12690_v24, %v15150_v59  ;;  %v15152_v50 = vld [vmem:[#allocation56_spill] sm:$0xff]  ;;  %v15153_v24 = vld [vmem:[#allocation55_spill] sm:$0xff] }
 0x88a   :  { %v4976_v59 = vld [vmem:[#allocation2 + $0x68] sm:$0xff] }
 0x88b   :  { %v4766_v2 = vadd.f32 %v12716_v31, %v4653_v62  ;;  %v4638_v32 = vadd.f32 %v12692_v28, %v4525_v54  ;;  %v5117_v54 = vunpack.c.l.bf16 %v4976_v59 }
 0x88c   :  { %v4783_v40 = vpop.f32.mrf.mxu2  ;;  %v4896_v35 = vpop.f32.mrf.mxu3 }
 0x88d   :  { %v4784_v43 = vadd.f32 %v4783_v40, %v4671_v22  ;;  %v4963_v40 = vld [vmem:[#allocation2] sm:$0xff]  ;;  %v4879_v31 = vadd.f32 %v12718_v51, %v4766_v2  ;;  %v4519_v22 = vadd.f32 %v12659_v3, %v15152_v50  ;;  %v4516_v51 = vadd.f32 %v12644_v56, %v15153_v24  ;;  %v4984_v2 = vld [vmem:[#allocation2 + $0xa8] sm:$0xff] }
 0x88e   :  { %v5092_v61 = vunpack.c.h.bf16 %v4963_v40  ;;  %v5091_v19 = vunpack.c.l.bf16 %v4963_v40  ;;  %v5134_v47 = vunpack.c.h.bf16 %v4984_v2 }
 0x88f   :  { %v4897_v34 = vadd.f32 %v4896_v35, %v4784_v43  ;;  %v4891_v43 = vadd.f32 %v4890_v49, %v4778_v58  ;;  %v4885_v49 = vadd.f32 %v12730_v21, %v4772_v29  ;;  %v15151_v21 = vld [vmem:[#allocation57_spill] sm:$0xff]  ;;  %v15154_v35 = vld [vmem:[#allocation54_spill] sm:$0xff]  ;;  %v4632_v28 = vadd.f32 %v12661_v6, %v4519_v22  ;;  %v4996_v29 = vld [vmem:[#allocation2 + $0x108] sm:$0xff] }
 0x890   :  { %5420 = vmatpush.msra.mxu2 %v5092_v61  ;;  %5380 = vmatpush.msra.mxu0 %v5091_v19  ;;  %v4522_v37 = vadd.f32 %v12674_v12, %v15151_v21  ;;  %v4751_v12 = vadd.f32 %v12696_v23, %v4638_v32  ;;  %v4513_v3 = vadd.f32 %v12622_v46, %v15154_v35  ;;  %v5206_v58 = vunpack.c.h.bf16 %v5020_v42  ;;  %v4972_v21 = vld [vmem:[#allocation2 + $0x48] sm:$0xff] }
 0x891   :  { %8717 = vmatpush.lsf.msrb.mxu1 %v4897_v34  ;;  %8783 = vmatpush.lsf.msrb.mxu3 %v4897_v34  ;;  %v4629_v56 = vadd.f32 %v12646_v63, %v4516_v51  ;;  %v15157_v63 = vld [vmem:[#allocation70_spill] sm:$0xff]  ;;  %v5016_v34 = vld [vmem:[#allocation2 + $0x1a8] sm:$0xff]  ;;  %v5158_v61 = vunpack.c.h.bf16 %v4996_v29  ;;  %v5110_v50 = vunpack.c.h.bf16 %v4972_v21 }
 0x892   :  { %8701 = vmatmul.lmr.bf16.vlgmr.msra.gmra.1.mxu0  ;;  %8767 = vmatmul.lmr.bf16.vlgmr.msra.gmra.1.mxu2  ;;  %v4635_v18 = vadd.f32 %v12676_v0, %v4522_v37  ;;  %v4745_v0 = vadd.f32 %v12668_v48, %v4632_v28  ;;  %v4864_v23 = vadd.f32 %v12698_v39, %v4751_v12  ;;  %v4626_v46 = vadd.f32 %v12624_v8, %v4513_v3  ;;  %v15159_v39 = vld [vmem:[#allocation68_spill] sm:$0xff]  ;;  %v4968_v22 = vld [vmem:[#allocation2 + $0x28] sm:$0xff] }
 0x893   :  { %8718 = vmatpush.lsf.msrb.mxu1 %v4894_v14  ;;  %8784 = vmatpush.lsf.msrb.mxu3 %v4894_v14  ;;  %v4742_v6 = vadd.f32 %v12655_v7, %v4629_v56  ;;  %v5205_v7 = vunpack.c.l.bf16 %v5020_v42  ;;  %v5197_v4 = vunpack.c.l.bf16 %v5016_v34  ;;  %v5198_v36 = vunpack.c.h.bf16 %v5016_v34  ;;  %v5088_v51 = vld [vmem:[#allocation2 + $0x3e8] sm:$0xff]  ;;  %v5025_v28 = vld [vmem:[#allocation2 + $0x1f0] sm:$0xff] }
 0x894   :  { %5445 = vmatpush.msra.mxu0 %v5213_v15  ;;  %5485 = vmatpush.msra.mxu2 %v5214_v41  ;;  %v4748_v55 = vadd.f32 %v12684_v33, %v4635_v18  ;;  %v15155_v33 = vld [vmem:[#allocation71_spill] sm:$0xff]  ;;  %v4858_v48 = vadd.f32 %v15157_v63, %v4745_v0  ;;  %v5181_v14 = vunpack.c.l.bf16 %v5008_v17  ;;  %v5109_v37 = vunpack.c.l.bf16 %v4972_v21 }
 0x895   :  { %5439 = vmatpush.msra.mxu3 %v5228_v52  ;;  %8719 = vmatpush.lsf.msrb.mxu1 %v4891_v43  ;;  %v5004_v52 = vld [vmem:[#allocation2 + $0x148] sm:$0xff]  ;;  %v5101_v32 = vunpack.c.l.bf16 %v4968_v22  ;;  %v5102_v24 = vunpack.c.h.bf16 %v4968_v22  ;;  %v5342_v56 = vunpack.c.h.bf16 %v5088_v51  ;;  %v5215_v0 = vunpack.c.l.bf16 %v5025_v28 }
 0x896   :  { %5446 = vmatpush.msra.mxu0 %v5205_v7  ;;  %5486 = vmatpush.msra.mxu2 %v5206_v58  ;;  %v5173_v40 = vunpack.c.l.bf16 %v5004_v52  ;;  %v5174_v20 = vunpack.c.h.bf16 %v5004_v52  ;;  %v4964_v18 = vld [vmem:[#allocation2 + $0x8] sm:$0xff]  ;;  %v5013_v7 = vld [vmem:[#allocation2 + $0x190] sm:$0xff] }
 0x897   :  { %8785 = vmatpush.lsf.msrb.mxu3 %v4891_v43  ;;  %5399 = vmatpush.msra.mxu1 %v5227_v5  ;;  %v5165_v5 = vunpack.c.l.bf16 %v5000_v45  ;;  %v5157_v43 = vunpack.c.l.bf16 %v4996_v29  ;;  %v5093_v12 = vunpack.c.l.bf16 %v4964_v18  ;;  %v5094_v35 = vunpack.c.h.bf16 %v4964_v18  ;;  %v5084_v3 = vld [vmem:[#allocation2 + $0x3c8] sm:$0xff]  ;;  %v4985_v18 = vld [vmem:[#allocation2 + $0xb0] sm:$0xff] }
 0x898   :  { %5447 = vmatpush.msra.mxu0 %v5197_v4  ;;  %5487 = vmatpush.msra.mxu2 %v5198_v36  ;;  %v5076_v63 = vld [vmem:[#allocation2 + $0x388] sm:$0xff]  ;;  %v5191_v4 = vunpack.c.l.bf16 %v5013_v7  ;;  %v5192_v36 = vunpack.c.h.bf16 %v5013_v7  ;;  %v5302_v45 = vunpack.c.h.bf16 %v5068_v26 }
 0x899   :  { %8720 = vmatpush.lsf.msrb.mxu1 %v4888_v10  ;;  %8786 = vmatpush.lsf.msrb.mxu3 %v4888_v10  ;;  %v4988_v10 = vld [vmem:[#allocation2 + $0xc8] sm:$0xff]  ;;  %v5317_v58 = vunpack.c.l.bf16 %v5076_v63  ;;  %v5318_v34 = vunpack.c.h.bf16 %v5076_v63 }
 0x89a   :  { %5448 = vmatpush.msra.mxu0 %v5189_v57  ;;  %5488 = vmatpush.msra.mxu2 %v5190_v1  ;;  %v5141_v19 = vunpack.c.l.bf16 %v4988_v10  ;;  %v5072_v42 = vld [vmem:[#allocation2 + $0x368] sm:$0xff]  ;;  %v5009_v57 = vld [vmem:[#allocation2 + $0x170] sm:$0xff] }
 0x89b   :  { %5440 = vmatpush.msra.mxu3 %v5220_v11  ;;  %8721 = vmatpush.lsf.msrb.mxu1 %v4885_v49  ;;  %v4992_v11 = vld [vmem:[#allocation2 + $0xe8] sm:$0xff]  ;;  %v5309_v1 = vunpack.c.l.bf16 %v5072_v42  ;;  %v5310_v17 = vunpack.c.h.bf16 %v5072_v42 }
 0x89c   :  { %5449 = vmatpush.msra.mxu0 %v5181_v14  ;;  %5489 = vmatpush.msra.mxu2 %v5182_v16  ;;  %v5149_v62 = vunpack.c.l.bf16 %v4992_v11  ;;  %v5150_v9 = vunpack.c.h.bf16 %v4992_v11  ;;  %v5183_v14 = vunpack.c.l.bf16 %v5009_v57  ;;  %v5184_v16 = vunpack.c.h.bf16 %v5009_v57  ;;  %v5064_v52 = vld [vmem:[#allocation2 + $0x328] sm:$0xff] }
 0x89d   :  { %8787 = vmatpush.lsf.msrb.mxu3 %v4885_v49  ;;  %5400 = vmatpush.msra.mxu1 %v5219_v53  ;;  %v5142_v53 = vunpack.c.h.bf16 %v4988_v10  ;;  %v5133_v49 = vunpack.c.l.bf16 %v4984_v2  ;;  %v5060_v29 = vld [vmem:[#allocation2 + $0x308] sm:$0xff]  ;;  %v5294_v11 = vunpack.c.h.bf16 %v5064_v52 }
 0x89e   :  { %5450 = vmatpush.msra.mxu0 %v5173_v40  ;;  %5490 = vmatpush.msra.mxu2 %v5174_v20  ;;  %v5005_v40 = vld [vmem:[#allocation2 + $0x150] sm:$0xff]  ;;  %v5301_v20 = vunpack.c.l.bf16 %v5068_v26  ;;  %v5056_v10 = vld [vmem:[#allocation2 + $0x2e8] sm:$0xff]  ;;  %v5286_v2 = vunpack.c.h.bf16 %v5060_v29 }
 0x89f   :  { %8722 = vmatpush.lsf.msrb.mxu1 %v4882_v27  ;;  %8788 = vmatpush.lsf.msrb.mxu3 %v4882_v27  ;;  %v4980_v27 = vld [vmem:[#allocation2 + $0x88] sm:$0xff] }
 0x8a0   :  { %5451 = vmatpush.msra.mxu0 %v5165_v5  ;;  %5491 = vmatpush.msra.mxu2 %v5166_v44  ;;  %v5125_v15 = vunpack.c.l.bf16 %v4980_v27  ;;  %v5126_v41 = vunpack.c.h.bf16 %v4980_v27  ;;  %v5175_v5 = vunpack.c.l.bf16 %v5005_v40  ;;  %v5176_v44 = vunpack.c.h.bf16 %v5005_v40  ;;  %v5052_v27 = vld [vmem:[#allocation2 + $0x2c8] sm:$0xff] }
 0x8a1   :  { %8723 = vmatpush.lsf.msrb.mxu1 %v4879_v31  ;;  %8789 = vmatpush.lsf.msrb.mxu3 %v4879_v31  ;;  %v5118_v31 = vunpack.c.h.bf16 %v4976_v59  ;;  %v5278_v59 = vunpack.c.h.bf16 %v5056_v10  ;;  %v5048_v21 = vld [vmem:[#allocation2 + $0x2a8] sm:$0xff]  ;;  %v5270_v22 = vunpack.c.h.bf16 %v5052_v27 }
 0x8a2   :  { %5452 = vmatpush.msra.mxu0 %v5157_v43  ;;  %5492 = vmatpush.msra.mxu2 %v5158_v61  ;;  %v5001_v43 = vld [vmem:[#allocation2 + $0x130] sm:$0xff]  ;;  %v5293_v61 = vunpack.c.l.bf16 %v5064_v52 }
 0x8a3   :  { %8724 = vmatpush.lsf.msrb.mxu1 %v12714_v38  ;;  %8790 = vmatpush.lsf.msrb.mxu3 %v12714_v38  ;;  %v15156_v38 = vld [vmem:[#allocation67_spill] sm:$0xff] }
 0x8a4   :  { %5453 = vmatpush.msra.mxu0 %v5149_v62  ;;  %5493 = vmatpush.msra.mxu2 %v5150_v9  ;;  %v5167_v62 = vunpack.c.l.bf16 %v5001_v43  ;;  %v5168_v9 = vunpack.c.h.bf16 %v5001_v43 }
 0x8a5   :  { %8725 = vmatpush.lsf.msrb.mxu1 %v12708_v30  ;;  %8791 = vmatpush.lsf.msrb.mxu3 %v12708_v30  ;;  %v4861_v30 = vadd.f32 %v15155_v33, %v4748_v55  ;;  %v5341_v55 = vunpack.c.l.bf16 %v5088_v51  ;;  %v5333_v33 = vunpack.c.l.bf16 %v5084_v3  ;;  %v5044_v51 = vld [vmem:[#allocation2 + $0x288] sm:$0xff] }
 0x8a6   :  { %5454 = vmatpush.msra.mxu0 %v5141_v19  ;;  %5494 = vmatpush.msra.mxu2 %v5142_v53  ;;  %v4997_v19 = vld [vmem:[#allocation2 + $0x110] sm:$0xff]  ;;  %v5285_v53 = vunpack.c.l.bf16 %v5060_v29 }
 0x8a7   :  { %8726 = vmatpush.lsf.msrb.mxu1 %v12705_v13  ;;  %8792 = vmatpush.lsf.msrb.mxu3 %v12705_v13  ;;  %v4739_v13 = vadd.f32 %v15156_v38, %v4626_v46  ;;  %v5080_v46 = vld [vmem:[#allocation2 + $0x3a8] sm:$0xff]  ;;  %v5081_v29 = vld [vmem:[#allocation2 + $0x3b0] sm:$0xff] }
 0x8a8   :  { %5455 = vmatpush.msra.mxu0 %v5133_v49  ;;  %5495 = vmatpush.msra.mxu2 %v5134_v47  ;;  %v5159_v49 = vunpack.c.l.bf16 %v4997_v19  ;;  %v5160_v47 = vunpack.c.h.bf16 %v4997_v19  ;;  %v5327_v19 = vunpack.c.l.bf16 %v5081_v29 }
 0x8a9   :  { %8727 = vmatpush.lsf.msrb.mxu1 %v12702_v25  ;;  %8793 = vmatpush.lsf.msrb.mxu3 %v12702_v25  ;;  %v4855_v25 = vadd.f32 %v15158_v60, %v4742_v6  ;;  %v4852_v8 = vadd.f32 %v15159_v39, %v4739_v13  ;;  %v5021_v6 = vld [vmem:[#allocation2 + $0x1d0] sm:$0xff]  ;;  %v5325_v60 = vunpack.c.l.bf16 %v5080_v46 }
 0x8aa   :  { %5456 = vmatpush.msra.mxu0 %v5125_v15  ;;  %5496 = vmatpush.msra.mxu2 %v5126_v41  ;;  %v5207_v38 = vunpack.c.l.bf16 %v5021_v6  ;;  %v5208_v13 = vunpack.c.h.bf16 %v5021_v6  ;;  %v4993_v15 = vld [vmem:[#allocation2 + $0xf0] sm:$0xff]  ;;  %v5277_v41 = vunpack.c.l.bf16 %v5056_v10 }
 0x8ab   :  { %8728 = vmatpush.lsf.msrb.mxu1 %v4864_v23  ;;  %8794 = vmatpush.lsf.msrb.mxu3 %v4864_v23  ;;  %v5216_v23 = vunpack.c.h.bf16 %v5025_v28  ;;  %v5136_v28 = vunpack.c.h.bf16 %v4985_v18 }
 0x8ac   :  { %5457 = vmatpush.msra.mxu0 %v5117_v54  ;;  %5497 = vmatpush.msra.mxu2 %v5118_v31  ;;  %v5151_v54 = vunpack.c.l.bf16 %v4993_v15  ;;  %v5152_v31 = vunpack.c.h.bf16 %v4993_v15 }
 0x8ad   :  { %8729 = vmatpush.lsf.msrb.mxu1 %v4861_v30  ;;  %8795 = vmatpush.lsf.msrb.mxu3 %v4861_v30  ;;  %v5334_v30 = vunpack.c.h.bf16 %v5084_v3  ;;  %v5135_v3 = vunpack.c.l.bf16 %v4985_v18 }
 0x8ae   :  { %5458 = vmatpush.msra.mxu0 %v5109_v37  ;;  %5498 = vmatpush.msra.mxu2 %v5110_v50  ;;  %v4989_v37 = vld [vmem:[#allocation2 + $0xd0] sm:$0xff]  ;;  %v5269_v50 = vunpack.c.l.bf16 %v5052_v27 }
 0x8af   :  { %8730 = vmatpush.lsf.msrb.mxu1 %v4858_v48  ;;  %8796 = vmatpush.lsf.msrb.mxu3 %v4858_v48  ;;  %v5017_v48 = vld [vmem:[#allocation2 + $0x1b0] sm:$0xff] }
 0x8b0   :  { %5459 = vmatpush.msra.mxu0 %v5101_v32  ;;  %5499 = vmatpush.msra.mxu2 %v5102_v24  ;;  %v5199_v39 = vunpack.c.l.bf16 %v5017_v48  ;;  %v5143_v32 = vunpack.c.l.bf16 %v4989_v37  ;;  %v5144_v24 = vunpack.c.h.bf16 %v4989_v37 }
 0x8b1   :  { %8731 = vmatpush.lsf.msrb.mxu1 %v4855_v25  ;;  %8797 = vmatpush.lsf.msrb.mxu3 %v4855_v25  ;;  %v5326_v25 = vunpack.c.h.bf16 %v5080_v46 }
 0x8b2   :  { %5460 = vmatpush.msra.mxu0 %v5093_v12  ;;  %5500 = vmatpush.msra.mxu2 %v5094_v35  ;;  %v5261_v12 = vunpack.c.l.bf16 %v5048_v21  ;;  %v5262_v35 = vunpack.c.h.bf16 %v5048_v21 }
 0x8b3   :  { %8732 = vmatpush.lsf.msrb.mxu1 %v4852_v8  ;;  %8798 = vmatpush.lsf.msrb.mxu3 %v4852_v8  ;;  %v5200_v8 = vunpack.c.h.bf16 %v5017_v48 }
 0x8b4   :  { %8733 = vllmr.1.mxu1  ;;  %8799 = vllmr.1.mxu3 }
 0x8b5   :  { %8702 = vmatmul.lmr.bf16.vlgmr.msra.gmra.1.mxu0  ;;  %8768 = vmatmul.lmr.bf16.vlgmr.msra.gmra.1.mxu2 }
 0x8b6   :  { %5525 = vmatpush.msra.mxu0 %v5215_v0  ;;  %5565 = vmatpush.msra.mxu2 %v5216_v23  ;;  %v5253_v0 = vunpack.c.l.bf16 %v5044_v51  ;;  %v5254_v23 = vunpack.c.h.bf16 %v5044_v51 }
 0x8b8   :  { %5526 = vmatpush.msra.mxu0 %v5207_v38  ;;  %5566 = vmatpush.msra.mxu2 %v5208_v13 }
 0x8ba   :  { %5527 = vmatpush.msra.mxu0 %v5199_v39  ;;  %5567 = vmatpush.msra.mxu2 %v5200_v8 }
 0x8bc   :  { %5528 = vmatpush.msra.mxu0 %v5191_v4  ;;  %5568 = vmatpush.msra.mxu2 %v5192_v36 }
 0x8be   :  { %5529 = vmatpush.msra.mxu0 %v5183_v14  ;;  %5569 = vmatpush.msra.mxu2 %v5184_v16 }
 0x8c0   :  { %5530 = vmatpush.msra.mxu0 %v5175_v5  ;;  %5570 = vmatpush.msra.mxu2 %v5176_v44  ;;  %v5026_v44 = vld [vmem:[#allocation2 + $0x1f8] sm:$0xff] }
 0x8c1   :  { %v5218_v10 = vunpack.c.h.bf16 %v5026_v44 }
 0x8c2   :  { %5531 = vmatpush.msra.mxu0 %v5167_v62  ;;  %5571 = vmatpush.msra.mxu2 %v5168_v9  ;;  %v5077_v62 = vld [vmem:[#allocation2 + $0x390] sm:$0xff]  ;;  %v5217_v9 = vunpack.c.l.bf16 %v5026_v44  ;;  %v4982_v44 = vld [vmem:[#allocation2 + $0x98] sm:$0xff] }
 0x8c3   :  { %v5319_v15 = vunpack.c.l.bf16 %v5077_v62 }
 0x8c4   :  { %5532 = vmatpush.msra.mxu0 %v5159_v49  ;;  %5572 = vmatpush.msra.mxu2 %v5160_v47  ;;  %v5073_v49 = vld [vmem:[#allocation2 + $0x370] sm:$0xff] }
 0x8c5   :  { %v5311_v37 = vunpack.c.l.bf16 %v5073_v49 }
 0x8c6   :  { %5533 = vmatpush.msra.mxu0 %v5151_v54  ;;  %5573 = vmatpush.msra.mxu2 %v5152_v31  ;;  %v5069_v54 = vld [vmem:[#allocation2 + $0x350] sm:$0xff] }
 0x8c7   :  { %v5303_v18 = vunpack.c.l.bf16 %v5069_v54 }
 0x8c8   :  { %5534 = vmatpush.msra.mxu0 %v5143_v32  ;;  %5574 = vmatpush.msra.mxu2 %v5144_v24  ;;  %v5065_v32 = vld [vmem:[#allocation2 + $0x330] sm:$0xff] }
 0x8ca   :  { %5535 = vmatpush.msra.mxu0 %v5135_v3  ;;  %5575 = vmatpush.msra.mxu2 %v5136_v28  ;;  %v5061_v3 = vld [vmem:[#allocation2 + $0x310] sm:$0xff] }
 0x8d5   :  { %8734 = vmatmul.lmr.bf16.vlgmr.msra.gmra.1.mxu1  ;;  %8800 = vmatmul.lmr.bf16.vlgmr.msra.gmra.1.mxu3 }
 0x8d6   :  { %5465 = vmatpush.msra.mxu1 %v5341_v55  ;;  %5505 = vmatpush.msra.mxu3 %v5342_v56  ;;  %v5040_v55 = vld [vmem:[#allocation2 + $0x268] sm:$0xff]  ;;  %v4981_v56 = vld [vmem:[#allocation2 + $0x90] sm:$0xff] }
 0x8d7   :  { %v5127_v46 = vunpack.c.l.bf16 %v4981_v56  ;;  %v5128_v6 = vunpack.c.h.bf16 %v4981_v56  ;;  %v5245_v38 = vunpack.c.l.bf16 %v5040_v55  ;;  %v5246_v13 = vunpack.c.h.bf16 %v5040_v55 }
 0x8d8   :  { %5466 = vmatpush.msra.mxu1 %v5333_v33  ;;  %5506 = vmatpush.msra.mxu3 %v5334_v30  ;;  %v5036_v33 = vld [vmem:[#allocation2 + $0x248] sm:$0xff]  ;;  %v4977_v30 = vld [vmem:[#allocation2 + $0x70] sm:$0xff]  ;;  %v5295_v56 = vunpack.c.l.bf16 %v5065_v32 }
 0x8d9   :  { %v5119_v63 = vunpack.c.l.bf16 %v4977_v30  ;;  %v5120_v48 = vunpack.c.h.bf16 %v4977_v30  ;;  %5536 = vmatpush.msra.mxu0 %v5127_v46  ;;  %5576 = vmatpush.msra.mxu2 %v5128_v6  ;;  %v5237_v39 = vunpack.c.l.bf16 %v5036_v33  ;;  %v5238_v8 = vunpack.c.h.bf16 %v5036_v33  ;;  %v5057_v46 = vld [vmem:[#allocation2 + $0x2f0] sm:$0xff] }
 0x8da   :  { %5467 = vmatpush.msra.mxu1 %v5325_v60  ;;  %5507 = vmatpush.msra.mxu3 %v5326_v25  ;;  %v5032_v60 = vld [vmem:[#allocation2 + $0x228] sm:$0xff]  ;;  %v4973_v25 = vld [vmem:[#allocation2 + $0x50] sm:$0xff]  ;;  %v5287_v30 = vunpack.c.l.bf16 %v5061_v3 }
 0x8db   :  { %v5111_v42 = vunpack.c.l.bf16 %v4973_v25  ;;  %v5112_v7 = vunpack.c.h.bf16 %v4973_v25  ;;  %5537 = vmatpush.msra.mxu0 %v5119_v63  ;;  %5577 = vmatpush.msra.mxu2 %v5120_v48  ;;  %v5229_v4 = vunpack.c.l.bf16 %v5032_v60  ;;  %v5230_v36 = vunpack.c.h.bf16 %v5032_v60  ;;  %v5053_v63 = vld [vmem:[#allocation2 + $0x2d0] sm:$0xff] }
 0x8dc   :  { %5468 = vmatpush.msra.mxu1 %v5317_v58  ;;  %5508 = vmatpush.msra.mxu3 %v5318_v34  ;;  %v5028_v58 = vld [vmem:[#allocation2 + $0x208] sm:$0xff]  ;;  %v4969_v34 = vld [vmem:[#allocation2 + $0x30] sm:$0xff]  ;;  %v5279_v25 = vunpack.c.l.bf16 %v5057_v46 }
 0x8dd   :  { %v5103_v26 = vunpack.c.l.bf16 %v4969_v34  ;;  %v5104_v57 = vunpack.c.h.bf16 %v4969_v34  ;;  %5538 = vmatpush.msra.mxu0 %v5111_v42  ;;  %5578 = vmatpush.msra.mxu2 %v5112_v7  ;;  %v5221_v14 = vunpack.c.l.bf16 %v5028_v58  ;;  %v5222_v16 = vunpack.c.h.bf16 %v5028_v58  ;;  %v5049_v42 = vld [vmem:[#allocation2 + $0x2b0] sm:$0xff] }
 0x8de   :  { %5469 = vmatpush.msra.mxu1 %v5309_v1  ;;  %5509 = vmatpush.msra.mxu3 %v5310_v17  ;;  %v5089_v1 = vld [vmem:[#allocation2 + $0x3f0] sm:$0xff]  ;;  %v5271_v34 = vunpack.c.l.bf16 %v5053_v63 }
 0x8df   :  { %v4965_v17 = vld [vmem:[#allocation2 + $0x10] sm:$0xff]  ;;  %5539 = vmatpush.msra.mxu0 %v5103_v26  ;;  %5579 = vmatpush.msra.mxu2 %v5104_v57  ;;  %v5344_v5 = vunpack.c.h.bf16 %v5089_v1 }
 0x8e0   :  { %5470 = vmatpush.msra.mxu1 %v5301_v20  ;;  %5510 = vmatpush.msra.mxu3 %v5302_v45  ;;  %v5095_v52 = vunpack.c.l.bf16 %v4965_v17  ;;  %v5096_v40 = vunpack.c.h.bf16 %v4965_v17  ;;  %v5085_v20 = vld [vmem:[#allocation2 + $0x3d0] sm:$0xff]  ;;  %v5343_v45 = vunpack.c.l.bf16 %v5089_v1  ;;  %v5263_v17 = vunpack.c.l.bf16 %v5049_v42 }
 0x8e1   :  { %v5335_v43 = vunpack.c.l.bf16 %v5085_v20  ;;  %v5045_v26 = vld [vmem:[#allocation2 + $0x290] sm:$0xff] }
 0x8e2   :  { %5471 = vmatpush.msra.mxu1 %v5293_v61  ;;  %5511 = vmatpush.msra.mxu3 %v5294_v11  ;;  %v5336_v61 = vunpack.c.h.bf16 %v5085_v20  ;;  %v5022_v11 = vld [vmem:[#allocation2 + $0x1d8] sm:$0xff] }
 0x8e3   :  { %5540 = vmatpush.msra.mxu0 %v5095_v52  ;;  %5580 = vmatpush.msra.mxu2 %v5096_v40  ;;  %v5209_v47 = vunpack.c.l.bf16 %v5022_v11  ;;  %v5210_v27 = vunpack.c.h.bf16 %v5022_v11  ;;  %v5041_v52 = vld [vmem:[#allocation2 + $0x270] sm:$0xff] }
 0x8e4   :  { %5472 = vmatpush.msra.mxu1 %v5285_v53  ;;  %5512 = vmatpush.msra.mxu3 %v5286_v2  ;;  %v5328_v53 = vunpack.c.h.bf16 %v5081_v29  ;;  %v5018_v2 = vld [vmem:[#allocation2 + $0x1b8] sm:$0xff]  ;;  %v5037_v29 = vld [vmem:[#allocation2 + $0x250] sm:$0xff]  ;;  %v5247_v11 = vunpack.c.l.bf16 %v5041_v52 }
 0x8e5   :  { %8703 = vmatmul.lmr.bf16.vlgmr.msra.gmra.1.mxu0  ;;  %8769 = vmatmul.lmr.bf16.vlgmr.msra.gmra.1.mxu2  ;;  %v5201_v31 = vunpack.c.l.bf16 %v5018_v2  ;;  %v5202_v21 = vunpack.c.h.bf16 %v5018_v2  ;;  %v5239_v2 = vunpack.c.l.bf16 %v5037_v29 }
 0x8e6   :  { %5473 = vmatpush.msra.mxu1 %v5277_v41  ;;  %5513 = vmatpush.msra.mxu3 %v5278_v59  ;;  %v5320_v41 = vunpack.c.h.bf16 %v5077_v62  ;;  %v5014_v59 = vld [vmem:[#allocation2 + $0x198] sm:$0xff]  ;;  %v5248_v62 = vunpack.c.h.bf16 %v5041_v52 }
 0x8e7   :  { %5605 = vmatpush.msra.mxu0 %v5217_v9  ;;  %5645 = vmatpush.msra.mxu2 %v5218_v10  ;;  %v5193_v24 = vunpack.c.l.bf16 %v5014_v59  ;;  %v5194_v51 = vunpack.c.h.bf16 %v5014_v59  ;;  %v4978_v9 = vld [vmem:[#allocation2 + $0x78] sm:$0xff]  ;;  %v5033_v10 = vld [vmem:[#allocation2 + $0x230] sm:$0xff] }
 0x8e8   :  { %5474 = vmatpush.msra.mxu1 %v5269_v50  ;;  %5514 = vmatpush.msra.mxu3 %v5270_v22  ;;  %v5312_v50 = vunpack.c.h.bf16 %v5073_v49  ;;  %v5010_v22 = vld [vmem:[#allocation2 + $0x178] sm:$0xff]  ;;  %v5240_v49 = vunpack.c.h.bf16 %v5037_v29  ;;  %v5231_v59 = vunpack.c.l.bf16 %v5033_v10 }
 0x8e9   :  { %5606 = vmatpush.msra.mxu0 %v5209_v47  ;;  %5646 = vmatpush.msra.mxu2 %v5210_v27  ;;  %v5185_v28 = vunpack.c.l.bf16 %v5010_v22  ;;  %v5186_v55 = vunpack.c.h.bf16 %v5010_v22  ;;  %v4974_v47 = vld [vmem:[#allocation2 + $0x58] sm:$0xff]  ;;  %v5029_v27 = vld [vmem:[#allocation2 + $0x210] sm:$0xff] }
 0x8ea   :  { %5475 = vmatpush.msra.mxu1 %v5261_v12  ;;  %5515 = vmatpush.msra.mxu3 %v5262_v35  ;;  %v5304_v12 = vunpack.c.h.bf16 %v5069_v54  ;;  %v5006_v35 = vld [vmem:[#allocation2 + $0x158] sm:$0xff]  ;;  %v5232_v54 = vunpack.c.h.bf16 %v5033_v10  ;;  %v5224_v22 = vunpack.c.h.bf16 %v5029_v27 }
 0x8eb   :  { %5607 = vmatpush.msra.mxu0 %v5201_v31  ;;  %5647 = vmatpush.msra.mxu2 %v5202_v21  ;;  %v5177_v6 = vunpack.c.l.bf16 %v5006_v35  ;;  %v5178_v33 = vunpack.c.h.bf16 %v5006_v35  ;;  %v5090_v31 = vld [vmem:[#allocation2 + $0x3f8] sm:$0xff]  ;;  %v5113_v21 = vunpack.c.l.bf16 %v4974_v47 }
 0x8ec   :  { %5476 = vmatpush.msra.mxu1 %v5253_v0  ;;  %5516 = vmatpush.msra.mxu3 %v5254_v23  ;;  %v5296_v0 = vunpack.c.h.bf16 %v5065_v32  ;;  %v5002_v23 = vld [vmem:[#allocation2 + $0x138] sm:$0xff] }
 0x8ed   :  { %5608 = vmatpush.msra.mxu0 %v5193_v24  ;;  %5648 = vmatpush.msra.mxu2 %v5194_v51  ;;  %v5169_v48 = vunpack.c.l.bf16 %v5002_v23  ;;  %v5170_v60 = vunpack.c.h.bf16 %v5002_v23  ;;  %v4970_v32 = vld [vmem:[#allocation2 + $0x38] sm:$0xff]  ;;  %v5345_v51 = vunpack.c.l.bf16 %v5090_v31 }
 0x8ee   :  { %5477 = vmatpush.msra.mxu1 %v5245_v38  ;;  %5517 = vmatpush.msra.mxu3 %v5246_v13  ;;  %v5288_v38 = vunpack.c.h.bf16 %v5061_v3  ;;  %v4998_v13 = vld [vmem:[#allocation2 + $0x118] sm:$0xff]  ;;  %v5105_v3 = vunpack.c.l.bf16 %v4970_v32 }
 0x8ef   :  { %5609 = vmatpush.msra.mxu0 %v5185_v28  ;;  %5649 = vmatpush.msra.mxu2 %v5186_v55  ;;  %v5161_v7 = vunpack.c.l.bf16 %v4998_v13  ;;  %v5162_v58 = vunpack.c.h.bf16 %v4998_v13  ;;  %v5086_v24 = vld [vmem:[#allocation2 + $0x3d8] sm:$0xff]  ;;  %v5106_v28 = vunpack.c.h.bf16 %v4970_v32  ;;  %v12814_v32 = vld [vmem:[#allocation5 + $0x50] sm:$0xff] }
 0x8f0   :  { %5478 = vmatpush.msra.mxu1 %v5237_v39  ;;  %5518 = vmatpush.msra.mxu3 %v5238_v8  ;;  %v5280_v39 = vunpack.c.h.bf16 %v5057_v46  ;;  %v4994_v8 = vld [vmem:[#allocation2 + $0xf8] sm:$0xff]  ;;  %v5337_v55 = vunpack.c.l.bf16 %v5086_v24 }
 0x8f1   :  { %5610 = vmatpush.msra.mxu0 %v5177_v6  ;;  %5650 = vmatpush.msra.mxu2 %v5178_v33  ;;  %v5153_v57 = vunpack.c.l.bf16 %v4994_v8  ;;  %v5154_v1 = vunpack.c.h.bf16 %v4994_v8  ;;  %v5082_v35 = vld [vmem:[#allocation2 + $0x3b8] sm:$0xff] }
 0x8f2   :  { %5479 = vmatpush.msra.mxu1 %v5229_v4  ;;  %5519 = vmatpush.msra.mxu3 %v5230_v36  ;;  %v5272_v4 = vunpack.c.h.bf16 %v5053_v63  ;;  %v4990_v36 = vld [vmem:[#allocation2 + $0xd8] sm:$0xff]  ;;  %v5329_v6 = vunpack.c.l.bf16 %v5082_v35  ;;  %v5330_v33 = vunpack.c.h.bf16 %v5082_v35  ;;  %v12817_v35 = vld [vmem:[#allocation5 + $0x40] sm:$0xff] }
 0x8f3   :  { %5611 = vmatpush.msra.mxu0 %v5169_v48  ;;  %5651 = vmatpush.msra.mxu2 %v5170_v60  ;;  %v5145_v40 = vunpack.c.l.bf16 %v4990_v36  ;;  %v5146_v20 = vunpack.c.h.bf16 %v4990_v36  ;;  %v12787_v48 = vld [vmem:[#allocation5 + $0xe0] sm:$0xff]  ;;  %v5070_v60 = vld [vmem:[#allocation2 + $0x358] sm:$0xff] }
 0x8f4   :  { %5480 = vmatpush.msra.mxu1 %v5221_v14  ;;  %5520 = vmatpush.msra.mxu3 %v5222_v16  ;;  %v5264_v14 = vunpack.c.h.bf16 %v5049_v42  ;;  %v4986_v16 = vld [vmem:[#allocation2 + $0xb8] sm:$0xff]  ;;  %v12790_v42 = vld [vmem:[#allocation5 + $0xd0] sm:$0xff]  ;;  %v12793_v36 = vld [vmem:[#allocation5 + $0xc0] sm:$0xff] }
 0x8f5   :  { %8735 = vmatmul.lmr.bf16.vlgmr.msra.gmra.1.mxu1  ;;  %8801 = vmatmul.lmr.bf16.vlgmr.msra.gmra.1.mxu3  ;;  %v5997_v52 = vunpack.c.l.bf16 %v12793_v36 }
 0x8f6   :  { %5545 = vmatpush.msra.mxu1 %v5343_v45  ;;  %5585 = vmatpush.msra.mxu3 %v5344_v5  ;;  %v5255_v45 = vunpack.c.l.bf16 %v5045_v26  ;;  %v5256_v5 = vunpack.c.h.bf16 %v5045_v26  ;;  %v5062_v26 = vld [vmem:[#allocation2 + $0x318] sm:$0xff] }
 0x8f7   :  { %5612 = vmatpush.msra.mxu0 %v5161_v7  ;;  %5652 = vmatpush.msra.mxu2 %v5162_v58  ;;  %v5066_v7 = vld [vmem:[#allocation2 + $0x338] sm:$0xff]  ;;  %v6005_v58 = vunpack.c.l.bf16 %v12787_v48 }
 0x8f8   :  { %5546 = vmatpush.msra.mxu1 %v5335_v43  ;;  %5586 = vmatpush.msra.mxu3 %v5336_v61  ;;  %v5137_v43 = vunpack.c.l.bf16 %v4986_v16  ;;  %v5138_v61 = vunpack.c.h.bf16 %v4986_v16  ;;  %v5058_v16 = vld [vmem:[#allocation2 + $0x2f8] sm:$0xff] }
 0x8f9   :  { %5613 = vmatpush.msra.mxu0 %v5153_v57  ;;  %5653 = vmatpush.msra.mxu2 %v5154_v1  ;;  %v6001_v57 = vunpack.c.l.bf16 %v12790_v42  ;;  %v5297_v1 = vunpack.c.l.bf16 %v5066_v7  ;;  %v5281_v29 = vunpack.c.l.bf16 %v5058_v16 }
 0x8fa   :  { %5547 = vmatpush.msra.mxu1 %v5327_v19  ;;  %5587 = vmatpush.msra.mxu3 %v5328_v53  ;;  %v5129_v19 = vunpack.c.l.bf16 %v4982_v44  ;;  %v5130_v53 = vunpack.c.h.bf16 %v4982_v44 }
 0x8fb   :  { %5614 = vmatpush.msra.mxu0 %v5145_v40  ;;  %5654 = vmatpush.msra.mxu2 %v5146_v20  ;;  %v5289_v40 = vunpack.c.l.bf16 %v5062_v26  ;;  %v5290_v20 = vunpack.c.h.bf16 %v5062_v26  ;;  %v12841_v26 = vld [vmem:[#allocation5 + $0x10] sm:$0xff] }
 0x8fc   :  { %5548 = vmatpush.msra.mxu1 %v5319_v15  ;;  %5588 = vmatpush.msra.mxu3 %v5320_v41  ;;  %v5121_v15 = vunpack.c.l.bf16 %v4978_v9  ;;  %v5122_v41 = vunpack.c.h.bf16 %v4978_v9 }
 0x8fd   :  { %5615 = vmatpush.msra.mxu0 %v5137_v43  ;;  %5655 = vmatpush.msra.mxu2 %v5138_v61  ;;  %v5282_v43 = vunpack.c.h.bf16 %v5058_v16  ;;  %v12802_v61 = vld [vmem:[#allocation5 + $0x90] sm:$0xff] }
 0x8fe   :  { %5549 = vmatpush.msra.mxu1 %v5311_v37  ;;  %5589 = vmatpush.msra.mxu3 %v5312_v50  ;;  %v5114_v37 = vunpack.c.h.bf16 %v4974_v47  ;;  %v5223_v50 = vunpack.c.l.bf16 %v5029_v27  ;;  %v12808_v27 = vld [vmem:[#allocation5 + $0x70] sm:$0xff] }
 0x8ff   :  { %5616 = vmatpush.msra.mxu0 %v5129_v19  ;;  %5656 = vmatpush.msra.mxu2 %v5130_v53  ;;  %v12805_v19 = vld [vmem:[#allocation5 + $0x80] sm:$0xff]  ;;  %v5046_v53 = vld [vmem:[#allocation2 + $0x298] sm:$0xff] }
 0x900   :  { %5550 = vmatpush.msra.mxu1 %v5303_v18  ;;  %5590 = vmatpush.msra.mxu3 %v5304_v12  ;;  %v5346_v18 = vunpack.c.h.bf16 %v5090_v31  ;;  %v4966_v12 = vld [vmem:[#allocation2 + $0x18] sm:$0xff]  ;;  %v12811_v31 = vld [vmem:[#allocation5 + $0x60] sm:$0xff] }
 0x901   :  { %5617 = vmatpush.msra.mxu0 %v5121_v15  ;;  %5657 = vmatpush.msra.mxu2 %v5122_v41  ;;  %v5097_v23 = vunpack.c.l.bf16 %v4966_v12  ;;  %v5098_v46 = vunpack.c.h.bf16 %v4966_v12  ;;  %v5042_v15 = vld [vmem:[#allocation2 + $0x278] sm:$0xff]  ;;  %v5981_v41 = vunpack.c.l.bf16 %v12805_v19 }
 0x902   :  { %5551 = vmatpush.msra.mxu1 %v5295_v56  ;;  %5591 = vmatpush.msra.mxu3 %v5296_v0  ;;  %v5338_v56 = vunpack.c.h.bf16 %v5086_v24  ;;  %v5078_v0 = vld [vmem:[#allocation2 + $0x398] sm:$0xff] }
 0x903   :  { %5618 = vmatpush.msra.mxu0 %v5113_v21  ;;  %5658 = vmatpush.msra.mxu2 %v5114_v37  ;;  %v5321_v13 = vunpack.c.l.bf16 %v5078_v0  ;;  %v5322_v63 = vunpack.c.h.bf16 %v5078_v0  ;;  %v5038_v21 = vld [vmem:[#allocation2 + $0x258] sm:$0xff]  ;;  %v5977_v37 = vunpack.c.l.bf16 %v12808_v27  ;;  %v12820_v0 = vld [vmem:[#allocation5 + $0x1f0] sm:$0xff] }
 0x904   :  { %5552 = vmatpush.msra.mxu1 %v5287_v30  ;;  %5592 = vmatpush.msra.mxu3 %v5288_v38  ;;  %v12785_v30 = vld [vmem:[#allocation5 + $0xf0] sm:$0xff]  ;;  %v5074_v38 = vld [vmem:[#allocation2 + $0x378] sm:$0xff]  ;;  %v5242_v12 = vunpack.c.h.bf16 %v5038_v21 }
 0x905   :  { %5619 = vmatpush.msra.mxu0 %v5105_v3  ;;  %5659 = vmatpush.msra.mxu2 %v5106_v28  ;;  %v5314_v8 = vunpack.c.h.bf16 %v5074_v38  ;;  %v5034_v24 = vld [vmem:[#allocation2 + $0x238] sm:$0xff]  ;;  %v5969_v28 = vunpack.c.l.bf16 %v12814_v32 }
 0x906   :  { %5553 = vmatpush.msra.mxu1 %v5279_v25  ;;  %5593 = vmatpush.msra.mxu3 %v5280_v39  ;;  %v6009_v25 = vunpack.c.l.bf16 %v12785_v30  ;;  %v5313_v39 = vunpack.c.l.bf16 %v5074_v38  ;;  %v5030_v3 = vld [vmem:[#allocation2 + $0x218] sm:$0xff]  ;;  %v12825_v38 = vld [vmem:[#allocation5 + $0x1e0] sm:$0xff] }
 0x907   :  { %5620 = vmatpush.msra.mxu0 %v5097_v23  ;;  %5660 = vmatpush.msra.mxu2 %v5098_v46  ;;  %v5965_v23 = vunpack.c.l.bf16 %v12817_v35  ;;  %v12823_v46 = vld [vmem:[#allocation5 + $0x30] sm:$0xff] }
 0x908   :  { %5554 = vmatpush.msra.mxu1 %v5271_v34  ;;  %5594 = vmatpush.msra.mxu3 %v5272_v4  ;;  %v5305_v34 = vunpack.c.l.bf16 %v5070_v60  ;;  %v5306_v4 = vunpack.c.h.bf16 %v5070_v60  ;;  %v12829_v60 = vld [vmem:[#allocation5 + $0x1d0] sm:$0xff] }
 0x909   :  { %8704 = vmatmul.lmr.bf16.vlgmr.msra.gmra.1.mxu0  ;;  %8770 = vmatmul.lmr.bf16.vlgmr.msra.gmra.1.mxu2 }
 0x90a   :  { %5555 = vmatpush.msra.mxu1 %v5263_v17  ;;  %5595 = vmatpush.msra.mxu3 %v5264_v14  ;;  %v5298_v17 = vunpack.c.h.bf16 %v5066_v7  ;;  %v12796_v14 = vld [vmem:[#allocation5 + $0xb0] sm:$0xff] }
 0x90b   :  { %6471 = vmatpush.msra.mxu0 %v6009_v25  ;;  %v5993_v44 = vunpack.c.l.bf16 %v12796_v14  ;;  %v6069_v25 = vunpack.c.l.bf16 %v12825_v38 }
 0x90c   :  { %5556 = vmatpush.msra.mxu1 %v5255_v45  ;;  %5596 = vmatpush.msra.mxu3 %v5256_v5  ;;  %v12799_v45 = vld [vmem:[#allocation5 + $0xa0] sm:$0xff]  ;;  %v5054_v5 = vld [vmem:[#allocation2 + $0x2d8] sm:$0xff] }
 0x90d   :  { %6472 = vmatpush.msra.mxu0 %v6005_v58  ;;  %v5273_v9 = vunpack.c.l.bf16 %v5054_v5  ;;  %v5274_v10 = vunpack.c.h.bf16 %v5054_v5  ;;  %v12837_v58 = vld [vmem:[#allocation5 + $0x2f0] sm:$0xff] }
 0x90e   :  { %5557 = vmatpush.msra.mxu1 %v5247_v11  ;;  %5597 = vmatpush.msra.mxu3 %v5248_v62  ;;  %v5050_v11 = vld [vmem:[#allocation2 + $0x2b8] sm:$0xff]  ;;  %v5989_v62 = vunpack.c.l.bf16 %v12799_v45 }
 0x90f   :  { %6473 = vmatpush.msra.mxu0 %v6001_v57  ;;  %v5266_v47 = vunpack.c.h.bf16 %v5050_v11  ;;  %v12843_v57 = vld [vmem:[#allocation5 + $0x1b0] sm:$0xff] }
 0x910   :  { %5558 = vmatpush.msra.mxu1 %v5239_v2  ;;  %5598 = vmatpush.msra.mxu3 %v5240_v49  ;;  %v5985_v2 = vunpack.c.l.bf16 %v12802_v61  ;;  %v5265_v49 = vunpack.c.l.bf16 %v5050_v11  ;;  %v12859_v11 = vld [vmem:[#allocation5 + $0x190] sm:$0xff] }
 0x911   :  { %6474 = vmatpush.msra.mxu0 %v5997_v52 }
 0x912   :  { %5559 = vmatpush.msra.mxu1 %v5231_v59  ;;  %5599 = vmatpush.msra.mxu3 %v5232_v54  ;;  %v5257_v59 = vunpack.c.l.bf16 %v5046_v53  ;;  %v5258_v54 = vunpack.c.h.bf16 %v5046_v53  ;;  %v12866_v53 = vld [vmem:[#allocation5 + $0x180] sm:$0xff] }
 0x913   :  { %6475 = vmatpush.msra.mxu0 %v5993_v44  ;;  %v12855_v44 = vld [vmem:[#allocation5 + $0x2d0] sm:$0xff] }
 0x914   :  { %5560 = vmatpush.msra.mxu1 %v5223_v50  ;;  %5600 = vmatpush.msra.mxu3 %v5224_v22  ;;  %v5249_v50 = vunpack.c.l.bf16 %v5042_v15  ;;  %v5250_v22 = vunpack.c.h.bf16 %v5042_v15  ;;  %v12872_v15 = vld [vmem:[#allocation5 + $0x3e0] sm:$0xff] }
 0x915   :  { %8736 = vmatmul.lmr.bf16.vlgmr.msra.gmra.1.mxu1  ;;  %8802 = vmatmul.lmr.bf16.vlgmr.msra.gmra.1.mxu3 }
 0x916   :  { %5625 = vmatpush.msra.mxu1 %v5345_v51  ;;  %5665 = vmatpush.msra.mxu3 %v5346_v18  ;;  %v5973_v51 = vunpack.c.l.bf16 %v12811_v31  ;;  %v5241_v18 = vunpack.c.l.bf16 %v5038_v21  ;;  %v6197_v21 = vunpack.c.l.bf16 %v12872_v15 }
 0x917   :  { %6476 = vmatpush.msra.mxu0 %v5989_v62  ;;  %v12861_v62 = vld [vmem:[#allocation5 + $0x2c0] sm:$0xff] }
 0x918   :  { %5626 = vmatpush.msra.mxu1 %v5337_v55  ;;  %5666 = vmatpush.msra.mxu3 %v5338_v56  ;;  %v5233_v55 = vunpack.c.l.bf16 %v5034_v24  ;;  %v5234_v56 = vunpack.c.h.bf16 %v5034_v24  ;;  %v12885_v24 = vld [vmem:[#allocation5 + $0x170] sm:$0xff] }
 0x919   :  { %6477 = vmatpush.msra.mxu0 %v5985_v2  ;;  %v6125_v2 = vunpack.c.l.bf16 %v12861_v62 }
 0x91a   :  { %5627 = vmatpush.msra.mxu1 %v5329_v6  ;;  %5667 = vmatpush.msra.mxu3 %v5330_v33  ;;  %v5225_v6 = vunpack.c.l.bf16 %v5030_v3  ;;  %v5226_v33 = vunpack.c.h.bf16 %v5030_v3  ;;  %v6045_v3 = vunpack.c.l.bf16 %v12866_v53 }
 0x91b   :  { %6478 = vmatpush.msra.mxu0 %v5981_v41  ;;  %v12874_v41 = vld [vmem:[#allocation5 + $0x2a0] sm:$0xff] }
 0x91c   :  { %5628 = vmatpush.msra.mxu1 %v5321_v13  ;;  %5668 = vmatpush.msra.mxu3 %v5322_v63  ;;  %v6073_v13 = vunpack.c.l.bf16 %v12820_v0  ;;  %v5961_v63 = vunpack.c.l.bf16 %v12823_v46  ;;  %15160 = vst [vmem:[#allocation72_spill] sm:$0xff] %v12874_v41 }
 0x91d   :  { %6479 = vmatpush.msra.mxu0 %v5977_v37  ;;  %v12879_v37 = vld [vmem:[#allocation5 + $0x3d0] sm:$0xff] }
 0x91e   :  { %5629 = vmatpush.msra.mxu1 %v5313_v39  ;;  %5669 = vmatpush.msra.mxu3 %v5314_v8  ;;  %v12832_v39 = vld [vmem:[#allocation5 + $0x20] sm:$0xff]  ;;  %15161 = vst [vmem:[#allocation73_spill] sm:$0xff] %v12879_v37 }
 0x91f   :  { %6480 = vmatpush.msra.mxu0 %v5973_v51  ;;  %v12834_v8 = vld [vmem:[#allocation5 + $0x1c0] sm:$0xff]  ;;  %v5957_v7 = vunpack.c.l.bf16 %v12832_v39  ;;  %v6117_v51 = vunpack.c.l.bf16 %v12874_v41  ;;  %v13027_v41 = vld [vmem:[#allocation5 + $0x470] sm:$0xff] }
 0x920   :  { %5630 = vmatpush.msra.mxu1 %v5305_v34  ;;  %5670 = vmatpush.msra.mxu3 %v5306_v4  ;;  %v6065_v34 = vunpack.c.l.bf16 %v12829_v60  ;;  %v6137_v4 = vunpack.c.l.bf16 %v12837_v58  ;;  %v6061_v16 = vunpack.c.l.bf16 %v12834_v8  ;;  %15194 = vst [vmem:[#allocation106_spill] sm:$0xff] %v13027_v41 }
 0x921   :  { %6481 = vmatpush.msra.mxu0 %v5969_v28 }
 0x922   :  { %5631 = vmatpush.msra.mxu1 %v5297_v1  ;;  %5671 = vmatpush.msra.mxu3 %v5298_v17  ;;  %v5953_v1 = vunpack.c.l.bf16 %v12841_v26  ;;  %v12846_v17 = vld [vmem:[#allocation5 + $0x2e0] sm:$0xff] }
 0x923   :  { %6482 = vmatpush.msra.mxu0 %v5965_v23  ;;  %v6133_v52 = vunpack.c.l.bf16 %v12846_v17  ;;  %6511 = vmatpush.msra.mxu2 %v6137_v4 }
 0x924   :  { %5632 = vmatpush.msra.mxu1 %v5289_v40  ;;  %5672 = vmatpush.msra.mxu3 %v5290_v20  ;;  %v12850_v40 = vld [vmem:[#allocation5] sm:$0xff] }
 0x925   :  { %6483 = vmatpush.msra.mxu0 %v5961_v63  ;;  %v12852_v20 = vld [vmem:[#allocation5 + $0x1a0] sm:$0xff]  ;;  %v5949_v5 = vunpack.c.l.bf16 %v12850_v40  ;;  %6512 = vmatpush.msra.mxu2 %v6133_v52  ;;  %v12902_v63 = vld [vmem:[#allocation5 + $0x270] sm:$0xff] }
 0x926   :  { %5633 = vmatpush.msra.mxu1 %v5281_v29  ;;  %5673 = vmatpush.msra.mxu3 %v5282_v43  ;;  %v6057_v29 = vunpack.c.l.bf16 %v12843_v57  ;;  %v6129_v43 = vunpack.c.l.bf16 %v12855_v44  ;;  %15167 = vst [vmem:[#allocation79_spill] sm:$0xff] %v12902_v63  ;;  %v12913_v52 = vld [vmem:[#allocation5 + $0x140] sm:$0xff] }
 0x927   :  { %6484 = vmatpush.msra.mxu0 %v5957_v7 }
 0x928   :  { %5634 = vmatpush.msra.mxu1 %v5273_v9  ;;  %5674 = vmatpush.msra.mxu3 %v5274_v10  ;;  %v12863_v9 = vld [vmem:[#allocation5 + $0x3f0] sm:$0xff]  ;;  %v6053_v10 = vunpack.c.l.bf16 %v12852_v20 }
 0x929   :  { %6485 = vmatpush.msra.mxu0 %v5953_v1  ;;  %6513 = vmatpush.msra.mxu2 %v6129_v43 }
 0x92a   :  { %5635 = vmatpush.msra.mxu1 %v5265_v49  ;;  %5675 = vmatpush.msra.mxu3 %v5266_v47  ;;  %v6201_v49 = vunpack.c.l.bf16 %v12863_v9  ;;  %v12870_v47 = vld [vmem:[#allocation5 + $0x2b0] sm:$0xff] }
 0x92b   :  { %6486 = vmatpush.msra.mxu0 %v5949_v5  ;;  %6514 = vmatpush.msra.mxu2 %v6125_v2  ;;  %v6105_v5 = vunpack.c.l.bf16 %v12902_v63  ;;  %v12920_v2 = vld [vmem:[#allocation5 + $0x250] sm:$0xff] }
 0x92c   :  { %5636 = vmatpush.msra.mxu1 %v5257_v59  ;;  %5676 = vmatpush.msra.mxu3 %v5258_v54  ;;  %v6049_v59 = vunpack.c.l.bf16 %v12859_v11  ;;  %v6121_v54 = vunpack.c.l.bf16 %v12870_v47  ;;  %15171 = vst [vmem:[#allocation83_spill] sm:$0xff] %v12920_v2  ;;  %v12975_v63 = vld [vmem:[#allocation5 + $0x4f0] sm:$0xff] }
 0x92e   :  { %5637 = vmatpush.msra.mxu1 %v5249_v50  ;;  %5677 = vmatpush.msra.mxu3 %v5250_v22  ;;  %v12881_v50 = vld [vmem:[#allocation5 + $0x290] sm:$0xff]  ;;  %v12883_v22 = vld [vmem:[#allocation5 + $0x3c0] sm:$0xff] }
 0x92f   :  { %15162 = vst [vmem:[#allocation74_spill] sm:$0xff] %v12881_v50  ;;  %v6189_v28 = vunpack.c.l.bf16 %v12883_v22  ;;  %6515 = vmatpush.msra.mxu2 %v6121_v54  ;;  %v6113_v23 = vunpack.c.l.bf16 %v12881_v50  ;;  %v12925_v54 = vld [vmem:[#allocation5 + $0x370] sm:$0xff] }
 0x930   :  { %5638 = vmatpush.msra.mxu1 %v5241_v18  ;;  %5678 = vmatpush.msra.mxu3 %v5242_v12  ;;  %15163 = vst [vmem:[#allocation75_spill] sm:$0xff] %v12883_v22  ;;  %v6193_v18 = vunpack.c.l.bf16 %v12879_v37  ;;  %v12889_v12 = vld [vmem:[#allocation5 + $0x3b0] sm:$0xff] }
 0x931   :  { %15164 = vst [vmem:[#allocation76_spill] sm:$0xff] %v12889_v12  ;;  %6516 = vmatpush.msra.mxu2 %v6117_v51  ;;  %v6029_v51 = vunpack.c.l.bf16 %v12913_v52  ;;  %v13023_v22 = vld [vmem:[#allocation5 + $0x5b0] sm:$0xff] }
 0x932   :  { %5639 = vmatpush.msra.mxu1 %v5233_v55  ;;  %5679 = vmatpush.msra.mxu3 %v5234_v56  ;;  %v12893_v55 = vld [vmem:[#allocation5 + $0x280] sm:$0xff]  ;;  %15172 = vst [vmem:[#allocation84_spill] sm:$0xff] %v12925_v54 }
 0x933   :  { %15165 = vst [vmem:[#allocation77_spill] sm:$0xff] %v12893_v55  ;;  %v12895_v56 = vld [vmem:[#allocation5 + $0x160] sm:$0xff]  ;;  %v6109_v7 = vunpack.c.l.bf16 %v12893_v55  ;;  %6517 = vmatpush.msra.mxu2 %v6113_v23  ;;  %v6097_v23 = vunpack.c.l.bf16 %v12920_v2 }
 0x934   :  { %5640 = vmatpush.msra.mxu1 %v5225_v6  ;;  %5680 = vmatpush.msra.mxu3 %v5226_v33  ;;  %v12898_v6 = vld [vmem:[#allocation5 + $0x3a0] sm:$0xff]  ;;  %v6041_v33 = vunpack.c.l.bf16 %v12885_v24  ;;  %v6037_v4 = vunpack.c.l.bf16 %v12895_v56  ;;  %15193 = vst [vmem:[#allocation105_spill] sm:$0xff] %v13023_v22 }
 0x935   :  { %8737 = vmatmul.lmr.bf16.vlgmr.msra.gmra.1.mxu1  ;;  %8803 = vmatmul.lmr.bf16.vlgmr.msra.gmra.1.mxu3  ;;  %15166 = vst [vmem:[#allocation78_spill] sm:$0xff] %v12898_v6  ;;  %v6181_v1 = vunpack.c.l.bf16 %v12898_v6  ;;  %v13021_v55 = vld [vmem:[#allocation5 + $0x480] sm:$0xff] }
 0x936   :  { %6491 = vmatpush.msra.mxu1 %v6073_v13  ;;  %6531 = vmatpush.msra.mxu3 %v6201_v49  ;;  %v6185_v13 = vunpack.c.l.bf16 %v12889_v12  ;;  %v12922_v49 = vld [vmem:[#allocation5 + $0x130] sm:$0xff]  ;;  %v13019_v12 = vld [vmem:[#allocation5 + $0x5c0] sm:$0xff]  ;;  %15192 = vst [vmem:[#allocation104_spill] sm:$0xff] %v13021_v55 }
 0x937   :  { %6518 = vmatpush.msra.mxu2 %v6109_v7  ;;  %v6169_v7 = vunpack.c.l.bf16 %v12925_v54  ;;  %15191 = vst [vmem:[#allocation103_spill] sm:$0xff] %v13019_v12  ;;  %v6317_v37 = vunpack.c.l.bf16 %v13019_v12  ;;  %v13039_v12 = vld [vmem:[#allocation5 + $0x450] sm:$0xff] }
 0x938   :  { %6492 = vmatpush.msra.mxu1 %v6069_v25  ;;  %6532 = vmatpush.msra.mxu3 %v6197_v21  ;;  %v12904_v25 = vld [vmem:[#allocation5 + $0x150] sm:$0xff]  ;;  %v12930_v21 = vld [vmem:[%s14006_s4] sm:$0xff]  ;;  %15198 = vst [vmem:[#allocation110_spill] sm:$0xff] %v13039_v12 }
 0x939   :  { %v6033_v43 = vunpack.c.l.bf16 %v12904_v25  ;;  %6519 = vmatpush.msra.mxu2 %v6105_v5  ;;  %v5382_v5 = vpop.f32.mrf.mxu0 }
 0x93a   :  { %6493 = vmatpush.msra.mxu1 %v6065_v34  ;;  %6533 = vmatpush.msra.mxu3 %v6193_v18  ;;  %v12907_v34 = vld [vmem:[#allocation5 + $0x390] sm:$0xff] }
 0x93b   :  { %15168 = vst [vmem:[#allocation80_spill] sm:$0xff] %v12907_v34 }
 0x93c   :  { %6494 = vmatpush.msra.mxu1 %v6061_v16  ;;  %6534 = vmatpush.msra.mxu3 %v6189_v28  ;;  %v12911_v16 = vld [vmem:[#allocation5 + $0x260] sm:$0xff] }
 0x93d   :  { %15169 = vst [vmem:[#allocation81_spill] sm:$0xff] %v12911_v16  ;;  %v12936_v28 = vld [vmem:[#allocation5 + $0x120] sm:$0xff] }
 0x93e   :  { %6495 = vmatpush.msra.mxu1 %v6057_v29  ;;  %v12916_v29 = vld [vmem:[#allocation5 + $0x380] sm:$0xff]  ;;  %6535 = vmatpush.msra.mxu3 %v6185_v13  ;;  %v6025_v13 = vunpack.c.l.bf16 %v12922_v49  ;;  %v6021_v2 = vunpack.c.l.bf16 %v12936_v28 }
 0x93f   :  { %15170 = vst [vmem:[#allocation82_spill] sm:$0xff] %v12916_v29  ;;  %v6173_v18 = vunpack.c.l.bf16 %v12916_v29  ;;  %v12946_v29 = vld [vmem:[#allocation5 + $0x110] sm:$0xff] }
 0x940   :  { %6496 = vmatpush.msra.mxu1 %v6053_v10  ;;  %v6177_v10 = vunpack.c.l.bf16 %v12907_v34  ;;  %6536 = vmatpush.msra.mxu3 %v6181_v1  ;;  %v5349_v1 = vperm.slane %v12930_v21, 0  ;;  %v6017_v54 = vunpack.c.l.bf16 %v12946_v29 }
 0x942   :  { %6497 = vmatpush.msra.mxu1 %v6049_v59  ;;  %v6101_v59 = vunpack.c.l.bf16 %v12911_v16  ;;  %6537 = vmatpush.msra.mxu3 %v6177_v10  ;;  %v12951_v16 = vld [vmem:[#allocation5 + $0x100] sm:$0xff]  ;;  %v5383_v6 = vadd.f32 %v5382_v5, %v5349_v1  ;;  %v5422_v1 = vpop.f32.mrf.mxu2 }
 0x944   :  { %6498 = vmatpush.msra.mxu1 %v6045_v3  ;;  %v12934_v3 = vld [vmem:[#allocation5 + $0x240] sm:$0xff]  ;;  %6520 = vmatpush.msra.mxu2 %v6101_v59 }
 0x945   :  { %15173 = vst [vmem:[#allocation85_spill] sm:$0xff] %v12934_v3  ;;  %v6093_v34 = vunpack.c.l.bf16 %v12934_v3  ;;  %6538 = vmatpush.msra.mxu3 %v6173_v18  ;;  %v12955_v59 = vld [vmem:[#allocation5 + $0x220] sm:$0xff]  ;;  %v12957_v3 = vld [vmem:[#allocation5 + $0x350] sm:$0xff] }
 0x946   :  { %6499 = vmatpush.msra.mxu1 %v6041_v33  ;;  %v12939_v33 = vld [vmem:[#allocation5 + $0x360] sm:$0xff]  ;;  %6521 = vmatpush.msra.mxu2 %v6097_v23  ;;  %15176 = vst [vmem:[#allocation88_spill] sm:$0xff] %v12955_v59  ;;  %v6085_v18 = vunpack.c.l.bf16 %v12955_v59  ;;  %v6161_v23 = vunpack.c.l.bf16 %v12957_v3 }
 0x947   :  { %15174 = vst [vmem:[#allocation86_spill] sm:$0xff] %v12939_v33  ;;  %6539 = vmatpush.msra.mxu3 %v6169_v7  ;;  %v12965_v7 = vld [vmem:[#allocation5 + $0x340] sm:$0xff] }
 0x948   :  { %6500 = vmatpush.msra.mxu1 %v6037_v4  ;;  %v12943_v4 = vld [vmem:[#allocation5 + $0x230] sm:$0xff]  ;;  %6522 = vmatpush.msra.mxu2 %v6093_v34  ;;  %15177 = vst [vmem:[#allocation89_spill] sm:$0xff] %v12957_v3  ;;  %v6157_v5 = vunpack.c.l.bf16 %v12965_v7  ;;  %v12969_v59 = vld [vmem:[#allocation5 + $0x200] sm:$0xff] }
 0x949   :  { %15175 = vst [vmem:[#allocation87_spill] sm:$0xff] %v12943_v4  ;;  %v6089_v10 = vunpack.c.l.bf16 %v12943_v4  ;;  %v12971_v3 = vld [vmem:[#allocation5 + $0x330] sm:$0xff] }
 0x94a   :  { %6501 = vmatpush.msra.mxu1 %v6033_v43  ;;  %v6165_v43 = vunpack.c.l.bf16 %v12939_v33  ;;  %v5350_v33 = vperm.slane %v12930_v21, 1  ;;  %15179 = vst [vmem:[#allocation91_spill] sm:$0xff] %v12965_v7  ;;  %v6153_v4 = vunpack.c.l.bf16 %v12971_v3  ;;  %v6265_v7 = vunpack.c.l.bf16 %v12975_v63 }
 0x94b   :  { %6523 = vmatpush.msra.mxu2 %v6089_v10  ;;  %15180 = vst [vmem:[#allocation92_spill] sm:$0xff] %v12969_v59  ;;  %v6077_v10 = vunpack.c.l.bf16 %v12969_v59  ;;  %v12998_v59 = vld [vmem:[#allocation5 + $0x5f0] sm:$0xff] }
 0x94c   :  { %6502 = vmatpush.msra.mxu1 %v6029_v51  ;;  %v6013_v51 = vunpack.c.l.bf16 %v12951_v16  ;;  %6540 = vmatpush.msra.mxu3 %v6165_v43  ;;  %15181 = vst [vmem:[#allocation93_spill] sm:$0xff] %v12971_v3  ;;  %v12996_v3 = vld [vmem:[#allocation5 + $0x4c0] sm:$0xff] }
 0x94d   :  { %6524 = vmatpush.msra.mxu2 %v6085_v18 }
 0x94e   :  { %6503 = vmatpush.msra.mxu1 %v6025_v13  ;;  %v12963_v13 = vld [vmem:[#allocation5 + $0x210] sm:$0xff]  ;;  %6541 = vmatpush.msra.mxu3 %v6161_v23  ;;  %v5423_v23 = vadd.f32 %v5422_v1, %v5350_v33 }
 0x94f   :  { %15178 = vst [vmem:[#allocation90_spill] sm:$0xff] %v12963_v13  ;;  %v12990_v1 = vld [vmem:[#allocation5 + $0x4d0] sm:$0xff] }
 0x950   :  { %6504 = vmatpush.msra.mxu1 %v6021_v2  ;;  %v6081_v2 = vunpack.c.l.bf16 %v12963_v13  ;;  %6542 = vmatpush.msra.mxu3 %v6157_v5  ;;  %v12987_v5 = vld [vmem:[#allocation5 + $0x310] sm:$0xff] }
 0x951   :  { %15183 = vst [vmem:[#allocation95_spill] sm:$0xff] %v12987_v5  ;;  %v6145_v33 = vunpack.c.l.bf16 %v12987_v5  ;;  %v13015_v5 = vld [vmem:[#allocation5 + $0x490] sm:$0xff] }
 0x952   :  { %v5402_v34 = vpop.f32.mrf.mxu1  ;;  %6505 = vmatpush.msra.mxu1 %v6017_v54  ;;  %6525 = vmatpush.msra.mxu2 %v6081_v2  ;;  %15190 = vst [vmem:[#allocation102_spill] sm:$0xff] %v13015_v5  ;;  %v6241_v50 = vunpack.c.l.bf16 %v13015_v5  ;;  %v13041_v5 = vld [vmem:[#allocation5 + $0x580] sm:$0xff] }
 0x953   :  { %v5403_v43 = vadd.f32 %v5402_v34, %v5383_v6  ;;  %v12980_v6 = vld [vmem:[#allocation5 + $0x320] sm:$0xff]  ;;  %6543 = vmatpush.msra.mxu3 %v6153_v4  ;;  %v6257_v4 = vunpack.c.l.bf16 %v12990_v1  ;;  %15199 = vst [vmem:[#allocation111_spill] sm:$0xff] %v13041_v5 }
 0x954   :  { %6506 = vmatpush.msra.mxu1 %v6013_v51  ;;  %15182 = vst [vmem:[#allocation94_spill] sm:$0xff] %v12980_v6  ;;  %v6149_v18 = vunpack.c.l.bf16 %v12980_v6  ;;  %v12983_v34 = vld [vmem:[#allocation5 + $0x4e0] sm:$0xff]  ;;  %6526 = vmatpush.msra.mxu2 %v6077_v10 }
 0x955   :  { %v12977_v54 = vmax.f32 %v5403_v43, 0.0  ;;  %v6261_v51 = vunpack.c.l.bf16 %v12983_v34  ;;  %v12993_v6 = vld [vmem:[#allocation5 + $0x300] sm:$0xff] }
 0x956   :  { %6544 = vmatpush.msra.mxu3 %v6149_v18  ;;  %15184 = vst [vmem:[#allocation96_spill] sm:$0xff] %v12993_v6  ;;  %v6141_v10 = vunpack.c.l.bf16 %v12993_v6  ;;  %v6329_v18 = vunpack.c.l.bf16 %v12998_v59  ;;  %v13011_v6 = vld [vmem:[#allocation5 + $0x4a0] sm:$0xff] }
 0x957   :  { %6487 = vmatmul.f32.vlgmr.msra.gmra.mxu0 %v12977_v54  ;;  %15188 = vst [vmem:[#allocation100_spill] sm:$0xff] %v13011_v6 }
 0x958   :  { %v5442_v43 = vpop.f32.mrf.mxu3  ;;  %6551 = vmatpush.msra.mxu0 %v6265_v7  ;;  %6545 = vmatpush.msra.mxu3 %v6145_v33  ;;  %v6253_v7 = vunpack.c.l.bf16 %v12996_v3 }
 0x959   :  { %v5443_v2 = vadd.f32 %v5442_v43, %v5423_v23  ;;  %v13004_v23 = vld [vmem:[#allocation5 + $0x4b0] sm:$0xff]  ;;  %v13006_v43 = vld [vmem:[#allocation5 + $0x5e0] sm:$0xff] }
 0x95a   :  { %6552 = vmatpush.msra.mxu0 %v6261_v51  ;;  %6546 = vmatpush.msra.mxu3 %v6141_v10  ;;  %15186 = vst [vmem:[#allocation98_spill] sm:$0xff] %v13004_v23  ;;  %v6249_v51 = vunpack.c.l.bf16 %v13004_v23  ;;  %v6325_v33 = vunpack.c.l.bf16 %v13006_v43  ;;  %v13068_v23 = vld [vmem:[#allocation5 + $0x540] sm:$0xff] }
 0x95b   :  { %v13000_v13 = vmax.f32 %v5443_v2, 0.0  ;;  %15187 = vst [vmem:[#allocation99_spill] sm:$0xff] %v13006_v43  ;;  %v13013_v2 = vld [vmem:[#allocation5 + $0x5d0] sm:$0xff] }
 0x95c   :  { %6553 = vmatpush.msra.mxu0 %v6257_v4  ;;  %15189 = vst [vmem:[#allocation101_spill] sm:$0xff] %v13013_v2  ;;  %v6245_v4 = vunpack.c.l.bf16 %v13011_v6  ;;  %v6321_v10 = vunpack.c.l.bf16 %v13013_v2  ;;  %v6313_v2 = vunpack.c.l.bf16 %v13023_v22  ;;  %v13033_v6 = vld [vmem:[#allocation5 + $0x460] sm:$0xff]  ;;  %v13035_v43 = vld [vmem:[#allocation5 + $0x590] sm:$0xff] }
 0x95d   :  { %15185 = vst [vmem:[#allocation97_spill] sm:$0xff] %v13000_v13  ;;  %6507 = vmatmul.f32.vlgmr.msra.gmra.mxu1 %v13000_v13  ;;  %v13045_v22 = vld [vmem:[#allocation5 + $0x440] sm:$0xff] }
 0x95e   :  { %6554 = vmatpush.msra.mxu0 %v6253_v7  ;;  %6571 = vmatpush.msra.mxu1 %v6329_v18  ;;  %v13029_v7 = vld [vmem:[#allocation5 + $0x5a0] sm:$0xff]  ;;  %v6237_v18 = vunpack.c.l.bf16 %v13021_v55  ;;  %15196 = vst [vmem:[#allocation108_spill] sm:$0xff] %v13033_v6  ;;  %v13047_v55 = vld [vmem:[#allocation5 + $0x570] sm:$0xff] }
 0x95f   :  { %15195 = vst [vmem:[#allocation107_spill] sm:$0xff] %v13029_v7 }
 0x960   :  { %6555 = vmatpush.msra.mxu0 %v6249_v51  ;;  %6572 = vmatpush.msra.mxu1 %v6325_v33  ;;  %15197 = vst [vmem:[#allocation109_spill] sm:$0xff] %v13035_v43  ;;  %v6233_v51 = vunpack.c.l.bf16 %v13027_v41  ;;  %v6309_v33 = vunpack.c.l.bf16 %v13029_v7  ;;  %v13051_v7 = vld [vmem:[#allocation5 + $0x430] sm:$0xff]  ;;  %v13053_v41 = vld [vmem:[#allocation5 + $0x560] sm:$0xff] }
 0x961   :  { %15200 = vst [vmem:[#allocation112_spill] sm:$0xff] %v13045_v22 }
 0x962   :  { %6556 = vmatpush.msra.mxu0 %v6245_v4  ;;  %6573 = vmatpush.msra.mxu1 %v6321_v10  ;;  %v6229_v4 = vunpack.c.l.bf16 %v13033_v6  ;;  %v6305_v10 = vunpack.c.l.bf16 %v13035_v43  ;;  %15201 = vst [vmem:[#allocation113_spill] sm:$0xff] %v13047_v55  ;;  %v5351_v43 = vperm.slane %v12930_v21, 2  ;;  %v13058_v6 = vld [vmem:[#allocation5 + $0x420] sm:$0xff] }
 0x963   :  { %15202 = vst [vmem:[#allocation114_spill] sm:$0xff] %v13051_v7 }
 0x964   :  { %6557 = vmatpush.msra.mxu0 %v6241_v50  ;;  %6574 = vmatpush.msra.mxu1 %v6317_v37  ;;  %v6225_v37 = vunpack.c.l.bf16 %v13039_v12  ;;  %v6301_v50 = vunpack.c.l.bf16 %v13041_v5  ;;  %15203 = vst [vmem:[#allocation115_spill] sm:$0xff] %v13053_v41  ;;  %v6217_v5 = vunpack.c.l.bf16 %v13051_v7  ;;  %v6293_v12 = vunpack.c.l.bf16 %v13053_v41 }
 0x965   :  { %15204 = vst [vmem:[#allocation116_spill] sm:$0xff] %v13058_v6  ;;  %v6285_v7 = vunpack.c.l.bf16 %v13068_v23 }
 0x966   :  { %6558 = vmatpush.msra.mxu0 %v6237_v18  ;;  %6575 = vmatpush.msra.mxu1 %v6313_v2  ;;  %v6221_v2 = vunpack.c.l.bf16 %v13045_v22  ;;  %v6297_v18 = vunpack.c.l.bf16 %v13047_v55  ;;  %v13066_v22 = vld [vmem:[#allocation5 + $0x410] sm:$0xff]  ;;  %15207 = vst [vmem:[#allocation119_spill] sm:$0xff] %v13068_v23 }
 0x967   :  { %15206 = vst [vmem:[#allocation118_spill] sm:$0xff] %v13066_v22 }
 0x968   :  { %6559 = vmatpush.msra.mxu0 %v6233_v51  ;;  %6576 = vmatpush.msra.mxu1 %v6309_v33  ;;  %v13060_v51 = vld [vmem:[#allocation5 + $0x550] sm:$0xff]  ;;  %v5462_v33 = vpop.f32.mrf.mxu0 }
 0x969   :  { %15205 = vst [vmem:[#allocation117_spill] sm:$0xff] %v13060_v51  ;;  %v5463_v55 = vadd.f32 %v5462_v33, %v5351_v43  ;;  %v13079_v33 = vld [vmem:[#allocation5 + $0x520] sm:$0xff] }
 0x96a   :  { %6560 = vmatpush.msra.mxu0 %v6229_v4  ;;  %6577 = vmatpush.msra.mxu1 %v6305_v10  ;;  %v6213_v4 = vunpack.c.l.bf16 %v13058_v6  ;;  %v6289_v10 = vunpack.c.l.bf16 %v13060_v51  ;;  %v13075_v51 = vld [vmem:[#allocation5 + $0x530] sm:$0xff]  ;;  %15210 = vst [vmem:[#allocation122_spill] sm:$0xff] %v13079_v33 }
 0x96b   :  { %15209 = vst [vmem:[#allocation121_spill] sm:$0xff] %v13075_v51  ;;  %v6281_v43 = vunpack.c.l.bf16 %v13075_v51 }
 0x96c   :  { %6561 = vmatpush.msra.mxu0 %v6225_v37  ;;  %6578 = vmatpush.msra.mxu1 %v6301_v50  ;;  %v5352_v37 = vperm.slane %v12930_v21, 3  ;;  %v6209_v50 = vunpack.c.l.bf16 %v13066_v22  ;;  %v13081_v22 = vld [vmem:[#allocation5 + $0x6f0] sm:$0xff] }
 0x96d   :  { %15211 = vst [vmem:[#allocation123_spill] sm:$0xff] %v13081_v22 }
 0x96e   :  { %6562 = vmatpush.msra.mxu0 %v6221_v2  ;;  %6579 = vmatpush.msra.mxu1 %v6297_v18  ;;  %v5502_v2 = vpop.f32.mrf.mxu2  ;;  %v13073_v18 = vld [vmem:[#allocation5 + $0x400] sm:$0xff] }
 0x96f   :  { %15208 = vst [vmem:[#allocation120_spill] sm:$0xff] %v13073_v18  ;;  %v5503_v6 = vadd.f32 %v5502_v2, %v5352_v37  ;;  %v13094_v2 = vld [vmem:[#allocation5 + $0x500] sm:$0xff] }
 0x970   :  { %6563 = vmatpush.msra.mxu0 %v6217_v5  ;;  %6580 = vmatpush.msra.mxu1 %v6293_v12  ;;  %v6205_v12 = vunpack.c.l.bf16 %v13073_v18  ;;  %15215 = vst [vmem:[#allocation127_spill] sm:$0xff] %v13094_v2 }
 0x972   :  { %v5482_v41 = vpop.f32.mrf.mxu1  ;;  %6564 = vmatpush.msra.mxu0 %v6213_v4  ;;  %6581 = vmatpush.msra.mxu1 %v6289_v10  ;;  %v6277_v4 = vunpack.c.l.bf16 %v13079_v33  ;;  %v6393_v10 = vunpack.c.l.bf16 %v13081_v22  ;;  %v13102_v33 = vld [vmem:[#allocation5 + $0x6c0] sm:$0xff] }
 0x973   :  { %v5483_v5 = vadd.f32 %v5482_v41, %v5463_v55  ;;  %v13088_v41 = vld [vmem:[#allocation5 + $0x510] sm:$0xff]  ;;  %v13090_v55 = vld [vmem:[#allocation5 + $0x6e0] sm:$0xff]  ;;  %15218 = vst [vmem:[#allocation130_spill] sm:$0xff] %v13102_v33 }
 0x974   :  { %6565 = vmatpush.msra.mxu0 %v6209_v50  ;;  %6582 = vmatpush.msra.mxu1 %v6285_v7  ;;  %15213 = vst [vmem:[#allocation125_spill] sm:$0xff] %v13088_v41  ;;  %v6273_v50 = vunpack.c.l.bf16 %v13088_v41  ;;  %v13166_v41 = vld [vmem:[#allocation5 + $0x750] sm:$0xff] }
 0x975   :  { %v13083_v23 = vmax.f32 %v5483_v5, 0.0  ;;  %15214 = vst [vmem:[#allocation126_spill] sm:$0xff] %v13090_v55  ;;  %v6389_v5 = vunpack.c.l.bf16 %v13090_v55  ;;  %v13164_v55 = vld [vmem:[#allocation5 + $0x620] sm:$0xff] }
 0x976   :  { %6566 = vmatpush.msra.mxu0 %v6205_v12  ;;  %6583 = vmatpush.msra.mxu1 %v6281_v43  ;;  %v13096_v12 = vld [vmem:[#allocation5 + $0x6d0] sm:$0xff]  ;;  %v6269_v43 = vunpack.c.l.bf16 %v13094_v2  ;;  %15238 = vst [vmem:[#allocation150_spill] sm:$0xff] %v13164_v55 }
 0x977   :  { %15212 = vst [vmem:[#allocation124_spill] sm:$0xff] %v13083_v23  ;;  %6527 = vmatmul.f32.vlgmr.msra.gmra.mxu2 %v13083_v23  ;;  %v6385_v23 = vunpack.c.l.bf16 %v13096_v12  ;;  %v13158_v2 = vld [vmem:[#allocation5 + $0x630] sm:$0xff] }
 0x978   :  { %v5522_v7 = vpop.f32.mrf.mxu3  ;;  %6584 = vmatpush.msra.mxu1 %v6277_v4  ;;  %6591 = vmatpush.msra.mxu2 %v6393_v10  ;;  %15216 = vst [vmem:[#allocation128_spill] sm:$0xff] %v13096_v12  ;;  %v13104_v4 = vld [vmem:[#allocation5 + $0x7f0] sm:$0xff]  ;;  %v13115_v12 = vld [vmem:[#allocation5 + $0x6a0] sm:$0xff] }
 0x979   :  { %v5523_v37 = vadd.f32 %v5522_v7, %v5503_v6  ;;  %15219 = vst [vmem:[#allocation131_spill] sm:$0xff] %v13104_v4  ;;  %v6381_v6 = vunpack.c.l.bf16 %v13102_v33  ;;  %v6457_v10 = vunpack.c.l.bf16 %v13104_v4  ;;  %v13109_v7 = vld [vmem:[#allocation5 + $0x6b0] sm:$0xff]  ;;  %v13123_v33 = vld [vmem:[#allocation5 + $0x7c0] sm:$0xff] }
 0x97a   :  { %6585 = vmatpush.msra.mxu1 %v6273_v50  ;;  %6592 = vmatpush.msra.mxu2 %v6389_v5  ;;  %15220 = vst [vmem:[#allocation132_spill] sm:$0xff] %v13109_v7  ;;  %v13111_v50 = vld [vmem:[#allocation5 + $0x7e0] sm:$0xff]  ;;  %v6377_v5 = vunpack.c.l.bf16 %v13109_v7  ;;  %v13121_v4 = vld [vmem:[#allocation5 + $0x690] sm:$0xff] }
 0x97b   :  { %v13100_v22 = vmax.f32 %v5523_v37, 0.0  ;;  %15221 = vst [vmem:[#allocation133_spill] sm:$0xff] %v13111_v50  ;;  %v6453_v37 = vunpack.c.l.bf16 %v13111_v50  ;;  %v13127_v50 = vld [vmem:[#allocation5 + $0x680] sm:$0xff]  ;;  %v13129_v7 = vld [vmem:[#allocation5 + $0x7b0] sm:$0xff] }
 0x97c   :  { %6586 = vmatpush.msra.mxu1 %v6269_v43  ;;  %6593 = vmatpush.msra.mxu2 %v6385_v23  ;;  %15222 = vst [vmem:[#allocation134_spill] sm:$0xff] %v13115_v12  ;;  %v13117_v43 = vld [vmem:[#allocation5 + $0x7d0] sm:$0xff]  ;;  %v6373_v23 = vunpack.c.l.bf16 %v13115_v12  ;;  %v13135_v12 = vld [vmem:[#allocation5 + $0x7a0] sm:$0xff] }
 0x97d   :  { %15217 = vst [vmem:[#allocation129_spill] sm:$0xff] %v13100_v22  ;;  %6547 = vmatmul.f32.vlgmr.msra.gmra.mxu3 %v13100_v22  ;;  %v6449_v22 = vunpack.c.l.bf16 %v13117_v43 }
 0x97e   :  { %6594 = vmatpush.msra.mxu2 %v6381_v6  ;;  %6611 = vmatpush.msra.mxu3 %v6457_v10  ;;  %15223 = vst [vmem:[#allocation135_spill] sm:$0xff] %v13117_v43  ;;  %v6369_v6 = vunpack.c.l.bf16 %v13121_v4  ;;  %v6445_v10 = vunpack.c.l.bf16 %v13123_v33  ;;  %v13133_v43 = vld [vmem:[#allocation5 + $0x670] sm:$0xff] }
 0x97f   :  { %15224 = vst [vmem:[#allocation136_spill] sm:$0xff] %v13121_v4  ;;  %v13141_v4 = vld [vmem:[#allocation5 + $0x790] sm:$0xff] }
 0x980   :  { %6595 = vmatpush.msra.mxu2 %v6377_v5  ;;  %6612 = vmatpush.msra.mxu3 %v6453_v37  ;;  %15225 = vst [vmem:[#allocation137_spill] sm:$0xff] %v13123_v33  ;;  %v6365_v5 = vunpack.c.l.bf16 %v13127_v50  ;;  %v6441_v37 = vunpack.c.l.bf16 %v13129_v7  ;;  %v13139_v33 = vld [vmem:[#allocation5 + $0x660] sm:$0xff] }
 0x981   :  { %15226 = vst [vmem:[#allocation138_spill] sm:$0xff] %v13127_v50  ;;  %v13147_v50 = vld [vmem:[#allocation5 + $0x780] sm:$0xff] }
 0x982   :  { %6596 = vmatpush.msra.mxu2 %v6373_v23  ;;  %6613 = vmatpush.msra.mxu3 %v6449_v22  ;;  %15227 = vst [vmem:[#allocation139_spill] sm:$0xff] %v13129_v7  ;;  %v6361_v22 = vunpack.c.l.bf16 %v13133_v43  ;;  %v6437_v23 = vunpack.c.l.bf16 %v13135_v12  ;;  %v13145_v7 = vld [vmem:[#allocation5 + $0x650] sm:$0xff] }
 0x983   :  { %15228 = vst [vmem:[#allocation140_spill] sm:$0xff] %v13133_v43  ;;  %v13152_v43 = vld [vmem:[#allocation5 + $0x640] sm:$0xff] }
 0x984   :  { %6597 = vmatpush.msra.mxu2 %v6369_v6  ;;  %6614 = vmatpush.msra.mxu3 %v6445_v10  ;;  %15229 = vst [vmem:[#allocation141_spill] sm:$0xff] %v13135_v12  ;;  %v6357_v6 = vunpack.c.l.bf16 %v13139_v33  ;;  %v6433_v10 = vunpack.c.l.bf16 %v13141_v4  ;;  %v5353_v12 = vperm.slane %v12930_v21, 4 }
 0x985   :  { %15230 = vst [vmem:[#allocation142_spill] sm:$0xff] %v13139_v33 }
 0x986   :  { %6598 = vmatpush.msra.mxu2 %v6365_v5  ;;  %6615 = vmatpush.msra.mxu3 %v6441_v37  ;;  %15231 = vst [vmem:[#allocation143_spill] sm:$0xff] %v13141_v4  ;;  %v6353_v5 = vunpack.c.l.bf16 %v13145_v7  ;;  %v6429_v37 = vunpack.c.l.bf16 %v13147_v50  ;;  %v6349_v4 = vunpack.c.l.bf16 %v13152_v43 }
 0x987   :  { %15232 = vst [vmem:[#allocation144_spill] sm:$0xff] %v13145_v7 }
 0x988   :  { %6599 = vmatpush.msra.mxu2 %v6361_v22  ;;  %6616 = vmatpush.msra.mxu3 %v6437_v23  ;;  %15233 = vst [vmem:[#allocation145_spill] sm:$0xff] %v13147_v50  ;;  %v13154_v22 = vld [vmem:[#allocation5 + $0x770] sm:$0xff]  ;;  %v5542_v23 = vpop.f32.mrf.mxu0 }
 0x989   :  { %15234 = vst [vmem:[#allocation146_spill] sm:$0xff] %v13152_v43  ;;  %v6425_v33 = vunpack.c.l.bf16 %v13154_v22  ;;  %v5543_v7 = vadd.f32 %v5542_v23, %v5353_v12  ;;  %v13171_v43 = vld [vmem:[#allocation5 + $0x610] sm:$0xff] }
 0x98a   :  { %6600 = vmatpush.msra.mxu2 %v6357_v6  ;;  %6617 = vmatpush.msra.mxu3 %v6433_v10  ;;  %15235 = vst [vmem:[#allocation147_spill] sm:$0xff] %v13154_v22  ;;  %v13160_v6 = vld [vmem:[#allocation5 + $0x760] sm:$0xff]  ;;  %v6345_v10 = vunpack.c.l.bf16 %v13158_v2  ;;  %v5354_v22 = vperm.slane %v12930_v21, 5  ;;  %v6337_v12 = vunpack.c.l.bf16 %v13171_v43 }
 0x98b   :  { %15236 = vst [vmem:[#allocation148_spill] sm:$0xff] %v13158_v2  ;;  %v6421_v50 = vunpack.c.l.bf16 %v13160_v6  ;;  %v5582_v2 = vpop.f32.mrf.mxu2 }
 0x98c   :  { %6601 = vmatpush.msra.mxu2 %v6353_v5  ;;  %6618 = vmatpush.msra.mxu3 %v6429_v37  ;;  %15237 = vst [vmem:[#allocation149_spill] sm:$0xff] %v13160_v6  ;;  %v6341_v5 = vunpack.c.l.bf16 %v13164_v55  ;;  %v6417_v37 = vunpack.c.l.bf16 %v13166_v41  ;;  %v13179_v55 = vld [vmem:[#allocation5 + $0x730] sm:$0xff] }
 0x98d   :  { %15239 = vst [vmem:[#allocation151_spill] sm:$0xff] %v13166_v41  ;;  %v6010_v41 = vunpack.c.h.bf16 %v12785_v30  ;;  %v6409_v51 = vunpack.c.l.bf16 %v13179_v55 }
 0x98e   :  { %6602 = vmatpush.msra.mxu2 %v6349_v4  ;;  %6619 = vmatpush.msra.mxu3 %v6425_v33  ;;  %v13173_v33 = vld [vmem:[#allocation5 + $0x740] sm:$0xff] }
 0x98f   :  { %15240 = vst [vmem:[#allocation152_spill] sm:$0xff] %v13173_v33  ;;  %v6413_v23 = vunpack.c.l.bf16 %v13173_v33  ;;  %v6006_v33 = vunpack.c.h.bf16 %v12787_v48  ;;  %v6074_v48 = vunpack.c.h.bf16 %v12820_v0  ;;  %v6066_v0 = vunpack.c.h.bf16 %v12829_v60 }
 0x990   :  { %6603 = vmatpush.msra.mxu2 %v6345_v10  ;;  %6620 = vmatpush.msra.mxu3 %v6421_v50  ;;  %v13177_v50 = vld [vmem:[#allocation5 + $0x600] sm:$0xff]  ;;  %v5974_v60 = vunpack.c.h.bf16 %v12811_v31  ;;  %v5962_v31 = vunpack.c.h.bf16 %v12823_v46 }
 0x991   :  { %v6333_v6 = vunpack.c.l.bf16 %v13177_v50 }
 0x992   :  { %v5562_v4 = vpop.f32.mrf.mxu1  ;;  %6604 = vmatpush.msra.mxu2 %v6341_v5  ;;  %6621 = vmatpush.msra.mxu3 %v6417_v37  ;;  %v5583_v5 = vadd.f32 %v5582_v2, %v5354_v22  ;;  %v13186_v37 = vld [vmem:[#allocation5 + $0x720] sm:$0xff]  ;;  %v5998_v22 = vunpack.c.h.bf16 %v12793_v36  ;;  %v5990_v36 = vunpack.c.h.bf16 %v12799_v45  ;;  %v6054_v45 = vunpack.c.h.bf16 %v12852_v20 }
 0x993   :  { %v5563_v10 = vadd.f32 %v5562_v4, %v5543_v7  ;;  %v6405_v7 = vunpack.c.l.bf16 %v13186_v37  ;;  %v6002_v4 = vunpack.c.h.bf16 %v12790_v42  ;;  %v5994_v42 = vunpack.c.h.bf16 %v12796_v14 }
 0x994   :  { %6605 = vmatpush.msra.mxu2 %v6337_v12  ;;  %6622 = vmatpush.msra.mxu3 %v6413_v23  ;;  %v13192_v12 = vld [vmem:[#allocation5 + $0x710] sm:$0xff]  ;;  %v5982_v14 = vunpack.c.h.bf16 %v12805_v19  ;;  %v6046_v19 = vunpack.c.h.bf16 %v12866_v53  ;;  %v5355_v20 = vperm.slane %v12930_v21, 6  ;;  %v6034_v53 = vunpack.c.h.bf16 %v12904_v25 }
 0x995   :  { %v13184_v18 = vmax.f32 %v5563_v10, 0.0  ;;  %v6401_v2 = vunpack.c.l.bf16 %v13192_v12  ;;  %v6070_v10 = vunpack.c.h.bf16 %v12825_v38  ;;  %v6058_v38 = vunpack.c.h.bf16 %v12843_v57 }
 0x996   :  { %6606 = vmatpush.msra.mxu2 %v6333_v6  ;;  %6623 = vmatpush.msra.mxu3 %v6409_v51  ;;  %v13197_v51 = vld [vmem:[#allocation5 + $0x700] sm:$0xff]  ;;  %v5966_v57 = vunpack.c.h.bf16 %v12817_v35  ;;  %v5954_v35 = vunpack.c.h.bf16 %v12841_v26  ;;  %v6022_v25 = vunpack.c.h.bf16 %v12936_v28  ;;  %v6014_v28 = vunpack.c.h.bf16 %v12951_v16 }
 0x997   :  { %15241 = vst [vmem:[#allocation153_spill] sm:$0xff] %v13184_v18  ;;  %6567 = vmatmul.f32.vlgmr.msra.gmra.mxu0 %v13184_v18  ;;  %v6330_v16 = vunpack.c.h.bf16 %v12998_v59 }
 0x998   :  { %6631 = vmatpush.msra.mxu0 %v6010_v41  ;;  %v5602_v30 = vpop.f32.mrf.mxu3  ;;  %6624 = vmatpush.msra.mxu3 %v6405_v7  ;;  %v6397_v41 = vunpack.c.l.bf16 %v13197_v51  ;;  %v5978_v7 = vunpack.c.h.bf16 %v12808_v27  ;;  %v6042_v27 = vunpack.c.h.bf16 %v12885_v24  ;;  %v6030_v24 = vunpack.c.h.bf16 %v12913_v52 }
 0x999   :  { %v5603_v23 = vadd.f32 %v5602_v30, %v5583_v5  ;;  %v6062_v5 = vunpack.c.h.bf16 %v12834_v8  ;;  %v5970_v8 = vunpack.c.h.bf16 %v12814_v32  ;;  %v5622_v30 = vpop.f32.mrf.mxu0  ;;  %v5958_v32 = vunpack.c.h.bf16 %v12832_v39 }
 0x99a   :  { %6632 = vmatpush.msra.mxu0 %v6006_v33  ;;  %6625 = vmatpush.msra.mxu3 %v6401_v2  ;;  %v5986_v33 = vunpack.c.h.bf16 %v12802_v61  ;;  %v6050_v61 = vunpack.c.h.bf16 %v12859_v11  ;;  %v6038_v11 = vunpack.c.h.bf16 %v12895_v56  ;;  %v5950_v56 = vunpack.c.h.bf16 %v12850_v40 }
 0x99b   :  { %v13199_v6 = vmax.f32 %v5603_v23, 0.0  ;;  %v5356_v23 = vperm.slane %v12930_v21, 7  ;;  %v6026_v2 = vunpack.c.h.bf16 %v12922_v49  ;;  %v6266_v21 = vunpack.c.h.bf16 %v12975_v63 }
 0x99c   :  { %6633 = vmatpush.msra.mxu0 %v6002_v4  ;;  %6626 = vmatpush.msra.mxu3 %v6397_v41  ;;  %v5623_v4 = vadd.f32 %v5622_v30, %v5355_v20  ;;  %v6018_v41 = vunpack.c.h.bf16 %v12946_v29  ;;  %v6134_v40 = vunpack.c.h.bf16 %v12846_v17  ;;  %v6262_v49 = vunpack.c.h.bf16 %v12983_v34  ;;  %v15255_v30 = vld [vmem:[#allocation76_spill] sm:$0xff] }
 0x99d   :  { %15242 = vst [vmem:[#allocation154_spill] sm:$0xff] %v13199_v6  ;;  %6587 = vmatmul.f32.vlgmr.msra.gmra.mxu1 %v13199_v6  ;;  %v6126_v17 = vunpack.c.h.bf16 %v12861_v62  ;;  %v6202_v34 = vunpack.c.h.bf16 %v12863_v9 }
 0x99e   :  { %6634 = vmatpush.msra.mxu0 %v5998_v22  ;;  %6651 = vmatpush.msra.mxu1 %v6074_v48  ;;  %v5662_v22 = vpop.f32.mrf.mxu2  ;;  %v6138_v48 = vunpack.c.h.bf16 %v12837_v58 }
 0x99f   :  { %v5663_v52 = vadd.f32 %v5662_v22, %v5356_v23  ;;  %v15258_v23 = vld [vmem:[#allocation79_spill] sm:$0xff]  ;;  %v15260_v22 = vld [vmem:[#allocation106_spill] sm:$0xff] }
 0x9a0   :  { %6635 = vmatpush.msra.mxu0 %v5994_v42  ;;  %6652 = vmatpush.msra.mxu1 %v6070_v10  ;;  %v6130_v42 = vunpack.c.h.bf16 %v12855_v44  ;;  %v6258_v10 = vunpack.c.h.bf16 %v12990_v1  ;;  %v6122_v44 = vunpack.c.h.bf16 %v12870_v47  ;;  %v6198_v1 = vunpack.c.h.bf16 %v12872_v15  ;;  %v15250_v15 = vld [vmem:[#allocation74_spill] sm:$0xff] }
 0x9a2   :  { %6636 = vmatpush.msra.mxu0 %v5990_v36  ;;  %6653 = vmatpush.msra.mxu1 %v6066_v0  ;;  %v6254_v36 = vunpack.c.h.bf16 %v12996_v3  ;;  %v15244_v0 = vld [vmem:[#allocation98_spill] sm:$0xff] }
 0x9a3   :  { %v6250_v62 = vunpack.c.h.bf16 %v15244_v0  ;;  %v15270_v0 = vld [vmem:[#allocation85_spill] sm:$0xff] }
 0x9a4   :  { %6637 = vmatpush.msra.mxu0 %v5986_v33  ;;  %6654 = vmatpush.msra.mxu1 %v6062_v5  ;;  %v15245_v33 = vld [vmem:[#allocation99_spill] sm:$0xff]  ;;  %v15246_v5 = vld [vmem:[#allocation72_spill] sm:$0xff] }
 0x9a5   :  { %v6326_v9 = vunpack.c.h.bf16 %v15245_v33  ;;  %v6118_v3 = vunpack.c.h.bf16 %v15246_v5  ;;  %v15271_v33 = vld [vmem:[#allocation84_spill] sm:$0xff] }
 0x9a6   :  { %6638 = vmatpush.msra.mxu0 %v5982_v14  ;;  %6655 = vmatpush.msra.mxu1 %v6058_v38  ;;  %v15247_v14 = vld [vmem:[#allocation73_spill] sm:$0xff]  ;;  %v15248_v38 = vld [vmem:[#allocation100_spill] sm:$0xff] }
 0x9a7   :  { %v6194_v59 = vunpack.c.h.bf16 %v15247_v14  ;;  %v6246_v47 = vunpack.c.h.bf16 %v15248_v38  ;;  %v15272_v5 = vld [vmem:[#allocation112_spill] sm:$0xff]  ;;  %v15273_v14 = vld [vmem:[#allocation113_spill] sm:$0xff]  ;;  %v15274_v38 = vld [vmem:[#allocation87_spill] sm:$0xff] }
 0x9a8   :  { %6639 = vmatpush.msra.mxu0 %v5978_v7  ;;  %6656 = vmatpush.msra.mxu1 %v6054_v45  ;;  %v15249_v7 = vld [vmem:[#allocation101_spill] sm:$0xff] }
 0x9a9   :  { %v6322_v45 = vunpack.c.h.bf16 %v15249_v7  ;;  %v15275_v7 = vld [vmem:[#allocation86_spill] sm:$0xff] }
 0x9aa   :  { %6640 = vmatpush.msra.mxu0 %v5974_v60  ;;  %6657 = vmatpush.msra.mxu1 %v6050_v61  ;;  %v6114_v60 = vunpack.c.h.bf16 %v15250_v15  ;;  %v15251_v61 = vld [vmem:[#allocation75_spill] sm:$0xff]  ;;  %v15276_v15 = vld [vmem:[#allocation114_spill] sm:$0xff] }
 0x9ac   :  { %6641 = vmatpush.msra.mxu0 %v5970_v8  ;;  %6658 = vmatpush.msra.mxu1 %v6046_v19  ;;  %v6190_v8 = vunpack.c.h.bf16 %v15251_v61  ;;  %v15252_v19 = vld [vmem:[#allocation102_spill] sm:$0xff]  ;;  %v15277_v61 = vld [vmem:[#allocation115_spill] sm:$0xff] }
 0x9ae   :  { %6642 = vmatpush.msra.mxu0 %v5966_v57  ;;  %6659 = vmatpush.msra.mxu1 %v6042_v27  ;;  %v6242_v57 = vunpack.c.h.bf16 %v15252_v19  ;;  %v15253_v27 = vld [vmem:[#allocation103_spill] sm:$0xff]  ;;  %v15278_v19 = vld [vmem:[#allocation88_spill] sm:$0xff] }
 0x9af   :  { %v6318_v20 = vunpack.c.h.bf16 %v15253_v27  ;;  %v15279_v27 = vld [vmem:[#allocation89_spill] sm:$0xff] }
 0x9b0   :  { %6643 = vmatpush.msra.mxu0 %v5962_v31  ;;  %6660 = vmatpush.msra.mxu1 %v6038_v11  ;;  %v15254_v31 = vld [vmem:[#allocation77_spill] sm:$0xff] }
 0x9b1   :  { %v6110_v11 = vunpack.c.h.bf16 %v15254_v31  ;;  %v15280_v31 = vld [vmem:[#allocation116_spill] sm:$0xff] }
 0x9b2   :  { %6644 = vmatpush.msra.mxu0 %v5958_v32  ;;  %6661 = vmatpush.msra.mxu1 %v6034_v53  ;;  %v5642_v46 = vpop.f32.mrf.mxu1  ;;  %v6186_v32 = vunpack.c.h.bf16 %v15255_v30  ;;  %v15256_v53 = vld [vmem:[#allocation104_spill] sm:$0xff]  ;;  %v15281_v30 = vld [vmem:[#allocation117_spill] sm:$0xff] }
 0x9b3   :  { %v5643_v39 = vadd.f32 %v5642_v46, %v5623_v4  ;;  %v6238_v4 = vunpack.c.h.bf16 %v15256_v53  ;;  %v6106_v46 = vunpack.c.h.bf16 %v15258_v23  ;;  %v15282_v53 = vld [vmem:[#allocation90_spill] sm:$0xff] }
 0x9b4   :  { %6645 = vmatpush.msra.mxu0 %v5954_v35  ;;  %6662 = vmatpush.msra.mxu1 %v6030_v24  ;;  %v15257_v35 = vld [vmem:[#allocation105_spill] sm:$0xff]  ;;  %v15284_v23 = vld [vmem:[#allocation118_spill] sm:$0xff] }
 0x9b5   :  { %v13231_v26 = vmax.f32 %v5643_v39, 0.0  ;;  %v6314_v24 = vunpack.c.h.bf16 %v15257_v35  ;;  %v6234_v39 = vunpack.c.h.bf16 %v15260_v22  ;;  %v15283_v35 = vld [vmem:[#allocation91_spill] sm:$0xff]  ;;  %v15286_v22 = vld [vmem:[#allocation92_spill] sm:$0xff] }
 0x9b6   :  { %6646 = vmatpush.msra.mxu0 %v5950_v56  ;;  %6663 = vmatpush.msra.mxu1 %v6026_v2  ;;  %v15259_v56 = vld [vmem:[#allocation78_spill] sm:$0xff] }
 0x9b7   :  { %6647 = vmatmul.f32.vlgmr.msra.gmra.mxu0 %v12977_v54  ;;  %6607 = vmatmul.f32.vlgmr.msra.gmra.mxu2 %v13231_v26  ;;  %v6182_v2 = vunpack.c.h.bf16 %v15259_v56  ;;  %v15285_v56 = vld [vmem:[#allocation119_spill] sm:$0xff] }
 0x9b8   :  { %6664 = vmatpush.msra.mxu1 %v6022_v25  ;;  %6671 = vmatpush.msra.mxu2 %v6138_v48  ;;  %v5682_v58 = vpop.f32.mrf.mxu3  ;;  %v15261_v25 = vld [vmem:[#allocation107_spill] sm:$0xff] }
 0x9b9   :  { %6711 = vmatpush.msra.mxu0 %v6266_v21  ;;  %v5683_v63 = vadd.f32 %v5682_v58, %v5663_v52  ;;  %v6310_v48 = vunpack.c.h.bf16 %v15261_v25  ;;  %v15262_v52 = vld [vmem:[#allocation81_spill] sm:$0xff] }
 0x9ba   :  { %6665 = vmatpush.msra.mxu1 %v6018_v41  ;;  %6672 = vmatpush.msra.mxu2 %v6134_v40  ;;  %v6102_v21 = vunpack.c.h.bf16 %v15262_v52  ;;  %v15263_v41 = vld [vmem:[#allocation80_spill] sm:$0xff]  ;;  %v15287_v25 = vld [vmem:[#allocation93_spill] sm:$0xff] }
 0x9bb   :  { %v13243_v29 = vmax.f32 %v5683_v63, 0.0  ;;  %6712 = vmatpush.msra.mxu0 %v6262_v49  ;;  %v6178_v40 = vunpack.c.h.bf16 %v15263_v41  ;;  %v15264_v49 = vld [vmem:[#allocation108_spill] sm:$0xff]  ;;  %v15266_v63 = vld [vmem:[#allocation83_spill] sm:$0xff]  ;;  %v15289_v41 = vld [vmem:[#allocation121_spill] sm:$0xff] }
 0x9bc   :  { %6666 = vmatpush.msra.mxu1 %v6014_v28  ;;  %6673 = vmatpush.msra.mxu2 %v6130_v42  ;;  %v6230_v58 = vunpack.c.h.bf16 %v15264_v49  ;;  %v15265_v28 = vld [vmem:[#allocation109_spill] sm:$0xff]  ;;  %v15288_v52 = vld [vmem:[#allocation120_spill] sm:$0xff] }
 0x9bd   :  { %15243 = vst [vmem:[#allocation155_spill] sm:$0xff] %v13243_v29  ;;  %6713 = vmatpush.msra.mxu0 %v6258_v10  ;;  %6667 = vmatmul.f32.vlgmr.msra.gmra.mxu1 %v13000_v13  ;;  %v6306_v42 = vunpack.c.h.bf16 %v15265_v28  ;;  %v6098_v10 = vunpack.c.h.bf16 %v15266_v63  ;;  %v13298_v49 = vld [vmem:[#allocation5 + $0xf8] sm:$0xff] }
 0x9be   :  { %6627 = vmatmul.f32.vlgmr.msra.gmra.mxu3 %v13243_v29  ;;  %6674 = vmatpush.msra.mxu2 %v6126_v17  ;;  %v15267_v17 = vld [vmem:[#allocation82_spill] sm:$0xff] }
 0x9bf   :  { %6691 = vmatpush.msra.mxu3 %v6202_v34  ;;  %6714 = vmatpush.msra.mxu0 %v6254_v36  ;;  %v6174_v34 = vunpack.c.h.bf16 %v15267_v17  ;;  %v15268_v36 = vld [vmem:[#allocation110_spill] sm:$0xff] }
 0x9c0   :  { %6731 = vmatpush.msra.mxu1 %v6330_v16  ;;  %6675 = vmatpush.msra.mxu2 %v6122_v44  ;;  %v6226_v16 = vunpack.c.h.bf16 %v15268_v36  ;;  %v15269_v44 = vld [vmem:[#allocation111_spill] sm:$0xff]  ;;  %v6011_v36 = vunpack.c.l.bf16 %v13298_v49 }
 0x9c1   :  { %6692 = vmatpush.msra.mxu3 %v6198_v1  ;;  %6715 = vmatpush.msra.mxu0 %v6250_v62  ;;  %v6302_v1 = vunpack.c.h.bf16 %v15269_v44  ;;  %v6094_v62 = vunpack.c.h.bf16 %v15270_v0  ;;  %v15295_v0 = vld [vmem:[#allocation125_spill] sm:$0xff] }
 0x9c2   :  { %6732 = vmatpush.msra.mxu1 %v6326_v9  ;;  %6676 = vmatpush.msra.mxu2 %v6118_v3  ;;  %v6170_v9 = vunpack.c.h.bf16 %v15271_v33  ;;  %v6222_v3 = vunpack.c.h.bf16 %v15272_v5  ;;  %v15296_v33 = vld [vmem:[#allocation126_spill] sm:$0xff]  ;;  %v13310_v5 = vld [vmem:[#allocation5 + $0xd8] sm:$0xff] }
 0x9c3   :  { %6693 = vmatpush.msra.mxu3 %v6194_v59  ;;  %6716 = vmatpush.msra.mxu0 %v6246_v47  ;;  %v6298_v59 = vunpack.c.h.bf16 %v15273_v14  ;;  %v6090_v47 = vunpack.c.h.bf16 %v15274_v38  ;;  %v15297_v14 = vld [vmem:[#allocation96_spill] sm:$0xff]  ;;  %v15298_v38 = vld [vmem:[#allocation127_spill] sm:$0xff] }
 0x9c4   :  { %6733 = vmatpush.msra.mxu1 %v6322_v45  ;;  %6677 = vmatpush.msra.mxu2 %v6114_v60  ;;  %v6166_v45 = vunpack.c.h.bf16 %v15275_v7  ;;  %v6218_v60 = vunpack.c.h.bf16 %v15276_v15  ;;  %v15299_v7 = vld [vmem:[#allocation128_spill] sm:$0xff]  ;;  %v13317_v15 = vld [vmem:[#allocation5 + $0xc8] sm:$0xff] }
 0x9c5   :  { %6694 = vmatpush.msra.mxu3 %v6190_v8  ;;  %6717 = vmatpush.msra.mxu0 %v6242_v57  ;;  %v6294_v8 = vunpack.c.h.bf16 %v15277_v61  ;;  %v6086_v57 = vunpack.c.h.bf16 %v15278_v19  ;;  %v13320_v61 = vld [vmem:[#allocation5 + $0x1f8] sm:$0xff] }
 0x9c6   :  { %6734 = vmatpush.msra.mxu1 %v6318_v20  ;;  %6678 = vmatpush.msra.mxu2 %v6110_v11  ;;  %v6162_v20 = vunpack.c.h.bf16 %v15279_v27  ;;  %v6214_v11 = vunpack.c.h.bf16 %v15280_v31  ;;  %v15301_v27 = vld [vmem:[#allocation131_spill] sm:$0xff]  ;;  %v5999_v31 = vunpack.c.l.bf16 %v13317_v15 }
 0x9c7   :  { %6695 = vmatpush.msra.mxu3 %v6186_v32  ;;  %6718 = vmatpush.msra.mxu0 %v6238_v4  ;;  %v6290_v32 = vunpack.c.h.bf16 %v15281_v30  ;;  %v6082_v4 = vunpack.c.h.bf16 %v15282_v53  ;;  %v6075_v30 = vunpack.c.l.bf16 %v13320_v61 }
 0x9c8   :  { %6735 = vmatpush.msra.mxu1 %v6314_v24  ;;  %6679 = vmatpush.msra.mxu2 %v6106_v46  ;;  %v6158_v24 = vunpack.c.h.bf16 %v15283_v35  ;;  %v6210_v46 = vunpack.c.h.bf16 %v15284_v23  ;;  %v15303_v35 = vld [vmem:[#allocation129_spill] sm:$0xff] }
 0x9c9   :  { %6696 = vmatpush.msra.mxu3 %v6182_v2  ;;  %6719 = vmatpush.msra.mxu0 %v6234_v39  ;;  %v6286_v2 = vunpack.c.h.bf16 %v15285_v56  ;;  %v6078_v39 = vunpack.c.h.bf16 %v15286_v22  ;;  %v13336_v56 = vld [vmem:[#allocation5 + $0x1d8] sm:$0xff]  ;;  %v15305_v22 = vld [vmem:[#allocation134_spill] sm:$0xff] }
 0x9ca   :  { %6736 = vmatpush.msra.mxu1 %v6310_v48  ;;  %6680 = vmatpush.msra.mxu2 %v6102_v21  ;;  %v6154_v48 = vunpack.c.h.bf16 %v15287_v25  ;;  %v6206_v21 = vunpack.c.h.bf16 %v15288_v52  ;;  %v13341_v25 = vld [vmem:[#allocation5 + $0x98] sm:$0xff] }
 0x9cb   :  { %6697 = vmatpush.msra.mxu3 %v6178_v40  ;;  %6720 = vmatpush.msra.mxu0 %v6230_v58  ;;  %v6282_v40 = vunpack.c.h.bf16 %v15289_v41  ;;  %v15290_v58 = vld [vmem:[#allocation94_spill] sm:$0xff]  ;;  %v13345_v41 = vld [vmem:[#allocation5 + $0x1c8] sm:$0xff] }
 0x9cc   :  { %6737 = vmatpush.msra.mxu1 %v6306_v42  ;;  %6681 = vmatpush.msra.mxu2 %v6098_v10  ;;  %v6150_v28 = vunpack.c.h.bf16 %v15290_v58  ;;  %v15291_v42 = vld [vmem:[#allocation122_spill] sm:$0xff]  ;;  %v15292_v10 = vld [vmem:[#allocation123_spill] sm:$0xff]  ;;  %v15307_v58 = vld [vmem:[#allocation136_spill] sm:$0xff] }
 0x9cd   :  { %6698 = vmatpush.msra.mxu3 %v6174_v34  ;;  %6721 = vmatpush.msra.mxu0 %v6226_v16  ;;  %v6278_v63 = vunpack.c.h.bf16 %v15291_v42  ;;  %v6394_v17 = vunpack.c.h.bf16 %v15292_v10  ;;  %v13303_v34 = vld [vmem:[#allocation5 + $0xe8] sm:$0xff] }
 0x9ce   :  { %6738 = vmatpush.msra.mxu1 %v6302_v1  ;;  %6682 = vmatpush.msra.mxu2 %v6094_v62  ;;  %v15293_v16 = vld [vmem:[#allocation95_spill] sm:$0xff]  ;;  %v15294_v1 = vld [vmem:[#allocation124_spill] sm:$0xff]  ;;  %v6274_v62 = vunpack.c.h.bf16 %v15295_v0 }
 0x9cf   :  { %6699 = vmatpush.msra.mxu3 %v6170_v9  ;;  %6722 = vmatpush.msra.mxu0 %v6222_v3  ;;  %v6146_v44 = vunpack.c.h.bf16 %v15293_v16  ;;  %v6390_v9 = vunpack.c.h.bf16 %v15296_v33  ;;  %v6007_v3 = vunpack.c.l.bf16 %v13303_v34  ;;  %v13349_v42 = vld [vmem:[#allocation5 + $0x88] sm:$0xff]  ;;  %v6063_v16 = vunpack.c.l.bf16 %v13345_v41 }
 0x9d0   :  { %6739 = vmatpush.msra.mxu1 %v6298_v59  ;;  %6683 = vmatpush.msra.mxu2 %v6090_v47  ;;  %v6142_v59 = vunpack.c.h.bf16 %v15297_v14  ;;  %v6270_v47 = vunpack.c.h.bf16 %v15298_v38  ;;  %v15310_v33 = vld [vmem:[#allocation139_spill] sm:$0xff]  ;;  %v15311_v38 = vld [vmem:[#allocation140_spill] sm:$0xff] }
 0x9d1   :  { %6700 = vmatpush.msra.mxu3 %v6166_v45  ;;  %6723 = vmatpush.msra.mxu0 %v6218_v60  ;;  %v6386_v45 = vunpack.c.h.bf16 %v15299_v7  ;;  %v6003_v60 = vunpack.c.l.bf16 %v13310_v5  ;;  %v13361_v14 = vld [vmem:[#allocation5 + $0x1a8] sm:$0xff] }
 0x9d2   :  { %6740 = vmatpush.msra.mxu1 %v6294_v8  ;;  %6684 = vmatpush.msra.mxu2 %v6086_v57  ;;  %v15300_v8 = vld [vmem:[#allocation130_spill] sm:$0xff]  ;;  %v13323_v57 = vld [vmem:[#allocation5 + $0xb8] sm:$0xff]  ;;  %v13365_v7 = vld [vmem:[#allocation5 + $0x68] sm:$0xff] }
 0x9d3   :  { %6701 = vmatpush.msra.mxu3 %v6162_v20  ;;  %6724 = vmatpush.msra.mxu0 %v6214_v11  ;;  %v6382_v19 = vunpack.c.h.bf16 %v15300_v8  ;;  %v6458_v20 = vunpack.c.h.bf16 %v15301_v27  ;;  %v13327_v11 = vld [vmem:[#allocation5 + $0x1e8] sm:$0xff]  ;;  %v6055_v27 = vunpack.c.l.bf16 %v13361_v14 }
 0x9d4   :  { %6741 = vmatpush.msra.mxu1 %v6290_v32  ;;  %6685 = vmatpush.msra.mxu2 %v6082_v4  ;;  %v15302_v32 = vld [vmem:[#allocation132_spill] sm:$0xff]  ;;  %v13331_v4 = vld [vmem:[#allocation5 + $0xa8] sm:$0xff] }
 0x9d5   :  { %6702 = vmatpush.msra.mxu3 %v6158_v24  ;;  %6725 = vmatpush.msra.mxu0 %v6210_v46  ;;  %v6378_v53 = vunpack.c.h.bf16 %v15302_v32  ;;  %v15304_v24 = vld [vmem:[#allocation133_spill] sm:$0xff]  ;;  %v5995_v46 = vunpack.c.l.bf16 %v13323_v57  ;;  %v15314_v32 = vld [vmem:[#allocation143_spill] sm:$0xff] }
 0x9d6   :  { %6742 = vmatpush.msra.mxu1 %v6286_v2  ;;  %6686 = vmatpush.msra.mxu2 %v6078_v39  ;;  %v6454_v23 = vunpack.c.h.bf16 %v15304_v24  ;;  %v6071_v2 = vunpack.c.l.bf16 %v13327_v11  ;;  %v6374_v39 = vunpack.c.h.bf16 %v15305_v22  ;;  %v5975_v24 = vunpack.c.l.bf16 %v13365_v7 }
 0x9d7   :  { %6703 = vmatpush.msra.mxu3 %v6154_v48  ;;  %6726 = vmatpush.msra.mxu0 %v6206_v21  ;;  %v15306_v48 = vld [vmem:[#allocation135_spill] sm:$0xff]  ;;  %v5991_v21 = vunpack.c.l.bf16 %v13331_v4 }
 0x9d8   :  { %6743 = vmatpush.msra.mxu1 %v6282_v40  ;;  %6687 = vmatmul.f32.vlgmr.msra.gmra.mxu2 %v15294_v1  ;;  %v6450_v52 = vunpack.c.h.bf16 %v15306_v48  ;;  %v6067_v40 = vunpack.c.l.bf16 %v13336_v56  ;;  %v15316_v48 = vld [vmem:[#allocation145_spill] sm:$0xff] }
 0x9d9   :  { %6727 = vmatmul.f32.vlgmr.msra.gmra.mxu0 %v13184_v18  ;;  %6704 = vmatpush.msra.mxu3 %v6150_v28  ;;  %v6370_v28 = vunpack.c.h.bf16 %v15307_v58 }
 0x9da   :  { %6744 = vmatpush.msra.mxu1 %v6278_v63  ;;  %6751 = vmatpush.msra.mxu2 %v6394_v17  ;;  %v15308_v63 = vld [vmem:[#allocation137_spill] sm:$0xff]  ;;  %v5987_v17 = vunpack.c.l.bf16 %v13341_v25 }
 0x9db   :  { %6791 = vmatpush.msra.mxu0 %v6011_v36  ;;  %6705 = vmatpush.msra.mxu3 %v6146_v44  ;;  %v6446_v10 = vunpack.c.h.bf16 %v15308_v63  ;;  %v13353_v36 = vld [vmem:[#allocation5 + $0x1b8] sm:$0xff]  ;;  %v15309_v44 = vld [vmem:[#allocation138_spill] sm:$0xff] }
 0x9dc   :  { %6745 = vmatpush.msra.mxu1 %v6274_v62  ;;  %6752 = vmatpush.msra.mxu2 %v6390_v9  ;;  %v6366_v0 = vunpack.c.h.bf16 %v15309_v44  ;;  %v13357_v62 = vld [vmem:[#allocation5 + $0x78] sm:$0xff]  ;;  %v6442_v9 = vunpack.c.h.bf16 %v15310_v33 }
 0x9dd   :  { %6792 = vmatpush.msra.mxu0 %v6007_v3  ;;  %6706 = vmatpush.msra.mxu3 %v6142_v59  ;;  %v5983_v3 = vunpack.c.l.bf16 %v13349_v42  ;;  %v6059_v59 = vunpack.c.l.bf16 %v13353_v36  ;;  %v5979_v8 = vunpack.c.l.bf16 %v13357_v62 }
 0x9de   :  { %6746 = vmatpush.msra.mxu1 %v6270_v47  ;;  %6753 = vmatpush.msra.mxu2 %v6386_v45  ;;  %v6362_v47 = vunpack.c.h.bf16 %v15311_v38  ;;  %v15312_v45 = vld [vmem:[#allocation141_spill] sm:$0xff] }
 0x9df   :  { %6793 = vmatpush.msra.mxu0 %v6003_v60  ;;  %6707 = vmatmul.f32.vlgmr.msra.gmra.mxu3 %v15303_v35  ;;  %v6438_v60 = vunpack.c.h.bf16 %v15312_v45  ;;  %v15320_v38 = vld [vmem:[#allocation149_spill] sm:$0xff] }
 0x9e0   :  { %6747 = vmatmul.f32.vlgmr.msra.gmra.mxu1 %v13199_v6  ;;  %6754 = vmatpush.msra.mxu2 %v6382_v19  ;;  %v13369_v19 = vld [vmem:[#allocation5 + $0x198] sm:$0xff] }
 0x9e1   :  { %6771 = vmatpush.msra.mxu3 %v6458_v20  ;;  %6794 = vmatpush.msra.mxu0 %v5999_v31  ;;  %v15313_v20 = vld [vmem:[#allocation142_spill] sm:$0xff] }
 0x9e2   :  { %6811 = vmatpush.msra.mxu1 %v6075_v30  ;;  %6755 = vmatpush.msra.mxu2 %v6378_v53  ;;  %v6358_v31 = vunpack.c.h.bf16 %v15313_v20  ;;  %v13373_v30 = vld [vmem:[#allocation5 + $0x58] sm:$0xff]  ;;  %v6434_v53 = vunpack.c.h.bf16 %v15314_v32  ;;  %v15322_v32 = vld [vmem:[#allocation151_spill] sm:$0xff] }
 0x9e3   :  { %6772 = vmatpush.msra.mxu3 %v6454_v23  ;;  %6795 = vmatpush.msra.mxu0 %v5995_v46  ;;  %v13377_v23 = vld [vmem:[#allocation5 + $0x188] sm:$0xff]  ;;  %v6051_v46 = vunpack.c.l.bf16 %v13369_v19 }
 0x9e4   :  { %6812 = vmatpush.msra.mxu1 %v6071_v2  ;;  %6756 = vmatpush.msra.mxu2 %v6374_v39  ;;  %v15315_v2 = vld [vmem:[#allocation144_spill] sm:$0xff]  ;;  %v13381_v39 = vld [vmem:[#allocation5 + $0x48] sm:$0xff]  ;;  %v6047_v58 = vunpack.c.l.bf16 %v13377_v23 }
 0x9e5   :  { %6773 = vmatpush.msra.mxu3 %v6450_v52  ;;  %6796 = vmatpush.msra.mxu0 %v5991_v21  ;;  %v6354_v22 = vunpack.c.h.bf16 %v15315_v2  ;;  %v6430_v52 = vunpack.c.h.bf16 %v15316_v48  ;;  %v5971_v21 = vunpack.c.l.bf16 %v13373_v30  ;;  %v5967_v44 = vunpack.c.l.bf16 %v13381_v39  ;;  %v13413_v48 = vld [vmem:[#allocation5 + $0x8] sm:$0xff] }
 0x9e6   :  { %6813 = vmatpush.msra.mxu1 %v6067_v40  ;;  %6757 = vmatpush.msra.mxu2 %v6370_v28  ;;  %v13385_v40 = vld [vmem:[#allocation5 + $0x178] sm:$0xff]  ;;  %v15317_v28 = vld [vmem:[#allocation146_spill] sm:$0xff] }
 0x9e7   :  { %6774 = vmatpush.msra.mxu3 %v6446_v10  ;;  %6797 = vmatpush.msra.mxu0 %v5987_v17  ;;  %v6350_v63 = vunpack.c.h.bf16 %v15317_v28  ;;  %v13389_v10 = vld [vmem:[#allocation5 + $0x38] sm:$0xff]  ;;  %v15318_v17 = vld [vmem:[#allocation147_spill] sm:$0xff]  ;;  %v6043_v33 = vunpack.c.l.bf16 %v13385_v40 }
 0x9e8   :  { %6814 = vmatpush.msra.mxu1 %v6063_v16  ;;  %6758 = vmatpush.msra.mxu2 %v6366_v0  ;;  %v6426_v16 = vunpack.c.h.bf16 %v15318_v17  ;;  %v13393_v0 = vld [vmem:[#allocation5 + $0x168] sm:$0xff]  ;;  %v5963_v45 = vunpack.c.l.bf16 %v13389_v10  ;;  %v13417_v28 = vld [vmem:[#allocation5 + $0x138] sm:$0xff]  ;;  %v6334_v17 = vunpack.c.h.bf16 %v13177_v50  ;;  %v6406_v50 = vunpack.c.h.bf16 %v13186_v37 }
 0x9e9   :  { %6775 = vmatpush.msra.mxu3 %v6442_v9  ;;  %6798 = vmatpush.msra.mxu0 %v5983_v3  ;;  %v15319_v9 = vld [vmem:[#allocation148_spill] sm:$0xff]  ;;  %v13443_v37 = vld [vmem:[#allocation5 + $0x2d8] sm:$0xff] }
 0x9ea   :  { %6815 = vmatpush.msra.mxu1 %v6059_v59  ;;  %6759 = vmatpush.msra.mxu2 %v6362_v47  ;;  %v6346_v3 = vunpack.c.h.bf16 %v15319_v9  ;;  %v13397_v59 = vld [vmem:[#allocation5 + $0x28] sm:$0xff]  ;;  %v6422_v47 = vunpack.c.h.bf16 %v15320_v38  ;;  %v6027_v9 = vunpack.c.l.bf16 %v13417_v28  ;;  %v13431_v38 = vld [vmem:[#allocation5 + $0x118] sm:$0xff]  ;;  %15324 = vst [vmem:[#allocation156_spill] sm:$0xff] %v13443_v37 }
 0x9eb   :  { %6776 = vmatpush.msra.mxu3 %v6438_v60  ;;  %6799 = vmatpush.msra.mxu0 %v5979_v8  ;;  %v13401_v60 = vld [vmem:[#allocation5 + $0x158] sm:$0xff]  ;;  %v6039_v8 = vunpack.c.l.bf16 %v13393_v0 }
 0x9ec   :  { %6816 = vmatpush.msra.mxu1 %v6055_v27  ;;  %6760 = vmatpush.msra.mxu2 %v6358_v31  ;;  %v15321_v27 = vld [vmem:[#allocation150_spill] sm:$0xff]  ;;  %v13405_v31 = vld [vmem:[#allocation5 + $0x18] sm:$0xff]  ;;  %v6035_v2 = vunpack.c.l.bf16 %v13401_v60 }
 0x9ed   :  { %6777 = vmatpush.msra.mxu3 %v6434_v53  ;;  %6800 = vmatpush.msra.mxu0 %v5975_v24  ;;  %v6342_v20 = vunpack.c.h.bf16 %v15321_v27  ;;  %v6418_v53 = vunpack.c.h.bf16 %v15322_v32  ;;  %v5959_v24 = vunpack.c.l.bf16 %v13397_v59  ;;  %v13441_v32 = vld [vmem:[#allocation5 + $0x108] sm:$0xff] }
 0x9ee   :  { %6817 = vmatpush.msra.mxu1 %v6051_v46  ;;  %6761 = vmatpush.msra.mxu2 %v6354_v22  ;;  %v13409_v46 = vld [vmem:[#allocation5 + $0x148] sm:$0xff]  ;;  %v6338_v22 = vunpack.c.h.bf16 %v13171_v43  ;;  %v6410_v43 = vunpack.c.h.bf16 %v13179_v55 }
 0x9ef   :  { %6778 = vmatpush.msra.mxu3 %v6430_v52  ;;  %6801 = vmatpush.msra.mxu0 %v5971_v21  ;;  %v15323_v52 = vld [vmem:[#allocation152_spill] sm:$0xff] }
 0x9f0   :  { %6818 = vmatpush.msra.mxu1 %v6047_v58  ;;  %6762 = vmatpush.msra.mxu2 %v6350_v63  ;;  %v6414_v21 = vunpack.c.h.bf16 %v15323_v52  ;;  %v5955_v58 = vunpack.c.l.bf16 %v13405_v31  ;;  %v6031_v63 = vunpack.c.l.bf16 %v13409_v46  ;;  %v13453_v52 = vld [vmem:[#allocation5 + $0x2c8] sm:$0xff] }
 0x9f1   :  { %6779 = vmatpush.msra.mxu3 %v6426_v16  ;;  %6802 = vmatpush.msra.mxu0 %v5967_v44  ;;  %v5951_v16 = vunpack.c.l.bf16 %v13413_v48  ;;  %v13423_v44 = vld [vmem:[#allocation5 + $0x128] sm:$0xff]  ;;  %15326 = vst [vmem:[#allocation158_spill] sm:$0xff] %v13453_v52 }
 0x9f2   :  { %6819 = vmatpush.msra.mxu1 %v6043_v33  ;;  %6763 = vmatpush.msra.mxu2 %v6346_v3  ;;  %v13425_v33 = vld [vmem:[#allocation5 + $0x2f8] sm:$0xff]  ;;  %v6023_v55 = vunpack.c.l.bf16 %v13423_v44 }
 0x9f3   :  { %6780 = vmatpush.msra.mxu3 %v6422_v47  ;;  %6803 = vmatpush.msra.mxu0 %v5963_v45  ;;  %v13428_v3 = vld [vmem:[#allocation5 + $0x4f8] sm:$0xff]  ;;  %v13433_v47 = vld [vmem:[#allocation5 + $0x2e8] sm:$0xff]  ;;  %v6139_v45 = vunpack.c.l.bf16 %v13425_v33 }
 0x9f4   :  { %6820 = vmatpush.msra.mxu1 %v6039_v8  ;;  %6764 = vmatpush.msra.mxu2 %v6342_v20  ;;  %v13437_v8 = vld [vmem:[#allocation5 + $0x4e8] sm:$0xff]  ;;  %v6267_v27 = vunpack.c.l.bf16 %v13428_v3  ;;  %v6402_v20 = vunpack.c.h.bf16 %v13192_v12  ;;  %v6398_v12 = vunpack.c.h.bf16 %v13197_v51  ;;  %v6127_v51 = vunpack.c.l.bf16 %v13453_v52  ;;  %v13479_v52 = vld [vmem:[#allocation5 + $0x3d8] sm:$0xff] }
 0x9f5   :  { %6781 = vmatpush.msra.mxu3 %v6418_v53  ;;  %6804 = vmatpush.msra.mxu0 %v5959_v24  ;;  %v6019_v53 = vunpack.c.l.bf16 %v13431_v38  ;;  %v6135_v24 = vunpack.c.l.bf16 %v13433_v47  ;;  %15335 = vst [vmem:[#allocation167_spill] sm:$0xff] %v13479_v52 }
 0x9f6   :  { %6821 = vmatpush.msra.mxu1 %v6035_v2  ;;  %6765 = vmatpush.msra.mxu2 %v6338_v22  ;;  %v13448_v2 = vld [vmem:[#allocation5 + $0x4d8] sm:$0xff]  ;;  %v6263_v22 = vunpack.c.l.bf16 %v13437_v8 }
 0x9f7   :  { %6782 = vmatpush.msra.mxu3 %v6414_v21  ;;  %6805 = vmatpush.msra.mxu0 %v5955_v58  ;;  %15325 = vst [vmem:[#allocation157_spill] sm:$0xff] %v13448_v2  ;;  %v6015_v21 = vunpack.c.l.bf16 %v13441_v32  ;;  %v6131_v58 = vunpack.c.l.bf16 %v13443_v37  ;;  %v13481_v37 = vld [vmem:[#allocation5 + $0x4a8] sm:$0xff] }
 0x9f8   :  { %6822 = vmatpush.msra.mxu1 %v6031_v63  ;;  %6766 = vmatpush.msra.mxu2 %v6334_v17  ;;  %v13457_v63 = vld [vmem:[#allocation5 + $0x3f8] sm:$0xff]  ;;  %v13459_v17 = vld [vmem:[#allocation5 + $0x4c8] sm:$0xff]  ;;  %15336 = vst [vmem:[#allocation168_spill] sm:$0xff] %v13481_v37 }
 0x9f9   :  { %6783 = vmatpush.msra.mxu3 %v6410_v43  ;;  %6806 = vmatpush.msra.mxu0 %v5951_v16  ;;  %15327 = vst [vmem:[#allocation159_spill] sm:$0xff] %v13457_v63  ;;  %v6259_v43 = vunpack.c.l.bf16 %v13448_v2  ;;  %v13462_v16 = vld [vmem:[#allocation5 + $0x5f8] sm:$0xff]  ;;  %v13475_v2 = vld [vmem:[#allocation5 + $0x2a8] sm:$0xff] }
 0x9fa   :  { %6823 = vmatpush.msra.mxu1 %v6027_v9  ;;  %6767 = vmatmul.f32.vlgmr.msra.gmra.mxu2 %v13231_v26  ;;  %15328 = vst [vmem:[#allocation160_spill] sm:$0xff] %v13459_v17  ;;  %v13464_v9 = vld [vmem:[#allocation5 + $0x2b8] sm:$0xff] }
 0x9fb   :  { %6807 = vmatmul.f32.vlgmr.msra.gmra.mxu0 %v12977_v54  ;;  %6784 = vmatpush.msra.mxu3 %v6406_v50  ;;  %15329 = vst [vmem:[#allocation161_spill] sm:$0xff] %v13462_v16  ;;  %v13467_v50 = vld [vmem:[#allocation5 + $0x3e8] sm:$0xff] }
 0x9fc   :  { %6824 = vmatpush.msra.mxu1 %v6023_v55  ;;  %6831 = vmatpush.msra.mxu2 %v6139_v45  ;;  %15330 = vst [vmem:[#allocation162_spill] sm:$0xff] %v13464_v9  ;;  %v13469_v55 = vld [vmem:[#allocation5 + $0x4b8] sm:$0xff]  ;;  %v6203_v45 = vunpack.c.l.bf16 %v13457_v63 }
 0x9fd   :  { %6871 = vmatpush.msra.mxu0 %v6267_v27  ;;  %6785 = vmatpush.msra.mxu3 %v6402_v20  ;;  %15331 = vst [vmem:[#allocation163_spill] sm:$0xff] %v13467_v50  ;;  %v6255_v27 = vunpack.c.l.bf16 %v13459_v17  ;;  %v13473_v20 = vld [vmem:[#allocation5 + $0x5e8] sm:$0xff]  ;;  %v13486_v17 = vld [vmem:[#allocation5 + $0x5d8] sm:$0xff] }
 0x9fe   :  { %6825 = vmatpush.msra.mxu1 %v6019_v53  ;;  %6832 = vmatpush.msra.mxu2 %v6135_v24  ;;  %15332 = vst [vmem:[#allocation164_spill] sm:$0xff] %v13469_v55  ;;  %v6331_v53 = vunpack.c.l.bf16 %v13462_v16  ;;  %v6123_v24 = vunpack.c.l.bf16 %v13464_v9  ;;  %v13488_v63 = vld [vmem:[#allocation5 + $0x298] sm:$0xff]  ;;  %v13493_v9 = vld [vmem:[#allocation5 + $0x3c8] sm:$0xff] }
 0x9ff   :  { %6872 = vmatpush.msra.mxu0 %v6263_v22  ;;  %6786 = vmatpush.msra.mxu3 %v6398_v12  ;;  %15333 = vst [vmem:[#allocation165_spill] sm:$0xff] %v13473_v20  ;;  %v6199_v22 = vunpack.c.l.bf16 %v13467_v50  ;;  %v6251_v12 = vunpack.c.l.bf16 %v13469_v55  ;;  %v6195_v50 = vunpack.c.l.bf16 %v13479_v52  ;;  %v6247_v55 = vunpack.c.l.bf16 %v13481_v37  ;;  %v13501_v16 = vld [vmem:[#allocation5 + $0x288] sm:$0xff]  ;;  %v13511_v37 = vld [vmem:[#allocation5 + $0x5b8] sm:$0xff] }
 0xa00   :  { %15334 = vst [vmem:[#allocation166_spill] sm:$0xff] %v13475_v2  ;;  %6826 = vmatpush.msra.mxu1 %v6015_v21  ;;  %6833 = vmatpush.msra.mxu2 %v6131_v58  ;;  %v6327_v21 = vunpack.c.l.bf16 %v13473_v20  ;;  %v6119_v58 = vunpack.c.l.bf16 %v13475_v2  ;;  %v6115_v2 = vunpack.c.l.bf16 %v13488_v63  ;;  %v13505_v20 = vld [vmem:[#allocation5 + $0x3b8] sm:$0xff] }
 0xa01   :  { %6873 = vmatpush.msra.mxu0 %v6259_v43  ;;  %6787 = vmatmul.f32.vlgmr.msra.gmra.mxu3 %v13243_v29  ;;  %15337 = vst [vmem:[#allocation169_spill] sm:$0xff] %v13486_v17  ;;  %v13495_v43 = vld [vmem:[#allocation5 + $0x498] sm:$0xff]  ;;  %v13499_v29 = vld [vmem:[#allocation5 + $0x5c8] sm:$0xff] }
 0xa02   :  { %15338 = vst [vmem:[#allocation170_spill] sm:$0xff] %v13488_v63  ;;  %6827 = vmatmul.f32.vlgmr.msra.gmra.mxu1 %v13000_v13  ;;  %6834 = vmatpush.msra.mxu2 %v6127_v51  ;;  %v6323_v51 = vunpack.c.l.bf16 %v13486_v17  ;;  %v13507_v13 = vld [vmem:[#allocation5 + $0x488] sm:$0xff]  ;;  %v13513_v52 = vld [vmem:[#allocation5 + $0x278] sm:$0xff] }
 0xa03   :  { %15339 = vst [vmem:[#allocation171_spill] sm:$0xff] %v13493_v9  ;;  %6851 = vmatpush.msra.mxu3 %v6203_v45  ;;  %6874 = vmatpush.msra.mxu0 %v6255_v27  ;;  %v6191_v45 = vunpack.c.l.bf16 %v13493_v9  ;;  %v6243_v27 = vunpack.c.l.bf16 %v13495_v43  ;;  %v13517_v63 = vld [vmem:[#allocation5 + $0x3a8] sm:$0xff]  ;;  %v13519_v17 = vld [vmem:[#allocation5 + $0x478] sm:$0xff] }
 0xa04   :  { %15340 = vst [vmem:[#allocation172_spill] sm:$0xff] %v13495_v43  ;;  %6891 = vmatpush.msra.mxu1 %v6331_v53  ;;  %6835 = vmatpush.msra.mxu2 %v6123_v24  ;;  %v6319_v53 = vunpack.c.l.bf16 %v13499_v29  ;;  %v6111_v24 = vunpack.c.l.bf16 %v13501_v16  ;;  %v13523_v43 = vld [vmem:[#allocation5 + $0x5a8] sm:$0xff] }
 0xa05   :  { %15341 = vst [vmem:[#allocation173_spill] sm:$0xff] %v13499_v29  ;;  %6852 = vmatpush.msra.mxu3 %v6199_v22  ;;  %6875 = vmatpush.msra.mxu0 %v6251_v12  ;;  %v6187_v22 = vunpack.c.l.bf16 %v13505_v20  ;;  %v6239_v12 = vunpack.c.l.bf16 %v13507_v13  ;;  %v13525_v9 = vld [vmem:[#allocation5 + $0x268] sm:$0xff] }
 0xa06   :  { %15342 = vst [vmem:[#allocation174_spill] sm:$0xff] %v13501_v16  ;;  %6892 = vmatpush.msra.mxu1 %v6327_v21  ;;  %6836 = vmatpush.msra.mxu2 %v6119_v58  ;;  %v6315_v21 = vunpack.c.l.bf16 %v13511_v37  ;;  %v6107_v58 = vunpack.c.l.bf16 %v13513_v52  ;;  %v13529_v16 = vld [vmem:[#allocation5 + $0x398] sm:$0xff]  ;;  %v13531_v29 = vld [vmem:[#allocation5 + $0x468] sm:$0xff] }
 0xa07   :  { %15343 = vst [vmem:[#allocation175_spill] sm:$0xff] %v13505_v20  ;;  %6853 = vmatpush.msra.mxu3 %v6195_v50  ;;  %6876 = vmatpush.msra.mxu0 %v6247_v55  ;;  %v6183_v50 = vunpack.c.l.bf16 %v13517_v63  ;;  %v6235_v55 = vunpack.c.l.bf16 %v13519_v17  ;;  %v13537_v20 = vld [vmem:[#allocation5 + $0x258] sm:$0xff] }
 0xa08   :  { %15344 = vst [vmem:[#allocation176_spill] sm:$0xff] %v13507_v13  ;;  %6893 = vmatpush.msra.mxu1 %v6323_v51  ;;  %6837 = vmatpush.msra.mxu2 %v6115_v2  ;;  %v13535_v13 = vld [vmem:[#allocation5 + $0x598] sm:$0xff]  ;;  %v6311_v2 = vunpack.c.l.bf16 %v13523_v43  ;;  %v6103_v51 = vunpack.c.l.bf16 %v13525_v9 }
 0xa09   :  { %15345 = vst [vmem:[#allocation177_spill] sm:$0xff] %v13511_v37  ;;  %6854 = vmatpush.msra.mxu3 %v6191_v45  ;;  %6877 = vmatpush.msra.mxu0 %v6243_v27  ;;  %v13543_v37 = vld [vmem:[#allocation5 + $0x458] sm:$0xff]  ;;  %v6179_v45 = vunpack.c.l.bf16 %v13529_v16  ;;  %v6231_v27 = vunpack.c.l.bf16 %v13531_v29 }
 0xa0a   :  { %15346 = vst [vmem:[#allocation178_spill] sm:$0xff] %v13513_v52  ;;  %6894 = vmatpush.msra.mxu1 %v6319_v53  ;;  %6838 = vmatpush.msra.mxu2 %v6111_v24  ;;  %v13541_v52 = vld [vmem:[#allocation5 + $0x388] sm:$0xff]  ;;  %v6307_v53 = vunpack.c.l.bf16 %v13535_v13  ;;  %v6099_v24 = vunpack.c.l.bf16 %v13537_v20 }
 0xa0b   :  { %15347 = vst [vmem:[#allocation179_spill] sm:$0xff] %v13517_v63  ;;  %6855 = vmatpush.msra.mxu3 %v6187_v22  ;;  %6878 = vmatpush.msra.mxu0 %v6239_v12  ;;  %v13549_v63 = vld [vmem:[#allocation5 + $0x248] sm:$0xff]  ;;  %v6175_v22 = vunpack.c.l.bf16 %v13541_v52  ;;  %v6227_v12 = vunpack.c.l.bf16 %v13543_v37 }
 0xa0c   :  { %15348 = vst [vmem:[#allocation180_spill] sm:$0xff] %v13519_v17  ;;  %v13547_v17 = vld [vmem:[#allocation5 + $0x588] sm:$0xff]  ;;  %6895 = vmatpush.msra.mxu1 %v6315_v21  ;;  %6839 = vmatpush.msra.mxu2 %v6107_v58  ;;  %v6095_v58 = vunpack.c.l.bf16 %v13549_v63 }
 0xa0d   :  { %15349 = vst [vmem:[#allocation181_spill] sm:$0xff] %v13523_v43  ;;  %v13555_v43 = vld [vmem:[#allocation5 + $0x448] sm:$0xff]  ;;  %6856 = vmatpush.msra.mxu3 %v6183_v50  ;;  %6879 = vmatpush.msra.mxu0 %v6235_v55  ;;  %v6303_v21 = vunpack.c.l.bf16 %v13547_v17 }
 0xa0e   :  { %15350 = vst [vmem:[#allocation182_spill] sm:$0xff] %v13525_v9  ;;  %v13553_v9 = vld [vmem:[#allocation5 + $0x378] sm:$0xff]  ;;  %6896 = vmatpush.msra.mxu1 %v6311_v2  ;;  %6840 = vmatpush.msra.mxu2 %v6103_v51  ;;  %v6223_v55 = vunpack.c.l.bf16 %v13555_v43 }
 0xa0f   :  { %15351 = vst [vmem:[#allocation183_spill] sm:$0xff] %v13529_v16  ;;  %v13561_v16 = vld [vmem:[#allocation5 + $0x238] sm:$0xff]  ;;  %6857 = vmatpush.msra.mxu3 %v6179_v45  ;;  %6880 = vmatpush.msra.mxu0 %v6231_v27  ;;  %v6171_v50 = vunpack.c.l.bf16 %v13553_v9 }
 0xa10   :  { %15352 = vst [vmem:[#allocation184_spill] sm:$0xff] %v13531_v29  ;;  %v13559_v29 = vld [vmem:[#allocation5 + $0x578] sm:$0xff]  ;;  %6897 = vmatpush.msra.mxu1 %v6307_v53  ;;  %6841 = vmatpush.msra.mxu2 %v6099_v24  ;;  %v6091_v51 = vunpack.c.l.bf16 %v13561_v16 }
 0xa11   :  { %15353 = vst [vmem:[#allocation185_spill] sm:$0xff] %v13535_v13  ;;  %v13567_v13 = vld [vmem:[#allocation5 + $0x438] sm:$0xff]  ;;  %v6299_v2 = vunpack.c.l.bf16 %v13559_v29  ;;  %6858 = vmatpush.msra.mxu3 %v6175_v22  ;;  %6881 = vmatpush.msra.mxu0 %v6227_v12 }
 0xa12   :  { %15354 = vst [vmem:[#allocation186_spill] sm:$0xff] %v13537_v20  ;;  %v13565_v20 = vld [vmem:[#allocation5 + $0x368] sm:$0xff]  ;;  %v6219_v27 = vunpack.c.l.bf16 %v13567_v13  ;;  %6898 = vmatpush.msra.mxu1 %v6303_v21  ;;  %6842 = vmatpush.msra.mxu2 %v6095_v58 }
 0xa13   :  { %15355 = vst [vmem:[#allocation187_spill] sm:$0xff] %v13541_v52  ;;  %v13573_v52 = vld [vmem:[#allocation5 + $0x228] sm:$0xff]  ;;  %v6167_v45 = vunpack.c.l.bf16 %v13565_v20  ;;  %6859 = vmatpush.msra.mxu3 %v6171_v50  ;;  %6882 = vmatpush.msra.mxu0 %v6223_v55 }
 0xa14   :  { %15356 = vst [vmem:[#allocation188_spill] sm:$0xff] %v13543_v37  ;;  %v13571_v37 = vld [vmem:[#allocation5 + $0x568] sm:$0xff]  ;;  %v6087_v24 = vunpack.c.l.bf16 %v13573_v52  ;;  %6899 = vmatpush.msra.mxu1 %v6299_v2  ;;  %6843 = vmatpush.msra.mxu2 %v6091_v51 }
 0xa15   :  { %15357 = vst [vmem:[#allocation189_spill] sm:$0xff] %v13547_v17  ;;  %v13579_v17 = vld [vmem:[#allocation5 + $0x428] sm:$0xff]  ;;  %v6295_v53 = vunpack.c.l.bf16 %v13571_v37  ;;  %6860 = vmatpush.msra.mxu3 %v6167_v45  ;;  %6883 = vmatpush.msra.mxu0 %v6219_v27 }
 0xa16   :  { %15358 = vst [vmem:[#allocation190_spill] sm:$0xff] %v13549_v63  ;;  %v13577_v63 = vld [vmem:[#allocation5 + $0x358] sm:$0xff]  ;;  %v6215_v12 = vunpack.c.l.bf16 %v13579_v17  ;;  %6844 = vmatpush.msra.mxu2 %v6087_v24  ;;  %v13615_v27 = vld [vmem:[#allocation5 + $0x528] sm:$0xff] }
 0xa17   :  { %15359 = vst [vmem:[#allocation191_spill] sm:$0xff] %v13553_v9  ;;  %v13585_v9 = vld [vmem:[#allocation5 + $0x218] sm:$0xff]  ;;  %v6163_v22 = vunpack.c.l.bf16 %v13577_v63  ;;  %6900 = vmatpush.msra.mxu1 %v6295_v53 }
 0xa18   :  { %15360 = vst [vmem:[#allocation192_spill] sm:$0xff] %v13555_v43  ;;  %v13583_v43 = vld [vmem:[#allocation5 + $0x558] sm:$0xff]  ;;  %v6083_v58 = vunpack.c.l.bf16 %v13585_v9  ;;  %6884 = vmatpush.msra.mxu0 %v6215_v12  ;;  %v13625_v12 = vld [vmem:[#allocation5 + $0x6e8] sm:$0xff] }
 0xa19   :  { %15361 = vst [vmem:[#allocation193_spill] sm:$0xff] %v13559_v29  ;;  %v13591_v29 = vld [vmem:[#allocation5 + $0x418] sm:$0xff]  ;;  %v6291_v21 = vunpack.c.l.bf16 %v13583_v43  ;;  %6861 = vmatpush.msra.mxu3 %v6163_v22 }
 0xa1a   :  { %15362 = vst [vmem:[#allocation194_spill] sm:$0xff] %v13561_v16  ;;  %v13589_v16 = vld [vmem:[#allocation5 + $0x348] sm:$0xff]  ;;  %v6211_v55 = vunpack.c.l.bf16 %v13591_v29  ;;  %6845 = vmatpush.msra.mxu2 %v6083_v58  ;;  %v13620_v24 = vld [vmem:[#allocation5 + $0x318] sm:$0xff]  ;;  %v6012_v58 = vunpack.c.h.bf16 %v13298_v49 }
 0xa1b   :  { %15363 = vst [vmem:[#allocation195_spill] sm:$0xff] %v13565_v20  ;;  %v13597_v20 = vld [vmem:[#allocation5 + $0x208] sm:$0xff]  ;;  %v6159_v50 = vunpack.c.l.bf16 %v13589_v16  ;;  %6901 = vmatpush.msra.mxu1 %v6291_v21  ;;  %v13623_v22 = vld [vmem:[#allocation5 + $0x518] sm:$0xff] }
 0xa1c   :  { %15364 = vst [vmem:[#allocation196_spill] sm:$0xff] %v13567_v13  ;;  %v13595_v13 = vld [vmem:[#allocation5 + $0x548] sm:$0xff]  ;;  %v6079_v51 = vunpack.c.l.bf16 %v13597_v20  ;;  %6885 = vmatpush.msra.mxu0 %v6211_v55 }
 0xa1d   :  { %15365 = vst [vmem:[#allocation197_spill] sm:$0xff] %v13571_v37  ;;  %v13603_v37 = vld [vmem:[#allocation5 + $0x408] sm:$0xff]  ;;  %v6287_v2 = vunpack.c.l.bf16 %v13595_v13  ;;  %6862 = vmatpush.msra.mxu3 %v6159_v50  ;;  %v6147_v50 = vunpack.c.l.bf16 %v13620_v24 }
 0xa1e   :  { %15366 = vst [vmem:[#allocation198_spill] sm:$0xff] %v13573_v52  ;;  %v13601_v52 = vld [vmem:[#allocation5 + $0x338] sm:$0xff]  ;;  %v6207_v45 = vunpack.c.l.bf16 %v13603_v37  ;;  %6846 = vmatpush.msra.mxu2 %v6079_v51  ;;  %v13629_v21 = vld [vmem:[#allocation5 + $0x308] sm:$0xff]  ;;  %v6391_v51 = vunpack.c.l.bf16 %v13625_v12 }
 0xa1f   :  { %15367 = vst [vmem:[#allocation199_spill] sm:$0xff] %v13579_v17  ;;  %v13607_v17 = vld [vmem:[#allocation5 + $0x538] sm:$0xff]  ;;  %6902 = vmatpush.msra.mxu1 %v6287_v2  ;;  %v13633_v55 = vld [vmem:[#allocation5 + $0x508] sm:$0xff]  ;;  %6847 = vmatmul.f32.vlgmr.msra.gmra.mxu2 %v15294_v1  ;;  %v6275_v2 = vunpack.c.l.bf16 %v13623_v22  ;;  %v6143_v49 = vunpack.c.l.bf16 %v13629_v21 }
 0xa20   :  { %15368 = vst [vmem:[#allocation200_spill] sm:$0xff] %v13583_v43  ;;  %v13611_v43 = vld [vmem:[#allocation5 + $0x328] sm:$0xff]  ;;  %v6283_v53 = vunpack.c.l.bf16 %v13607_v17  ;;  %6886 = vmatpush.msra.mxu0 %v6207_v45  ;;  %v13647_v1 = vld [vmem:[#allocation5 + $0x7f8] sm:$0xff] }
 0xa21   :  { %15369 = vst [vmem:[#allocation201_spill] sm:$0xff] %v13585_v9  ;;  %v6155_v9 = vunpack.c.l.bf16 %v13601_v52  ;;  %6887 = vmatmul.f32.vlgmr.msra.gmra.mxu0 %v13184_v18  ;;  %v13643_v45 = vld [vmem:[#allocation5 + $0x6c8] sm:$0xff]  ;;  %v13650_v18 = vld [vmem:[#allocation5 + $0x6b8] sm:$0xff] }
 0xa22   :  { %15370 = vst [vmem:[#allocation202_spill] sm:$0xff] %v13589_v16  ;;  %v13617_v16 = vld [vmem:[#allocation5 + $0x6f8] sm:$0xff]  ;;  %6903 = vmatpush.msra.mxu1 %v6283_v53  ;;  %6951 = vmatpush.msra.mxu0 %v6012_v58  ;;  %v6379_v58 = vunpack.c.l.bf16 %v13650_v18 }
 0xa23   :  { %15371 = vst [vmem:[#allocation203_spill] sm:$0xff] %v13597_v20  ;;  %v6151_v20 = vunpack.c.l.bf16 %v13611_v43  ;;  %6863 = vmatpush.msra.mxu3 %v6155_v9  ;;  %v6008_v9 = vunpack.c.h.bf16 %v13303_v34  ;;  %v6383_v34 = vunpack.c.l.bf16 %v13643_v45 }
 0xa24   :  { %15372 = vst [vmem:[#allocation204_spill] sm:$0xff] %v13601_v52  ;;  %v6395_v52 = vunpack.c.l.bf16 %v13617_v16 }
 0xa25   :  { %15373 = vst [vmem:[#allocation205_spill] sm:$0xff] %v13603_v37  ;;  %v6279_v37 = vunpack.c.l.bf16 %v13615_v27  ;;  %6864 = vmatpush.msra.mxu3 %v6151_v20  ;;  %v13653_v20 = vld [vmem:[#allocation5 + $0x7e8] sm:$0xff]  ;;  %6952 = vmatpush.msra.mxu0 %v6008_v9  ;;  %v13666_v9 = vld [vmem:[#allocation5 + $0x698] sm:$0xff] }
 0xa26   :  { %15374 = vst [vmem:[#allocation206_spill] sm:$0xff] %v13611_v43  ;;  %v13635_v43 = vld [vmem:[#allocation5 + $0x6d8] sm:$0xff]  ;;  %6911 = vmatpush.msra.mxu2 %v6395_v52  ;;  %v6000_v52 = vunpack.c.h.bf16 %v13317_v15  ;;  %v6072_v15 = vunpack.c.h.bf16 %v13327_v11 }
 0xa27   :  { %15375 = vst [vmem:[#allocation207_spill] sm:$0xff] %v13620_v24  ;;  %6904 = vmatpush.msra.mxu1 %v6279_v37  ;;  %v6271_v24 = vunpack.c.l.bf16 %v13633_v55  ;;  %v6387_v53 = vunpack.c.l.bf16 %v13635_v43  ;;  %6865 = vmatpush.msra.mxu3 %v6147_v50  ;;  %v6459_v37 = vunpack.c.l.bf16 %v13647_v1  ;;  %v13661_v50 = vld [vmem:[#allocation5 + $0x7d8] sm:$0xff] }
 0xa28   :  { %15376 = vst [vmem:[#allocation208_spill] sm:$0xff] %v13625_v12  ;;  %v6004_v12 = vunpack.c.h.bf16 %v13310_v5  ;;  %6912 = vmatpush.msra.mxu2 %v6391_v51  ;;  %v6076_v5 = vunpack.c.h.bf16 %v13320_v61  ;;  %v5996_v51 = vunpack.c.h.bf16 %v13323_v57  ;;  %v6068_v57 = vunpack.c.h.bf16 %v13336_v56 }
 0xa29   :  { %15377 = vst [vmem:[#allocation209_spill] sm:$0xff] %v13635_v43  ;;  %6905 = vmatpush.msra.mxu1 %v6275_v2  ;;  %6866 = vmatpush.msra.mxu3 %v6143_v49  ;;  %v13657_v43 = vld [vmem:[#allocation5 + $0x6a8] sm:$0xff]  ;;  %v6455_v2 = vunpack.c.l.bf16 %v13653_v20  ;;  %v5992_v49 = vunpack.c.h.bf16 %v13331_v4  ;;  %v6064_v4 = vunpack.c.h.bf16 %v13345_v41 }
 0xa2a   :  { %6913 = vmatpush.msra.mxu2 %v6387_v53  ;;  %6953 = vmatpush.msra.mxu0 %v6004_v12  ;;  %v6375_v61 = vunpack.c.l.bf16 %v13657_v43  ;;  %v6451_v12 = vunpack.c.l.bf16 %v13661_v50  ;;  %v13675_v53 = vld [vmem:[#allocation5 + $0x688] sm:$0xff] }
 0xa2b   :  { %6906 = vmatpush.msra.mxu1 %v6271_v24  ;;  %6867 = vmatmul.f32.vlgmr.msra.gmra.mxu3 %v15303_v35  ;;  %v13671_v24 = vld [vmem:[#allocation5 + $0x7c8] sm:$0xff] }
 0xa2c   :  { %6907 = vmatmul.f32.vlgmr.msra.gmra.mxu1 %v13199_v6  ;;  %6914 = vmatpush.msra.mxu2 %v6383_v34  ;;  %v6371_v34 = vunpack.c.l.bf16 %v13666_v9  ;;  %v13679_v6 = vld [vmem:[#allocation5 + $0x7b8] sm:$0xff]  ;;  %v6447_v11 = vunpack.c.l.bf16 %v13671_v24 }
 0xa2d   :  { %6931 = vmatpush.msra.mxu3 %v6459_v37  ;;  %6954 = vmatpush.msra.mxu0 %v6000_v52  ;;  %v5988_v37 = vunpack.c.h.bf16 %v13341_v25  ;;  %v13683_v52 = vld [vmem:[#allocation5 + $0x678] sm:$0xff]  ;;  %v6443_v56 = vunpack.c.l.bf16 %v13679_v6  ;;  %v6060_v25 = vunpack.c.h.bf16 %v13353_v36 }
 0xa2e   :  { %6971 = vmatpush.msra.mxu1 %v6076_v5  ;;  %6915 = vmatpush.msra.mxu2 %v6379_v58  ;;  %v6367_v5 = vunpack.c.l.bf16 %v13675_v53  ;;  %v13687_v58 = vld [vmem:[#allocation5 + $0x7a8] sm:$0xff] }
 0xa2f   :  { %6932 = vmatpush.msra.mxu3 %v6455_v2  ;;  %6955 = vmatpush.msra.mxu0 %v5996_v51  ;;  %v5984_v2 = vunpack.c.h.bf16 %v13349_v42  ;;  %v13691_v51 = vld [vmem:[#allocation5 + $0x668] sm:$0xff]  ;;  %v6439_v41 = vunpack.c.l.bf16 %v13687_v58  ;;  %v6056_v42 = vunpack.c.h.bf16 %v13361_v14 }
 0xa30   :  { %6972 = vmatpush.msra.mxu1 %v6072_v15  ;;  %6916 = vmatpush.msra.mxu2 %v6375_v61  ;;  %v6363_v15 = vunpack.c.l.bf16 %v13683_v52  ;;  %v13695_v61 = vld [vmem:[#allocation5 + $0x798] sm:$0xff] }
 0xa31   :  { %6933 = vmatpush.msra.mxu3 %v6451_v12  ;;  %6956 = vmatpush.msra.mxu0 %v5992_v49  ;;  %v5980_v12 = vunpack.c.h.bf16 %v13357_v62  ;;  %v13699_v49 = vld [vmem:[#allocation5 + $0x658] sm:$0xff]  ;;  %v6435_v36 = vunpack.c.l.bf16 %v13695_v61  ;;  %v6052_v62 = vunpack.c.h.bf16 %v13369_v19 }
 0xa32   :  { %6973 = vmatpush.msra.mxu1 %v6068_v57  ;;  %6917 = vmatpush.msra.mxu2 %v6371_v34  ;;  %v6359_v57 = vunpack.c.l.bf16 %v13691_v51  ;;  %v13703_v34 = vld [vmem:[#allocation5 + $0x788] sm:$0xff] }
 0xa33   :  { %6934 = vmatpush.msra.mxu3 %v6447_v11  ;;  %6957 = vmatpush.msra.mxu0 %v5988_v37  ;;  %v5976_v11 = vunpack.c.h.bf16 %v13365_v7  ;;  %v13707_v37 = vld [vmem:[#allocation5 + $0x648] sm:$0xff]  ;;  %v6431_v14 = vunpack.c.l.bf16 %v13703_v34  ;;  %v6048_v7 = vunpack.c.h.bf16 %v13377_v23 }
 0xa34   :  { %6974 = vmatpush.msra.mxu1 %v6064_v4  ;;  %6918 = vmatpush.msra.mxu2 %v6367_v5  ;;  %v6355_v4 = vunpack.c.l.bf16 %v13699_v49  ;;  %v13711_v5 = vld [vmem:[#allocation5 + $0x778] sm:$0xff] }
 0xa35   :  { %6935 = vmatpush.msra.mxu3 %v6443_v56  ;;  %6958 = vmatpush.msra.mxu0 %v5984_v2  ;;  %v5972_v56 = vunpack.c.h.bf16 %v13373_v30  ;;  %v13715_v2 = vld [vmem:[#allocation5 + $0x638] sm:$0xff]  ;;  %v6427_v19 = vunpack.c.l.bf16 %v13711_v5  ;;  %v6044_v30 = vunpack.c.h.bf16 %v13385_v40 }
 0xa36   :  { %6975 = vmatpush.msra.mxu1 %v6060_v25  ;;  %6919 = vmatpush.msra.mxu2 %v6363_v15  ;;  %v6351_v25 = vunpack.c.l.bf16 %v13707_v37  ;;  %v13719_v15 = vld [vmem:[#allocation5 + $0x768] sm:$0xff] }
 0xa37   :  { %6936 = vmatpush.msra.mxu3 %v6439_v41  ;;  %6959 = vmatpush.msra.mxu0 %v5980_v12  ;;  %v5968_v41 = vunpack.c.h.bf16 %v13381_v39  ;;  %v13723_v12 = vld [vmem:[#allocation5 + $0x628] sm:$0xff]  ;;  %v6423_v23 = vunpack.c.l.bf16 %v13719_v15  ;;  %v6040_v39 = vunpack.c.h.bf16 %v13393_v0 }
 0xa38   :  { %6976 = vmatpush.msra.mxu1 %v6056_v42  ;;  %6920 = vmatpush.msra.mxu2 %v6359_v57  ;;  %v6347_v42 = vunpack.c.l.bf16 %v13715_v2  ;;  %v13727_v57 = vld [vmem:[#allocation5 + $0x758] sm:$0xff] }
 0xa39   :  { %6937 = vmatpush.msra.mxu3 %v6435_v36  ;;  %6960 = vmatpush.msra.mxu0 %v5976_v11  ;;  %v5964_v36 = vunpack.c.h.bf16 %v13389_v10  ;;  %v13731_v11 = vld [vmem:[#allocation5 + $0x618] sm:$0xff]  ;;  %v6419_v40 = vunpack.c.l.bf16 %v13727_v57  ;;  %v6036_v10 = vunpack.c.h.bf16 %v13401_v60 }
 0xa3a   :  { %6977 = vmatpush.msra.mxu1 %v6052_v62  ;;  %6921 = vmatpush.msra.mxu2 %v6355_v4  ;;  %v6343_v62 = vunpack.c.l.bf16 %v13723_v12  ;;  %v13735_v4 = vld [vmem:[#allocation5 + $0x748] sm:$0xff] }
 0xa3b   :  { %6938 = vmatpush.msra.mxu3 %v6431_v14  ;;  %6961 = vmatpush.msra.mxu0 %v5972_v56  ;;  %v5960_v14 = vunpack.c.h.bf16 %v13397_v59  ;;  %v13739_v56 = vld [vmem:[#allocation5 + $0x608] sm:$0xff]  ;;  %v6415_v0 = vunpack.c.l.bf16 %v13735_v4  ;;  %v6032_v59 = vunpack.c.h.bf16 %v13409_v46  ;;  %v6024_v46 = vunpack.c.h.bf16 %v13423_v44 }
 0xa3c   :  { %6978 = vmatpush.msra.mxu1 %v6048_v7  ;;  %6922 = vmatpush.msra.mxu2 %v6351_v25  ;;  %v6339_v7 = vunpack.c.l.bf16 %v13731_v11  ;;  %v13743_v25 = vld [vmem:[#allocation5 + $0x738] sm:$0xff]  ;;  %v6264_v44 = vunpack.c.h.bf16 %v13437_v8 }
 0xa3d   :  { %6939 = vmatpush.msra.mxu3 %v6427_v19  ;;  %6962 = vmatpush.msra.mxu0 %v5968_v41  ;;  %v5956_v19 = vunpack.c.h.bf16 %v13405_v31  ;;  %v6335_v41 = vunpack.c.l.bf16 %v13739_v56  ;;  %v6411_v60 = vunpack.c.l.bf16 %v13743_v25 }
 0xa3e   :  { %6979 = vmatpush.msra.mxu1 %v6044_v30  ;;  %6923 = vmatpush.msra.mxu2 %v6347_v42  ;;  %v13749_v30 = vld [vmem:[#allocation5 + $0x728] sm:$0xff]  ;;  %v5952_v42 = vunpack.c.h.bf16 %v13413_v48  ;;  %v6268_v48 = vunpack.c.h.bf16 %v13428_v3  ;;  %v6016_v3 = vunpack.c.h.bf16 %v13441_v32 }
 0xa3f   :  { %6940 = vmatpush.msra.mxu3 %v6423_v23  ;;  %6963 = vmatpush.msra.mxu0 %v5964_v36  ;;  %v6028_v23 = vunpack.c.h.bf16 %v13417_v28  ;;  %v13754_v36 = vld [vmem:[#allocation5 + $0x718] sm:$0xff]  ;;  %v6407_v31 = vunpack.c.l.bf16 %v13749_v30 }
 0xa40   :  { %6980 = vmatpush.msra.mxu1 %v6040_v39  ;;  %6924 = vmatpush.msra.mxu2 %v6343_v62  ;;  %v6140_v39 = vunpack.c.h.bf16 %v13425_v33  ;;  %v13759_v62 = vld [vmem:[#allocation5 + $0x708] sm:$0xff]  ;;  %v6403_v28 = vunpack.c.l.bf16 %v13754_v36 }
 0xa41   :  { %6941 = vmatpush.msra.mxu3 %v6419_v40  ;;  %6964 = vmatpush.msra.mxu0 %v5960_v14  ;;  %v6020_v40 = vunpack.c.h.bf16 %v13431_v38  ;;  %v6136_v14 = vunpack.c.h.bf16 %v13433_v47  ;;  %v6399_v33 = vunpack.c.l.bf16 %v13759_v62  ;;  %v15380_v38 = vld [vmem:[#allocation158_spill] sm:$0xff] }
 0xa42   :  { %6981 = vmatpush.msra.mxu1 %v6036_v10  ;;  %6925 = vmatpush.msra.mxu2 %v6339_v7  ;;  %v15378_v10 = vld [vmem:[#allocation156_spill] sm:$0xff]  ;;  %v6128_v47 = vunpack.c.h.bf16 %v15380_v38 }
 0xa43   :  { %6942 = vmatpush.msra.mxu3 %v6415_v0  ;;  %6965 = vmatpush.msra.mxu0 %v5956_v19  ;;  %v6132_v7 = vunpack.c.h.bf16 %v15378_v10  ;;  %v15379_v0 = vld [vmem:[#allocation157_spill] sm:$0xff] }
 0xa44   :  { %6982 = vmatpush.msra.mxu1 %v6032_v59  ;;  %6926 = vmatpush.msra.mxu2 %v6335_v41  ;;  %v6260_v19 = vunpack.c.h.bf16 %v15379_v0  ;;  %v15382_v59 = vld [vmem:[#allocation160_spill] sm:$0xff] }
 0xa45   :  { %6943 = vmatpush.msra.mxu3 %v6411_v60  ;;  %6966 = vmatpush.msra.mxu0 %v5952_v42  ;;  %v6256_v41 = vunpack.c.h.bf16 %v15382_v59  ;;  %v15383_v60 = vld [vmem:[#allocation161_spill] sm:$0xff]  ;;  %v15384_v42 = vld [vmem:[#allocation162_spill] sm:$0xff]  ;;  %v15392_v0 = vld [vmem:[#allocation168_spill] sm:$0xff] }
 0xa46   :  { %6983 = vmatpush.msra.mxu1 %v6028_v23  ;;  %6927 = vmatmul.f32.vlgmr.msra.gmra.mxu2 %v13231_v26  ;;  %v6332_v32 = vunpack.c.h.bf16 %v15383_v60  ;;  %v6124_v23 = vunpack.c.h.bf16 %v15384_v42  ;;  %v6248_v38 = vunpack.c.h.bf16 %v15392_v0  ;;  %v15394_v59 = vld [vmem:[#allocation170_spill] sm:$0xff]  ;;  %v15395_v42 = vld [vmem:[#allocation171_spill] sm:$0xff] }
 0xa47   :  { %6967 = vmatmul.f32.vlgmr.msra.gmra.mxu0 %v12977_v54  ;;  %6944 = vmatpush.msra.mxu3 %v6407_v31  ;;  %v15381_v54 = vld [vmem:[#allocation159_spill] sm:$0xff]  ;;  %v6116_v60 = vunpack.c.h.bf16 %v15394_v59  ;;  %v15402_v0 = vld [vmem:[#allocation178_spill] sm:$0xff]  ;;  %v15404_v59 = vld [vmem:[#allocation180_spill] sm:$0xff] }
 0xa48   :  { %6984 = vmatpush.msra.mxu1 %v6024_v46  ;;  %6991 = vmatpush.msra.mxu2 %v6140_v39  ;;  %v6204_v8 = vunpack.c.h.bf16 %v15381_v54  ;;  %v15385_v31 = vld [vmem:[#allocation155_spill] sm:$0xff] }
 0xa49   :  { %7031 = vmatpush.msra.mxu0 %v6268_v48  ;;  %6945 = vmatpush.msra.mxu3 %v6403_v28  ;;  %v15386_v46 = vld [vmem:[#allocation163_spill] sm:$0xff]  ;;  %v15387_v48 = vld [vmem:[#allocation164_spill] sm:$0xff] }
 0xa4a   :  { %6985 = vmatpush.msra.mxu1 %v6020_v40  ;;  %6992 = vmatpush.msra.mxu2 %v6136_v14  ;;  %v6200_v39 = vunpack.c.h.bf16 %v15386_v46  ;;  %v6252_v28 = vunpack.c.h.bf16 %v15387_v48  ;;  %v15388_v40 = vld [vmem:[#allocation97_spill] sm:$0xff]  ;;  %v15396_v46 = vld [vmem:[#allocation172_spill] sm:$0xff] }
 0xa4b   :  { %7032 = vmatpush.msra.mxu0 %v6264_v44  ;;  %6946 = vmatpush.msra.mxu3 %v6399_v33  ;;  %v15389_v14 = vld [vmem:[#allocation165_spill] sm:$0xff]  ;;  %v15390_v33 = vld [vmem:[#allocation166_spill] sm:$0xff]  ;;  %v6244_v48 = vunpack.c.h.bf16 %v15396_v46 }
 0xa4c   :  { %6986 = vmatpush.msra.mxu1 %v6016_v3  ;;  %6993 = vmatpush.msra.mxu2 %v6132_v7  ;;  %v6328_v44 = vunpack.c.h.bf16 %v15389_v14  ;;  %v6120_v10 = vunpack.c.h.bf16 %v15390_v33  ;;  %v15391_v3 = vld [vmem:[#allocation167_spill] sm:$0xff]  ;;  %v15400_v33 = vld [vmem:[#allocation176_spill] sm:$0xff]  ;;  %v15406_v46 = vld [vmem:[#allocation182_spill] sm:$0xff] }
 0xa4d   :  { %7033 = vmatpush.msra.mxu0 %v6260_v19  ;;  %6947 = vmatmul.f32.vlgmr.msra.gmra.mxu3 %v15385_v31  ;;  %v6196_v7 = vunpack.c.h.bf16 %v15391_v3  ;;  %v15393_v19 = vld [vmem:[#allocation169_spill] sm:$0xff]  ;;  %v6240_v3 = vunpack.c.h.bf16 %v15400_v33  ;;  %v15410_v33 = vld [vmem:[#allocation186_spill] sm:$0xff] }
 0xa4e   :  { %6987 = vmatmul.f32.vlgmr.msra.gmra.mxu1 %v15388_v40  ;;  %6994 = vmatpush.msra.mxu2 %v6128_v47  ;;  %v6324_v54 = vunpack.c.h.bf16 %v15393_v19  ;;  %v6192_v47 = vunpack.c.h.bf16 %v15395_v42  ;;  %v15398_v40 = vld [vmem:[#allocation174_spill] sm:$0xff]  ;;  %v6108_v19 = vunpack.c.h.bf16 %v15402_v0  ;;  %v6236_v42 = vunpack.c.h.bf16 %v15404_v59  ;;  %v15412_v0 = vld [vmem:[#allocation188_spill] sm:$0xff] }
 0xa4f   :  { %7011 = vmatpush.msra.mxu3 %v6204_v8  ;;  %7034 = vmatpush.msra.mxu0 %v6256_v41  ;;  %v15397_v8 = vld [vmem:[#allocation173_spill] sm:$0xff]  ;;  %v6112_v14 = vunpack.c.h.bf16 %v15398_v40  ;;  %v15408_v40 = vld [vmem:[#allocation184_spill] sm:$0xff]  ;;  %v15414_v59 = vld [vmem:[#allocation190_spill] sm:$0xff] }
 0xa50   :  { %7051 = vmatpush.msra.mxu1 %v6332_v32  ;;  %6995 = vmatpush.msra.mxu2 %v6124_v23  ;;  %v6320_v41 = vunpack.c.h.bf16 %v15397_v8  ;;  %v15399_v32 = vld [vmem:[#allocation175_spill] sm:$0xff]  ;;  %v6104_v8 = vunpack.c.h.bf16 %v15406_v46  ;;  %v15416_v46 = vld [vmem:[#allocation192_spill] sm:$0xff] }
 0xa51   :  { %7012 = vmatpush.msra.mxu3 %v6200_v39  ;;  %7035 = vmatpush.msra.mxu0 %v6252_v28  ;;  %v6188_v23 = vunpack.c.h.bf16 %v15399_v32  ;;  %v15401_v39 = vld [vmem:[#allocation177_spill] sm:$0xff]  ;;  %v6232_v32 = vunpack.c.h.bf16 %v15408_v40  ;;  %v15418_v40 = vld [vmem:[#allocation194_spill] sm:$0xff] }
 0xa52   :  { %7052 = vmatpush.msra.mxu1 %v6328_v44  ;;  %6996 = vmatpush.msra.mxu2 %v6120_v10  ;;  %v6316_v28 = vunpack.c.h.bf16 %v15401_v39  ;;  %v15403_v44 = vld [vmem:[#allocation179_spill] sm:$0xff]  ;;  %v6100_v39 = vunpack.c.h.bf16 %v15410_v33  ;;  %v15420_v33 = vld [vmem:[#allocation196_spill] sm:$0xff] }
 0xa53   :  { %7013 = vmatpush.msra.mxu3 %v6196_v7  ;;  %7036 = vmatpush.msra.mxu0 %v6248_v38  ;;  %v6184_v10 = vunpack.c.h.bf16 %v15403_v44  ;;  %v15405_v7 = vld [vmem:[#allocation181_spill] sm:$0xff]  ;;  %v6228_v44 = vunpack.c.h.bf16 %v15412_v0  ;;  %v15422_v0 = vld [vmem:[#allocation198_spill] sm:$0xff] }
 0xa54   :  { %7053 = vmatpush.msra.mxu1 %v6324_v54  ;;  %6997 = vmatpush.msra.mxu2 %v6116_v60  ;;  %v6312_v38 = vunpack.c.h.bf16 %v15405_v7  ;;  %v15407_v54 = vld [vmem:[#allocation183_spill] sm:$0xff]  ;;  %v6096_v7 = vunpack.c.h.bf16 %v15414_v59 }
 0xa55   :  { %7014 = vmatpush.msra.mxu3 %v6192_v47  ;;  %7037 = vmatpush.msra.mxu0 %v6244_v48  ;;  %v6180_v60 = vunpack.c.h.bf16 %v15407_v54  ;;  %v15409_v47 = vld [vmem:[#allocation185_spill] sm:$0xff]  ;;  %v6224_v54 = vunpack.c.h.bf16 %v15416_v46 }
 0xa56   :  { %7054 = vmatpush.msra.mxu1 %v6320_v41  ;;  %6998 = vmatpush.msra.mxu2 %v6112_v14  ;;  %v6308_v48 = vunpack.c.h.bf16 %v15409_v47  ;;  %v15411_v41 = vld [vmem:[#allocation187_spill] sm:$0xff]  ;;  %v6092_v47 = vunpack.c.h.bf16 %v15418_v40 }
 0xa57   :  { %7015 = vmatpush.msra.mxu3 %v6188_v23  ;;  %7038 = vmatpush.msra.mxu0 %v6240_v3  ;;  %v6176_v14 = vunpack.c.h.bf16 %v15411_v41  ;;  %v15413_v23 = vld [vmem:[#allocation189_spill] sm:$0xff]  ;;  %v6220_v41 = vunpack.c.h.bf16 %v15420_v33  ;;  %v15430_v33 = vld [vmem:[#allocation206_spill] sm:$0xff] }
 0xa58   :  { %7055 = vmatpush.msra.mxu1 %v6316_v28  ;;  %6999 = vmatpush.msra.mxu2 %v6108_v19  ;;  %v6304_v3 = vunpack.c.h.bf16 %v15413_v23  ;;  %v15415_v28 = vld [vmem:[#allocation191_spill] sm:$0xff]  ;;  %v6088_v23 = vunpack.c.h.bf16 %v15422_v0 }
 0xa59   :  { %7016 = vmatpush.msra.mxu3 %v6184_v10  ;;  %7039 = vmatpush.msra.mxu0 %v6236_v42  ;;  %v6172_v19 = vunpack.c.h.bf16 %v15415_v28  ;;  %v15417_v10 = vld [vmem:[#allocation193_spill] sm:$0xff]  ;;  %v15431_v0 = vld [vmem:[#allocation207_spill] sm:$0xff] }
 0xa5a   :  { %7056 = vmatpush.msra.mxu1 %v6312_v38  ;;  %7000 = vmatpush.msra.mxu2 %v6104_v8  ;;  %v6300_v42 = vunpack.c.h.bf16 %v15417_v10  ;;  %v15419_v38 = vld [vmem:[#allocation195_spill] sm:$0xff]  ;;  %v15425_v28 = vld [vmem:[#allocation201_spill] sm:$0xff]  ;;  %v6212_v10 = vunpack.c.h.bf16 %v13591_v29 }
 0xa5b   :  { %7017 = vmatpush.msra.mxu3 %v6180_v60  ;;  %7040 = vmatpush.msra.mxu0 %v6232_v32  ;;  %v6168_v8 = vunpack.c.h.bf16 %v15419_v38  ;;  %v15421_v60 = vld [vmem:[#allocation197_spill] sm:$0xff]  ;;  %v6084_v46 = vunpack.c.h.bf16 %v15425_v28  ;;  %v6144_v28 = vunpack.c.h.bf16 %v13629_v21  ;;  %v6384_v21 = vunpack.c.h.bf16 %v13643_v45 }
 0xa5c   :  { %7057 = vmatpush.msra.mxu1 %v6308_v48  ;;  %7001 = vmatpush.msra.mxu2 %v6100_v39  ;;  %v6296_v32 = vunpack.c.h.bf16 %v15421_v60  ;;  %v6164_v48 = vunpack.c.h.bf16 %v13577_v63  ;;  %v15423_v39 = vld [vmem:[#allocation199_spill] sm:$0xff]  ;;  %v8647_v29 = vld [vmem:[%s14009_s7 + $0x38] sm:$0xff]   ;;  %v6396_v60 = vunpack.c.h.bf16 %v13617_v16  ;;  %v6380_v45 = vunpack.c.h.bf16 %v13650_v18 }
 0xa5d   :  { %7018 = vmatpush.msra.mxu3 %v6176_v14  ;;  %7041 = vmatpush.msra.mxu0 %v6228_v44  ;;  %v6216_v59 = vunpack.c.h.bf16 %v15423_v39  ;;  %v15424_v14 = vld [vmem:[#allocation200_spill] sm:$0xff]  ;;  %v6276_v39 = vunpack.c.h.bf16 %v13623_v22  ;;  %v8416_v16 = vunpack.c.l.bf16 %v8647_v29  ;;  %v6376_v18 = vunpack.c.h.bf16 %v13657_v43 }
 0xa5e   :  { %7058 = vmatpush.msra.mxu1 %v6304_v3  ;;  %7002 = vmatpush.msra.mxu2 %v6096_v7  ;;  %v6292_v44 = vunpack.c.h.bf16 %v15424_v14  ;;  %v15426_v3 = vld [vmem:[#allocation202_spill] sm:$0xff]  ;;  %v6448_v43 = vunpack.c.h.bf16 %v13671_v24  ;;  %v6444_v24 = vunpack.c.h.bf16 %v13679_v6 }
 0xa5f   :  { %7019 = vmatpush.msra.mxu3 %v6172_v19  ;;  %7042 = vmatpush.msra.mxu0 %v6224_v54  ;;  %v6160_v7 = vunpack.c.h.bf16 %v15426_v3  ;;  %v6288_v19 = vunpack.c.h.bf16 %v13595_v13  ;;  %v15427_v54 = vld [vmem:[#allocation203_spill] sm:$0xff]  ;;  %v6152_v13 = vunpack.c.h.bf16 %v15430_v33  ;;  %v6272_v3 = vunpack.c.h.bf16 %v13633_v55  ;;  %v13857_v55 = vld [vmem:[%s14008_s6] sm:$0xf]  ;;  %v8654_v33 = vld [vmem:[%s14009_s7 + $0x70] sm:$0xff]  }
 0xa60   :  { %7059 = vmatpush.msra.mxu1 %v6300_v42  ;;  %7003 = vmatpush.msra.mxu2 %v6092_v47  ;;  %v6080_v63 = vunpack.c.h.bf16 %v15427_v54  ;;  %v15428_v42 = vld [vmem:[#allocation204_spill] sm:$0xff]  ;;  %v15429_v47 = vld [vmem:[#allocation205_spill] sm:$0xff]  ;;  %v13848_v54 = vpop.f32.mrf.mxu2 }
 0xa61   :  { %7020 = vmatpush.msra.mxu3 %v6168_v8  ;;  %7043 = vmatpush.msra.mxu0 %v6220_v41  ;;  %v6156_v40 = vunpack.c.h.bf16 %v15428_v42  ;;  %v6208_v38 = vunpack.c.h.bf16 %v15429_v47  ;;  %v6284_v8 = vunpack.c.h.bf16 %v13607_v17  ;;  %v6280_v41 = vunpack.c.h.bf16 %v13615_v27  ;;  %v6488_v17 = vpop.f32.mrf.mxu0  ;;  %v15434_v27 = vld [vmem:[#allocation153_spill] sm:$0xff]  ;;  %v13860_v47 = vpop.f32.mrf.mxu3 }
 0xa62   :  { %7060 = vmatpush.msra.mxu1 %v6296_v32  ;;  %7004 = vmatpush.msra.mxu2 %v6088_v23  ;;  %v8417_v32 = vunpack.c.h.bf16 %v8647_v29  ;;  %v6148_v23 = vunpack.c.h.bf16 %v15431_v0  ;;  %v6460_v42 = vunpack.c.h.bf16 %v13647_v1  ;;  %v6463_v1 = vperm.slane %v13857_v55, 0 }
 0xa63   :  { %7021 = vmatpush.msra.mxu3 %v6164_v48  ;;  %7044 = vmatpush.msra.mxu0 %v6216_v59  ;;  %v15432_v48 = vld [vmem:[#allocation124_spill] sm:$0xff] }
 0xa64   :  { %7061 = vmatpush.msra.mxu1 %v6292_v44  ;;  %7005 = vmatpush.msra.mxu2 %v6084_v46  ;;  %v15433_v59 = vld [vmem:[#allocation208_spill] sm:$0xff]  ;;  %v13841_v46 = vpop.f32.mrf.mxu1 }
 0xa65   :  { %7022 = vmatpush.msra.mxu3 %v6160_v7  ;;  %7045 = vmatpush.msra.mxu0 %v6212_v10  ;;  %v6392_v14 = vunpack.c.h.bf16 %v15433_v59  ;;  %v8646_v44 = vld [vmem:[%s14009_s7 + $0x30] sm:$0xff]   ;;  %v15435_v7 = vld [vmem:[#allocation209_spill] sm:$0xff]  ;;  %v8653_v59 = vld [vmem:[%s14009_s7 + $0x68] sm:$0xff]  }
 0xa66   :  { %7062 = vmatpush.msra.mxu1 %v6288_v19  ;;  %7006 = vmatpush.msra.mxu2 %v6080_v63  ;;  %v6388_v22 = vunpack.c.h.bf16 %v15435_v7  ;;  %v8413_v10 = vunpack.c.h.bf16 %v8646_v44  ;;  %v8655_v19 = vld [vmem:[%s14009_s7 + $0x78] sm:$0xff]   ;;  %v8645_v63 = vld [vmem:[%s14009_s7 + $0x28] sm:$0xff]   ;;  %v6440_v7 = vunpack.c.h.bf16 %v13687_v58  ;;  %v6436_v58 = vunpack.c.h.bf16 %v13695_v61 }
 0xa67   :  { %7023 = vmatpush.msra.mxu3 %v6156_v40  ;;  %7046 = vmatpush.msra.mxu0 %v6208_v38  ;;  %v8412_v40 = vunpack.c.l.bf16 %v8646_v44  ;;  %v8449_v38 = vunpack.c.h.bf16 %v8655_v19  ;;  %v8409_v29 = vunpack.c.h.bf16 %v8645_v63 }
 0xa68   :  { %7063 = vmatpush.msra.mxu1 %v6284_v8  ;;  %7007 = vmatmul.f32.vlgmr.msra.gmra.mxu2 %v15432_v48  ;;  %v6456_v8 = vunpack.c.h.bf16 %v13653_v20  ;;  %v6452_v20 = vunpack.c.h.bf16 %v13661_v50  ;;  %v8445_v48 = vunpack.c.h.bf16 %v8654_v33  ;;  %v13884_v44 = vpop.f32.mrf.mxu2  ;;  %v6368_v50 = vunpack.c.h.bf16 %v13675_v53 }
 0xa69   :  { %7047 = vmatmul.f32.vlgmr.msra.gmra.mxu0 %v15434_v27  ;;  %7024 = vmatpush.msra.mxu3 %v6152_v13  ;;  %v13869_v13 = vpop.f32.mrf.mxu0  ;;  %v8444_v27 = vunpack.c.l.bf16 %v8654_v33  ;;  %v6464_v53 = vperm.slane %v13857_v55, 1  ;;  %v8651_v33 = vld [vmem:[%s14009_s7 + $0x58] sm:$0xff]  }
 0xa6a   :  { %7064 = vmatpush.msra.mxu1 %v6280_v41  ;;  %7071 = vmatpush.msra.mxu2 %v6396_v60  ;;  %v15436_v41 = vld [vmem:[#allocation154_spill] sm:$0xff]  ;;  %v8448_v60 = vunpack.c.l.bf16 %v8655_v19 }
 0xa6b   :  { %7247 = vmatpush.msra.mxu0 %v8417_v32  ;;  %7025 = vmatpush.msra.mxu3 %v6148_v23  ;;  %v8408_v32 = vunpack.c.l.bf16 %v8645_v63  ;;  %v6372_v23 = vunpack.c.h.bf16 %v13666_v9  ;;  %v8643_v9 = vld [vmem:[%s14009_s7 + $0x18] sm:$0xff]   ;;  %v8440_v63 = vunpack.c.l.bf16 %v8653_v59 }
 0xa6c   :  { %7065 = vmatpush.msra.mxu1 %v6276_v39  ;;  %7072 = vmatpush.msra.mxu2 %v6392_v14  ;;  %v13877_v0 = vpop.f32.mrf.mxu1  ;;  %v6489_v14 = vadd.f32 %v6488_v17, %v6463_v1  ;;  %v6364_v17 = vunpack.c.h.bf16 %v13683_v52  ;;  %v8642_v52 = vld [vmem:[%s14009_s7 + $0x10] sm:$0xff]  }
 0xa6d   :  { %7248 = vmatpush.msra.mxu0 %v8416_v16  ;;  %7026 = vmatpush.msra.mxu3 %v6144_v28  ;;  %v13891_v28 = vpop.f32.mrf.mxu3 }
 0xa6e   :  { %7066 = vmatpush.msra.mxu1 %v6272_v3  ;;  %7073 = vmatpush.msra.mxu2 %v6388_v22  ;;  %v8441_v3 = vunpack.c.h.bf16 %v8653_v59  ;;  %v8401_v22 = vunpack.c.h.bf16 %v8643_v9  ;;  %v6509_v6 = vadd.f32 %v13841_v46, %v6489_v14  ;;  %v6356_v46 = vunpack.c.h.bf16 %v13699_v49  ;;  %v8641_v49 = vld [vmem:[%s14009_s7 + $0x8] sm:$0xff]  }
 0xa6f   :  { %7249 = vmatpush.msra.mxu0 %v8413_v10  ;;  %7027 = vmatmul.f32.vlgmr.msra.gmra.mxu3 %v15303_v35  ;;  %v8644_v35 = vld [vmem:[%s14009_s7 + $0x20] sm:$0xff]   ;;  %v8392_v14 = vunpack.c.l.bf16 %v8641_v49 }
 0xa70   :  { %7067 = vmatmul.f32.vlgmr.msra.gmra.mxu1 %v15436_v41  ;;  %7074 = vmatpush.msra.mxu2 %v6384_v21  ;;  %v8405_v39 = vunpack.c.h.bf16 %v8644_v35  ;;  %v8404_v16 = vunpack.c.l.bf16 %v8644_v35  ;;  %v8652_v10 = vld [vmem:[%s14009_s7 + $0x60] sm:$0xff]   ;;  %v6360_v21 = vunpack.c.h.bf16 %v13691_v51  ;;  %v6688_v1 = vpop.f32.mrf.mxu2  ;;  %v8396_v35 = vunpack.c.l.bf16 %v8642_v52 }
 0xa71   :  { %7091 = vmatpush.msra.mxu3 %v6460_v42  ;;  %7250 = vmatpush.msra.mxu0 %v8412_v40  ;;  %v6648_v19 = vpop.f32.mrf.mxu0  ;;  %v8400_v42 = vunpack.c.l.bf16 %v8643_v9  ;;  %v6529_v40 = vadd.f32 %v13848_v54, %v6509_v6  ;;  %v6352_v54 = vunpack.c.h.bf16 %v13707_v37  ;;  %v8436_v41 = vunpack.c.l.bf16 %v8652_v10 }
 0xa72   :  { %7075 = vmatpush.msra.mxu2 %v6380_v45  ;;  %7267 = vmatpush.msra.mxu1 %v8449_v38  ;;  %v8437_v38 = vunpack.c.h.bf16 %v8652_v10  ;;  %v6649_v51 = vadd.f32 %v6648_v19, %v6464_v53  ;;  %v8433_v37 = vunpack.c.h.bf16 %v8651_v33  ;;  %v8648_v10 = vld [vmem:[%s14009_s7 + $0x40] sm:$0xff]   ;;  %v6404_v6 = vunpack.c.h.bf16 %v13754_v36  ;;  %v8662_v36 = vld [vmem:[%s14009_s7 + $0xb0] sm:$0xff]  }
 0xa73   :  { %7092 = vmatpush.msra.mxu3 %v6456_v8  ;;  %7251 = vmatpush.msra.mxu0 %v8409_v29  ;;  %v6432_v8 = vunpack.c.h.bf16 %v13703_v34  ;;  %v8397_v29 = vunpack.c.h.bf16 %v8642_v52  ;;  %v6549_v61 = vadd.f32 %v13860_v47, %v6529_v40  ;;  %v6428_v34 = vunpack.c.h.bf16 %v13711_v5 }
 0xa74   :  { %7076 = vmatpush.msra.mxu2 %v6376_v18  ;;  %7268 = vmatpush.msra.mxu1 %v8448_v60  ;;  %v6668_v45 = vpop.f32.mrf.mxu1  ;;  %v6348_v47 = vunpack.c.h.bf16 %v13715_v2  ;;  %v8387_v2 = vld [vmem:[%s14009_s7] sm:$0xff]   ;;  %v8421_v52 = vunpack.c.h.bf16 %v8648_v10 }
 0xa75   :  { %7093 = vmatpush.msra.mxu3 %v6452_v20  ;;  %7252 = vmatpush.msra.mxu0 %v8408_v32  ;;  %v6669_v18 = vadd.f32 %v6668_v45, %v6649_v51  ;;  %v6569_v60 = vadd.f32 %v13869_v13, %v6549_v61  ;;  %v6708_v20 = vpop.f32.mrf.mxu3  ;;  %v6344_v13 = vunpack.c.h.bf16 %v13723_v12  ;;  %v6416_v12 = vunpack.c.h.bf16 %v13735_v4 }
 0xa76   :  { %7077 = vmatpush.msra.mxu2 %v6372_v23  ;;  %7269 = vmatpush.msra.mxu1 %v8445_v48  ;;  %v6424_v23 = vunpack.c.h.bf16 %v13719_v15  ;;  %v8393_v48 = vunpack.c.h.bf16 %v8641_v49  ;;  %v6420_v15 = vunpack.c.h.bf16 %v13727_v57  ;;  %v8388_v53 = vunpack.c.l.bf16 %v8387_v2 }
 0xa77   :  { %7094 = vmatpush.msra.mxu3 %v6448_v43  ;;  %7253 = vmatpush.msra.mxu0 %v8405_v39  ;;  %v6689_v32 = vadd.f32 %v6688_v1, %v6669_v18  ;;  %v8650_v43 = vld [vmem:[%s14009_s7 + $0x50] sm:$0xff]   ;;  %v6589_v5 = vadd.f32 %v13877_v0, %v6569_v60  ;;  %v8432_v39 = vunpack.c.l.bf16 %v8651_v33  ;;  %v6340_v0 = vunpack.c.h.bf16 %v13731_v11  ;;  %v8659_v1 = vld [vmem:[%s14009_s7 + $0x98] sm:$0xff]  }
 0xa78   :  { %7078 = vmatpush.msra.mxu2 %v6368_v50  ;;  %7270 = vmatpush.msra.mxu1 %v8444_v27  ;;  %v8429_v9 = vunpack.c.h.bf16 %v8650_v43  ;;  %v8389_v27 = vunpack.c.h.bf16 %v8387_v2  ;;  %v8428_v57 = vunpack.c.l.bf16 %v8650_v43  ;;  %v6408_v4 = vunpack.c.h.bf16 %v13749_v30 }
 0xa79   :  { %7095 = vmatpush.msra.mxu3 %v6444_v24  ;;  %7254 = vmatpush.msra.mxu0 %v8404_v16  ;;  %v6709_v59 = vadd.f32 %v6708_v20, %v6689_v32  ;;  %v6609_v50 = vadd.f32 %v13884_v44, %v6589_v5  ;;  %v6728_v16 = vpop.f32.mrf.mxu0  ;;  %v8649_v44 = vld [vmem:[%s14009_s7 + $0x48] sm:$0xff]   ;;  %v8464_v49 = vunpack.c.l.bf16 %v8659_v1 }
 0xa7a   :  { %7079 = vmatpush.msra.mxu2 %v6364_v17  ;;  %7271 = vmatpush.msra.mxu1 %v8441_v3  ;;  %v6336_v17 = vunpack.c.h.bf16 %v13739_v56  ;;  %v6412_v3 = vunpack.c.h.bf16 %v13743_v25  ;;  %v8424_v19 = vunpack.c.l.bf16 %v8649_v44 }
 0xa7b   :  { %7096 = vmatpush.msra.mxu3 %v6440_v7  ;;  %7255 = vmatpush.msra.mxu0 %v8401_v22  ;;  %v6629_v24 = vadd.f32 %v13891_v28, %v6609_v50  ;;  %v6729_v11 = vadd.f32 %v6728_v16, %v6709_v59  ;;  %v8425_v28 = vunpack.c.h.bf16 %v8649_v44  ;;  %v8670_v44 = vld [vmem:[%s14009_s7 + $0xf0] sm:$0xff]  }
 0xa7c   :  { %7080 = vmatpush.msra.mxu2 %v6360_v21  ;;  %7272 = vmatpush.msra.mxu1 %v8440_v63  ;;  %v6748_v7 = vpop.f32.mrf.mxu1  ;;  %v6400_v21 = vunpack.c.h.bf16 %v13759_v62 }
 0xa7d   :  { %7097 = vmatpush.msra.mxu3 %v6436_v58  ;;  %7256 = vmatpush.msra.mxu0 %v8400_v42  ;;  %v7111_v56 = vmax.f32 %v6629_v24, 0.0  ;;  %v6768_v22 = vpop.f32.mrf.mxu2  ;;  %v6749_v25 = vadd.f32 %v6748_v7, %v6729_v11  ;;  %v8420_v42 = vunpack.c.l.bf16 %v8648_v10  ;;  %v8668_v7 = vld [vmem:[%s14009_s7 + $0xe0] sm:$0xff]  }
 0xa7e   :  { %7081 = vmatpush.msra.mxu2 %v6356_v46  ;;  %7273 = vmatpush.msra.mxu1 %v8437_v38  ;;  %v8477_v46 = vunpack.c.h.bf16 %v8662_v36  ;;  %v8661_v38 = vld [vmem:[%s14009_s7 + $0xa8] sm:$0xff]   ;;  %v8501_v10 = vunpack.c.h.bf16 %v8668_v7 }
 0xa7f   :  { %7098 = vmatpush.msra.mxu3 %v6432_v8  ;;  %7257 = vmatpush.msra.mxu0 %v8397_v29  ;;  %v6769_v30 = vadd.f32 %v6768_v22, %v6749_v25  ;;  %v8473_v51 = vunpack.c.h.bf16 %v8661_v38  ;;  %v8660_v8 = vld [vmem:[%s14009_s7 + $0xa0] sm:$0xff]   ;;  %v8472_v29 = vunpack.c.l.bf16 %v8661_v38  ;;  %v8500_v25 = vunpack.c.l.bf16 %v8668_v7 }
 0xa80   :  { %7082 = vmatpush.msra.mxu2 %v6352_v54  ;;  %7274 = vmatpush.msra.mxu1 %v8436_v41  ;;  %v8469_v33 = vunpack.c.h.bf16 %v8660_v8  ;;  %v8468_v61 = vunpack.c.l.bf16 %v8660_v8  ;;  %v8465_v54 = vunpack.c.h.bf16 %v8659_v1  ;;  %v8658_v41 = vld [vmem:[%s14009_s7 + $0x90] sm:$0xff]  }
 0xa81   :  { %7099 = vmatpush.msra.mxu3 %v6428_v34  ;;  %7258 = vmatpush.msra.mxu0 %v8396_v35  ;;  %v8461_v18 = vunpack.c.h.bf16 %v8658_v41  ;;  %v8460_v34 = vunpack.c.l.bf16 %v8658_v41  ;;  %v8657_v35 = vld [vmem:[%s14009_s7 + $0x88] sm:$0xff]  }
 0xa82   :  { %7083 = vmatpush.msra.mxu2 %v6348_v47  ;;  %7275 = vmatpush.msra.mxu1 %v8433_v37  ;;  %v8457_v60 = vunpack.c.h.bf16 %v8657_v35  ;;  %v8456_v20 = vunpack.c.l.bf16 %v8657_v35  ;;  %v8656_v47 = vld [vmem:[%s14009_s7 + $0x80] sm:$0xff]  }
 0xa83   :  { %7100 = vmatpush.msra.mxu3 %v6424_v23  ;;  %7259 = vmatpush.msra.mxu0 %v8393_v48  ;;  %v8453_v37 = vunpack.c.h.bf16 %v8656_v47  ;;  %v8452_v32 = vunpack.c.l.bf16 %v8656_v47  ;;  %v6465_v23 = vperm.slane %v13857_v55, 2  ;;  %v6808_v48 = vpop.f32.mrf.mxu0 }
 0xa84   :  { %7084 = vmatpush.msra.mxu2 %v6344_v13  ;;  %7276 = vmatpush.msra.mxu1 %v8432_v39  ;;  %v6788_v63 = vpop.f32.mrf.mxu3  ;;  %v6828_v43 = vpop.f32.mrf.mxu1 }
 0xa85   :  { %7101 = vmatpush.msra.mxu3 %v6420_v15  ;;  %7260 = vmatpush.msra.mxu0 %v8392_v14  ;;  %v6789_v58 = vadd.f32 %v6788_v63, %v6769_v30  ;;  %v6809_v5 = vadd.f32 %v6808_v48, %v6465_v23 }
 0xa86   :  { %7085 = vmatpush.msra.mxu2 %v6340_v0  ;;  %7277 = vmatpush.msra.mxu1 %v8429_v9 }
 0xa87   :  { %7102 = vmatpush.msra.mxu3 %v6416_v12  ;;  %7261 = vmatpush.msra.mxu0 %v8389_v27  ;;  %v7112_v40 = vmax.f32 %v6789_v58, 0.0  ;;  %v6829_v2 = vadd.f32 %v6828_v43, %v6809_v5  ;;  %v8665_v58 = vld [vmem:[%s14009_s7 + $0xc8] sm:$0xff]  }
 0xa88   :  { %7086 = vmatpush.msra.mxu2 %v6336_v17  ;;  %7278 = vmatpush.msra.mxu1 %v8428_v57  ;;  %v8671_v57 = vld [vmem:[%s14009_s7 + $0xf8] sm:$0xff]  }
 0xa89   :  { %7103 = vmatpush.msra.mxu3 %v6412_v3  ;;  %7262 = vmatpush.msra.mxu0 %v8388_v53  ;;  %v8513_v11 = vunpack.c.h.bf16 %v8671_v57  ;;  %v8512_v3 = vunpack.c.l.bf16 %v8671_v57  ;;  %v8509_v53 = vunpack.c.h.bf16 %v8670_v44 }
 0xa8a   :  { %7087 = vmatmul.f32.vlgmr.msra.gmra.mxu2 %v13231_v26  ;;  %7263 = vmatmul.f32.vlgmr.msra.gmra.mxu0 %v7111_v56  ;;  %v8663_v26 = vld [vmem:[%s14009_s7 + $0xb8] sm:$0xff]  }
 0xa8b   :  { %7104 = vmatpush.msra.mxu3 %v6408_v4  ;;  %7279 = vmatpush.msra.mxu1 %v8425_v28  ;;  %v8481_v62 = vunpack.c.h.bf16 %v8663_v26  ;;  %v8480_v45 = vunpack.c.l.bf16 %v8663_v26  ;;  %v8669_v4 = vld [vmem:[%s14009_s7 + $0xe8] sm:$0xff]   ;;  %v8508_v28 = vunpack.c.l.bf16 %v8670_v44  ;;  %v8664_v26 = vld [vmem:[%s14009_s7 + $0xc0] sm:$0xff]  }
 0xa8c   :  { %v8505_v56 = vunpack.c.h.bf16 %v8669_v4  ;;  %v8504_v22 = vunpack.c.l.bf16 %v8669_v4 }
 0xa8d   :  { %7105 = vmatpush.msra.mxu3 %v6404_v6  ;;  %7280 = vmatpush.msra.mxu1 %v8424_v19  ;;  %v8667_v6 = vld [vmem:[%s14009_s7 + $0xd8] sm:$0xff]  }
 0xa8e   :  { %7287 = vmatpush.msra.mxu2 %v8481_v62  ;;  %v8497_v19 = vunpack.c.h.bf16 %v8667_v6  ;;  %v8496_v30 = vunpack.c.l.bf16 %v8667_v6  ;;  %v8484_v62 = vunpack.c.l.bf16 %v8664_v26 }
 0xa8f   :  { %7106 = vmatpush.msra.mxu3 %v6400_v21  ;;  %7281 = vmatpush.msra.mxu1 %v8421_v52  ;;  %v8666_v21 = vld [vmem:[%s14009_s7 + $0xd0] sm:$0xff]  }
 0xa90   :  { %7107 = vmatmul.f32.vlgmr.msra.gmra.mxu3 %v15385_v31  ;;  %7288 = vmatpush.msra.mxu2 %v8480_v45  ;;  %v8476_v31 = vunpack.c.l.bf16 %v8662_v36  ;;  %v8493_v52 = vunpack.c.h.bf16 %v8666_v21  ;;  %v8492_v63 = vunpack.c.l.bf16 %v8666_v21  ;;  %v8485_v36 = vunpack.c.h.bf16 %v8664_v26 }
 0xa91   :  { %7282 = vmatpush.msra.mxu1 %v8420_v42  ;;  %7307 = vmatpush.msra.mxu3 %v8513_v11  ;;  %v8489_v42 = vunpack.c.h.bf16 %v8665_v58  ;;  %v6466_v45 = vperm.slane %v13857_v55, 3  ;;  %v8811_v55 = vld [vmem:[%s14010_s8] ss:$0 sm:$0xff] }
 0xa92   :  { %7283 = vmatmul.f32.vlgmr.msra.gmra.mxu1 %v7112_v40  ;;  %7289 = vmatpush.msra.mxu2 %v8477_v46  ;;  %v8488_v40 = vunpack.c.l.bf16 %v8665_v58 }
 0xa93   :  { %7308 = vmatpush.msra.mxu3 %v8512_v3 }
 0xa94   :  { %7290 = vmatpush.msra.mxu2 %v8476_v31 }
 0xa95   :  { %7309 = vmatpush.msra.mxu3 %v8509_v53 }
 0xa96   :  { %7291 = vmatpush.msra.mxu2 %v8473_v51 }
 0xa97   :  { %7310 = vmatpush.msra.mxu3 %v8508_v28 }
 0xa98   :  { %7292 = vmatpush.msra.mxu2 %v8472_v29 }
 0xa99   :  { %7311 = vmatpush.msra.mxu3 %v8505_v56 }
 0xa9a   :  { %7293 = vmatpush.msra.mxu2 %v8469_v33 }
 0xa9b   :  { %7312 = vmatpush.msra.mxu3 %v8504_v22 }
 0xa9c   :  { %7294 = vmatpush.msra.mxu2 %v8468_v61 }
 0xa9d   :  { %7313 = vmatpush.msra.mxu3 %v8501_v10 }
 0xa9e   :  { %7295 = vmatpush.msra.mxu2 %v8465_v54  ;;  %v6888_v14 = vpop.f32.mrf.mxu0 }
 0xa9f   :  { %7314 = vmatpush.msra.mxu3 %v8500_v25 }
 0xaa0   :  { %7296 = vmatpush.msra.mxu2 %v8464_v49 }
 0xaa1   :  { %7315 = vmatpush.msra.mxu3 %v8497_v19 }
 0xaa2   :  { %7297 = vmatpush.msra.mxu2 %v8461_v18  ;;  %v6848_v13 = vpop.f32.mrf.mxu2 }
 0xaa3   :  { %v6849_v59 = vadd.f32 %v6848_v13, %v6829_v2  ;;  %7316 = vmatpush.msra.mxu3 %v8496_v30 }
 0xaa4   :  { %7298 = vmatpush.msra.mxu2 %v8460_v34 }
 0xaa5   :  { %7317 = vmatpush.msra.mxu3 %v8493_v52 }
 0xaa6   :  { %7299 = vmatpush.msra.mxu2 %v8457_v60 }
 0xaa7   :  { %7318 = vmatpush.msra.mxu3 %v8492_v63 }
 0xaa8   :  { %7300 = vmatpush.msra.mxu2 %v8456_v20 }
 0xaa9   :  { %v6908_v0 = vpop.f32.mrf.mxu1  ;;  %7319 = vmatpush.msra.mxu3 %v8489_v42 }
 0xaaa   :  { %7301 = vmatpush.msra.mxu2 %v8453_v37 }
 0xaab   :  { %7320 = vmatpush.msra.mxu3 %v8488_v40 }
 0xaac   :  { %7302 = vmatpush.msra.mxu2 %v8452_v32 }
 0xaad   :  { %7321 = vmatpush.msra.mxu3 %v8485_v36 }
 0xaae   :  { %v6868_v39 = vpop.f32.mrf.mxu3 }
 0xaaf   :  { %v6869_v15 = vadd.f32 %v6868_v39, %v6849_v59  ;;  %7322 = vmatpush.msra.mxu3 %v8484_v62 }
 0xab1   :  { %v6889_v50 = vadd.f32 %v6888_v14, %v6869_v15 }
 0xab3   :  { %v6909_v12 = vadd.f32 %v6908_v0, %v6889_v50 }
 0xac4   :  { %v6968_v46 = vpop.f32.mrf.mxu0 }
 0xac5   :  { %v6969_v31 = vadd.f32 %v6968_v46, %v6466_v45 }
 0xac9   :  { %v6928_v9 = vpop.f32.mrf.mxu2 }
 0xaca   :  { %v6929_v27 = vadd.f32 %v6928_v9, %v6909_v12 }
 0xacb   :  { %v6988_v38 = vpop.f32.mrf.mxu1 }
 0xacc   :  { %v6989_v8 = vadd.f32 %v6988_v38, %v6969_v31 }
 0xad0   :  { %v6948_v24 = vpop.f32.mrf.mxu3 }
 0xad1   :  { %v6949_v16 = vadd.f32 %v6948_v24, %v6929_v27 }
 0xad3   :  { %v7113_v17 = vmax.f32 %v6949_v16, 0.0 }
 0xad5   :  { %7303 = vmatmul.f32.vlgmr.msra.gmra.mxu2 %v7113_v17 }
 0xae6   :  { %v7048_v1 = vpop.f32.mrf.mxu0 }
 0xaeb   :  { %v7008_v51 = vpop.f32.mrf.mxu2 }
 0xaec   :  { %v7009_v33 = vadd.f32 %v7008_v51, %v6989_v8 }
 0xaed   :  { %v7068_v49 = vpop.f32.mrf.mxu1 }
 0xaf2   :  { %v7028_v29 = vpop.f32.mrf.mxu3 }
 0xaf3   :  { %v7029_v61 = vadd.f32 %v7028_v29, %v7009_v33 }
 0xaf5   :  { %v7049_v54 = vadd.f32 %v7048_v1, %v7029_v61 }
 0xaf7   :  { %v7069_v18 = vadd.f32 %v7068_v49, %v7049_v54 }
 0xb07   :  { %v7264_v47 = vpop.f32.mrf.mxu0 }
 0xb08   :  { %v7265_v32 = vadd.f32 %v8811_v55, %v7264_v47 }
 0xb0d   :  { %v7088_v41 = vpop.f32.mrf.mxu2 }
 0xb0e   :  { %v7089_v34 = vadd.f32 %v7088_v41, %v7069_v18 }
 0xb0f   :  { %v7284_v37 = vpop.f32.mrf.mxu1 }
 0xb10   :  { %v7285_v48 = vadd.f32 %v7284_v37, %v7265_v32 }
 0xb13   :  { %v7108_v35 = vpop.f32.mrf.mxu3 }
 0xb14   :  { %v7109_v60 = vadd.f32 %v7108_v35, %v7089_v34 }
 0xb16   :  { %v7114_v20 = vmax.f32 %v7109_v60, 0.0 }
 0xb18   :  { %7323 = vmatmul.f32.vlgmr.msra.gmra.mxu3 %v7114_v20 }
 0xb58   :  { %v7304_v23 = vpop.f32.mrf.mxu2 }
 0xb59   :  { %v7305_v43 = vadd.f32 %v7304_v23, %v7285_v48 }
 0xb9b   :  { %v7324_v5 = vpop.f32.mrf.mxu3 }
 0xb9c   :  { %v7325_v13 = vadd.f32 %v7324_v5, %v7305_v43 }
 0xb9e   :  { %7327 = vst [vmem:[#allocation7] sm:$0xff] %v7325_v13 }
 0xb9f   :  { %7338 = dma.vmem_to_hbm [thread:$0]  %s7334_s11, 128, %s7336_s14, [#allocation4]  }
 0xba0   :  { %8920 = dma.done.wait [#allocation4], 128  }
 0xba1   :  { %8921 = vsyncadd [#allocation4], 4294967168 }
 0xba2   :  { %7343 = vsyncpa [#allocation3], 1 }
 0xba3   :  { %7344 = vsyncpa [#allocation6], 1 }
 0xba4   :  { %7345 = vsyncpa [#allocation4], 1 }

</bundles_post_ra>
